<compile_context>
chip_gen: v5e
topology: v5e:2x2
jax: 0.10.0
libtpu: 0.0.40
codegen_flags: <defaults>
</compile_context>

<pallas_src>
import functools

import jax
import jax.numpy as jnp
from jax.experimental import pallas as pl
from jax.experimental.pallas import tpu as pltpu


def _round_up(x: int, m: int) -> int:
    return ((x + m - 1) // m) * m


def _ffn_kernel(x_ref, w1_ref, b1_ref, w2_ref, b2_ref, o_ref):
    # x_ref: (tm, dim) tile of rows; weights/biases fully resident in VMEM.
    x = x_ref[...].astype(jnp.bfloat16)

    # in_proj: bf16 x bf16 -> f32 accumulate, bias add in f32.
    h = jnp.dot(x, w1_ref[...], preferred_element_type=jnp.float32)
    h = h + b1_ref[...]

    # tanh-approximate GELU: tanh runs on the EUP slot, so the VALU is no
    # longer the binding unit (exact erf was ~20 VALU ops/element).
    h = jax.nn.gelu(h, approximate=True)

    # dropout(p=0.0) is identity — nothing to do.

    # out_proj: bf16 x bf16 -> f32 accumulate, bias add in f32.
    out = jnp.dot(h.astype(jnp.bfloat16), w2_ref[...],
                  preferred_element_type=jnp.float32)
    out = out + b2_ref[...]
    o_ref[...] = out.astype(o_ref.dtype)


def prepare_ffn_params(w1, b1, w2, b2):
    """One-time parameter prep (hoisted out of the per-call hot path).

    Weights are stored bf16 for the MXU fast path; biases become f32 (1, n)
    rows added after the f32 accumulation.
    """
    return (
        w1.astype(jnp.bfloat16),
        b1.astype(jnp.float32).reshape(1, -1),
        w2.astype(jnp.bfloat16),
        b2.astype(jnp.float32).reshape(1, -1),
    )


@functools.partial(jax.jit, static_argnames=("block_rows",))
def feed_forward(x, w1_bf, b1_2d, w2_bf, b2_2d, *, block_rows=1024):
    """x: (..., dim). Params as returned by `prepare_ffn_params`."""
    dim = x.shape[-1]
    ffn_dim = w1_bf.shape[1]
    orig_shape = x.shape
    x2 = x.reshape(-1, dim)
    n_rows = x2.shape[0]

    # Row tile: multiple of 256 (full MXU rows on v6e/v7x; >=2x128 on v5e),
    # sized so the parallel grid axis has >= 2 steps when rows allow (feeds
    # both v7x TensorCores), capped at block_rows.  Partial / oversized last
    # blocks are masked by Pallas on writeback; rows are independent.
    block_rows = max(256, _round_up(block_rows, 256))
    tm = max(256, min(block_rows, _round_up(pl.cdiv(n_rows, 2), 256)))
    grid = (pl.cdiv(n_rows, tm),)

    xb = x2.dtype.itemsize
    # Actual per-call VMEM footprint (+25% and 4 MiB headroom for compiler
    # internal scratch) instead of a blanket limit — keeps slack on v7x.
    vmem_bytes = (
        2 * tm * dim * xb                        # x tile (double-buffered)
        + 2 * tm * dim * xb                      # out tile (double-buffered)
        + 2 * (dim * ffn_dim + ffn_dim * dim)    # resident bf16 weights
        + 4 * (ffn_dim + dim)                    # f32 biases
        + 2 * tm * ffn_dim * 4                   # f32 hidden + compute temporaries
    )
    vmem_limit = min(int(vmem_bytes * 1.25) + (4 << 20), 96 << 20)

    bytes_accessed = (
        n_rows * dim * xb                        # read x
        + n_rows * dim * xb                      # write out
        + (w1_bf.size + w2_bf.size) * 2          # bf16 weights (resident)
        + (b1_2d.size + b2_2d.size) * 4          # f32 biases
    )
    cost = pl.CostEstimate(
        flops=4 * n_rows * dim * ffn_dim,        # two matmuls
        transcendentals=n_rows * ffn_dim,        # tanh per hidden element
        bytes_accessed=bytes_accessed,
    )

    resident = pl.Buffered(1)  # constant index_map -> no double buffering
    out = pl.pallas_call(
        _ffn_kernel,
        out_shape=jax.ShapeDtypeStruct((n_rows, dim), x.dtype),
        grid_spec=pltpu.PrefetchScalarGridSpec(
            num_scalar_prefetch=0,
            grid=grid,
            in_specs=[
                pl.BlockSpec((tm, dim), lambda i: (i, 0)),               # x rows
                pl.BlockSpec((dim, ffn_dim), lambda i: (0, 0),
                             pipeline_mode=resident),                    # W1
                pl.BlockSpec((1, ffn_dim), lambda i: (0, 0),
                             pipeline_mode=resident),                    # b1
                pl.BlockSpec((ffn_dim, dim), lambda i: (0, 0),
                             pipeline_mode=resident),                    # W2
                pl.BlockSpec((1, dim), lambda i: (0, 0),
                             pipeline_mode=resident),                    # b2
            ],
            out_specs=pl.BlockSpec((tm, dim), lambda i: (i, 0)),
        ),
        compiler_params=pltpu.CompilerParams(
            dimension_semantics=("parallel",),
            vmem_limit_bytes=vmem_limit,
        ),
        cost_estimate=cost,
    )(x2, w1_bf, b1_2d, w2_bf, b2_2d)

    return out.reshape(orig_shape)


def _reference(x, w1, b1, w2, b2):
    # Exact-erf GELU, matching torch.nn.GELU() default semantics.
    h = x @ w1 + b1
    h = 0.5 * h * (1.0 + jax.lax.erf(h / jnp.sqrt(2.0)))
    return h @ w2 + b2


if __name__ == "__main__":
    # Module config (PyTorch defaults): dim=256, ffn_dim=1024, dropout=0.0
    dim, ffn_dim = 256, 1024
    batch, seq = 2, 8

    key = jax.random.PRNGKey(0)
    k_x, k_w1, k_b1, k_w2, k_b2 = jax.random.split(key, 5)

    # Deterministic synthetic parameters (uniform like nn.Linear's default init).
    lim1 = 1.0 / jnp.sqrt(dim)
    lim2 = 1.0 / jnp.sqrt(ffn_dim)
    w1 = jax.random.uniform(k_w1, (dim, ffn_dim), jnp.float32, -lim1, lim1)
    b1 = jax.random.uniform(k_b1, (ffn_dim,), jnp.float32, -lim1, lim1)
    w2 = jax.random.uniform(k_w2, (ffn_dim, dim), jnp.float32, -lim2, lim2)
    b2 = jax.random.uniform(k_b2, (dim,), jnp.float32, -lim2, lim2)

    x = jax.random.normal(k_x, (batch, seq, dim), jnp.float32)

    # One-time parameter prep (outside the jitted per-call hot path).
    params = prepare_ffn_params(w1, b1, w2, b2)
    params = jax.tree_util.tree_map(jax.block_until_ready, params)

    out = feed_forward(x, *params)
    out = jax.block_until_ready(out)

    # f32 / exact-erf reference; tolerance covers bf16 MXU operands plus the
    # tanh-approximate GELU (both contribute only a few 1e-3 at these sizes).
    ref = _reference(x.reshape(-1, dim), w1, b1, w2, b2).reshape(x.shape)
    assert out.shape == x.shape
    assert jnp.allclose(out, ref, atol=4e-2, rtol=4e-2), "mismatch vs reference"

    print("KERNEL_OK")
</pallas_src>

<mosaic_0001>
module attributes {stable_mosaic.version = 11 : i64} {
  func.func @_ffn_kernel(%arg0: i32, %arg1: memref<256x256xf32, #tpu.memory_space<vmem>>, %arg2: memref<256x1024xbf16, #tpu.memory_space<vmem>>, %arg3: memref<1x1024xf32, #tpu.memory_space<vmem>>, %arg4: memref<1024x256xbf16, #tpu.memory_space<vmem>>, %arg5: memref<1x256xf32, #tpu.memory_space<vmem>>, %arg6: memref<256x256xf32, #tpu.memory_space<vmem>>) attributes {dimension_semantics = [#tpu.dimension_semantics<parallel>], iteration_bounds = array<i64: 1>, scalar_prefetch = 0 : i64, scratch_operands = 0 : i64, tpu.core_type = #tpu.core_type<tc>, window_params = [{transform_indices = @transform_0, window_bounds = array<i64: 256, 256>}, {pipeline_mode = #tpu.pipeline_mode<synchronous>, transform_indices = @transform_1, window_bounds = array<i64: 256, 1024>}, {pipeline_mode = #tpu.pipeline_mode<synchronous>, transform_indices = @transform_2, window_bounds = array<i64: 1, 1024>}, {pipeline_mode = #tpu.pipeline_mode<synchronous>, transform_indices = @transform_3, window_bounds = array<i64: 1024, 256>}, {pipeline_mode = #tpu.pipeline_mode<synchronous>, transform_indices = @transform_4, window_bounds = array<i64: 1, 256>}, {transform_indices = @transform_5, window_bounds = array<i64: 256, 256>}]} {
    %c0 = arith.constant 0 : index
    %c0_0 = arith.constant 0 : index
    %0 = vector.load %arg1[%c0, %c0_0] : memref<256x256xf32, #tpu.memory_space<vmem>>, vector<256x256xf32>
    %1 = arith.truncf %0 : vector<256x256xf32> to vector<256x256xbf16>
    %c0_1 = arith.constant 0 : index
    %c0_2 = arith.constant 0 : index
    %2 = vector.load %arg2[%c0_1, %c0_2] : memref<256x1024xbf16, #tpu.memory_space<vmem>>, vector<256x1024xbf16>
    %cst = arith.constant dense<0.000000e+00> : vector<256x1024xf32>
    %3 = tpu.matmul %1, %2, %cst {dimension_numbers = #tpu.dot_dimension_numbers<[1], [0], [0], [1], [0, 0, 1, 1], [], []>} : vector<256x256xbf16>, vector<256x1024xbf16>, vector<256x1024xf32> -> vector<256x1024xf32>
    %c0_3 = arith.constant 0 : index
    %c0_4 = arith.constant 0 : index
    %4 = vector.load %arg3[%c0_3, %c0_4] : memref<1x1024xf32, #tpu.memory_space<vmem>>, vector<1x1024xf32>
    %5 = vector.broadcast %4 : vector<1x1024xf32> to vector<256x1024xf32>
    %6 = arith.addf %3, %5 : vector<256x1024xf32>
    %7 = arith.mulf %6, %6 : vector<256x1024xf32>
    %8 = arith.mulf %6, %7 : vector<256x1024xf32>
    %cst_5 = arith.constant 4.471500e-02 : f32
    %9 = vector.broadcast %cst_5 : f32 to vector<256x1024xf32>
    %10 = arith.mulf %9, %8 : vector<256x1024xf32>
    %11 = arith.addf %6, %10 : vector<256x1024xf32>
    %cst_6 = arith.constant 0.797884583 : f32
    %12 = vector.broadcast %cst_6 : f32 to vector<256x1024xf32>
    %13 = arith.mulf %12, %11 : vector<256x1024xf32>
    %14 = math.tanh %13 : vector<256x1024xf32>
    %cst_7 = arith.constant 1.000000e+00 : f32
    %15 = vector.broadcast %cst_7 : f32 to vector<256x1024xf32>
    %16 = arith.addf %15, %14 : vector<256x1024xf32>
    %cst_8 = arith.constant 5.000000e-01 : f32
    %17 = vector.broadcast %cst_8 : f32 to vector<256x1024xf32>
    %18 = arith.mulf %17, %16 : vector<256x1024xf32>
    %19 = arith.mulf %6, %18 : vector<256x1024xf32>
    %20 = arith.truncf %19 : vector<256x1024xf32> to vector<256x1024xbf16>
    %c0_9 = arith.constant 0 : index
    %c0_10 = arith.constant 0 : index
    %21 = vector.load %arg4[%c0_9, %c0_10] : memref<1024x256xbf16, #tpu.memory_space<vmem>>, vector<1024x256xbf16>
    %cst_11 = arith.constant dense<0.000000e+00> : vector<256x256xf32>
    %22 = tpu.matmul %20, %21, %cst_11 {dimension_numbers = #tpu.dot_dimension_numbers<[1], [0], [0], [1], [0, 0, 1, 1], [], []>} : vector<256x1024xbf16>, vector<1024x256xbf16>, vector<256x256xf32> -> vector<256x256xf32>
    %c0_12 = arith.constant 0 : index
    %c0_13 = arith.constant 0 : index
    %23 = vector.load %arg5[%c0_12, %c0_13] : memref<1x256xf32, #tpu.memory_space<vmem>>, vector<1x256xf32>
    %24 = vector.broadcast %23 : vector<1x256xf32> to vector<256x256xf32>
    %25 = arith.addf %22, %24 : vector<256x256xf32>
    %c0_14 = arith.constant 0 : index
    %c0_15 = arith.constant 0 : index
    %26 = vector.load %arg6[%c0_14, %c0_15] : memref<256x256xf32, #tpu.memory_space<vmem>>, vector<256x256xf32>
    tpu.vector_store %arg6[%c0_14, %c0_15], %25 {strides = array<i32>} : memref<256x256xf32, #tpu.memory_space<vmem>>, vector<256x256xf32>,
    return
  }
  func.func @transform_0(%arg0: i32) -> (i32, i32) {
    %c0_i32 = arith.constant 0 : i32
    %c0_i32_0 = arith.constant 0 : i32
    return %arg0, %c0_i32 : i32, i32
  }
  func.func @transform_1(%arg0: i32) -> (i32, i32) {
    %c0_i32 = arith.constant 0 : i32
    %c0_i32_0 = arith.constant 0 : i32
    %c0_i32_1 = arith.constant 0 : i32
    return %c0_i32, %c0_i32_0 : i32, i32
  }
  func.func @transform_2(%arg0: i32) -> (i32, i32) {
    %c0_i32 = arith.constant 0 : i32
    %c0_i32_0 = arith.constant 0 : i32
    %c0_i32_1 = arith.constant 0 : i32
    return %c0_i32, %c0_i32_0 : i32, i32
  }
  func.func @transform_3(%arg0: i32) -> (i32, i32) {
    %c0_i32 = arith.constant 0 : i32
    %c0_i32_0 = arith.constant 0 : i32
    %c0_i32_1 = arith.constant 0 : i32
    return %c0_i32, %c0_i32_0 : i32, i32
  }
  func.func @transform_4(%arg0: i32) -> (i32, i32) {
    %c0_i32 = arith.constant 0 : i32
    %c0_i32_0 = arith.constant 0 : i32
    %c0_i32_1 = arith.constant 0 : i32
    return %c0_i32, %c0_i32_0 : i32, i32
  }
  func.func @transform_5(%arg0: i32) -> (i32, i32) {
    %c0_i32 = arith.constant 0 : i32
    %c0_i32_0 = arith.constant 0 : i32
    return %arg0, %c0_i32 : i32, i32
  }
}

</mosaic_0001>

<bundles_post_ra>
// kernel: feed_forward.1
= control target key start
LH: loop header
LB: loop body
LE: loop exit
PB: predicated region body
PF: predicated region fallthrough
CT: control target
= control target key end

     0   :  { %10 = vsyncpa [#allocation3], 0  ;;  %s12262_s0 = inlined_call_operand.hbm [shape: f32[16,256], index: 0, kind: input, shape index: {}]   ;;  %s12263_s1 = inlined_call_operand.hbm [shape: bf16[256,1024], index: 1, kind: input, shape index: {}]   ;;  %s12264_s2 = inlined_call_operand.hbm [shape: f32[1,1024], index: 2, kind: input, shape index: {}]   ;;  %s12265_s3 = inlined_call_operand.hbm [shape: bf16[1024,256], index: 3, kind: input, shape index: {}]   ;;  %s12266_s4 = inlined_call_operand.vmem [shape: f32[1,256], index: 4, kind: input, shape index: {}]   ;;  %s12267_s5 = inlined_call_operand.hbm [shape: f32[16,256], index: 5, kind: output, shape index: {}]  }
   0x1   :  { %11 = vsyncpa [#allocation6], 0 }
   0x2   :  { %12 = vsyncpa [#allocation9], 0 }
   0x3   :  { %13 = vsyncpa [#allocation4], 0  ;;  %s31_s20 = sshll.u32 %s12263_s1, 4  ;;  %s32_s20 = int_to_ptr.hbm [resolvable:$true] %s31_s20 }
   0x4   :  { %17 = vsyncadd [#allocation3], 7680  ;;  %s9038_s21 = smov [#allocation5]   ;;  %s18_s25 = sshll.u32 %s12262_s0, 4  ;;  %s19_s25 = int_to_ptr.hbm [resolvable:$true] %s18_s25 }
   0x5   :  { %s33_s22 = sshll.u32 %s9038_s21, 4  ;;  %s9039_s26 = smov 512   ;;  %s34_s22 = int_to_ptr.vmem [resolvable:$true] %s33_s22 }
   0x6   :  { %s9040_s27 = smov 32   ;;  %s9041_s28 = smov [#allocation2]  }
   0x7   :  { %39 = dma.hbm_to_vmem [thread:$0]  %s32_s20, 16384, %s34_s22, [#allocation6], %s9039_s26, %s9039_s26, %s9040_s27  }
   0x8   :  { %s20_s29 = sshll.u32 %s9041_s28, 4  ;;  %s9042_s30 = smov 256   ;;  %s21_s29 = int_to_ptr.vmem [resolvable:$true] %s20_s29 }
   0x9   :  { %s9043_s6 = smov 16   ;;  %s45_s8 = sshll.u32 %s12264_s2, 4  ;;  %s46_s8 = int_to_ptr.hbm [resolvable:$true] %s45_s8 }
   0xa   :  { %26 = dma.hbm_to_vmem [thread:$0]  %s19_s25, 512, %s21_s29, [#allocation3], %s9042_s30, %s9042_s30, %s9043_s6  }
   0xb   :  { %s9044_s9 = smov [#allocation7]   ;;  %s55_s12 = sshll.u32 %s12265_s3, 4  ;;  %s56_s12 = int_to_ptr.hbm [resolvable:$true] %s55_s12 }
   0xc   :  { %s47_s0 = sshll.u32 %s9044_s9, 4  ;;  %s9045_s13 = smov [#allocation8]   ;;  %s48_s0 = int_to_ptr.vmem [resolvable:$true] %s47_s0 }
   0xd   :  { %50 = dma.hbm_to_vmem [thread:$0]  %s46_s8, 128, %s48_s0, [#allocation6]  }
   0xe   :  { %s57_s14 = sshll.u32 %s9045_s13, 4  ;;  %s9046_s15 = smov 128   ;;  %s58_s14 = int_to_ptr.vmem [resolvable:$true] %s57_s14 }
   0xf   :  { %s9047_s16 = smov 8  }
  0x10   :  { %63 = dma.hbm_to_vmem [thread:$0]  %s56_s12, 16384, %s58_s14, [#allocation9], %s9046_s15, %s9046_s15, %s9047_s16  }
  0x11   :  { %9030 = dma.done.wait [#allocation3], 8192  }
  0x12   :  { %9031 = vsyncadd [#allocation3], 4294959104 }
  0x13   :  { %9032 = dma.done.wait [#allocation6], 16512  }
  0x14   :  { %9033 = vsyncadd [#allocation6], 4294950784 }
  0x15   :  { %9034 = dma.done.wait [#allocation9], 16384  }
  0x16   :  { %9035 = vsyncadd [#allocation9], 4294950912  ;;  %v7329_v0 = vld [vmem:[#allocation5 + $0x1c0] sm:$0xf]  ;;  %v8183_v5 = vld [vmem:[#allocation5 + $0x1c4] sm:$0xf] }
  0x17   :  { %v8187_v1 = vld [vmem:[#allocation5 + $0x1dc] sm:$0xf0]  ;;  %v7331_v6 = vld [vmem:[#allocation5 + $0x1e0] sm:$0xf0] }
  0x18   :  { %v7585_v2 = vld [vmem:[#allocation5 + $0x3c0] sm:$0xf]  ;;  %v7330_v3 = vor.u32 %v8187_v1, %v7329_v0  ;;  %v7334_v8 = vor.u32 %v8183_v5, %v7331_v6  ;;  %v8247_v9 = vld [vmem:[#allocation5 + $0x3c4] sm:$0xf] }
  0x19   :  { %v8251_v4 = vld [vmem:[#allocation5 + $0x3dc] sm:$0xf0]  ;;  %v7587_v10 = vld [vmem:[#allocation5 + $0x3e0] sm:$0xf0] }
  0x1a   :  { %v7586_v7 = vor.u32 %v8251_v4, %v7585_v2  ;;  %v7297_v11 = vld [vmem:[#allocation5 + $0x180] sm:$0xf]  ;;  %964 = vmatpush.bf16.msra.mxu0 %v7330_v3  ;;  %v7590_v12 = vor.u32 %v8247_v9, %v7587_v10  ;;  %1142 = vmatpush.bf16.msra.mxu2 %v7334_v8  ;;  %v8175_v18 = vld [vmem:[#allocation5 + $0x184] sm:$0xf] }
  0x1b   :  { %v8179_v13 = vld [vmem:[#allocation5 + $0x19c] sm:$0xf0]  ;;  %v7299_v19 = vld [vmem:[#allocation5 + $0x1a0] sm:$0xf0] }
  0x1c   :  { %v7553_v14 = vld [vmem:[#allocation5 + $0x380] sm:$0xf]  ;;  %1053 = vmatpush.bf16.msra.mxu1 %v7586_v7  ;;  %v7298_v16 = vor.u32 %v8179_v13, %v7297_v11  ;;  %v8239_v20 = vld [vmem:[#allocation5 + $0x384] sm:$0xf]  ;;  %1231 = vmatpush.bf16.msra.mxu3 %v7590_v12  ;;  %v7302_v21 = vor.u32 %v8175_v18, %v7299_v19 }
  0x1d   :  { %v8243_v15 = vld [vmem:[#allocation5 + $0x39c] sm:$0xf0]  ;;  %v7555_v22 = vld [vmem:[#allocation5 + $0x3a0] sm:$0xf0] }
  0x1e   :  { %v7554_v17 = vor.u32 %v8243_v15, %v7553_v14  ;;  %v7265_v23 = vld [vmem:[#allocation5 + $0x140] sm:$0xf]  ;;  %v7558_v25 = vor.u32 %v8239_v20, %v7555_v22  ;;  %v8167_v28 = vld [vmem:[#allocation5 + $0x144] sm:$0xf]  ;;  %965 = vmatpush.bf16.msra.mxu0 %v7298_v16  ;;  %1143 = vmatpush.bf16.msra.mxu2 %v7302_v21 }
  0x1f   :  { %v8171_v24 = vld [vmem:[#allocation5 + $0x15c] sm:$0xf0]  ;;  %v7267_v30 = vld [vmem:[#allocation5 + $0x160] sm:$0xf0] }
  0x20   :  { %v7521_v26 = vld [vmem:[#allocation5 + $0x340] sm:$0xf]  ;;  %v7266_v29 = vor.u32 %v8171_v24, %v7265_v23  ;;  %v8231_v31 = vld [vmem:[#allocation5 + $0x344] sm:$0xf]  ;;  %1054 = vmatpush.bf16.msra.mxu1 %v7554_v17  ;;  %v7270_v34 = vor.u32 %v8167_v28, %v7267_v30  ;;  %1232 = vmatpush.bf16.msra.mxu3 %v7558_v25  ;;  %v7339_v30 = vld [vmem:[#allocation5 + $0x1e8] sm:$0xf0] }
  0x21   :  { %v8235_v27 = vld [vmem:[#allocation5 + $0x35c] sm:$0xf0]  ;;  %v7523_v32 = vld [vmem:[#allocation5 + $0x360] sm:$0xf0] }
  0x22   :  { %v7522_v33 = vor.u32 %v8235_v27, %v7521_v26  ;;  %v7233_v35 = vld [vmem:[#allocation5 + $0x100] sm:$0xf]  ;;  %v7526_v38 = vor.u32 %v8231_v31, %v7523_v32  ;;  %v8159_v40 = vld [vmem:[#allocation5 + $0x104] sm:$0xf]  ;;  %966 = vmatpush.bf16.msra.mxu0 %v7266_v29  ;;  %1144 = vmatpush.bf16.msra.mxu2 %v7270_v34  ;;  %v8184_v29 = vld [vmem:[#allocation5 + $0x1cc] sm:$0xf] }
  0x23   :  { %v8163_v36 = vld [vmem:[#allocation5 + $0x11c] sm:$0xf0]  ;;  %v7235_v41 = vld [vmem:[#allocation5 + $0x120] sm:$0xf0]  ;;  %v84_v32 = vld [vmem:[#allocation2 + $0x10] sm:$0xff] }
  0x24   :  { %v7489_v37 = vld [vmem:[#allocation5 + $0x300] sm:$0xf]  ;;  %v8223_v42 = vld [vmem:[#allocation5 + $0x304] sm:$0xf]  ;;  %v7234_v44 = vor.u32 %v8163_v36, %v7233_v35  ;;  %1055 = vmatpush.bf16.msra.mxu1 %v7522_v33  ;;  %v7238_v46 = vor.u32 %v8159_v40, %v7235_v41  ;;  %1233 = vmatpush.bf16.msra.mxu3 %v7526_v38  ;;  %v8248_v33 = vld [vmem:[#allocation5 + $0x3cc] sm:$0xf]  ;;  %v7342_v40 = vor.u32 %v8184_v29, %v7339_v30 }
  0x25   :  { %v8227_v39 = vld [vmem:[#allocation5 + $0x31c] sm:$0xf0]  ;;  %v7491_v43 = vld [vmem:[#allocation5 + $0x320] sm:$0xf0]  ;;  %v7595_v34 = vld [vmem:[#allocation5 + $0x3e8] sm:$0xf0] }
  0x26   :  { %v7490_v45 = vor.u32 %v8227_v39, %v7489_v37  ;;  %v7201_v47 = vld [vmem:[#allocation5 + $0xc0] sm:$0xf]  ;;  %v7494_v50 = vor.u32 %v8223_v42, %v7491_v43  ;;  %v8151_v52 = vld [vmem:[#allocation5 + $0xc4] sm:$0xf]  ;;  %967 = vmatpush.bf16.msra.mxu0 %v7234_v44  ;;  %1145 = vmatpush.bf16.msra.mxu2 %v7238_v46  ;;  %v83_v37 = vld [vmem:[#allocation2 + $0x8] sm:$0xff]  ;;  %v7598_v44 = vor.u32 %v8248_v33, %v7595_v34 }
  0x27   :  { %v8155_v48 = vld [vmem:[#allocation5 + $0xdc] sm:$0xf0]  ;;  %v7203_v53 = vld [vmem:[#allocation5 + $0xe0] sm:$0xf0]  ;;  %v85_v38 = vld [vmem:[#allocation2 + $0x18] sm:$0xff] }
  0x28   :  { %v7457_v49 = vld [vmem:[#allocation5 + $0x2c0] sm:$0xf]  ;;  %v8215_v54 = vld [vmem:[#allocation5 + $0x2c4] sm:$0xf]  ;;  %v7202_v56 = vor.u32 %v8155_v48, %v7201_v47  ;;  %1056 = vmatpush.bf16.msra.mxu1 %v7490_v45  ;;  %v7206_v58 = vor.u32 %v8151_v52, %v7203_v53  ;;  %1234 = vmatpush.bf16.msra.mxu3 %v7494_v50  ;;  %v7337_v41 = vld [vmem:[#allocation5 + $0x1c8] sm:$0xf]  ;;  %v9096_v47 = vpack.c.bf16 %v85_v38, %v83_v37 }
  0x29   :  { %v8219_v51 = vld [vmem:[#allocation5 + $0x2dc] sm:$0xf0]  ;;  %v7459_v55 = vld [vmem:[#allocation5 + $0x2e0] sm:$0xf0]  ;;  %v8188_v42 = vld [vmem:[#allocation5 + $0x1e4] sm:$0xf0] }
  0x2a   :  { %v7458_v57 = vor.u32 %v8219_v51, %v7457_v49  ;;  %v7169_v59 = vld [vmem:[#allocation5 + $0x80] sm:$0xf]  ;;  %v7462_v62 = vor.u32 %v8215_v54, %v7459_v55  ;;  %v8143_v0 = vld [vmem:[#allocation5 + $0x84] sm:$0xf]  ;;  %968 = vmatpush.bf16.msra.mxu0 %v7202_v56  ;;  %1146 = vmatpush.bf16.msra.mxu2 %v7206_v58  ;;  %v7593_v45 = vld [vmem:[#allocation5 + $0x3c8] sm:$0xf]  ;;  %v7338_v48 = vor.u32 %v8188_v42, %v7337_v41 }
  0x2b   :  { %v8147_v60 = vld [vmem:[#allocation5 + $0x9c] sm:$0xf0]  ;;  %v7171_v1 = vld [vmem:[#allocation5 + $0xa0] sm:$0xf0]  ;;  %v8252_v46 = vld [vmem:[#allocation5 + $0x3e4] sm:$0xf0] }
  0x2c   :  { %v7425_v61 = vld [vmem:[#allocation5 + $0x280] sm:$0xf]  ;;  %v8207_v2 = vld [vmem:[#allocation5 + $0x284] sm:$0xf]  ;;  %v7170_v4 = vor.u32 %v8147_v60, %v7169_v59  ;;  %1057 = vmatpush.bf16.msra.mxu1 %v7458_v57  ;;  %v7174_v6 = vor.u32 %v8143_v0, %v7171_v1  ;;  %1235 = vmatpush.bf16.msra.mxu3 %v7462_v62  ;;  %v7594_v49 = vor.u32 %v8252_v46, %v7593_v45  ;;  %v8176_v50 = vld [vmem:[#allocation5 + $0x18c] sm:$0xf] }
  0x2d   :  { %v8211_v63 = vld [vmem:[#allocation5 + $0x29c] sm:$0xf0]  ;;  %v7427_v3 = vld [vmem:[#allocation5 + $0x2a0] sm:$0xf0]  ;;  %v7307_v51 = vld [vmem:[#allocation5 + $0x1a8] sm:$0xf0] }
  0x2e   :  { %v7426_v5 = vor.u32 %v8211_v63, %v7425_v61  ;;  %v7137_v7 = vld [vmem:[#allocation5 + $0x40] sm:$0xf]  ;;  %v7430_v10 = vor.u32 %v8207_v2, %v7427_v3  ;;  %v8135_v12 = vld [vmem:[#allocation5 + $0x44] sm:$0xf]  ;;  %969 = vmatpush.bf16.msra.mxu0 %v7170_v4  ;;  %1147 = vmatpush.bf16.msra.mxu2 %v7174_v6  ;;  %v7305_v52 = vld [vmem:[#allocation5 + $0x188] sm:$0xf]  ;;  %v7310_v53 = vor.u32 %v8176_v50, %v7307_v51 }
  0x2f   :  { %v8139_v8 = vld [vmem:[#allocation5 + $0x5c] sm:$0xf0]  ;;  %v7139_v13 = vld [vmem:[#allocation5 + $0x60] sm:$0xf0]  ;;  %v8180_v54 = vld [vmem:[#allocation5 + $0x1a4] sm:$0xf0] }
  0x30   :  { %v7393_v9 = vld [vmem:[#allocation5 + $0x240] sm:$0xf]  ;;  %v8199_v14 = vld [vmem:[#allocation5 + $0x244] sm:$0xf]  ;;  %v7138_v16 = vor.u32 %v8139_v8, %v7137_v7  ;;  %1058 = vmatpush.bf16.msra.mxu1 %v7426_v5  ;;  %v7142_v20 = vor.u32 %v8135_v12, %v7139_v13  ;;  %1236 = vmatpush.bf16.msra.mxu3 %v7430_v10  ;;  %v8240_v55 = vld [vmem:[#allocation5 + $0x38c] sm:$0xf]  ;;  %v7306_v57 = vor.u32 %v8180_v54, %v7305_v52 }
  0x31   :  { %v8203_v11 = vld [vmem:[#allocation5 + $0x25c] sm:$0xf0]  ;;  %v7395_v15 = vld [vmem:[#allocation5 + $0x260] sm:$0xf0]  ;;  %v7563_v56 = vld [vmem:[#allocation5 + $0x3a8] sm:$0xf0] }
  0x32   :  { %v7105_v17 = vld [vmem:[#allocation5] sm:$0xf]  ;;  %v7394_v19 = vor.u32 %v8203_v11, %v7393_v9  ;;  %v8127_v23 = vld [vmem:[#allocation5 + $0x4] sm:$0xf]  ;;  %v7398_v24 = vor.u32 %v8199_v14, %v7395_v15  ;;  %970 = vmatpush.bf16.msra.mxu0 %v7138_v16  ;;  %1148 = vmatpush.bf16.msra.mxu2 %v7142_v20  ;;  %v7566_v58 = vor.u32 %v8240_v55, %v7563_v56  ;;  %v7561_v59 = vld [vmem:[#allocation5 + $0x388] sm:$0xf] }
  0x33   :  { %v8131_v18 = vld [vmem:[#allocation5 + $0x1c] sm:$0xf0]  ;;  %v7107_v25 = vld [vmem:[#allocation5 + $0x20] sm:$0xf0]  ;;  %v8244_v60 = vld [vmem:[#allocation5 + $0x3a4] sm:$0xf0] }
  0x34   :  { %v7361_v21 = vld [vmem:[#allocation5 + $0x200] sm:$0xf]  ;;  %v8191_v26 = vld [vmem:[#allocation5 + $0x204] sm:$0xf]  ;;  %v7106_v31 = vor.u32 %v8131_v18, %v7105_v17  ;;  %1059 = vmatpush.bf16.msra.mxu1 %v7394_v19  ;;  %v7110_v36 = vor.u32 %v8127_v23, %v7107_v25  ;;  %1237 = vmatpush.bf16.msra.mxu3 %v7398_v24  ;;  %v7562_v61 = vor.u32 %v8244_v60, %v7561_v59  ;;  %v88_v63 = vld [vmem:[#allocation2 + $0x30] sm:$0xff] }
  0x35   :  { %v8195_v22 = vld [vmem:[#allocation5 + $0x21c] sm:$0xf0]  ;;  %v7363_v27 = vld [vmem:[#allocation5 + $0x220] sm:$0xf0]  ;;  %v87_v0 = vld [vmem:[#allocation2 + $0x28] sm:$0xff] }
  0x36   :  { %v82_v28 = vld [vmem:[#allocation2] sm:$0xff]  ;;  %v7362_v35 = vor.u32 %v8195_v22, %v7361_v21  ;;  %v7366_v39 = vor.u32 %v8191_v26, %v7363_v27  ;;  %971 = vmatpush.bf16.msra.mxu0 %v7106_v31  ;;  %1149 = vmatpush.bf16.msra.mxu2 %v7110_v36  ;;  %v89_v1 = vld [vmem:[#allocation2 + $0x38] sm:$0xff]  ;;  %v92_v5 = vld [vmem:[#allocation2 + $0x50] sm:$0xff] }
  0x37   :  { %v9094_v43 = vpack.c.bf16 %v84_v32, %v82_v28  ;;  %v86_v62 = vld [vmem:[#allocation2 + $0x20] sm:$0xff]  ;;  %v9104_v3 = vpack.c.bf16 %v89_v1, %v87_v0  ;;  %v91_v6 = vld [vmem:[#allocation2 + $0x48] sm:$0xff]  ;;  %v93_v7 = vld [vmem:[#allocation2 + $0x58] sm:$0xff] }
  0x38   :  { %1060 = vmatpush.bf16.msra.mxu1 %v7362_v35  ;;  %1238 = vmatpush.bf16.msra.mxu3 %v7366_v39  ;;  %v9102_v2 = vpack.c.bf16 %v88_v63, %v86_v62  ;;  %v90_v4 = vld [vmem:[#allocation2 + $0x40] sm:$0xff]  ;;  %v9112_v9 = vpack.c.bf16 %v93_v7, %v91_v6  ;;  %v8168_v10 = vld [vmem:[#allocation5 + $0x14c] sm:$0xf]  ;;  %v7273_v12 = vld [vmem:[#allocation5 + $0x148] sm:$0xf] }
  0x39   :  { %972 = vmatmul.bf16.vlgmr.msra.gmra.mxu0 %v9094_v43  ;;  %1150 = vmatmul.bf16.vlgmr.msra.gmra.mxu2 %v9094_v43  ;;  %v9110_v8 = vpack.c.bf16 %v92_v5, %v90_v4  ;;  %v7275_v11 = vld [vmem:[#allocation5 + $0x168] sm:$0xf0]  ;;  %v8172_v14 = vld [vmem:[#allocation5 + $0x164] sm:$0xf0]  ;;  %v94_v22 = vld [vmem:[#allocation2 + $0x60] sm:$0xff] }
  0x3a   :  { %1498 = vmatpush.bf16.msrb.mxu2 %v7342_v40  ;;  %1320 = vmatpush.bf16.msrb.mxu0 %v7338_v48  ;;  %v7278_v13 = vor.u32 %v8168_v10, %v7275_v11  ;;  %v8232_v15 = vld [vmem:[#allocation5 + $0x34c] sm:$0xf]  ;;  %v7274_v17 = vor.u32 %v8172_v14, %v7273_v12  ;;  %v7529_v19 = vld [vmem:[#allocation5 + $0x348] sm:$0xf]  ;;  %v96_v23 = vld [vmem:[#allocation2 + $0x70] sm:$0xff] }
  0x3b   :  { %1061 = vmatmul.bf16.vlgmr.msra.gmra.mxu1 %v9096_v47  ;;  %1239 = vmatmul.bf16.vlgmr.msra.gmra.mxu3 %v9096_v47  ;;  %v7531_v16 = vld [vmem:[#allocation5 + $0x368] sm:$0xf0]  ;;  %v8236_v20 = vld [vmem:[#allocation5 + $0x364] sm:$0xf0]  ;;  %v97_v25 = vld [vmem:[#allocation2 + $0x78] sm:$0xff]  ;;  %v9118_v26 = vpack.c.bf16 %v96_v23, %v94_v22 }
  0x3c   :  { %1587 = vmatpush.bf16.msrb.mxu3 %v7598_v44  ;;  %1409 = vmatpush.bf16.msrb.mxu1 %v7594_v49  ;;  %v7534_v18 = vor.u32 %v8232_v15, %v7531_v16  ;;  %v7530_v21 = vor.u32 %v8236_v20, %v7529_v19  ;;  %v95_v24 = vld [vmem:[#allocation2 + $0x68] sm:$0xff]  ;;  %v98_v28 = vld [vmem:[#allocation2 + $0x80] sm:$0xff]  ;;  %v100_v29 = vld [vmem:[#allocation2 + $0x90] sm:$0xff] }
  0x3d   :  { %v9120_v27 = vpack.c.bf16 %v97_v25, %v95_v24  ;;  %v99_v30 = vld [vmem:[#allocation2 + $0x88] sm:$0xff]  ;;  %v101_v31 = vld [vmem:[#allocation2 + $0x98] sm:$0xff]  ;;  %v9126_v32 = vpack.c.bf16 %v100_v29, %v98_v28  ;;  %v102_v48 = vld [vmem:[#allocation2 + $0xa0] sm:$0xff] }
  0x3e   :  { %1499 = vmatpush.bf16.msrb.mxu2 %v7310_v53  ;;  %1321 = vmatpush.bf16.msrb.mxu0 %v7306_v57  ;;  %v9128_v33 = vpack.c.bf16 %v101_v31, %v99_v30  ;;  %v8160_v34 = vld [vmem:[#allocation5 + $0x10c] sm:$0xf]  ;;  %v7241_v36 = vld [vmem:[#allocation5 + $0x108] sm:$0xf]  ;;  %v104_v49 = vld [vmem:[#allocation2 + $0xb0] sm:$0xff] }
  0x3f   :  { %v7243_v35 = vld [vmem:[#allocation5 + $0x128] sm:$0xf0]  ;;  %v8164_v38 = vld [vmem:[#allocation5 + $0x124] sm:$0xf0]  ;;  %v105_v51 = vld [vmem:[#allocation2 + $0xb8] sm:$0xff]  ;;  %v9134_v52 = vpack.c.bf16 %v104_v49, %v102_v48 }
  0x40   :  { %1588 = vmatpush.bf16.msrb.mxu3 %v7566_v58  ;;  %1410 = vmatpush.bf16.msrb.mxu1 %v7562_v61  ;;  %v7246_v37 = vor.u32 %v8160_v34, %v7243_v35  ;;  %v8224_v39 = vld [vmem:[#allocation5 + $0x30c] sm:$0xf]  ;;  %v7242_v41 = vor.u32 %v8164_v38, %v7241_v36  ;;  %v7497_v44 = vld [vmem:[#allocation5 + $0x308] sm:$0xf]  ;;  %v106_v54 = vld [vmem:[#allocation2 + $0xc0] sm:$0xff] }
  0x41   :  { %v7499_v40 = vld [vmem:[#allocation5 + $0x328] sm:$0xf0]  ;;  %v8228_v45 = vld [vmem:[#allocation5 + $0x324] sm:$0xf0]  ;;  %v108_v55 = vld [vmem:[#allocation2 + $0xd0] sm:$0xff] }
  0x42   :  { %1500 = vmatpush.bf16.msrb.mxu2 %v7278_v13  ;;  %1322 = vmatpush.bf16.msrb.mxu0 %v7274_v17  ;;  %v7502_v42 = vor.u32 %v8224_v39, %v7499_v40  ;;  %v7498_v46 = vor.u32 %v8228_v45, %v7497_v44  ;;  %v103_v50 = vld [vmem:[#allocation2 + $0xa8] sm:$0xff]  ;;  %v109_v57 = vld [vmem:[#allocation2 + $0xd8] sm:$0xff]  ;;  %v9142_v58 = vpack.c.bf16 %v108_v55, %v106_v54  ;;  %v110_v60 = vld [vmem:[#allocation2 + $0xe0] sm:$0xff] }
  0x43   :  { %v9136_v53 = vpack.c.bf16 %v105_v51, %v103_v50  ;;  %v107_v56 = vld [vmem:[#allocation2 + $0xc8] sm:$0xff]  ;;  %v112_v61 = vld [vmem:[#allocation2 + $0xf0] sm:$0xff]  ;;  %v113_v63 = vld [vmem:[#allocation2 + $0xf8] sm:$0xff] }
  0x44   :  { %1589 = vmatpush.bf16.msrb.mxu3 %v7534_v18  ;;  %1411 = vmatpush.bf16.msrb.mxu1 %v7530_v21  ;;  %v9144_v59 = vpack.c.bf16 %v109_v57, %v107_v56  ;;  %v111_v62 = vld [vmem:[#allocation2 + $0xe8] sm:$0xff]  ;;  %v9150_v0 = vpack.c.bf16 %v112_v61, %v110_v60  ;;  %v306_v4 = vld [vmem:[#allocation7] sm:$0xff]  ;;  %v116_v15 = vld [vmem:[#allocation2 + $0x110] sm:$0xff] }
  0x45   :  { %v9152_v1 = vpack.c.bf16 %v113_v63, %v111_v62  ;;  %v8152_v5 = vld [vmem:[#allocation5 + $0xcc] sm:$0xf]  ;;  %v7209_v7 = vld [vmem:[#allocation5 + $0xc8] sm:$0xf]  ;;  %v114_v14 = vld [vmem:[#allocation2 + $0x100] sm:$0xff]  ;;  %v9158_v18 = vperm.slane %v306_v4, 0 }
  0x46   :  { %1501 = vmatpush.bf16.msrb.mxu2 %v7246_v37  ;;  %1323 = vmatpush.bf16.msrb.mxu0 %v7242_v41  ;;  %v7211_v6 = vld [vmem:[#allocation5 + $0xe8] sm:$0xf0]  ;;  %v8156_v11 = vld [vmem:[#allocation5 + $0xe4] sm:$0xf0]  ;;  %v117_v20 = vld [vmem:[#allocation2 + $0x118] sm:$0xff]  ;;  %v9160_v21 = vpack.c.bf16 %v116_v15, %v114_v14  ;;  %v9170_v34 = vperm.slane %v306_v4, 1 }
  0x47   :  { %v7214_v10 = vor.u32 %v8152_v5, %v7211_v6  ;;  %v8216_v12 = vld [vmem:[#allocation5 + $0x2cc] sm:$0xf]  ;;  %v7210_v16 = vor.u32 %v8156_v11, %v7209_v7  ;;  %v7465_v28 = vld [vmem:[#allocation5 + $0x2c8] sm:$0xf]  ;;  %v118_v50 = vld [vmem:[#allocation2 + $0x120] sm:$0xff] }
  0x48   :  { %1590 = vmatpush.bf16.msrb.mxu3 %v7502_v42  ;;  %1412 = vmatpush.bf16.msrb.mxu1 %v7498_v46  ;;  %v7467_v13 = vld [vmem:[#allocation5 + $0x2e8] sm:$0xf0]  ;;  %v8220_v29 = vld [vmem:[#allocation5 + $0x2e4] sm:$0xf0]  ;;  %v120_v51 = vld [vmem:[#allocation2 + $0x130] sm:$0xff] }
  0x49   :  { %977 = vmatmul.bf16.gmra.mxu0 %v9102_v2  ;;  %1155 = vmatmul.bf16.gmra.mxu2 %v9102_v2  ;;  %v7470_v17 = vor.u32 %v8216_v12, %v7467_v13  ;;  %v115_v19 = vld [vmem:[#allocation2 + $0x108] sm:$0xff]  ;;  %v7466_v30 = vor.u32 %v8220_v29, %v7465_v28  ;;  %v121_v57 = vld [vmem:[#allocation2 + $0x138] sm:$0xff]  ;;  %v9189_v63 = vpack.c.bf16 %v120_v51, %v118_v50 }
  0x4a   :  { %1502 = vmatpush.bf16.msrb.mxu2 %v7214_v10  ;;  %1324 = vmatpush.bf16.msrb.mxu0 %v7210_v16  ;;  %v9162_v23 = vpack.c.bf16 %v117_v20, %v115_v19  ;;  %v119_v56 = vld [vmem:[#allocation2 + $0x128] sm:$0xff] }
  0x4b   :  { %1066 = vmatmul.bf16.gmra.mxu1 %v9104_v3  ;;  %1244 = vmatmul.bf16.gmra.mxu3 %v9104_v3  ;;  %v8144_v4 = vld [vmem:[#allocation5 + $0x8c] sm:$0xf]  ;;  %v7177_v6 = vld [vmem:[#allocation5 + $0x88] sm:$0xf]  ;;  %v9192_v13 = vpack.c.bf16 %v121_v57, %v119_v56 }
  0x4c   :  { %1591 = vmatpush.bf16.msrb.mxu3 %v7470_v17  ;;  %1413 = vmatpush.bf16.msrb.mxu1 %v7466_v30  ;;  %v7179_v5 = vld [vmem:[#allocation5 + $0xa8] sm:$0xf0]  ;;  %v8148_v15 = vld [vmem:[#allocation5 + $0xa4] sm:$0xf0] }
  0x4d   :  { %v7182_v14 = vor.u32 %v8144_v4, %v7179_v5  ;;  %v8208_v16 = vld [vmem:[#allocation5 + $0x28c] sm:$0xf] }
  0x4f   :  { %1503 = vmatpush.bf16.msrb.mxu2 %v7182_v14 }
  0x59   :  { %982 = vmatmul.bf16.gmra.mxu0 %v9110_v8  ;;  %1160 = vmatmul.bf16.gmra.mxu2 %v9110_v8 }
  0x5b   :  { %1071 = vmatmul.bf16.gmra.mxu1 %v9112_v9  ;;  %1249 = vmatmul.bf16.gmra.mxu3 %v9112_v9 }
  0x69   :  { %987 = vmatmul.bf16.gmra.mxu0 %v9118_v26  ;;  %1165 = vmatmul.bf16.gmra.mxu2 %v9118_v26 }
  0x6b   :  { %1076 = vmatmul.bf16.gmra.mxu1 %v9120_v27  ;;  %1254 = vmatmul.bf16.gmra.mxu3 %v9120_v27 }
  0x79   :  { %992 = vmatmul.bf16.gmra.mxu0 %v9126_v32  ;;  %1170 = vmatmul.bf16.gmra.mxu2 %v9126_v32 }
  0x7b   :  { %1081 = vmatmul.bf16.gmra.mxu1 %v9128_v33  ;;  %1259 = vmatmul.bf16.gmra.mxu3 %v9128_v33 }
  0x89   :  { %997 = vmatmul.bf16.gmra.mxu0 %v9134_v52  ;;  %1175 = vmatmul.bf16.gmra.mxu2 %v9134_v52 }
  0x8b   :  { %1086 = vmatmul.bf16.gmra.mxu1 %v9136_v53  ;;  %1264 = vmatmul.bf16.gmra.mxu3 %v9136_v53 }
  0x99   :  { %1002 = vmatmul.bf16.gmra.mxu0 %v9142_v58  ;;  %1180 = vmatmul.bf16.gmra.mxu2 %v9142_v58 }
  0x9b   :  { %1091 = vmatmul.bf16.gmra.mxu1 %v9144_v59  ;;  %1269 = vmatmul.bf16.gmra.mxu3 %v9144_v59 }
  0xa9   :  { %1007 = vmatmul.bf16.gmra.mxu0 %v9150_v0  ;;  %1185 = vmatmul.bf16.gmra.mxu2 %v9150_v0 }
  0xab   :  { %1096 = vmatmul.bf16.gmra.mxu1 %v9152_v1  ;;  %1274 = vmatmul.bf16.gmra.mxu3 %v9152_v1 }
  0xb6   :  { %v973_v22 = vpop.f32.mrf.mxu0 }
  0xb7   :  { %v974_v24 = vadd.f32 %v973_v22, %v9158_v18  ;;  %v7178_v22 = vor.u32 %v8148_v15, %v7177_v6  ;;  %v124_v15 = vld [vmem:[#allocation2 + $0x150] sm:$0xff] }
  0xb8   :  { %v1062_v25 = vpop.f32.mrf.mxu1 }
  0xb9   :  { %v9165_v31 = vadd.f32 %v1062_v25, %v974_v24  ;;  %1012 = vmatmul.bf16.gmra.mxu0 %v9160_v21  ;;  %1190 = vmatmul.bf16.gmra.mxu2 %v9160_v21  ;;  %v7435_v24 = vld [vmem:[#allocation5 + $0x2a8] sm:$0xf0] }
  0xba   :  { %v7438_v29 = vor.u32 %v8208_v16, %v7435_v24  ;;  %1325 = vmatpush.bf16.msrb.mxu0 %v7178_v22  ;;  %v123_v16 = vld [vmem:[#allocation2 + $0x148] sm:$0xff] }
  0xbb   :  { %1101 = vmatmul.bf16.gmra.mxu1 %v9162_v23  ;;  %v2388_v35 = vmul.f32 %v9165_v31, %v9165_v31  ;;  %1279 = vmatmul.bf16.gmra.mxu3 %v9162_v23 }
  0xbc   :  { %v1151_v37 = vpop.f32.mrf.mxu2  ;;  %1592 = vmatpush.bf16.msrb.mxu3 %v7438_v29 }
  0xbd   :  { %v2644_v36 = vmul.f32 %v2388_v35, %v9165_v31  ;;  %v1152_v38 = vadd.f32 %v1151_v37, %v9170_v34 }
  0xbe   :  { %v1240_v39 = vpop.f32.mrf.mxu3  ;;  %v975_v40 = vpop.f32.mrf.mxu0 }
  0xbf   :  { %v2900_v41 = vmul.f32 0.044715, %v2644_v36  ;;  %v976_v42 = vadd.f32 %v975_v40, %v9158_v18  ;;  %v9178_v45 = vadd.f32 %v1240_v39, %v1152_v38 }
  0xc0   :  { %v1064_v44 = vpop.f32.mrf.mxu1 }
  0xc1   :  { %v3156_v46 = vadd.f32 %v2900_v41, %v9165_v31  ;;  %v9181_v48 = vadd.f32 %v1064_v44, %v976_v42  ;;  %v2389_v49 = vmul.f32 %v9178_v45, %v9178_v45  ;;  %v7433_v41 = vld [vmem:[#allocation5 + $0x288] sm:$0xf] }
  0xc2   :  { %v8212_v42 = vld [vmem:[#allocation5 + $0x2a4] sm:$0xf0] }
  0xc3   :  { %v3412_v54 = vmul.f32 0.7978846, %v3156_v46  ;;  %v2396_v55 = vmul.f32 %v9181_v48, %v9181_v48  ;;  %v2645_v60 = vmul.f32 %v2389_v49, %v9178_v45  ;;  %v7434_v50 = vor.u32 %v8212_v42, %v7433_v41 }
  0xc4   :  { %v1153_v62 = vpop.f32.mrf.mxu2 }
  0xc5   :  { %v2652_v61 = vmul.f32 %v2396_v55, %v9181_v48  ;;  %v2901_v7 = vmul.f32 0.044715, %v2645_v60  ;;  %v1154_v10 = vadd.f32 %v1153_v62, %v9170_v34  ;;  %8394 = vtanh.f32 %v3412_v54  ;;  %1414 = vmatpush.bf16.msrb.mxu1 %v7434_v50 }
  0xc6   :  { %v1242_v11 = vpop.f32.mrf.mxu3  ;;  %v978_v12 = vpop.f32.mrf.mxu0 }
  0xc7   :  { %v2908_v17 = vmul.f32 0.044715, %v2652_v61  ;;  %v979_v19 = vadd.f32 %v978_v12, %v9158_v18  ;;  %v3157_v25 = vadd.f32 %v2901_v7, %v9178_v45  ;;  %v9196_v28 = vadd.f32 %v1242_v11, %v1154_v10  ;;  %v122_v10 = vld [vmem:[#allocation2 + $0x140] sm:$0xff] }
  0xc8   :  { %v1067_v20 = vpop.f32.mrf.mxu1 }
  0xc9   :  { %v3164_v30 = vadd.f32 %v2908_v17, %v9181_v48  ;;  %v9199_v35 = vadd.f32 %v1067_v20, %v979_v19  ;;  %1017 = vmatmul.bf16.gmra.mxu0 %v9189_v63  ;;  %v3413_v36 = vmul.f32 0.7978846, %v3157_v25  ;;  %v2397_v37 = vmul.f32 %v9196_v28, %v9196_v28  ;;  %1195 = vmatmul.bf16.gmra.mxu2 %v9189_v63  ;;  %v125_v17 = vld [vmem:[#allocation2 + $0x158] sm:$0xff] }
  0xcb   :  { %1106 = vmatmul.bf16.gmra.mxu1 %v9192_v13  ;;  %v3420_v38 = vmul.f32 0.7978846, %v3164_v30  ;;  %v2404_v39 = vmul.f32 %v9199_v35, %v9199_v35  ;;  %1284 = vmatmul.bf16.gmra.mxu3 %v9192_v13  ;;  %8396 = vtanh.f32 %v3413_v36  ;;  %v2653_v40 = vmul.f32 %v2397_v37, %v9196_v28  ;;  %v8395_v44 = vpop.eup %8394 }
  0xcc   :  { %v1156_v49 = vpop.f32.mrf.mxu2  ;;  %v3924_v62 = vadd.f32 1.0, %v8395_v44 }
  0xcd   :  { %8398 = vtanh.f32 %v3420_v38  ;;  %v2660_v46 = vmul.f32 %v2404_v39, %v9199_v35  ;;  %v2909_v51 = vmul.f32 0.044715, %v2653_v40  ;;  %v1157_v54 = vadd.f32 %v1156_v49, %v9170_v34 }
  0xce   :  { %v1245_v55 = vpop.f32.mrf.mxu3  ;;  %v980_v56 = vpop.f32.mrf.mxu0  ;;  %v4180_v24 = vmul.f32 0.5, %v3924_v62  ;;  %v9225_v38 = vpack.c.bf16 %v124_v15, %v122_v10  ;;  %v9227_v39 = vpack.c.bf16 %v125_v17, %v123_v16 }
  0xcf   :  { %v2916_v57 = vmul.f32 0.044715, %v2660_v46  ;;  %v981_v60 = vadd.f32 %v980_v56, %v9158_v18  ;;  %v3165_v4 = vadd.f32 %v2909_v51, %v9196_v28  ;;  %v9214_v5 = vadd.f32 %v1245_v55, %v1157_v54 }
  0xd0   :  { %v1069_v61 = vpop.f32.mrf.mxu1  ;;  %v4436_v54 = vmul.f32 %v4180_v24, %v9165_v31 }
  0xd1   :  { %v3172_v6 = vadd.f32 %v2916_v57, %v9199_v35  ;;  %v9217_v7 = vadd.f32 %v1069_v61, %v981_v60  ;;  %v8397_v11 = vpop.eup %8396  ;;  %v3421_v12 = vmul.f32 0.7978846, %v3165_v4  ;;  %v2405_v14 = vmul.f32 %v9214_v5, %v9214_v5 }
  0xd2   :  { %v3925_v30 = vadd.f32 1.0, %v8397_v11 }
  0xd3   :  { %v8399_v19 = vpop.eup %8398  ;;  %v3428_v20 = vmul.f32 0.7978846, %v3172_v6  ;;  %v2412_v22 = vmul.f32 %v9217_v7, %v9217_v7  ;;  %8400 = vtanh.f32 %v3421_v12  ;;  %v2661_v29 = vmul.f32 %v2405_v14, %v9214_v5 }
  0xd4   :  { %v3932_v25 = vadd.f32 1.0, %v8399_v19  ;;  %v1158_v37 = vpop.f32.mrf.mxu2  ;;  %v4181_v4 = vmul.f32 0.5, %v3925_v30 }
  0xd5   :  { %v2668_v36 = vmul.f32 %v2412_v22, %v9217_v7  ;;  %8402 = vtanh.f32 %v3428_v20  ;;  %v2917_v41 = vmul.f32 0.044715, %v2661_v29  ;;  %v1159_v42 = vadd.f32 %v1158_v37, %v9170_v34 }
  0xd6   :  { %v4188_v40 = vmul.f32 0.5, %v3932_v25  ;;  %v1247_v44 = vpop.f32.mrf.mxu3  ;;  %v983_v46 = vpop.f32.mrf.mxu0  ;;  %v4437_v20 = vmul.f32 %v4181_v4, %v9178_v45 }
  0xd7   :  { %v2924_v49 = vmul.f32 0.044715, %v2668_v36  ;;  %v984_v50 = vadd.f32 %v983_v46, %v9158_v18  ;;  %v3173_v56 = vadd.f32 %v2917_v41, %v9214_v5  ;;  %v9234_v57 = vadd.f32 %v1247_v44, %v1159_v42 }
  0xd8   :  { %v1072_v51 = vpop.f32.mrf.mxu1  ;;  %v4444_v55 = vmul.f32 %v4188_v40, %v9181_v48 }
  0xd9   :  { %v3180_v60 = vadd.f32 %v2924_v49, %v9217_v7  ;;  %v9237_v61 = vadd.f32 %v1072_v51, %v984_v50  ;;  %1022 = vmatmul.bf16.gmra.mxu0 %v9225_v38  ;;  %v8401_v62 = vpop.eup %8400  ;;  %v3429_v10 = vmul.f32 0.7978846, %v3173_v56  ;;  %v2413_v31 = vmul.f32 %v9234_v57, %v9234_v57  ;;  %1200 = vmatmul.bf16.gmra.mxu2 %v9225_v38  ;;  %v126_v50 = vld [vmem:[#allocation2 + $0x160] sm:$0xff]  ;;  %v127_v56 = vld [vmem:[#allocation2 + $0x168] sm:$0xff] }
  0xda   :  { %v9240_v6 = vpack.c.bf16 %v4444_v55, %v4436_v54  ;;  %v3933_v48 = vadd.f32 1.0, %v8401_v62  ;;  %v128_v55 = vld [vmem:[#allocation2 + $0x170] sm:$0xff] }
  0xdb   :  { %1111 = vmatmul.bf16.gmra.mxu1 %v9227_v39  ;;  %v3436_v11 = vmul.f32 0.7978846, %v3180_v60  ;;  %v2420_v12 = vmul.f32 %v9237_v61, %v9237_v61  ;;  %1289 = vmatmul.bf16.gmra.mxu3 %v9227_v39  ;;  %v8403_v14 = vpop.eup %8402  ;;  %8404 = vtanh.f32 %v3429_v10  ;;  %v2669_v15 = vmul.f32 %v2413_v31, %v9234_v57  ;;  %v129_v60 = vld [vmem:[#allocation2 + $0x178] sm:$0xff] }
  0xdc   :  { %12389 = vst [vmem:[#allocation15_spill] sm:$0xff] %v9240_v6  ;;  %v4189_v16 = vmul.f32 0.5, %v3933_v48  ;;  %v1161_v19 = vpop.f32.mrf.mxu2  ;;  %v3940_v41 = vadd.f32 1.0, %v8403_v14 }
  0xdd   :  { %v2676_v17 = vmul.f32 %v2420_v12, %v9237_v61  ;;  %8406 = vtanh.f32 %v3436_v11  ;;  %v2925_v22 = vmul.f32 0.044715, %v2669_v15  ;;  %v1162_v24 = vadd.f32 %v1161_v19, %v9170_v34  ;;  %v8136_v19 = vld [vmem:[#allocation5 + $0x4c] sm:$0xf] }
  0xde   :  { %v1250_v25 = vpop.f32.mrf.mxu3  ;;  %v985_v29 = vpop.f32.mrf.mxu0  ;;  %v4445_v30 = vmul.f32 %v4189_v16, %v9196_v28  ;;  %v4196_v31 = vmul.f32 0.5, %v3940_v41  ;;  %v9269_v16 = vpack.c.bf16 %v128_v55, %v126_v50 }
  0xdf   :  { %v2932_v36 = vmul.f32 0.044715, %v2676_v17  ;;  %v986_v37 = vadd.f32 %v985_v29, %v9158_v18  ;;  %v3181_v42 = vadd.f32 %v2925_v22, %v9234_v57  ;;  %v9256_v44 = vadd.f32 %v1250_v25, %v1162_v24  ;;  %v7145_v22 = vld [vmem:[#allocation5 + $0x48] sm:$0xf] }
  0xe0   :  { %v1074_v40 = vpop.f32.mrf.mxu1  ;;  %v9258_v46 = vpack.c.bf16 %v4445_v30, %v4437_v20  ;;  %v9271_v17 = vpack.c.bf16 %v129_v60, %v127_v56  ;;  %v7147_v20 = vld [vmem:[#allocation5 + $0x68] sm:$0xf0] }
  0xe1   :  { %v3188_v45 = vadd.f32 %v2932_v36, %v9237_v61  ;;  %v9261_v49 = vadd.f32 %v1074_v40, %v986_v37  ;;  %v8405_v51 = vpop.eup %8404  ;;  %v3437_v54 = vmul.f32 0.7978846, %v3181_v42  ;;  %v2421_v28 = vmul.f32 %v9256_v44, %v9256_v44  ;;  %v8140_v37 = vld [vmem:[#allocation5 + $0x64] sm:$0xf0]  ;;  %v8200_v40 = vld [vmem:[#allocation5 + $0x24c] sm:$0xf] }
  0xe2   :  { %12390 = vst [vmem:[#allocation16_spill] sm:$0xff] %v9258_v46  ;;  %v3941_v12 = vadd.f32 1.0, %v8405_v51  ;;  %v7150_v36 = vor.u32 %v8136_v19, %v7147_v20  ;;  %v7146_v50 = vor.u32 %v8140_v37, %v7145_v22  ;;  %v7403_v51 = vld [vmem:[#allocation5 + $0x268] sm:$0xf0] }
  0xe3   :  { %v8407_v62 = vpop.eup %8406  ;;  %v3444_v4 = vmul.f32 0.7978846, %v3188_v45  ;;  %v2428_v10 = vmul.f32 %v9261_v49, %v9261_v49  ;;  %v2677_v48 = vmul.f32 %v2421_v28, %v9256_v44  ;;  %8408 = vtanh.f32 %v3437_v54 }
  0xe4   :  { %v3948_v11 = vadd.f32 1.0, %v8407_v62  ;;  %v1163_v15 = vpop.f32.mrf.mxu2  ;;  %1504 = vmatpush.bf16.msrb.mxu2 %v7150_v36  ;;  %v7406_v56 = vor.u32 %v8200_v40, %v7403_v51  ;;  %1326 = vmatpush.bf16.msrb.mxu0 %v7146_v50 }
  0xe5   :  { %v2684_v14 = vmul.f32 %v2428_v10, %v9261_v49  ;;  %8410 = vtanh.f32 %v3444_v4  ;;  %v2933_v24 = vmul.f32 0.044715, %v2677_v48  ;;  %v1164_v25 = vadd.f32 %v1163_v15, %v9170_v34 }
  0xe6   :  { %v1252_v29 = vpop.f32.mrf.mxu3  ;;  %v988_v30 = vpop.f32.mrf.mxu0  ;;  %v4204_v54 = vmul.f32 0.5, %v3948_v11  ;;  %v4452_v4 = vmul.f32 %v4196_v31, %v9199_v35  ;;  %v4197_v15 = vmul.f32 0.5, %v3941_v12  ;;  %1593 = vmatpush.bf16.msrb.mxu3 %v7406_v56 }
  0xe7   :  { %v2940_v41 = vmul.f32 0.044715, %v2684_v14  ;;  %v989_v42 = vadd.f32 %v988_v30, %v9158_v18  ;;  %v3189_v28 = vadd.f32 %v2933_v24, %v9256_v44  ;;  %v9276_v55 = vadd.f32 %v1252_v29, %v1164_v25  ;;  %v7401_v24 = vld [vmem:[#allocation5 + $0x248] sm:$0xf] }
  0xe8   :  { %v1077_v45 = vpop.f32.mrf.mxu1  ;;  %v4460_v10 = vmul.f32 %v4204_v54, %v9217_v7  ;;  %v8204_v25 = vld [vmem:[#allocation5 + $0x264] sm:$0xf0]  ;;  %v4453_v54 = vmul.f32 %v4197_v15, %v9214_v5  ;;  %v132_v5 = vld [vmem:[#allocation2 + $0x190] sm:$0xff] }
  0xe9   :  { %v3196_v60 = vadd.f32 %v2940_v41, %v9261_v49  ;;  %v9279_v62 = vadd.f32 %v1077_v45, %v989_v42  ;;  %1027 = vmatmul.bf16.gmra.mxu0 %v9269_v16  ;;  %v8409_v48 = vpop.eup %8408  ;;  %v3445_v14 = vmul.f32 0.7978846, %v3189_v28  ;;  %v2429_v11 = vmul.f32 %v9276_v55, %v9276_v55  ;;  %1205 = vmatmul.bf16.gmra.mxu2 %v9269_v16  ;;  %v131_v15 = vld [vmem:[#allocation2 + $0x188] sm:$0xff] }
  0xea   :  { %v9291_v35 = vpack.c.bf16 %v4460_v10, %v4452_v4  ;;  %v3949_v7 = vadd.f32 1.0, %v8409_v48  ;;  %v7402_v30 = vor.u32 %v8204_v25, %v7401_v24 }
  0xeb   :  { %1116 = vmatmul.bf16.gmra.mxu1 %v9271_v17  ;;  %v3452_v19 = vmul.f32 0.7978846, %v3196_v60  ;;  %v2436_v20 = vmul.f32 %v9279_v62, %v9279_v62  ;;  %1294 = vmatmul.bf16.gmra.mxu3 %v9271_v17  ;;  %v8411_v31 = vpop.eup %8410  ;;  %8412 = vtanh.f32 %v3445_v14  ;;  %v2685_v22 = vmul.f32 %v2429_v11, %v9276_v55  ;;  %v130_v14 = vld [vmem:[#allocation2 + $0x180] sm:$0xff] }
  0xec   :  { %12391 = vst [vmem:[#allocation17_spill] sm:$0xff] %v9291_v35  ;;  %v1166_v12 = vpop.f32.mrf.mxu2  ;;  %v4205_v36 = vmul.f32 0.5, %v3949_v7  ;;  %1415 = vmatpush.bf16.msrb.mxu1 %v7402_v30  ;;  %v3956_v4 = vadd.f32 1.0, %v8411_v31 }
  0xed   :  { %v2692_v29 = vmul.f32 %v2436_v20, %v9279_v62  ;;  %8414 = vtanh.f32 %v3452_v19  ;;  %v2941_v37 = vmul.f32 0.044715, %v2685_v22  ;;  %v1167_v40 = vadd.f32 %v1166_v12, %v9170_v34 }
  0xee   :  { %v1255_v41 = vpop.f32.mrf.mxu3  ;;  %v990_v42 = vpop.f32.mrf.mxu0  ;;  %v4461_v28 = vmul.f32 %v4205_v36, %v9234_v57  ;;  %v133_v57 = vld [vmem:[#allocation2 + $0x198] sm:$0xff]  ;;  %v4212_v12 = vmul.f32 0.5, %v3956_v4 }
  0xef   :  { %v2948_v45 = vmul.f32 0.044715, %v2692_v29  ;;  %v991_v50 = vadd.f32 %v990_v42, %v9158_v18  ;;  %v3197_v56 = vadd.f32 %v2941_v37, %v9276_v55  ;;  %v9300_v60 = vadd.f32 %v1255_v41, %v1167_v40 }
  0xf0   :  { %v1079_v51 = vpop.f32.mrf.mxu1  ;;  %v9305_v11 = vpack.c.bf16 %v4461_v28, %v4453_v54  ;;  %v9313_v37 = vpack.c.bf16 %v132_v5, %v130_v14  ;;  %v9315_v40 = vpack.c.bf16 %v133_v57, %v131_v15  ;;  %v4468_v14 = vmul.f32 %v4212_v12, %v9237_v61 }
  0xf1   :  { %v3204_v10 = vadd.f32 %v2948_v45, %v9279_v62  ;;  %v9303_v48 = vadd.f32 %v1079_v51, %v991_v50  ;;  %v8413_v19 = vpop.eup %8412  ;;  %v3453_v20 = vmul.f32 0.7978846, %v3197_v56  ;;  %v2437_v7 = vmul.f32 %v9300_v60, %v9300_v60 }
  0xf2   :  { %12392 = vst [vmem:[#allocation18_spill] sm:$0xff] %v9305_v11  ;;  %v3957_v41 = vadd.f32 1.0, %v8413_v19 }
  0xf3   :  { %v8415_v22 = vpop.eup %8414  ;;  %v3460_v24 = vmul.f32 0.7978846, %v3204_v10  ;;  %v2444_v31 = vmul.f32 %v9303_v48, %v9303_v48  ;;  %v2693_v25 = vmul.f32 %v2437_v7, %v9300_v60  ;;  %8416 = vtanh.f32 %v3453_v20 }
  0xf4   :  { %v3964_v29 = vadd.f32 1.0, %v8415_v22  ;;  %v1168_v36 = vpop.f32.mrf.mxu2  ;;  %v4213_v61 = vmul.f32 0.5, %v3957_v41 }
  0xf5   :  { %v2700_v30 = vmul.f32 %v2444_v31, %v9303_v48  ;;  %8418 = vtanh.f32 %v3460_v24  ;;  %v2949_v42 = vmul.f32 0.044715, %v2693_v25  ;;  %v1169_v45 = vadd.f32 %v1168_v36, %v9170_v34 }
  0xf6   :  { %v1257_v50 = vpop.f32.mrf.mxu3  ;;  %v993_v51 = vpop.f32.mrf.mxu0  ;;  %v4220_v54 = vmul.f32 0.5, %v3964_v29 }
  0xf7   :  { %v2956_v28 = vmul.f32 0.044715, %v2700_v30  ;;  %v994_v56 = vadd.f32 %v993_v51, %v9158_v18  ;;  %v3205_v10 = vadd.f32 %v2949_v42, %v9300_v60  ;;  %v9320_v20 = vadd.f32 %v1257_v50, %v1169_v45 }
  0xf8   :  { %v1082_v4 = vpop.f32.mrf.mxu1  ;;  %v4476_v7 = vmul.f32 %v4220_v54, %v9261_v49  ;;  %v4469_v54 = vmul.f32 %v4213_v61, %v9256_v44 }
  0xf9   :  { %v3212_v19 = vadd.f32 %v2956_v28, %v9303_v48  ;;  %v9325_v5 = vadd.f32 %v1082_v4, %v994_v56  ;;  %1032 = vmatmul.bf16.gmra.mxu0 %v9313_v37  ;;  %v8417_v15 = vpop.eup %8416  ;;  %v3461_v57 = vmul.f32 0.7978846, %v3205_v10  ;;  %v2445_v22 = vmul.f32 %v9320_v20, %v9320_v20  ;;  %1210 = vmatmul.bf16.gmra.mxu2 %v9313_v37 }
  0xfa   :  { %v9332_v24 = vpack.c.bf16 %v4476_v7, %v4468_v14  ;;  %v3965_v25 = vadd.f32 1.0, %v8417_v15 }
  0xfb   :  { %1121 = vmatmul.bf16.gmra.mxu1 %v9315_v40  ;;  %v3468_v31 = vmul.f32 0.7978846, %v3212_v19  ;;  %v2452_v49 = vmul.f32 %v9325_v5, %v9325_v5  ;;  %1299 = vmatmul.bf16.gmra.mxu3 %v9315_v40  ;;  %v8419_v29 = vpop.eup %8418  ;;  %8420 = vtanh.f32 %v3461_v57  ;;  %v2701_v12 = vmul.f32 %v2445_v22, %v9320_v20  ;;  %v134_v22 = vld [vmem:[#allocation2 + $0x1a0] sm:$0xff] }
  0xfc   :  { %12393 = vst [vmem:[#allocation19_spill] sm:$0xff] %v9332_v24  ;;  %v1171_v36 = vpop.f32.mrf.mxu2  ;;  %v4221_v42 = vmul.f32 0.5, %v3965_v25  ;;  %v3972_v14 = vadd.f32 1.0, %v8419_v29  ;;  %v136_v25 = vld [vmem:[#allocation2 + $0x1b0] sm:$0xff] }
  0xfd   :  { %v2708_v30 = vmul.f32 %v2452_v49, %v9325_v5  ;;  %8422 = vtanh.f32 %v3468_v31  ;;  %v2957_v45 = vmul.f32 0.044715, %v2701_v12  ;;  %v1172_v50 = vadd.f32 %v1171_v36, %v9170_v34  ;;  %v135_v12 = vld [vmem:[#allocation2 + $0x1a8] sm:$0xff] }
  0xfe   :  { %v1260_v41 = vpop.f32.mrf.mxu3  ;;  %v995_v51 = vpop.f32.mrf.mxu0  ;;  %v4477_v10 = vmul.f32 %v4221_v42, %v9276_v55  ;;  %v137_v55 = vld [vmem:[#allocation2 + $0x1b8] sm:$0xff]  ;;  %v4228_v42 = vmul.f32 0.5, %v3972_v14 }
  0xff   :  { %v2964_v28 = vmul.f32 0.044715, %v2708_v30  ;;  %v996_v56 = vadd.f32 %v995_v51, %v9158_v18  ;;  %v3213_v7 = vadd.f32 %v2957_v45, %v9320_v20  ;;  %v9344_v19 = vadd.f32 %v1260_v41, %v1172_v50 }
 0x100   :  { %v1084_v4 = vpop.f32.mrf.mxu1  ;;  %v9349_v31 = vpack.c.bf16 %v4477_v10, %v4469_v54  ;;  %v7115_v10 = vld [vmem:[#allocation5 + $0x28] sm:$0xf0] }
 0x101   :  { %v3220_v15 = vadd.f32 %v2964_v28, %v9325_v5  ;;  %v9347_v57 = vadd.f32 %v1084_v4, %v996_v56  ;;  %v8421_v49 = vpop.eup %8420  ;;  %v3469_v44 = vmul.f32 0.7978846, %v3213_v7  ;;  %v2453_v61 = vmul.f32 %v9344_v19, %v9344_v19  ;;  %v8128_v4 = vld [vmem:[#allocation5 + $0xc] sm:$0xf]  ;;  %v7113_v7 = vld [vmem:[#allocation5 + $0x8] sm:$0xf] }
 0x102   :  { %12394 = vst [vmem:[#allocation20_spill] sm:$0xff] %v9349_v31  ;;  %v3973_v41 = vadd.f32 1.0, %v8421_v49  ;;  %v9357_v28 = vpack.c.bf16 %v136_v25, %v134_v22  ;;  %v9359_v56 = vpack.c.bf16 %v137_v55, %v135_v12  ;;  %v7371_v25 = vld [vmem:[#allocation5 + $0x228] sm:$0xf0] }
 0x103   :  { %v8423_v29 = vpop.eup %8422  ;;  %v3476_v30 = vmul.f32 0.7978846, %v3220_v15  ;;  %v2460_v36 = vmul.f32 %v9347_v57, %v9347_v57  ;;  %v2709_v45 = vmul.f32 %v2453_v61, %v9344_v19  ;;  %8424 = vtanh.f32 %v3469_v44  ;;  %v8192_v44 = vld [vmem:[#allocation5 + $0x20c] sm:$0xf] }
 0x104   :  { %v3980_v50 = vadd.f32 1.0, %v8423_v29  ;;  %v1173_v54 = vpop.f32.mrf.mxu2  ;;  %v7118_v61 = vor.u32 %v8128_v4, %v7115_v10  ;;  %v8132_v29 = vld [vmem:[#allocation5 + $0x24] sm:$0xf0] }
 0x105   :  { %v2716_v51 = vmul.f32 %v2460_v36, %v9347_v57  ;;  %8426 = vtanh.f32 %v3476_v30  ;;  %v2965_v15 = vmul.f32 0.044715, %v2709_v45  ;;  %v1174_v31 = vadd.f32 %v1173_v54, %v9170_v34 }
 0x106   :  { %v1262_v14 = vpop.f32.mrf.mxu3  ;;  %v998_v24 = vpop.f32.mrf.mxu0  ;;  %v7114_v22 = vor.u32 %v8132_v29, %v7113_v7  ;;  %v4236_v12 = vmul.f32 0.5, %v3980_v50  ;;  %1505 = vmatpush.bf16.msrb.mxu2 %v7118_v61  ;;  %v7374_v30 = vor.u32 %v8192_v44, %v7371_v25  ;;  %v8196_v61 = vld [vmem:[#allocation5 + $0x224] sm:$0xf0] }
 0x107   :  { %v2972_v49 = vmul.f32 0.044715, %v2716_v51  ;;  %v999_v36 = vadd.f32 %v998_v24, %v9158_v18  ;;  %v3221_v55 = vadd.f32 %v2965_v15, %v9344_v19  ;;  %v9364_v35 = vadd.f32 %v1262_v14, %v1174_v31  ;;  %v7369_v14 = vld [vmem:[#allocation5 + $0x208] sm:$0xf] }
 0x108   :  { %v1087_v11 = vpop.f32.mrf.mxu1  ;;  %v4484_v51 = vmul.f32 %v4228_v42, %v9279_v62  ;;  %v4492_v24 = vmul.f32 %v4236_v12, %v9303_v48  ;;  %v4229_v31 = vmul.f32 0.5, %v3973_v41  ;;  %1327 = vmatpush.bf16.msrb.mxu0 %v7114_v22  ;;  %1594 = vmatpush.bf16.msrb.mxu3 %v7374_v30  ;;  %v7370_v44 = vor.u32 %v8196_v61, %v7369_v14 }
 0x109   :  { %v3228_v45 = vadd.f32 %v2972_v49, %v9347_v57  ;;  %v9367_v54 = vadd.f32 %v1087_v11, %v999_v36  ;;  %1037 = vmatmul.bf16.gmra.mxu0 %v9357_v28  ;;  %v8425_v4 = vpop.eup %8424  ;;  %v3477_v10 = vmul.f32 0.7978846, %v3221_v55  ;;  %v2461_v50 = vmul.f32 %v9364_v35, %v9364_v35  ;;  %1215 = vmatmul.bf16.gmra.mxu2 %v9357_v28 }
 0x10a   :  { %v9379_v62 = vpack.c.bf16 %v4492_v24, %v4484_v51  ;;  %v3981_v48 = vadd.f32 1.0, %v8425_v4  ;;  %1416 = vmatpush.bf16.msrb.mxu1 %v7370_v44  ;;  %v4485_v30 = vmul.f32 %v4229_v31, %v9300_v60  ;;  %v140_v60 = vld [vmem:[#allocation2 + $0x1d0] sm:$0xff]  ;;  %v139_v31 = vld [vmem:[#allocation2 + $0x1c8] sm:$0xff] }
 0x10b   :  { %1126 = vmatmul.bf16.gmra.mxu1 %v9359_v56  ;;  %v3484_v7 = vmul.f32 0.7978846, %v3228_v45  ;;  %v2468_v11 = vmul.f32 %v9367_v54, %v9367_v54  ;;  %1304 = vmatmul.bf16.gmra.mxu3 %v9359_v56  ;;  %v8427_v42 = vpop.eup %8426  ;;  %8428 = vtanh.f32 %v3477_v10  ;;  %v2717_v15 = vmul.f32 %v2461_v50, %v9364_v35 }
 0x10c   :  { %12395 = vst [vmem:[#allocation21_spill] sm:$0xff] %v9379_v62  ;;  %v1176_v41 = vpop.f32.mrf.mxu2  ;;  %v4237_v49 = vmul.f32 0.5, %v3981_v48  ;;  %v3988_v50 = vadd.f32 1.0, %v8427_v42  ;;  %v138_v48 = vld [vmem:[#allocation2 + $0x1c0] sm:$0xff] }
 0x10d   :  { %v2724_v29 = vmul.f32 %v2468_v11, %v9367_v54  ;;  %8430 = vtanh.f32 %v3484_v7  ;;  %v2973_v36 = vmul.f32 0.044715, %v2717_v15  ;;  %v1177_v25 = vadd.f32 %v1176_v41, %v9170_v34 }
 0x10e   :  { %v1265_v22 = vpop.f32.mrf.mxu3  ;;  %v1000_v12 = vpop.f32.mrf.mxu0  ;;  %v4493_v24 = vmul.f32 %v4237_v49, %v9320_v20  ;;  %v141_v20 = vld [vmem:[#allocation2 + $0x1d8] sm:$0xff] }
 0x10f   :  { %v2980_v55 = vmul.f32 0.044715, %v2724_v29  ;;  %v1001_v45 = vadd.f32 %v1000_v12, %v9158_v18  ;;  %v3229_v4 = vadd.f32 %v2973_v36, %v9364_v35  ;;  %v9388_v10 = vadd.f32 %v1265_v22, %v1177_v25 }
 0x110   :  { %v1089_v51 = vpop.f32.mrf.mxu1  ;;  %v9393_v15 = vpack.c.bf16 %v4493_v24, %v4485_v30  ;;  %v4244_v25 = vmul.f32 0.5, %v3988_v50 }
 0x111   :  { %v3236_v7 = vadd.f32 %v2980_v55, %v9367_v54  ;;  %v9391_v11 = vadd.f32 %v1089_v51, %v1001_v45  ;;  %v8429_v14 = vpop.eup %8428  ;;  %v3485_v61 = vmul.f32 0.7978846, %v3229_v4  ;;  %v2469_v29 = vmul.f32 %v9388_v10, %v9388_v10 }
 0x112   :  { %12396 = vst [vmem:[#allocation22_spill] sm:$0xff] %v9393_v15  ;;  %v9401_v55 = vpack.c.bf16 %v140_v60, %v138_v48  ;;  %v9403_v45 = vpack.c.bf16 %v141_v20, %v139_v31  ;;  %v3989_v51 = vadd.f32 1.0, %v8429_v14  ;;  %v4500_v48 = vmul.f32 %v4244_v25, %v9325_v5 }
 0x113   :  { %v8431_v41 = vpop.eup %8430  ;;  %v3492_v44 = vmul.f32 0.7978846, %v3236_v7  ;;  %v2476_v42 = vmul.f32 %v9391_v11, %v9391_v11  ;;  %v2725_v49 = vmul.f32 %v2469_v29, %v9388_v10  ;;  %8432 = vtanh.f32 %v3485_v61 }
 0x114   :  { %v3996_v36 = vadd.f32 1.0, %v8431_v41  ;;  %v1178_v12 = vpop.f32.mrf.mxu2  ;;  %12397 = vst [vmem:[#allocation23_spill] sm:$0xff] %v9401_v55  ;;  %v4245_v5 = vmul.f32 0.5, %v3989_v51 }
 0x115   :  { %v2732_v22 = vmul.f32 %v2476_v42, %v9391_v11  ;;  %12398 = vst [vmem:[#allocation24_spill] sm:$0xff] %v9403_v45  ;;  %8434 = vtanh.f32 %v3492_v44  ;;  %v2981_v30 = vmul.f32 0.044715, %v2725_v49  ;;  %v1179_v24 = vadd.f32 %v1178_v12, %v9170_v34 }
 0x116   :  { %v1267_v4 = vpop.f32.mrf.mxu3  ;;  %v1003_v7 = vpop.f32.mrf.mxu0  ;;  %v4252_v15 = vmul.f32 0.5, %v3996_v36 }
 0x117   :  { %v2988_v62 = vmul.f32 0.044715, %v2732_v22  ;;  %v1004_v29 = vadd.f32 %v1003_v7, %v9158_v18  ;;  %v3237_v61 = vadd.f32 %v2981_v30, %v9388_v10  ;;  %v9408_v41 = vadd.f32 %v1267_v4, %v1179_v24 }
 0x118   :  { %v1092_v50 = vpop.f32.mrf.mxu1  ;;  %v4508_v60 = vmul.f32 %v4252_v15, %v9347_v57 }
 0x119   :  { %v3244_v14 = vadd.f32 %v2988_v62, %v9391_v11  ;;  %v9413_v31 = vadd.f32 %v1092_v50, %v1004_v29  ;;  %1042 = vmatmul.bf16.gmra.mxu0 %v9401_v55  ;;  %v8433_v20 = vpop.eup %8432  ;;  %v3493_v44 = vmul.f32 0.7978846, %v3237_v61  ;;  %v2477_v42 = vmul.f32 %v9408_v41, %v9408_v41  ;;  %1220 = vmatmul.bf16.gmra.mxu2 %v9401_v55 }
 0x11a   :  { %v9420_v49 = vpack.c.bf16 %v4508_v60, %v4500_v48  ;;  %v3997_v62 = vadd.f32 1.0, %v8433_v20  ;;  %v4501_v29 = vmul.f32 %v4245_v5, %v9344_v19 }
 0x11b   :  { %1131 = vmatmul.bf16.gmra.mxu1 %v9403_v45  ;;  %v3500_v36 = vmul.f32 0.7978846, %v3244_v14  ;;  %v2484_v57 = vmul.f32 %v9413_v31, %v9413_v31  ;;  %1309 = vmatmul.bf16.gmra.mxu3 %v9403_v45  ;;  %v8435_v15 = vpop.eup %8434  ;;  %8436 = vtanh.f32 %v3493_v44  ;;  %v2733_v25 = vmul.f32 %v2477_v42, %v9408_v41 }
 0x11c   :  { %12399 = vst [vmem:[#allocation25_spill] sm:$0xff] %v9420_v49  ;;  %v1181_v12 = vpop.f32.mrf.mxu2  ;;  %v4253_v30 = vmul.f32 0.5, %v3997_v62  ;;  %v4004_v14 = vadd.f32 1.0, %v8435_v15  ;;  %v7345_v49 = vld [vmem:[#allocation5 + $0x1d0] sm:$0xf] }
 0x11d   :  { %v2740_v22 = vmul.f32 %v2484_v57, %v9413_v31  ;;  %8438 = vtanh.f32 %v3500_v36  ;;  %v2989_v24 = vmul.f32 0.044715, %v2733_v25  ;;  %v1182_v4 = vadd.f32 %v1181_v12, %v9170_v34  ;;  %v142_v57 = vld [vmem:[#allocation2 + $0x1e0] sm:$0xff]  ;;  %v143_v12 = vld [vmem:[#allocation2 + $0x1e8] sm:$0xff] }
 0x11e   :  { %v1270_v51 = vpop.f32.mrf.mxu3  ;;  %v1005_v7 = vpop.f32.mrf.mxu0  ;;  %v4509_v60 = vmul.f32 %v4253_v30, %v9364_v35  ;;  %v145_v35 = vld [vmem:[#allocation2 + $0x1f8] sm:$0xff] }
 0x11f   :  { %v2996_v50 = vmul.f32 0.044715, %v2740_v22  ;;  %v1006_v61 = vadd.f32 %v1005_v7, %v9158_v18  ;;  %v3245_v20 = vadd.f32 %v2989_v24, %v9408_v41  ;;  %v9432_v44 = vadd.f32 %v1270_v51, %v1182_v4  ;;  %v144_v22 = vld [vmem:[#allocation2 + $0x1f0] sm:$0xff] }
 0x120   :  { %v1094_v48 = vpop.f32.mrf.mxu1  ;;  %v9437_v62 = vpack.c.bf16 %v4509_v60, %v4501_v29  ;;  %v4260_v4 = vmul.f32 0.5, %v4004_v14  ;;  %v9447_v60 = vpack.c.bf16 %v145_v35, %v143_v12 }
 0x121   :  { %v3252_v42 = vadd.f32 %v2996_v50, %v9413_v31  ;;  %v9435_v36 = vadd.f32 %v1094_v48, %v1006_v61  ;;  %v8437_v25 = vpop.eup %8436  ;;  %v3501_v19 = vmul.f32 0.7978846, %v3245_v20  ;;  %v2485_v5 = vmul.f32 %v9432_v44, %v9432_v44  ;;  %v8185_v20 = vld [vmem:[#allocation5 + $0x1d4] sm:$0xf] }
 0x122   :  { %12400 = vst [vmem:[#allocation26_spill] sm:$0xff] %v9437_v62  ;;  %v4005_v29 = vadd.f32 1.0, %v8437_v25  ;;  %v9445_v48 = vpack.c.bf16 %v144_v22, %v142_v57  ;;  %v7347_v62 = vld [vmem:[#allocation5 + $0x1f0] sm:$0xf0] }
 0x123   :  { %v8439_v15 = vpop.eup %8438  ;;  %v3508_v30 = vmul.f32 0.7978846, %v3252_v42  ;;  %v2492_v24 = vmul.f32 %v9435_v36, %v9435_v36  ;;  %v2741_v51 = vmul.f32 %v2485_v5, %v9432_v44  ;;  %8440 = vtanh.f32 %v3501_v19  ;;  %v8249_v19 = vld [vmem:[#allocation5 + $0x3d4] sm:$0xf] }
 0x124   :  { %v4012_v7 = vadd.f32 1.0, %v8439_v15  ;;  %v1183_v61 = vpop.f32.mrf.mxu2  ;;  %v7350_v5 = vor.u32 %v8185_v20, %v7347_v62  ;;  %v8189_v15 = vld [vmem:[#allocation5 + $0x1ec] sm:$0xf0]  ;;  %v7603_v22 = vld [vmem:[#allocation5 + $0x3f0] sm:$0xf0]  ;;  %v4516_v62 = vmul.f32 %v4260_v4, %v9367_v54 }
 0x125   :  { %v2748_v50 = vmul.f32 %v2492_v24, %v9435_v36  ;;  %8442 = vtanh.f32 %v3508_v30  ;;  %v2997_v42 = vmul.f32 0.044715, %v2741_v51  ;;  %v1184_v46 = vadd.f32 %v1183_v61, %v9170_v34 }
 0x126   :  { %v1272_v14 = vpop.f32.mrf.mxu3  ;;  %v1008_v6 = vpop.f32.mrf.mxu0  ;;  %v7346_v57 = vor.u32 %v8189_v15, %v7345_v49  ;;  %v4268_v12 = vmul.f32 0.5, %v4012_v7  ;;  %1854 = vmatpush.bf16.msra.mxu2 %v7350_v5  ;;  %v7606_v30 = vor.u32 %v8249_v19, %v7603_v22  ;;  %v8253_v5 = vld [vmem:[#allocation5 + $0x3ec] sm:$0xf0] }
 0x127   :  { %v3004_v25 = vmul.f32 0.044715, %v2748_v50  ;;  %v1009_v24 = vadd.f32 %v1008_v6, %v9158_v18  ;;  %v3253_v35 = vadd.f32 %v2997_v42, %v9432_v44  ;;  %v9452_v55 = vadd.f32 %v1272_v14, %v1184_v46  ;;  %v7601_v14 = vld [vmem:[#allocation5 + $0x3d0] sm:$0xf] }
 0x128   :  { %v1097_v45 = vpop.f32.mrf.mxu1  ;;  %v4524_v6 = vmul.f32 %v4268_v12, %v9391_v11  ;;  %v4261_v46 = vmul.f32 0.5, %v4005_v29  ;;  %1676 = vmatpush.bf16.msra.mxu0 %v7346_v57  ;;  %1943 = vmatpush.bf16.msra.mxu3 %v7606_v30  ;;  %v7602_v19 = vor.u32 %v8253_v5, %v7601_v14 }
 0x129   :  { %v3260_v51 = vadd.f32 %v3004_v25, %v9435_v36  ;;  %v9455_v61 = vadd.f32 %v1097_v45, %v1009_v24  ;;  %1047 = vmatmul.bf16.gmra.mxu0 %v9445_v48  ;;  %v8441_v50 = vpop.eup %8440  ;;  %v3509_v49 = vmul.f32 0.7978846, %v3253_v35  ;;  %v2493_v7 = vmul.f32 %v9452_v55, %v9452_v55  ;;  %1225 = vmatmul.bf16.gmra.mxu2 %v9445_v48 }
 0x12a   :  { %v9467_v54 = vpack.c.bf16 %v4524_v6, %v4516_v62  ;;  %v4013_v11 = vadd.f32 1.0, %v8441_v50  ;;  %1765 = vmatpush.bf16.msra.mxu1 %v7602_v19  ;;  %v4517_v30 = vmul.f32 %v4261_v46, %v9388_v10 }
 0x12b   :  { %1136 = vmatmul.bf16.gmra.mxu1 %v9447_v60  ;;  %v3516_v20 = vmul.f32 0.7978846, %v3260_v51  ;;  %v2500_v45 = vmul.f32 %v9455_v61, %v9455_v61  ;;  %1314 = vmatmul.bf16.gmra.mxu3 %v9447_v60  ;;  %v8443_v4 = vpop.eup %8442  ;;  %8444 = vtanh.f32 %v3509_v49  ;;  %v2749_v42 = vmul.f32 %v2493_v7, %v9452_v55 }
 0x12c   :  { %12401 = vst [vmem:[#allocation27_spill] sm:$0xff] %v9467_v54  ;;  %v1186_v29 = vpop.f32.mrf.mxu2  ;;  %v4269_v25 = vmul.f32 0.5, %v4013_v11  ;;  %v4020_v7 = vadd.f32 1.0, %v8443_v4 }
 0x12d   :  { %v2756_v15 = vmul.f32 %v2500_v45, %v9455_v61  ;;  %8446 = vtanh.f32 %v3516_v20  ;;  %v3005_v24 = vmul.f32 0.044715, %v2749_v42  ;;  %v1187_v22 = vadd.f32 %v1186_v29, %v9170_v34 }
 0x12e   :  { %v1275_v57 = vpop.f32.mrf.mxu3  ;;  %v1010_v12 = vpop.f32.mrf.mxu0  ;;  %v4525_v6 = vmul.f32 %v4269_v25, %v9408_v41  ;;  %v4276_v4 = vmul.f32 0.5, %v4020_v7 }
 0x12f   :  { %v3012_v35 = vmul.f32 0.044715, %v2756_v15  ;;  %v1011_v51 = vadd.f32 %v1010_v12, %v9158_v18  ;;  %v3261_v50 = vadd.f32 %v3005_v24, %v9452_v55  ;;  %v9476_v49 = vadd.f32 %v1275_v57, %v1187_v22 }
 0x130   :  { %v1099_v62 = vpop.f32.mrf.mxu1  ;;  %v9481_v11 = vpack.c.bf16 %v4525_v6, %v4517_v30  ;;  %v4532_v7 = vmul.f32 %v4276_v4, %v9413_v31 }
 0x131   :  { %v3268_v20 = vadd.f32 %v3012_v35, %v9455_v61  ;;  %v9479_v45 = vadd.f32 %v1099_v62, %v1011_v51  ;;  %v8445_v42 = vpop.eup %8444  ;;  %v3517_v14 = vmul.f32 0.7978846, %v3261_v50  ;;  %v2501_v5 = vmul.f32 %v9476_v49, %v9476_v49 }
 0x132   :  { %12402 = vst [vmem:[#allocation28_spill] sm:$0xff] %v9481_v11  ;;  %v4021_v24 = vadd.f32 1.0, %v8445_v42 }
 0x133   :  { %v8447_v15 = vpop.eup %8446  ;;  %v3524_v10 = vmul.f32 0.7978846, %v3268_v20  ;;  %v2508_v41 = vmul.f32 %v9479_v45, %v9479_v45  ;;  %v2757_v46 = vmul.f32 %v2501_v5, %v9476_v49  ;;  %8448 = vtanh.f32 %v3517_v14 }
 0x134   :  { %v4028_v29 = vadd.f32 1.0, %v8447_v15  ;;  %v1188_v25 = vpop.f32.mrf.mxu2  ;;  %v4277_v31 = vmul.f32 0.5, %v4021_v24 }
 0x135   :  { %v2764_v19 = vmul.f32 %v2508_v41, %v9479_v45  ;;  %8450 = vtanh.f32 %v3524_v10  ;;  %v3013_v22 = vmul.f32 0.044715, %v2757_v46  ;;  %v1189_v57 = vadd.f32 %v1188_v25, %v9170_v34 }
 0x136   :  { %v1277_v12 = vpop.f32.mrf.mxu3  ;;  %v1013_v35 = vpop.f32.mrf.mxu0  ;;  %v4284_v51 = vmul.f32 0.5, %v4028_v29 }
 0x137   :  { %v3020_v62 = vmul.f32 0.044715, %v2764_v19  ;;  %v1014_v30 = vadd.f32 %v1013_v35, %v9158_v18  ;;  %v3269_v50 = vadd.f32 %v3013_v22, %v9476_v49  ;;  %v9492_v20 = vadd.f32 %v1277_v12, %v1189_v57 }
 0x138   :  { %v1102_v6 = vpop.f32.mrf.mxu1  ;;  %v4540_v14 = vmul.f32 %v4284_v51, %v9435_v36 }
 0x139   :  { %v3276_v42 = vadd.f32 %v3020_v62, %v9479_v45  ;;  %v9497_v5 = vadd.f32 %v1102_v6, %v1014_v30  ;;  %1328 = vmatmul.bf16.vlgmr.msrb.gmra.mxu0 %v9094_v43  ;;  %v8449_v15 = vpop.eup %8448  ;;  %v3525_v10 = vmul.f32 0.7978846, %v3269_v50  ;;  %v2509_v41 = vmul.f32 %v9492_v20, %v9492_v20  ;;  %1506 = vmatmul.bf16.vlgmr.msrb.gmra.mxu2 %v9094_v43 }
 0x13a   :  { %v9504_v46 = vpack.c.bf16 %v4540_v14, %v4532_v7  ;;  %v4029_v4 = vadd.f32 1.0, %v8449_v15  ;;  %v4533_v30 = vmul.f32 %v4277_v31, %v9432_v44 }
 0x13b   :  { %1417 = vmatmul.bf16.vlgmr.msrb.gmra.mxu1 %v9096_v47  ;;  %v3532_v29 = vmul.f32 0.7978846, %v3276_v42  ;;  %v2516_v36 = vmul.f32 %v9497_v5, %v9497_v5  ;;  %1595 = vmatmul.bf16.vlgmr.msrb.gmra.mxu3 %v9096_v47  ;;  %v8451_v19 = vpop.eup %8450  ;;  %8452 = vtanh.f32 %v3525_v10  ;;  %v2765_v25 = vmul.f32 %v2509_v41, %v9492_v20 }
 0x13c   :  { %12403 = vst [vmem:[#allocation29_spill] sm:$0xff] %v9504_v46  ;;  %v1191_v57 = vpop.f32.mrf.mxu2  ;;  %v4285_v12 = vmul.f32 0.5, %v4029_v4  ;;  %v4036_v42 = vadd.f32 1.0, %v8451_v19 }
 0x13d   :  { %v2772_v22 = vmul.f32 %v2516_v36, %v9497_v5  ;;  %8454 = vtanh.f32 %v3532_v29  ;;  %v3021_v35 = vmul.f32 0.044715, %v2765_v25  ;;  %v1192_v51 = vadd.f32 %v1191_v57, %v9170_v34 }
 0x13e   :  { %v1280_v24 = vpop.f32.mrf.mxu3  ;;  %v1015_v62 = vpop.f32.mrf.mxu0  ;;  %v4541_v14 = vmul.f32 %v4285_v12, %v9452_v55  ;;  %v4292_v19 = vmul.f32 0.5, %v4036_v42  ;;  %v8241_v42 = vld [vmem:[#allocation5 + $0x394] sm:$0xf] }
 0x13f   :  { %v3028_v6 = vmul.f32 0.044715, %v2772_v22  ;;  %v1016_v50 = vadd.f32 %v1015_v62, %v9158_v18  ;;  %v3277_v15 = vadd.f32 %v3021_v35, %v9492_v20  ;;  %v9516_v10 = vadd.f32 %v1280_v24, %v1192_v51  ;;  %v8177_v62 = vld [vmem:[#allocation5 + $0x194] sm:$0xf] }
 0x140   :  { %v1104_v7 = vpop.f32.mrf.mxu1  ;;  %v9521_v36 = vpack.c.bf16 %v4541_v14, %v4533_v30  ;;  %v7315_v30 = vld [vmem:[#allocation5 + $0x1b0] sm:$0xf0] }
 0x141   :  { %v3284_v41 = vadd.f32 %v3028_v6, %v9497_v5  ;;  %v9519_v29 = vadd.f32 %v1104_v7, %v1016_v50  ;;  %v8453_v4 = vpop.eup %8452  ;;  %v3533_v25 = vmul.f32 0.7978846, %v3277_v15  ;;  %v2517_v44 = vmul.f32 %v9516_v10, %v9516_v10  ;;  %v7313_v6 = vld [vmem:[#allocation5 + $0x190] sm:$0xf] }
 0x142   :  { %12404 = vst [vmem:[#allocation30_spill] sm:$0xff] %v9521_v36  ;;  %v4037_v35 = vadd.f32 1.0, %v8453_v4  ;;  %v8181_v36 = vld [vmem:[#allocation5 + $0x1ac] sm:$0xf0] }
 0x143   :  { %v8455_v31 = vpop.eup %8454  ;;  %v3540_v22 = vmul.f32 0.7978846, %v3284_v41  ;;  %v2524_v55 = vmul.f32 %v9519_v29, %v9519_v29  ;;  %v2773_v57 = vmul.f32 %v2517_v44, %v9516_v10  ;;  %8456 = vtanh.f32 %v3533_v25 }
 0x144   :  { %v4044_v12 = vadd.f32 1.0, %v8455_v31  ;;  %v1193_v24 = vpop.f32.mrf.mxu2  ;;  %v7318_v41 = vor.u32 %v8177_v62, %v7315_v30  ;;  %v7314_v4 = vor.u32 %v8181_v36, %v7313_v6  ;;  %v7571_v31 = vld [vmem:[#allocation5 + $0x3b0] sm:$0xf0]  ;;  %v4293_v6 = vmul.f32 0.5, %v4037_v35 }
 0x145   :  { %v2780_v51 = vmul.f32 %v2524_v55, %v9519_v29  ;;  %8458 = vtanh.f32 %v3540_v22  ;;  %v3029_v50 = vmul.f32 0.044715, %v2773_v57  ;;  %v1194_v7 = vadd.f32 %v1193_v24, %v9170_v34 }
 0x146   :  { %v1282_v14 = vpop.f32.mrf.mxu3  ;;  %v1018_v15 = vpop.f32.mrf.mxu0  ;;  %v4300_v55 = vmul.f32 0.5, %v4044_v12  ;;  %1855 = vmatpush.bf16.msra.mxu2 %v7318_v41  ;;  %v7574_v22 = vor.u32 %v8241_v42, %v7571_v31  ;;  %1677 = vmatpush.bf16.msra.mxu0 %v7314_v4 }
 0x147   :  { %v3036_v46 = vmul.f32 0.044715, %v2780_v51  ;;  %v1019_v44 = vadd.f32 %v1018_v15, %v9158_v18  ;;  %v3285_v11 = vadd.f32 %v3029_v50, %v9516_v10  ;;  %v9532_v54 = vadd.f32 %v1282_v14, %v1194_v7  ;;  %v7569_v7 = vld [vmem:[#allocation5 + $0x390] sm:$0xf] }
 0x148   :  { %v1107_v25 = vpop.f32.mrf.mxu1  ;;  %v4548_v51 = vmul.f32 %v4292_v19, %v9455_v61  ;;  %v4556_v62 = vmul.f32 %v4300_v55, %v9479_v45  ;;  %1944 = vmatpush.bf16.msra.mxu3 %v7574_v22  ;;  %v8245_v14 = vld [vmem:[#allocation5 + $0x3ac] sm:$0xf0]  ;;  %v4549_v22 = vmul.f32 %v4293_v6, %v9476_v49 }
 0x149   :  { %v3292_v57 = vadd.f32 %v3036_v46, %v9519_v29  ;;  %v9535_v24 = vadd.f32 %v1107_v25, %v1019_v44  ;;  %1333 = vmatmul.bf16.gmra.mxu0 %v9102_v2  ;;  %v8457_v30 = vpop.eup %8456  ;;  %v3541_v36 = vmul.f32 0.7978846, %v3285_v11  ;;  %v2525_v12 = vmul.f32 %v9532_v54, %v9532_v54  ;;  %1511 = vmatmul.bf16.gmra.mxu2 %v9102_v2 }
 0x14a   :  { %v9547_v61 = vpack.c.bf16 %v4556_v62, %v4548_v51  ;;  %v4045_v45 = vadd.f32 1.0, %v8457_v30  ;;  %v7570_v41 = vor.u32 %v8245_v14, %v7569_v7 }
 0x14b   :  { %1422 = vmatmul.bf16.gmra.mxu1 %v9104_v3  ;;  %v3548_v50 = vmul.f32 0.7978846, %v3292_v57  ;;  %v2532_v46 = vmul.f32 %v9535_v24, %v9535_v24  ;;  %1600 = vmatmul.bf16.gmra.mxu3 %v9104_v3  ;;  %v8459_v19 = vpop.eup %8458  ;;  %8460 = vtanh.f32 %v3541_v36  ;;  %v2781_v11 = vmul.f32 %v2525_v12, %v9532_v54 }
 0x14c   :  { %12405 = vst [vmem:[#allocation31_spill] sm:$0xff] %v9547_v61  ;;  %v1196_v35 = vpop.f32.mrf.mxu2  ;;  %v4301_v42 = vmul.f32 0.5, %v4045_v45  ;;  %1766 = vmatpush.bf16.msra.mxu1 %v7570_v41  ;;  %v4052_v12 = vadd.f32 1.0, %v8459_v19 }
 0x14d   :  { %v2788_v15 = vmul.f32 %v2532_v46, %v9535_v24  ;;  %8462 = vtanh.f32 %v3548_v50  ;;  %v3037_v44 = vmul.f32 0.044715, %v2781_v11  ;;  %v1197_v25 = vadd.f32 %v1196_v35, %v9170_v34 }
 0x14e   :  { %v1285_v4 = vpop.f32.mrf.mxu3  ;;  %v1020_v31 = vpop.f32.mrf.mxu0  ;;  %v4557_v62 = vmul.f32 %v4301_v42, %v9492_v20  ;;  %v4308_v19 = vmul.f32 0.5, %v4052_v12 }
 0x14f   :  { %v3044_v55 = vmul.f32 0.044715, %v2788_v15  ;;  %v1021_v57 = vadd.f32 %v1020_v31, %v9158_v18  ;;  %v3293_v30 = vadd.f32 %v3037_v44, %v9532_v54  ;;  %v9556_v36 = vadd.f32 %v1285_v4, %v1197_v25 }
 0x150   :  { %v1109_v51 = vpop.f32.mrf.mxu1  ;;  %v9561_v45 = vpack.c.bf16 %v4557_v62, %v4549_v22  ;;  %v4564_v12 = vmul.f32 %v4308_v19, %v9497_v5 }
 0x151   :  { %v3300_v50 = vadd.f32 %v3044_v55, %v9535_v24  ;;  %v9559_v46 = vadd.f32 %v1109_v51, %v1021_v57  ;;  %v8461_v11 = vpop.eup %8460  ;;  %v3549_v7 = vmul.f32 0.7978846, %v3293_v30  ;;  %v2533_v14 = vmul.f32 %v9556_v36, %v9556_v36 }
 0x152   :  { %12406 = vst [vmem:[#allocation32_spill] sm:$0xff] %v9561_v45  ;;  %v4053_v44 = vadd.f32 1.0, %v8461_v11 }
 0x153   :  { %v8463_v15 = vpop.eup %8462  ;;  %v3556_v49 = vmul.f32 0.7978846, %v3300_v50  ;;  %v2540_v20 = vmul.f32 %v9559_v46, %v9559_v46  ;;  %v2789_v6 = vmul.f32 %v2533_v14, %v9556_v36  ;;  %8464 = vtanh.f32 %v3549_v7 }
 0x154   :  { %v4060_v35 = vadd.f32 1.0, %v8463_v15  ;;  %v1198_v42 = vpop.f32.mrf.mxu2  ;;  %v4309_v5 = vmul.f32 0.5, %v4053_v44 }
 0x155   :  { %v2796_v41 = vmul.f32 %v2540_v20, %v9559_v46  ;;  %8466 = vtanh.f32 %v3556_v49  ;;  %v3045_v25 = vmul.f32 0.044715, %v2789_v6  ;;  %v1199_v4 = vadd.f32 %v1198_v42, %v9170_v34 }
 0x156   :  { %v1287_v31 = vpop.f32.mrf.mxu3  ;;  %v1023_v55 = vpop.f32.mrf.mxu0  ;;  %v4316_v57 = vmul.f32 0.5, %v4060_v35 }
 0x157   :  { %v3052_v51 = vmul.f32 0.044715, %v2796_v41  ;;  %v1024_v22 = vadd.f32 %v1023_v55, %v9158_v18  ;;  %v3301_v30 = vadd.f32 %v3045_v25, %v9556_v36  ;;  %v9572_v50 = vadd.f32 %v1287_v31, %v1199_v4 }
 0x158   :  { %v1112_v62 = vpop.f32.mrf.mxu1  ;;  %v4572_v7 = vmul.f32 %v4316_v57, %v9519_v29 }
 0x159   :  { %v3308_v11 = vadd.f32 %v3052_v51, %v9559_v46  ;;  %v9577_v14 = vadd.f32 %v1112_v62, %v1024_v22  ;;  %1338 = vmatmul.bf16.gmra.mxu0 %v9110_v8  ;;  %v8465_v15 = vpop.eup %8464  ;;  %v3557_v49 = vmul.f32 0.7978846, %v3301_v30  ;;  %v2541_v20 = vmul.f32 %v9572_v50, %v9572_v50  ;;  %1516 = vmatmul.bf16.gmra.mxu2 %v9110_v8 }
 0x15a   :  { %v9584_v6 = vpack.c.bf16 %v4572_v7, %v4564_v12  ;;  %v4061_v19 = vadd.f32 1.0, %v8465_v15  ;;  %v4565_v22 = vmul.f32 %v4309_v5, %v9516_v10 }
 0x15b   :  { %1427 = vmatmul.bf16.gmra.mxu1 %v9112_v9  ;;  %v3564_v35 = vmul.f32 0.7978846, %v3308_v11  ;;  %v2548_v29 = vmul.f32 %v9577_v14, %v9577_v14  ;;  %1605 = vmatmul.bf16.gmra.mxu3 %v9112_v9  ;;  %v8467_v41 = vpop.eup %8466  ;;  %8468 = vtanh.f32 %v3557_v49  ;;  %v2797_v42 = vmul.f32 %v2541_v20, %v9572_v50 }
 0x15c   :  { %12407 = vst [vmem:[#allocation33_spill] sm:$0xff] %v9584_v6  ;;  %v1201_v4 = vpop.f32.mrf.mxu2  ;;  %v4317_v31 = vmul.f32 0.5, %v4061_v19  ;;  %v4068_v11 = vadd.f32 1.0, %v8467_v41 }
 0x15d   :  { %v2804_v25 = vmul.f32 %v2548_v29, %v9577_v14  ;;  %8470 = vtanh.f32 %v3564_v35  ;;  %v3053_v55 = vmul.f32 0.044715, %v2797_v42  ;;  %v1202_v57 = vadd.f32 %v1201_v4, %v9170_v34 }
 0x15e   :  { %v1290_v44 = vpop.f32.mrf.mxu3  ;;  %v1025_v51 = vpop.f32.mrf.mxu0  ;;  %v4573_v7 = vmul.f32 %v4317_v31, %v9532_v54  ;;  %v4324_v41 = vmul.f32 0.5, %v4068_v11  ;;  %v8233_v11 = vld [vmem:[#allocation5 + $0x354] sm:$0xf] }
 0x15f   :  { %v3060_v62 = vmul.f32 0.044715, %v2804_v25  ;;  %v1026_v30 = vadd.f32 %v1025_v51, %v9158_v18  ;;  %v3309_v15 = vadd.f32 %v3053_v55, %v9572_v50  ;;  %v9596_v49 = vadd.f32 %v1290_v44, %v1202_v57  ;;  %v8169_v51 = vld [vmem:[#allocation5 + $0x154] sm:$0xf] }
 0x160   :  { %v1114_v12 = vpop.f32.mrf.mxu1  ;;  %v9601_v29 = vpack.c.bf16 %v4573_v7, %v4565_v22  ;;  %v7283_v22 = vld [vmem:[#allocation5 + $0x170] sm:$0xf0] }
 0x161   :  { %v3316_v20 = vadd.f32 %v3060_v62, %v9577_v14  ;;  %v9599_v35 = vadd.f32 %v1114_v12, %v1026_v30  ;;  %v8469_v19 = vpop.eup %8468  ;;  %v3565_v42 = vmul.f32 0.7978846, %v3309_v15  ;;  %v2549_v10 = vmul.f32 %v9596_v49, %v9596_v49  ;;  %v7281_v62 = vld [vmem:[#allocation5 + $0x150] sm:$0xf] }
 0x162   :  { %12408 = vst [vmem:[#allocation34_spill] sm:$0xff] %v9601_v29  ;;  %v4069_v55 = vadd.f32 1.0, %v8469_v19  ;;  %v8173_v29 = vld [vmem:[#allocation5 + $0x16c] sm:$0xf0] }
 0x163   :  { %v8471_v5 = vpop.eup %8470  ;;  %v3572_v25 = vmul.f32 0.7978846, %v3316_v20  ;;  %v2556_v54 = vmul.f32 %v9599_v35, %v9599_v35  ;;  %v2805_v4 = vmul.f32 %v2549_v10, %v9596_v49  ;;  %8472 = vtanh.f32 %v3565_v42 }
 0x164   :  { %v4076_v31 = vadd.f32 1.0, %v8471_v5  ;;  %v1203_v44 = vpop.f32.mrf.mxu2  ;;  %v7286_v20 = vor.u32 %v8169_v51, %v7283_v22  ;;  %v7282_v19 = vor.u32 %v8173_v29, %v7281_v62  ;;  %v7539_v5 = vld [vmem:[#allocation5 + $0x370] sm:$0xf0]  ;;  %v4325_v62 = vmul.f32 0.5, %v4069_v55 }
 0x165   :  { %v2812_v57 = vmul.f32 %v2556_v54, %v9599_v35  ;;  %8474 = vtanh.f32 %v3572_v25  ;;  %v3061_v30 = vmul.f32 0.044715, %v2805_v4  ;;  %v1204_v12 = vadd.f32 %v1203_v44, %v9170_v34 }
 0x166   :  { %v1292_v7 = vpop.f32.mrf.mxu3  ;;  %v1028_v15 = vpop.f32.mrf.mxu0  ;;  %v4332_v54 = vmul.f32 0.5, %v4076_v31  ;;  %1856 = vmatpush.bf16.msra.mxu2 %v7286_v20  ;;  %v7542_v25 = vor.u32 %v8233_v11, %v7539_v5  ;;  %1678 = vmatpush.bf16.msra.mxu0 %v7282_v19 }
 0x167   :  { %v3068_v6 = vmul.f32 0.044715, %v2812_v57  ;;  %v1029_v10 = vadd.f32 %v1028_v15, %v9158_v18  ;;  %v3317_v45 = vadd.f32 %v3061_v30, %v9596_v49  ;;  %v9612_v61 = vadd.f32 %v1292_v7, %v1204_v12  ;;  %v7537_v12 = vld [vmem:[#allocation5 + $0x350] sm:$0xf] }
 0x168   :  { %v1117_v42 = vpop.f32.mrf.mxu1  ;;  %v4580_v57 = vmul.f32 %v4324_v41, %v9535_v24  ;;  %v4588_v51 = vmul.f32 %v4332_v54, %v9559_v46  ;;  %1945 = vmatpush.bf16.msra.mxu3 %v7542_v25  ;;  %v8237_v7 = vld [vmem:[#allocation5 + $0x36c] sm:$0xf0]  ;;  %v4581_v25 = vmul.f32 %v4325_v62, %v9556_v36 }
 0x169   :  { %v3324_v4 = vadd.f32 %v3068_v6, %v9599_v35  ;;  %v9615_v44 = vadd.f32 %v1117_v42, %v1029_v10  ;;  %1343 = vmatmul.bf16.gmra.mxu0 %v9118_v26  ;;  %v8473_v22 = vpop.eup %8472  ;;  %v3573_v29 = vmul.f32 0.7978846, %v3317_v45  ;;  %v2557_v31 = vmul.f32 %v9612_v61, %v9612_v61  ;;  %1521 = vmatmul.bf16.gmra.mxu2 %v9118_v26 }
 0x16a   :  { %v9627_v24 = vpack.c.bf16 %v4588_v51, %v4580_v57  ;;  %v4077_v46 = vadd.f32 1.0, %v8473_v22  ;;  %v7538_v20 = vor.u32 %v8237_v7, %v7537_v12 }
 0x16b   :  { %1432 = vmatmul.bf16.gmra.mxu1 %v9120_v27  ;;  %v3580_v30 = vmul.f32 0.7978846, %v3324_v4  ;;  %v2564_v6 = vmul.f32 %v9615_v44, %v9615_v44  ;;  %1610 = vmatmul.bf16.gmra.mxu3 %v9120_v27  ;;  %v8475_v41 = vpop.eup %8474  ;;  %8476 = vtanh.f32 %v3573_v29  ;;  %v2813_v45 = vmul.f32 %v2557_v31, %v9612_v61 }
 0x16c   :  { %12409 = vst [vmem:[#allocation35_spill] sm:$0xff] %v9627_v24  ;;  %v1206_v55 = vpop.f32.mrf.mxu2  ;;  %v4333_v11 = vmul.f32 0.5, %v4077_v46  ;;  %1767 = vmatpush.bf16.msra.mxu1 %v7538_v20  ;;  %v4084_v31 = vadd.f32 1.0, %v8475_v41 }
 0x16d   :  { %v2820_v15 = vmul.f32 %v2564_v6, %v9615_v44  ;;  %8478 = vtanh.f32 %v3580_v30  ;;  %v3069_v10 = vmul.f32 0.044715, %v2813_v45  ;;  %v1207_v42 = vadd.f32 %v1206_v55, %v9170_v34 }
 0x16e   :  { %v1295_v19 = vpop.f32.mrf.mxu3  ;;  %v1030_v5 = vpop.f32.mrf.mxu0  ;;  %v4589_v51 = vmul.f32 %v4333_v11, %v9572_v50  ;;  %v4340_v41 = vmul.f32 0.5, %v4084_v31 }
 0x16f   :  { %v3076_v54 = vmul.f32 0.044715, %v2820_v15  ;;  %v1031_v4 = vadd.f32 %v1030_v5, %v9158_v18  ;;  %v3325_v22 = vadd.f32 %v3069_v10, %v9612_v61  ;;  %v9636_v29 = vadd.f32 %v1295_v19, %v1207_v42 }
 0x170   :  { %v1119_v57 = vpop.f32.mrf.mxu1  ;;  %v9641_v46 = vpack.c.bf16 %v4589_v51, %v4581_v25  ;;  %v4596_v31 = vmul.f32 %v4340_v41, %v9577_v14 }
 0x171   :  { %v3332_v30 = vadd.f32 %v3076_v54, %v9615_v44  ;;  %v9639_v6 = vadd.f32 %v1119_v57, %v1031_v4  ;;  %v8477_v45 = vpop.eup %8476  ;;  %v3581_v12 = vmul.f32 0.7978846, %v3325_v22  ;;  %v2565_v7 = vmul.f32 %v9636_v29, %v9636_v29 }
 0x172   :  { %12410 = vst [vmem:[#allocation36_spill] sm:$0xff] %v9641_v46  ;;  %v4085_v10 = vadd.f32 1.0, %v8477_v45 }
 0x173   :  { %v8479_v15 = vpop.eup %8478  ;;  %v3588_v36 = vmul.f32 0.7978846, %v3332_v30  ;;  %v2572_v50 = vmul.f32 %v9639_v6, %v9639_v6  ;;  %v2821_v62 = vmul.f32 %v2565_v7, %v9636_v29  ;;  %8480 = vtanh.f32 %v3581_v12 }
 0x174   :  { %v4092_v55 = vadd.f32 1.0, %v8479_v15  ;;  %v1208_v11 = vpop.f32.mrf.mxu2  ;;  %v4341_v14 = vmul.f32 0.5, %v4085_v10 }
 0x175   :  { %v2828_v20 = vmul.f32 %v2572_v50, %v9639_v6  ;;  %8482 = vtanh.f32 %v3588_v36  ;;  %v3077_v42 = vmul.f32 0.044715, %v2821_v62  ;;  %v1209_v19 = vadd.f32 %v1208_v11, %v9170_v34 }
 0x176   :  { %v1297_v5 = vpop.f32.mrf.mxu3  ;;  %v1033_v54 = vpop.f32.mrf.mxu0  ;;  %v4348_v4 = vmul.f32 0.5, %v4092_v55 }
 0x177   :  { %v3084_v57 = vmul.f32 0.044715, %v2828_v20  ;;  %v1034_v25 = vadd.f32 %v1033_v54, %v9158_v18  ;;  %v3333_v22 = vadd.f32 %v3077_v42, %v9636_v29  ;;  %v9652_v30 = vadd.f32 %v1297_v5, %v1209_v19 }
 0x178   :  { %v1122_v51 = vpop.f32.mrf.mxu1  ;;  %v4604_v12 = vmul.f32 %v4348_v4, %v9599_v35 }
 0x179   :  { %v3340_v45 = vadd.f32 %v3084_v57, %v9639_v6  ;;  %v9657_v7 = vadd.f32 %v1122_v51, %v1034_v25  ;;  %1348 = vmatmul.bf16.gmra.mxu0 %v9126_v32  ;;  %v8481_v15 = vpop.eup %8480  ;;  %v3589_v36 = vmul.f32 0.7978846, %v3333_v22  ;;  %v2573_v50 = vmul.f32 %v9652_v30, %v9652_v30  ;;  %1526 = vmatmul.bf16.gmra.mxu2 %v9126_v32 }
 0x17a   :  { %v9664_v62 = vpack.c.bf16 %v4604_v12, %v4596_v31  ;;  %v4093_v41 = vadd.f32 1.0, %v8481_v15  ;;  %v4597_v25 = vmul.f32 %v4341_v14, %v9596_v49 }
 0x17b   :  { %1437 = vmatmul.bf16.gmra.mxu1 %v9128_v33  ;;  %v3596_v55 = vmul.f32 0.7978846, %v3340_v45  ;;  %v2580_v35 = vmul.f32 %v9657_v7, %v9657_v7  ;;  %1615 = vmatmul.bf16.gmra.mxu3 %v9128_v33  ;;  %v8483_v20 = vpop.eup %8482  ;;  %8484 = vtanh.f32 %v3589_v36  ;;  %v2829_v11 = vmul.f32 %v2573_v50, %v9652_v30 }
 0x17c   :  { %12411 = vst [vmem:[#allocation37_spill] sm:$0xff] %v9664_v62  ;;  %v1211_v19 = vpop.f32.mrf.mxu2  ;;  %v4349_v5 = vmul.f32 0.5, %v4093_v41  ;;  %v4100_v45 = vadd.f32 1.0, %v8483_v20 }
 0x17d   :  { %v2836_v42 = vmul.f32 %v2580_v35, %v9657_v7  ;;  %8486 = vtanh.f32 %v3596_v55  ;;  %v3085_v54 = vmul.f32 0.044715, %v2829_v11  ;;  %v1212_v4 = vadd.f32 %v1211_v19, %v9170_v34 }
 0x17e   :  { %v1300_v10 = vpop.f32.mrf.mxu3  ;;  %v1035_v57 = vpop.f32.mrf.mxu0  ;;  %v4605_v12 = vmul.f32 %v4349_v5, %v9612_v61  ;;  %v4356_v20 = vmul.f32 0.5, %v4100_v45  ;;  %v8225_v45 = vld [vmem:[#allocation5 + $0x314] sm:$0xf] }
 0x17f   :  { %v3092_v51 = vmul.f32 0.044715, %v2836_v42  ;;  %v1036_v22 = vadd.f32 %v1035_v57, %v9158_v18  ;;  %v3341_v15 = vadd.f32 %v3085_v54, %v9652_v30  ;;  %v9676_v36 = vadd.f32 %v1300_v10, %v1212_v4  ;;  %v8161_v57 = vld [vmem:[#allocation5 + $0x114] sm:$0xf] }
 0x180   :  { %v1124_v31 = vpop.f32.mrf.mxu1  ;;  %v9681_v35 = vpack.c.bf16 %v4605_v12, %v4597_v25  ;;  %v7251_v25 = vld [vmem:[#allocation5 + $0x130] sm:$0xf0] }
 0x181   :  { %v3348_v50 = vadd.f32 %v3092_v51, %v9657_v7  ;;  %v9679_v55 = vadd.f32 %v1124_v31, %v1036_v22  ;;  %v8485_v41 = vpop.eup %8484  ;;  %v3597_v11 = vmul.f32 0.7978846, %v3341_v15  ;;  %v2581_v49 = vmul.f32 %v9676_v36, %v9676_v36  ;;  %v7249_v51 = vld [vmem:[#allocation5 + $0x110] sm:$0xf] }
 0x182   :  { %12412 = vst [vmem:[#allocation38_spill] sm:$0xff] %v9681_v35  ;;  %v4101_v54 = vadd.f32 1.0, %v8485_v41  ;;  %v8165_v35 = vld [vmem:[#allocation5 + $0x12c] sm:$0xf0] }
 0x183   :  { %v8487_v14 = vpop.eup %8486  ;;  %v3604_v42 = vmul.f32 0.7978846, %v3348_v50  ;;  %v2588_v61 = vmul.f32 %v9679_v55, %v9679_v55  ;;  %v2837_v19 = vmul.f32 %v2581_v49, %v9676_v36  ;;  %8488 = vtanh.f32 %v3597_v11 }
 0x184   :  { %v4108_v5 = vadd.f32 1.0, %v8487_v14  ;;  %v1213_v10 = vpop.f32.mrf.mxu2  ;;  %v7254_v50 = vor.u32 %v8161_v57, %v7251_v25  ;;  %v7250_v41 = vor.u32 %v8165_v35, %v7249_v51  ;;  %v7507_v14 = vld [vmem:[#allocation5 + $0x330] sm:$0xf0]  ;;  %v4357_v51 = vmul.f32 0.5, %v4101_v54 }
 0x185   :  { %v2844_v4 = vmul.f32 %v2588_v61, %v9679_v55  ;;  %8490 = vtanh.f32 %v3604_v42  ;;  %v3093_v22 = vmul.f32 0.044715, %v2837_v19  ;;  %v1214_v31 = vadd.f32 %v1213_v10, %v9170_v34 }
 0x186   :  { %v1302_v12 = vpop.f32.mrf.mxu3  ;;  %v1038_v15 = vpop.f32.mrf.mxu0  ;;  %v4364_v61 = vmul.f32 0.5, %v4108_v5  ;;  %1857 = vmatpush.bf16.msra.mxu2 %v7254_v50  ;;  %v7510_v42 = vor.u32 %v8225_v45, %v7507_v14  ;;  %1679 = vmatpush.bf16.msra.mxu0 %v7250_v41 }
 0x187   :  { %v3100_v62 = vmul.f32 0.044715, %v2844_v4  ;;  %v1039_v49 = vadd.f32 %v1038_v15, %v9158_v18  ;;  %v3349_v46 = vadd.f32 %v3093_v22, %v9676_v36  ;;  %v9692_v24 = vadd.f32 %v1302_v12, %v1214_v31  ;;  %v7505_v31 = vld [vmem:[#allocation5 + $0x310] sm:$0xf] }
 0x188   :  { %v1127_v11 = vpop.f32.mrf.mxu1  ;;  %v4612_v4 = vmul.f32 %v4356_v20, %v9615_v44  ;;  %v4620_v57 = vmul.f32 %v4364_v61, %v9639_v6  ;;  %1946 = vmatpush.bf16.msra.mxu3 %v7510_v42  ;;  %v8229_v12 = vld [vmem:[#allocation5 + $0x32c] sm:$0xf0]  ;;  %v4613_v42 = vmul.f32 %v4357_v51, %v9636_v29 }
 0x189   :  { %v3356_v19 = vadd.f32 %v3100_v62, %v9679_v55  ;;  %v9695_v10 = vadd.f32 %v1127_v11, %v1039_v49  ;;  %1353 = vmatmul.bf16.gmra.mxu0 %v9134_v52  ;;  %v8489_v25 = vpop.eup %8488  ;;  %v3605_v35 = vmul.f32 0.7978846, %v3349_v46  ;;  %v2589_v5 = vmul.f32 %v9692_v24, %v9692_v24  ;;  %1531 = vmatmul.bf16.gmra.mxu2 %v9134_v52 }
 0x18a   :  { %v9707_v44 = vpack.c.bf16 %v4620_v57, %v4612_v4  ;;  %v4109_v6 = vadd.f32 1.0, %v8489_v25  ;;  %v7506_v54 = vor.u32 %v8229_v12, %v7505_v31 }
 0x18b   :  { %1442 = vmatmul.bf16.gmra.mxu1 %v9136_v53  ;;  %v3612_v22 = vmul.f32 0.7978846, %v3356_v19  ;;  %v2596_v62 = vmul.f32 %v9695_v10, %v9695_v10  ;;  %1620 = vmatmul.bf16.gmra.mxu3 %v9136_v53  ;;  %v8491_v20 = vpop.eup %8490  ;;  %v2845_v46 = vmul.f32 %v2589_v5, %v9692_v24 }
 0x18c   :  { %12413 = vst [vmem:[#allocation39_spill] sm:$0xff] %v9707_v44  ;;  %v1216_v50 = vpop.f32.mrf.mxu2  ;;  %v4365_v45 = vmul.f32 0.5, %v4109_v6  ;;  %1768 = vmatpush.bf16.msra.mxu1 %v7506_v54 }
 0x18d   :  { %v2852_v15 = vmul.f32 %v2596_v62, %v9695_v10  ;;  %8492 = vtanh.f32 %v3612_v22  ;;  %v3101_v49 = vmul.f32 0.044715, %v2845_v46  ;;  %v1217_v11 = vadd.f32 %v1216_v50, %v9170_v34 }
 0x18e   :  { %8494 = vtanh.f32 %v3605_v35  ;;  %v1305_v41 = vpop.f32.mrf.mxu3  ;;  %v1040_v14 = vpop.f32.mrf.mxu0  ;;  %v4621_v57 = vmul.f32 %v4365_v45, %v9652_v30  ;;  %v4116_v22 = vadd.f32 1.0, %v8491_v20 }
 0x18f   :  { %v3108_v61 = vmul.f32 0.044715, %v2852_v15  ;;  %v1041_v19 = vadd.f32 %v1040_v14, %v9158_v18  ;;  %v3357_v25 = vadd.f32 %v3101_v49, %v9692_v24  ;;  %v9716_v5 = vadd.f32 %v1305_v41, %v1217_v11 }
 0x190   :  { %v1129_v4 = vpop.f32.mrf.mxu1  ;;  %v9721_v6 = vpack.c.bf16 %v4621_v57, %v4613_v42  ;;  %v4372_v20 = vmul.f32 0.5, %v4116_v22 }
 0x191   :  { %v3364_v35 = vadd.f32 %v3108_v61, %v9695_v10  ;;  %v9719_v62 = vadd.f32 %v1129_v4, %v1041_v19  ;;  %v3613_v46 = vmul.f32 0.7978846, %v3357_v25  ;;  %v2597_v31 = vmul.f32 %v9716_v5, %v9716_v5 }
 0x192   :  { %12414 = vst [vmem:[#allocation40_spill] sm:$0xff] %v9721_v6  ;;  %v4628_v22 = vmul.f32 %v4372_v20, %v9657_v7 }
 0x193   :  { %v8493_v12 = vpop.eup %8492  ;;  %v3620_v15 = vmul.f32 0.7978846, %v3364_v35  ;;  %v2604_v29 = vmul.f32 %v9719_v62, %v9719_v62  ;;  %v2853_v51 = vmul.f32 %v2597_v31, %v9716_v5  ;;  %8496 = vtanh.f32 %v3613_v46 }
 0x194   :  { %v8495_v30 = vpop.eup %8494  ;;  %v4124_v50 = vadd.f32 1.0, %v8493_v12  ;;  %v1218_v45 = vpop.f32.mrf.mxu2 }
 0x195   :  { %v2860_v54 = vmul.f32 %v2604_v29, %v9719_v62  ;;  %v3109_v49 = vmul.f32 0.044715, %v2853_v51  ;;  %v1219_v11 = vadd.f32 %v1218_v45, %v9170_v34  ;;  %8498 = vtanh.f32 %v3620_v15 }
 0x196   :  { %v1307_v41 = vpop.f32.mrf.mxu3  ;;  %v1043_v14 = vpop.f32.mrf.mxu0  ;;  %v4380_v61 = vmul.f32 0.5, %v4124_v50  ;;  %v4117_v57 = vadd.f32 1.0, %v8495_v30 }
 0x197   :  { %v3116_v19 = vmul.f32 0.044715, %v2860_v54  ;;  %v1044_v4 = vadd.f32 %v1043_v14, %v9158_v18  ;;  %v3365_v25 = vadd.f32 %v3109_v49, %v9716_v5  ;;  %v9732_v35 = vadd.f32 %v1307_v41, %v1219_v11 }
 0x198   :  { %v1132_v42 = vpop.f32.mrf.mxu1  ;;  %v4636_v46 = vmul.f32 %v4380_v61, %v9679_v55  ;;  %v4373_v20 = vmul.f32 0.5, %v4117_v57 }
 0x199   :  { %v3372_v31 = vadd.f32 %v3116_v19, %v9719_v62  ;;  %v9737_v12 = vadd.f32 %v1132_v42, %v1044_v4  ;;  %1358 = vmatmul.bf16.gmra.mxu0 %v9142_v58  ;;  %v8497_v15 = vpop.eup %8496  ;;  %v3621_v29 = vmul.f32 0.7978846, %v3365_v25  ;;  %v2605_v51 = vmul.f32 %v9732_v35, %v9732_v35  ;;  %1536 = vmatmul.bf16.gmra.mxu2 %v9142_v58 }
 0x19a   :  { %v9744_v30 = vpack.c.bf16 %v4636_v46, %v4628_v22  ;;  %v4125_v50 = vadd.f32 1.0, %v8497_v15  ;;  %v4629_v57 = vmul.f32 %v4373_v20, %v9676_v36 }
 0x19b   :  { %1447 = vmatmul.bf16.gmra.mxu1 %v9144_v59  ;;  %v3628_v7 = vmul.f32 0.7978846, %v3372_v31  ;;  %v2612_v55 = vmul.f32 %v9737_v12, %v9737_v12  ;;  %1625 = vmatmul.bf16.gmra.mxu3 %v9144_v59  ;;  %8500 = vtanh.f32 %v3621_v29  ;;  %v2861_v54 = vmul.f32 %v2605_v51, %v9732_v35  ;;  %v8499_v45 = vpop.eup %8498 }
 0x19c   :  { %12415 = vst [vmem:[#allocation41_spill] sm:$0xff] %v9744_v30  ;;  %v1221_v11 = vpop.f32.mrf.mxu2  ;;  %v4381_v41 = vmul.f32 0.5, %v4125_v50  ;;  %v4132_v29 = vadd.f32 1.0, %v8499_v45 }
 0x19d   :  { %v2868_v49 = vmul.f32 %v2612_v55, %v9737_v12  ;;  %8502 = vtanh.f32 %v3628_v7  ;;  %v3117_v14 = vmul.f32 0.044715, %v2861_v54  ;;  %v1222_v61 = vadd.f32 %v1221_v11, %v9170_v34 }
 0x19e   :  { %v1310_v19 = vpop.f32.mrf.mxu3  ;;  %v1045_v4 = vpop.f32.mrf.mxu0  ;;  %v4637_v46 = vmul.f32 %v4381_v41, %v9692_v24  ;;  %v4388_v45 = vmul.f32 0.5, %v4132_v29 }
 0x19f   :  { %v3124_v42 = vmul.f32 0.044715, %v2868_v49  ;;  %v1046_v25 = vadd.f32 %v1045_v4, %v9158_v18  ;;  %v3373_v31 = vadd.f32 %v3117_v14, %v9732_v35  ;;  %v9756_v15 = vadd.f32 %v1310_v19, %v1222_v61 }
 0x1a0   :  { %v1134_v22 = vpop.f32.mrf.mxu1  ;;  %v9761_v55 = vpack.c.bf16 %v4637_v46, %v4629_v57  ;;  %v4644_v29 = vmul.f32 %v4388_v45, %v9695_v10 }
 0x1a1   :  { %v3380_v51 = vadd.f32 %v3124_v42, %v9737_v12  ;;  %v9759_v7 = vadd.f32 %v1134_v22, %v1046_v25  ;;  %v8501_v50 = vpop.eup %8500  ;;  %v3629_v54 = vmul.f32 0.7978846, %v3373_v31  ;;  %v2613_v49 = vmul.f32 %v9756_v15, %v9756_v15 }
 0x1a2   :  { %12416 = vst [vmem:[#allocation42_spill] sm:$0xff] %v9761_v55  ;;  %v4133_v19 = vadd.f32 1.0, %v8501_v50 }
 0x1a3   :  { %v8503_v11 = vpop.eup %8502  ;;  %v3636_v36 = vmul.f32 0.7978846, %v3380_v51  ;;  %v2620_v24 = vmul.f32 %v9759_v7, %v9759_v7  ;;  %v2869_v20 = vmul.f32 %v2613_v49, %v9756_v15  ;;  %8504 = vtanh.f32 %v3629_v54 }
 0x1a4   :  { %v4140_v41 = vadd.f32 1.0, %v8503_v11  ;;  %v1223_v61 = vpop.f32.mrf.mxu2  ;;  %v4389_v10 = vmul.f32 0.5, %v4133_v19 }
 0x1a5   :  { %v2876_v14 = vmul.f32 %v2620_v24, %v9759_v7  ;;  %8506 = vtanh.f32 %v3636_v36  ;;  %v3125_v4 = vmul.f32 0.044715, %v2869_v20  ;;  %v1224_v42 = vadd.f32 %v1223_v61, %v9170_v34 }
 0x1a6   :  { %v1312_v25 = vpop.f32.mrf.mxu3  ;;  %v1048_v22 = vpop.f32.mrf.mxu0  ;;  %v4396_v57 = vmul.f32 0.5, %v4140_v41 }
 0x1a7   :  { %v3132_v46 = vmul.f32 0.044715, %v2876_v14  ;;  %v1049_v31 = vadd.f32 %v1048_v22, %v9158_v18  ;;  %v3381_v49 = vadd.f32 %v3125_v4, %v9756_v15  ;;  %v9772_v11 = vadd.f32 %v1312_v25, %v1224_v42 }
 0x1a8   :  { %v1137_v51 = vpop.f32.mrf.mxu1  ;;  %v4652_v54 = vmul.f32 %v4396_v57, %v9719_v62 }
 0x1a9   :  { %v3388_v50 = vadd.f32 %v3132_v46, %v9759_v7  ;;  %v9777_v36 = vadd.f32 %v1137_v51, %v1049_v31  ;;  %1363 = vmatmul.bf16.gmra.mxu0 %v9150_v0  ;;  %v8505_v24 = vpop.eup %8504  ;;  %v3637_v20 = vmul.f32 0.7978846, %v3381_v49  ;;  %v2621_v41 = vmul.f32 %v9772_v11, %v9772_v11  ;;  %1541 = vmatmul.bf16.gmra.mxu2 %v9150_v0 }
 0x1aa   :  { %v9784_v14 = vpack.c.bf16 %v4652_v54, %v4644_v29  ;;  %v4141_v61 = vadd.f32 1.0, %v8505_v24  ;;  %v4645_v49 = vmul.f32 %v4389_v10, %v9716_v5  ;;  %v8157_v5 = vld [vmem:[#allocation5 + $0xec] sm:$0xf0]  ;;  %v8217_v10 = vld [vmem:[#allocation5 + $0x2d4] sm:$0xf] }
 0x1ab   :  { %1452 = vmatmul.bf16.gmra.mxu1 %v9152_v1  ;;  %v3644_v45 = vmul.f32 0.7978846, %v3388_v50  ;;  %v2628_v62 = vmul.f32 %v9777_v36, %v9777_v36  ;;  %1630 = vmatmul.bf16.gmra.mxu3 %v9152_v1  ;;  %v8507_v4 = vpop.eup %8506  ;;  %8508 = vtanh.f32 %v3637_v20  ;;  %v2877_v42 = vmul.f32 %v2621_v41, %v9772_v11 }
 0x1ac   :  { %12417 = vst [vmem:[#allocation43_spill] sm:$0xff] %v9784_v14  ;;  %v1226_v22 = vpop.f32.mrf.mxu2  ;;  %v4397_v57 = vmul.f32 0.5, %v4141_v61  ;;  %v4148_v20 = vadd.f32 1.0, %v8507_v4  ;;  %v8153_v61 = vld [vmem:[#allocation5 + $0xd4] sm:$0xf] }
 0x1ad   :  { %v2884_v25 = vmul.f32 %v2628_v62, %v9777_v36  ;;  %8510 = vtanh.f32 %v3644_v45  ;;  %v3133_v46 = vmul.f32 0.044715, %v2877_v42  ;;  %v1227_v31 = vadd.f32 %v1226_v22, %v9170_v34  ;;  %v7219_v45 = vld [vmem:[#allocation5 + $0xf0] sm:$0xf0]  ;;  %v7217_v42 = vld [vmem:[#allocation5 + $0xd0] sm:$0xf] }
 0x1ae   :  { %v1315_v19 = vpop.f32.mrf.mxu3  ;;  %v1050_v51 = vpop.f32.mrf.mxu0  ;;  %v4653_v24 = vmul.f32 %v4397_v57, %v9732_v35  ;;  %v7222_v55 = vor.u32 %v8153_v61, %v7219_v45  ;;  %v7218_v57 = vor.u32 %v8157_v5, %v7217_v42  ;;  %v4404_v61 = vmul.f32 0.5, %v4148_v20 }
 0x1af   :  { %v3140_v29 = vmul.f32 0.044715, %v2884_v25  ;;  %v1051_v54 = vadd.f32 %v1050_v51, %v9158_v18  ;;  %v3389_v41 = vadd.f32 %v3133_v46, %v9772_v11  ;;  %v9796_v62 = vadd.f32 %v1315_v19, %v1227_v31  ;;  %v7475_v25 = vld [vmem:[#allocation5 + $0x2f0] sm:$0xf0] }
 0x1b0   :  { %v1139_v50 = vpop.f32.mrf.mxu1  ;;  %v9801_v18 = vpack.c.bf16 %v4653_v24, %v4645_v49  ;;  %v7478_v46 = vor.u32 %v8217_v10, %v7475_v25  ;;  %1858 = vmatpush.bf16.msra.mxu2 %v7222_v55  ;;  %1680 = vmatpush.bf16.msra.mxu0 %v7218_v57  ;;  %v8221_v57 = vld [vmem:[#allocation5 + $0x2ec] sm:$0xf0] }
 0x1b1   :  { %v3396_v22 = vadd.f32 %v3140_v29, %v9777_v36  ;;  %v9799_v14 = vadd.f32 %v1139_v50, %v1051_v54  ;;  %v8509_v51 = vpop.eup %8508  ;;  %v3645_v35 = vmul.f32 0.7978846, %v3389_v41  ;;  %v2629_v4 = vmul.f32 %v9796_v62, %v9796_v62  ;;  %v8906_v54 = vld [vmem:[#allocation7] sm:$0xff] }
 0x1b2   :  { %12418 = vst [vmem:[#allocation44_spill] sm:$0xff] %v9801_v18  ;;  %v9807_v50 = vperm.slane %v8906_v54, 2  ;;  %1947 = vmatpush.bf16.msra.mxu3 %v7478_v46  ;;  %v4149_v42 = vadd.f32 1.0, %v8509_v51  ;;  %v4660_v46 = vmul.f32 %v4404_v61, %v9737_v12 }
 0x1b3   :  { %v8511_v31 = vpop.eup %8510  ;;  %v3652_v19 = vmul.f32 0.7978846, %v3396_v22  ;;  %v2636_v29 = vmul.f32 %v9799_v14, %v9799_v14  ;;  %v2885_v49 = vmul.f32 %v2629_v4, %v9796_v62  ;;  %8512 = vtanh.f32 %v3645_v35  ;;  %v7473_v4 = vld [vmem:[#allocation5 + $0x2d0] sm:$0xf] }
 0x1b4   :  { %v4156_v24 = vadd.f32 1.0, %v8511_v31  ;;  %v1228_v45 = vpop.f32.mrf.mxu2  ;;  %v7474_v51 = vor.u32 %v8221_v57, %v7473_v4 }
 0x1b5   :  { %v2892_v41 = vmul.f32 %v2636_v29, %v9799_v14  ;;  %8514 = vtanh.f32 %v3652_v19  ;;  %v3141_v22 = vmul.f32 0.044715, %v2885_v49  ;;  %v1229_v5 = vadd.f32 %v1228_v45, %v9170_v34 }
 0x1b6   :  { %v1317_v10 = vpop.f32.mrf.mxu3  ;;  %v1329_v25 = vpop.f32.mrf.mxu0  ;;  %v4412_v18 = vmul.f32 0.5, %v4156_v24  ;;  %v9822_v49 = vperm.slane %v8906_v54, 3  ;;  %1769 = vmatpush.bf16.msra.mxu1 %v7474_v51 }
 0x1b7   :  { %v3148_v30 = vmul.f32 0.044715, %v2892_v41  ;;  %v1330_v55 = vadd.f32 %v1329_v25, %v9807_v50  ;;  %v3397_v35 = vadd.f32 %v3141_v22, %v9796_v62  ;;  %v9815_v31 = vadd.f32 %v1317_v10, %v1229_v5 }
 0x1b8   :  { %v1418_v20 = vpop.f32.mrf.mxu1  ;;  %v4668_v19 = vmul.f32 %v4412_v18, %v9759_v7  ;;  %v4405_v7 = vmul.f32 0.5, %v4149_v42 }
 0x1b9   :  { %v3404_v34 = vadd.f32 %v3148_v30, %v9799_v14  ;;  %v9819_v29 = vadd.f32 %v1418_v20, %v1330_v55  ;;  %1368 = vmatmul.bf16.gmra.mxu0 %v9160_v21  ;;  %v8513_v24 = vpop.eup %8512  ;;  %v3653_v41 = vmul.f32 0.7978846, %v3397_v35  ;;  %v2637_v12 = vmul.f32 %v9815_v31, %v9815_v31  ;;  %1546 = vmatmul.bf16.gmra.mxu2 %v9160_v21 }
 0x1ba   :  { %v9828_v61 = vpack.c.bf16 %v4668_v19, %v4660_v46  ;;  %v4157_v54 = vadd.f32 1.0, %v8513_v24  ;;  %v4661_v57 = vmul.f32 %v4405_v7, %v9756_v15 }
 0x1bb   :  { %1457 = vmatmul.bf16.gmra.mxu1 %v9162_v23  ;;  %v3660_v18 = vmul.f32 0.7978846, %v3404_v34  ;;  %v2390_v30 = vmul.f32 %v9819_v29, %v9819_v29  ;;  %1635 = vmatmul.bf16.gmra.mxu3 %v9162_v23  ;;  %v8515_v45 = vpop.eup %8514  ;;  %8516 = vtanh.f32 %v3653_v41  ;;  %v2893_v22 = vmul.f32 %v2637_v12, %v9815_v31 }
 0x1bc   :  { %12419 = vst [vmem:[#allocation45_spill] sm:$0xff] %v9828_v61  ;;  %v1507_v10 = vpop.f32.mrf.mxu2  ;;  %v4413_v25 = vmul.f32 0.5, %v4157_v54  ;;  %v4164_v34 = vadd.f32 1.0, %v8515_v45 }
 0x1bd   :  { %v2646_v5 = vmul.f32 %v2390_v30, %v9819_v29  ;;  %8518 = vtanh.f32 %v3660_v18  ;;  %v3149_v55 = vmul.f32 0.044715, %v2893_v22  ;;  %v1508_v42 = vadd.f32 %v1507_v10, %v9822_v49 }
 0x1be   :  { %v1596_v20 = vpop.f32.mrf.mxu3  ;;  %v1331_v4 = vpop.f32.mrf.mxu0  ;;  %v4669_v19 = vmul.f32 %v4413_v25, %v9772_v11  ;;  %v4420_v45 = vmul.f32 0.5, %v4164_v34  ;;  %v8209_v34 = vld [vmem:[#allocation5 + $0x294] sm:$0xf] }
 0x1bf   :  { %v2902_v46 = vmul.f32 0.044715, %v2646_v5  ;;  %v1332_v35 = vadd.f32 %v1331_v4, %v9807_v50  ;;  %v3405_v24 = vadd.f32 %v3149_v55, %v9815_v31  ;;  %v9840_v41 = vadd.f32 %v1596_v20, %v1508_v42  ;;  %v8145_v4 = vld [vmem:[#allocation5 + $0x94] sm:$0xf] }
 0x1c0   :  { %v1420_v51 = vpop.f32.mrf.mxu1  ;;  %v9845_v30 = vpack.c.bf16 %v4669_v19, %v4661_v57  ;;  %v7187_v57 = vld [vmem:[#allocation5 + $0xb0] sm:$0xf0] }
 0x1c1   :  { %v3158_v12 = vadd.f32 %v2902_v46, %v9819_v29  ;;  %v9843_v18 = vadd.f32 %v1420_v51, %v1332_v35  ;;  %v8517_v54 = vpop.eup %8516  ;;  %v3661_v22 = vmul.f32 0.7978846, %v3405_v24  ;;  %v2391_v15 = vmul.f32 %v9840_v41, %v9840_v41  ;;  %v7185_v46 = vld [vmem:[#allocation5 + $0x90] sm:$0xf] }
 0x1c2   :  { %12420 = vst [vmem:[#allocation46_spill] sm:$0xff] %v9845_v30  ;;  %v4165_v55 = vadd.f32 1.0, %v8517_v54  ;;  %v8149_v30 = vld [vmem:[#allocation5 + $0xac] sm:$0xf0] }
 0x1c3   :  { %v8519_v7 = vpop.eup %8518  ;;  %v3414_v5 = vmul.f32 0.7978846, %v3158_v12  ;;  %v2398_v11 = vmul.f32 %v9843_v18, %v9843_v18  ;;  %v2647_v10 = vmul.f32 %v2391_v15, %v9840_v41  ;;  %8520 = vtanh.f32 %v3661_v22 }
 0x1c4   :  { %v4172_v25 = vadd.f32 1.0, %v8519_v7  ;;  %v1509_v20 = vpop.f32.mrf.mxu2  ;;  %v7190_v12 = vor.u32 %v8145_v4, %v7187_v57  ;;  %v7186_v54 = vor.u32 %v8149_v30, %v7185_v46  ;;  %v7443_v7 = vld [vmem:[#allocation5 + $0x2b0] sm:$0xf0]  ;;  %v4421_v46 = vmul.f32 0.5, %v4165_v55 }
 0x1c5   :  { %v2654_v42 = vmul.f32 %v2398_v11, %v9843_v18  ;;  %8522 = vtanh.f32 %v3414_v5  ;;  %v2903_v35 = vmul.f32 0.044715, %v2647_v10  ;;  %v1510_v51 = vadd.f32 %v1509_v20, %v9822_v49 }
 0x1c6   :  { %v1598_v19 = vpop.f32.mrf.mxu3  ;;  %v1334_v24 = vpop.f32.mrf.mxu0  ;;  %v4428_v11 = vmul.f32 0.5, %v4172_v25  ;;  %1859 = vmatpush.bf16.msra.mxu2 %v7190_v12  ;;  %v7446_v5 = vor.u32 %v8209_v34, %v7443_v7  ;;  %1681 = vmatpush.bf16.msra.mxu0 %v7186_v54 }
 0x1c7   :  { %v2910_v61 = vmul.f32 0.044715, %v2654_v42  ;;  %v1335_v15 = vadd.f32 %v1334_v24, %v9807_v50  ;;  %v3159_v6 = vadd.f32 %v2903_v35, %v9840_v41  ;;  %v9856_v44 = vadd.f32 %v1598_v19, %v1510_v51  ;;  %v7441_v51 = vld [vmem:[#allocation5 + $0x290] sm:$0xf] }
 0x1c8   :  { %v1423_v22 = vpop.f32.mrf.mxu1  ;;  %v4676_v42 = vmul.f32 %v4420_v45, %v9777_v36  ;;  %v4684_v4 = vmul.f32 %v4428_v11, %v9799_v14  ;;  %1948 = vmatpush.bf16.msra.mxu3 %v7446_v5  ;;  %v8213_v19 = vld [vmem:[#allocation5 + $0x2ac] sm:$0xf0]  ;;  %v4677_v5 = vmul.f32 %v4421_v46, %v9796_v62 }
 0x1c9   :  { %v3166_v10 = vadd.f32 %v2910_v61, %v9843_v18  ;;  %v9859_v20 = vadd.f32 %v1423_v22, %v1335_v15  ;;  %1373 = vmatmul.bf16.gmra.mxu0 %v9189_v63  ;;  %v8521_v57 = vpop.eup %8520  ;;  %v3415_v30 = vmul.f32 0.7978846, %v3159_v6  ;;  %v2399_v25 = vmul.f32 %v9856_v44, %v9856_v44  ;;  %1551 = vmatmul.bf16.gmra.mxu2 %v9189_v63 }
 0x1ca   :  { %v9871_v36 = vpack.c.bf16 %v4684_v4, %v4676_v42  ;;  %v4173_v14 = vadd.f32 1.0, %v8521_v57  ;;  %v7442_v12 = vor.u32 %v8213_v19, %v7441_v51 }
 0x1cb   :  { %1462 = vmatmul.bf16.gmra.mxu1 %v9192_v13  ;;  %v3422_v35 = vmul.f32 0.7978846, %v3166_v10  ;;  %v2406_v61 = vmul.f32 %v9859_v20, %v9859_v20  ;;  %1640 = vmatmul.bf16.gmra.mxu3 %v9192_v13  ;;  %v8523_v45 = vpop.eup %8522  ;;  %8524 = vtanh.f32 %v3415_v30  ;;  %v2655_v6 = vmul.f32 %v2399_v25, %v9856_v44 }
 0x1cc   :  { %12421 = vst [vmem:[#allocation47_spill] sm:$0xff] %v9871_v36  ;;  %v1512_v24 = vpop.f32.mrf.mxu2  ;;  %v4429_v34 = vmul.f32 0.5, %v4173_v14  ;;  %1770 = vmatpush.bf16.msra.mxu1 %v7442_v12  ;;  %v3926_v57 = vadd.f32 1.0, %v8523_v45 }
 0x1cd   :  { %8526 = vtanh.f32 %v3422_v35  ;;  %v2662_v55 = vmul.f32 %v2406_v61, %v9859_v20  ;;  %v2911_v15 = vmul.f32 0.044715, %v2655_v6  ;;  %v1513_v22 = vadd.f32 %v1512_v24, %v9822_v49 }
 0x1ce   :  { %v1601_v54 = vpop.f32.mrf.mxu3  ;;  %v1336_v7 = vpop.f32.mrf.mxu0  ;;  %v4685_v4 = vmul.f32 %v4429_v34, %v9815_v31  ;;  %v4182_v46 = vmul.f32 0.5, %v3926_v57 }
 0x1cf   :  { %v2918_v11 = vmul.f32 0.044715, %v2662_v55  ;;  %v1337_v10 = vadd.f32 %v1336_v7, %v9807_v50  ;;  %v3167_v30 = vadd.f32 %v2911_v15, %v9856_v44  ;;  %v9880_v25 = vadd.f32 %v1601_v54, %v1513_v22 }
 0x1d0   :  { %v1425_v42 = vpop.f32.mrf.mxu1  ;;  %v9885_v14 = vpack.c.bf16 %v4685_v4, %v4677_v5  ;;  %v4438_v57 = vmul.f32 %v4182_v46, %v9819_v29 }
 0x1d1   :  { %v3174_v35 = vadd.f32 %v2918_v11, %v9859_v20  ;;  %v9883_v61 = vadd.f32 %v1425_v42, %v1337_v10  ;;  %v8525_v6 = vpop.eup %8524  ;;  %v3423_v51 = vmul.f32 0.7978846, %v3167_v30  ;;  %v2407_v19 = vmul.f32 %v9880_v25, %v9880_v25 }
 0x1d2   :  { %12422 = vst [vmem:[#allocation48_spill] sm:$0xff] %v9885_v14  ;;  %v3927_v12 = vadd.f32 1.0, %v8525_v6  ;;  %v8141_v14 = vld [vmem:[#allocation5 + $0x6c] sm:$0xf0] }
 0x1d3   :  { %v8527_v55 = vpop.eup %8526  ;;  %v3430_v62 = vmul.f32 0.7978846, %v3174_v35  ;;  %v2414_v31 = vmul.f32 %v9883_v61, %v9883_v61  ;;  %8528 = vtanh.f32 %v3423_v51  ;;  %v2663_v24 = vmul.f32 %v2407_v19, %v9880_v25 }
 0x1d4   :  { %v3934_v45 = vadd.f32 1.0, %v8527_v55  ;;  %v1514_v15 = vpop.f32.mrf.mxu2 }
 0x1d5   :  { %v2670_v34 = vmul.f32 %v2414_v31, %v9883_v61  ;;  %8530 = vtanh.f32 %v3430_v62  ;;  %v2919_v54 = vmul.f32 0.044715, %v2663_v24  ;;  %v1515_v7 = vadd.f32 %v1514_v15, %v9822_v49 }
 0x1d6   :  { %v4190_v22 = vmul.f32 0.5, %v3934_v45  ;;  %v1603_v11 = vpop.f32.mrf.mxu3  ;;  %v1339_v10 = vpop.f32.mrf.mxu0  ;;  %v4183_v62 = vmul.f32 0.5, %v3927_v12 }
 0x1d7   :  { %v2926_v42 = vmul.f32 0.044715, %v2670_v34  ;;  %v1340_v5 = vadd.f32 %v1339_v10, %v9807_v50  ;;  %v3175_v35 = vadd.f32 %v2919_v54, %v9880_v25  ;;  %v9898_v6 = vadd.f32 %v1603_v11, %v1515_v7 }
 0x1d8   :  { %v1428_v4 = vpop.f32.mrf.mxu1  ;;  %v4446_v30 = vmul.f32 %v4190_v22, %v9843_v18  ;;  %v4439_v7 = vmul.f32 %v4183_v62, %v9840_v41 }
 0x1d9   :  { %v3182_v51 = vadd.f32 %v2926_v42, %v9883_v61  ;;  %v9901_v19 = vadd.f32 %v1428_v4, %v1340_v5  ;;  %1378 = vmatmul.bf16.gmra.mxu0 %v9225_v38  ;;  %v8529_v55 = vpop.eup %8528  ;;  %v3431_v45 = vmul.f32 0.7978846, %v3175_v35  ;;  %v2415_v29 = vmul.f32 %v9898_v6, %v9898_v6  ;;  %1556 = vmatmul.bf16.gmra.mxu2 %v9225_v38 }
 0x1da   :  { %v9904_v31 = vpack.c.bf16 %v4446_v30, %v4438_v57  ;;  %v3935_v18 = vadd.f32 1.0, %v8529_v55 }
 0x1db   :  { %1467 = vmatmul.bf16.gmra.mxu1 %v9227_v39  ;;  %v3438_v46 = vmul.f32 0.7978846, %v3182_v51  ;;  %v2422_v24 = vmul.f32 %v9901_v19, %v9901_v19  ;;  %1645 = vmatmul.bf16.gmra.mxu3 %v9227_v39  ;;  %v8531_v34 = vpop.eup %8530  ;;  %8532 = vtanh.f32 %v3431_v45  ;;  %v2671_v12 = vmul.f32 %v2415_v29, %v9898_v6 }
 0x1dc   :  { %12423 = vst [vmem:[#allocation49_spill] sm:$0xff] %v9904_v31  ;;  %v4191_v15 = vmul.f32 0.5, %v3935_v18  ;;  %v1517_v54 = vpop.f32.mrf.mxu2  ;;  %v3942_v51 = vadd.f32 1.0, %v8531_v34 }
 0x1dd   :  { %v2678_v22 = vmul.f32 %v2422_v24, %v9901_v19  ;;  %8534 = vtanh.f32 %v3438_v46  ;;  %v2927_v11 = vmul.f32 0.044715, %v2671_v12  ;;  %v1518_v10 = vadd.f32 %v1517_v54, %v9822_v49 }
 0x1de   :  { %v1606_v42 = vpop.f32.mrf.mxu3  ;;  %v1341_v5 = vpop.f32.mrf.mxu0  ;;  %v4447_v4 = vmul.f32 %v4191_v15, %v9856_v44  ;;  %v4198_v15 = vmul.f32 0.5, %v3942_v51  ;;  %v8201_v51 = vld [vmem:[#allocation5 + $0x254] sm:$0xf] }
 0x1df   :  { %v2934_v57 = vmul.f32 0.044715, %v2678_v22  ;;  %v1342_v30 = vadd.f32 %v1341_v5, %v9807_v50  ;;  %v3183_v55 = vadd.f32 %v2927_v11, %v9898_v6  ;;  %v9920_v45 = vadd.f32 %v1606_v42, %v1518_v10  ;;  %v8137_v42 = vld [vmem:[#allocation5 + $0x54] sm:$0xf] }
 0x1e0   :  { %v1430_v35 = vpop.f32.mrf.mxu1  ;;  %v9922_v29 = vpack.c.bf16 %v4447_v4, %v4439_v7  ;;  %v7155_v5 = vld [vmem:[#allocation5 + $0x70] sm:$0xf0]  ;;  %v7153_v4 = vld [vmem:[#allocation5 + $0x50] sm:$0xf] }
 0x1e1   :  { %v3190_v41 = vadd.f32 %v2934_v57, %v9901_v19  ;;  %v9925_v62 = vadd.f32 %v1430_v35, %v1342_v30  ;;  %v8533_v18 = vpop.eup %8532  ;;  %v3439_v46 = vmul.f32 0.7978846, %v3183_v55  ;;  %v2423_v44 = vmul.f32 %v9920_v45, %v9920_v45 }
 0x1e2   :  { %12424 = vst [vmem:[#allocation50_spill] sm:$0xff] %v9922_v29  ;;  %v3943_v7 = vadd.f32 1.0, %v8533_v18  ;;  %v7154_v18 = vor.u32 %v8141_v14, %v7153_v4 }
 0x1e3   :  { %v8535_v24 = vpop.eup %8534  ;;  %v3446_v12 = vmul.f32 0.7978846, %v3190_v41  ;;  %v2430_v34 = vmul.f32 %v9925_v62, %v9925_v62  ;;  %v2679_v22 = vmul.f32 %v2423_v44, %v9920_v45  ;;  %8536 = vtanh.f32 %v3439_v46 }
 0x1e4   :  { %v3950_v54 = vadd.f32 1.0, %v8535_v24  ;;  %v1519_v10 = vpop.f32.mrf.mxu2  ;;  %v7158_v41 = vor.u32 %v8137_v42, %v7155_v5  ;;  %v7411_v24 = vld [vmem:[#allocation5 + $0x270] sm:$0xf0]  ;;  %v4199_v4 = vmul.f32 0.5, %v3943_v7  ;;  %1682 = vmatpush.bf16.msra.mxu0 %v7154_v18 }
 0x1e5   :  { %v2686_v11 = vmul.f32 %v2430_v34, %v9925_v62  ;;  %8538 = vtanh.f32 %v3446_v12  ;;  %v2935_v57 = vmul.f32 0.044715, %v2679_v22  ;;  %v1520_v30 = vadd.f32 %v1519_v10, %v9822_v49 }
 0x1e6   :  { %v1608_v35 = vpop.f32.mrf.mxu3  ;;  %v1344_v55 = vpop.f32.mrf.mxu0  ;;  %v4206_v34 = vmul.f32 0.5, %v3950_v54  ;;  %1860 = vmatpush.bf16.msra.mxu2 %v7158_v41  ;;  %v7414_v12 = vor.u32 %v8201_v51, %v7411_v24 }
 0x1e7   :  { %v2942_v36 = vmul.f32 0.044715, %v2686_v11  ;;  %v1345_v44 = vadd.f32 %v1344_v55, %v9807_v50  ;;  %v3191_v29 = vadd.f32 %v2935_v57, %v9920_v45  ;;  %v9936_v31 = vadd.f32 %v1608_v35, %v1520_v30  ;;  %v7409_v30 = vld [vmem:[#allocation5 + $0x250] sm:$0xf] }
 0x1e8   :  { %v1433_v46 = vpop.f32.mrf.mxu1  ;;  %v4454_v11 = vmul.f32 %v4198_v15, %v9859_v20  ;;  %v4462_v42 = vmul.f32 %v4206_v34, %v9883_v61  ;;  %1949 = vmatpush.bf16.msra.mxu3 %v7414_v12  ;;  %v8205_v35 = vld [vmem:[#allocation5 + $0x26c] sm:$0xf0]  ;;  %v4455_v12 = vmul.f32 %v4199_v4, %v9880_v25 }
 0x1e9   :  { %v3198_v22 = vadd.f32 %v2942_v36, %v9925_v62  ;;  %v9939_v10 = vadd.f32 %v1433_v46, %v1345_v44  ;;  %1383 = vmatmul.bf16.gmra.mxu0 %v9269_v16  ;;  %v8537_v5 = vpop.eup %8536  ;;  %v3447_v14 = vmul.f32 0.7978846, %v3191_v29  ;;  %v2431_v54 = vmul.f32 %v9936_v31, %v9936_v31  ;;  %1561 = vmatmul.bf16.gmra.mxu2 %v9269_v16 }
 0x1ea   :  { %v9951_v20 = vpack.c.bf16 %v4462_v42, %v4454_v11  ;;  %v3951_v61 = vadd.f32 1.0, %v8537_v5  ;;  %v7410_v41 = vor.u32 %v8205_v35, %v7409_v30 }
 0x1eb   :  { %1472 = vmatmul.bf16.gmra.mxu1 %v9271_v17  ;;  %v3454_v57 = vmul.f32 0.7978846, %v3198_v22  ;;  %v2438_v36 = vmul.f32 %v9939_v10, %v9939_v10  ;;  %1650 = vmatmul.bf16.gmra.mxu3 %v9271_v17  ;;  %v8539_v15 = vpop.eup %8538  ;;  %8540 = vtanh.f32 %v3447_v14  ;;  %v2687_v29 = vmul.f32 %v2431_v54, %v9936_v31 }
 0x1ec   :  { %12425 = vst [vmem:[#allocation51_spill] sm:$0xff] %v9951_v20  ;;  %v1522_v7 = vpop.f32.mrf.mxu2  ;;  %v4207_v51 = vmul.f32 0.5, %v3951_v61  ;;  %1771 = vmatpush.bf16.msra.mxu1 %v7410_v41  ;;  %v3958_v54 = vadd.f32 1.0, %v8539_v15 }
 0x1ed   :  { %v2694_v55 = vmul.f32 %v2438_v36, %v9939_v10  ;;  %8542 = vtanh.f32 %v3454_v57  ;;  %v2943_v44 = vmul.f32 0.044715, %v2687_v29  ;;  %v1523_v46 = vadd.f32 %v1522_v7, %v9822_v49 }
 0x1ee   :  { %v1611_v18 = vpop.f32.mrf.mxu3  ;;  %v1346_v24 = vpop.f32.mrf.mxu0  ;;  %v4463_v42 = vmul.f32 %v4207_v51, %v9898_v6  ;;  %v4214_v15 = vmul.f32 0.5, %v3958_v54 }
 0x1ef   :  { %v2950_v34 = vmul.f32 0.044715, %v2694_v55  ;;  %v1347_v22 = vadd.f32 %v1346_v24, %v9807_v50  ;;  %v3199_v5 = vadd.f32 %v2943_v44, %v9936_v31  ;;  %v9960_v14 = vadd.f32 %v1611_v18, %v1523_v46 }
 0x1f0   :  { %v1435_v11 = vpop.f32.mrf.mxu1  ;;  %v9965_v61 = vpack.c.bf16 %v4463_v42, %v4455_v12  ;;  %v4470_v54 = vmul.f32 %v4214_v15, %v9901_v19 }
 0x1f1   :  { %v3206_v57 = vadd.f32 %v2950_v34, %v9939_v10  ;;  %v9963_v36 = vadd.f32 %v1435_v11, %v1347_v22  ;;  %v8541_v29 = vpop.eup %8540  ;;  %v3455_v30 = vmul.f32 0.7978846, %v3199_v5  ;;  %v2439_v35 = vmul.f32 %v9960_v14, %v9960_v14 }
 0x1f2   :  { %12426 = vst [vmem:[#allocation52_spill] sm:$0xff] %v9965_v61  ;;  %v3959_v44 = vadd.f32 1.0, %v8541_v29 }
 0x1f3   :  { %v8543_v55 = vpop.eup %8542  ;;  %v3462_v25 = vmul.f32 0.7978846, %v3206_v57  ;;  %v2446_v6 = vmul.f32 %v9963_v36, %v9963_v36  ;;  %v2695_v4 = vmul.f32 %v2439_v35, %v9960_v14  ;;  %8544 = vtanh.f32 %v3455_v30 }
 0x1f4   :  { %v3966_v7 = vadd.f32 1.0, %v8543_v55  ;;  %v1524_v51 = vpop.f32.mrf.mxu2  ;;  %v4215_v19 = vmul.f32 0.5, %v3959_v44 }
 0x1f5   :  { %v2702_v41 = vmul.f32 %v2446_v6, %v9963_v36  ;;  %8546 = vtanh.f32 %v3462_v25  ;;  %v2951_v46 = vmul.f32 0.044715, %v2695_v4  ;;  %v1525_v18 = vadd.f32 %v1524_v51, %v9822_v49 }
 0x1f6   :  { %v1613_v24 = vpop.f32.mrf.mxu3  ;;  %v1349_v34 = vpop.f32.mrf.mxu0  ;;  %v4222_v22 = vmul.f32 0.5, %v3966_v7 }
 0x1f7   :  { %v2958_v11 = vmul.f32 0.044715, %v2702_v41  ;;  %v1350_v12 = vadd.f32 %v1349_v34, %v9807_v50  ;;  %v3207_v5 = vadd.f32 %v2951_v46, %v9960_v14  ;;  %v9976_v57 = vadd.f32 %v1613_v24, %v1525_v18 }
 0x1f8   :  { %v1438_v42 = vpop.f32.mrf.mxu1  ;;  %v4478_v30 = vmul.f32 %v4222_v22, %v9925_v62 }
 0x1f9   :  { %v3214_v29 = vadd.f32 %v2958_v11, %v9963_v36  ;;  %v9981_v35 = vadd.f32 %v1438_v42, %v1350_v12  ;;  %1388 = vmatmul.bf16.gmra.mxu0 %v9313_v37  ;;  %v8545_v55 = vpop.eup %8544  ;;  %v3463_v25 = vmul.f32 0.7978846, %v3207_v5  ;;  %v2447_v6 = vmul.f32 %v9976_v57, %v9976_v57  ;;  %1566 = vmatmul.bf16.gmra.mxu2 %v9313_v37 }
 0x1fa   :  { %v9988_v4 = vpack.c.bf16 %v4478_v30, %v4470_v54  ;;  %v3967_v15 = vadd.f32 1.0, %v8545_v55  ;;  %v4471_v12 = vmul.f32 %v4215_v19, %v9920_v45 }
 0x1fb   :  { %1477 = vmatmul.bf16.gmra.mxu1 %v9315_v40  ;;  %v3470_v7 = vmul.f32 0.7978846, %v3214_v29  ;;  %v2454_v62 = vmul.f32 %v9981_v35, %v9981_v35  ;;  %1655 = vmatmul.bf16.gmra.mxu3 %v9315_v40  ;;  %v8547_v41 = vpop.eup %8546  ;;  %8548 = vtanh.f32 %v3463_v25  ;;  %v2703_v51 = vmul.f32 %v2447_v6, %v9976_v57 }
 0x1fc   :  { %12427 = vst [vmem:[#allocation53_spill] sm:$0xff] %v9988_v4  ;;  %v1527_v18 = vpop.f32.mrf.mxu2  ;;  %v4223_v24 = vmul.f32 0.5, %v3967_v15  ;;  %v3974_v29 = vadd.f32 1.0, %v8547_v41 }
 0x1fd   :  { %v2710_v46 = vmul.f32 %v2454_v62, %v9981_v35  ;;  %8550 = vtanh.f32 %v3470_v7  ;;  %v2959_v34 = vmul.f32 0.044715, %v2703_v51  ;;  %v1528_v22 = vadd.f32 %v1527_v18, %v9822_v49 }
 0x1fe   :  { %v1616_v44 = vpop.f32.mrf.mxu3  ;;  %v1351_v11 = vpop.f32.mrf.mxu0  ;;  %v4479_v30 = vmul.f32 %v4223_v24, %v9936_v31  ;;  %v4230_v41 = vmul.f32 0.5, %v3974_v29  ;;  %v8193_v29 = vld [vmem:[#allocation5 + $0x214] sm:$0xf] }
 0x1ff   :  { %v2966_v42 = vmul.f32 0.044715, %v2710_v46  ;;  %v1352_v5 = vadd.f32 %v1351_v11, %v9807_v50  ;;  %v3215_v55 = vadd.f32 %v2959_v34, %v9976_v57  ;;  %v10000_v25 = vadd.f32 %v1616_v44, %v1528_v22  ;;  %v8129_v11 = vld [vmem:[#allocation5 + $0x14] sm:$0xf] }
 0x200   :  { %v1440_v54 = vpop.f32.mrf.mxu1  ;;  %v10005_v62 = vpack.c.bf16 %v4479_v30, %v4471_v12  ;;  %v7123_v12 = vld [vmem:[#allocation5 + $0x30] sm:$0xf0] }
 0x201   :  { %v3222_v6 = vadd.f32 %v2966_v42, %v9981_v35  ;;  %v10003_v7 = vadd.f32 %v1440_v54, %v1352_v5  ;;  %v8549_v15 = vpop.eup %8548  ;;  %v3471_v51 = vmul.f32 0.7978846, %v3215_v55  ;;  %v2455_v45 = vmul.f32 %v10000_v25, %v10000_v25  ;;  %v7121_v42 = vld [vmem:[#allocation5 + $0x10] sm:$0xf] }
 0x202   :  { %12428 = vst [vmem:[#allocation54_spill] sm:$0xff] %v10005_v62  ;;  %v3975_v34 = vadd.f32 1.0, %v8549_v15  ;;  %v8133_v62 = vld [vmem:[#allocation5 + $0x2c] sm:$0xf0] }
 0x203   :  { %v8551_v19 = vpop.eup %8550  ;;  %v3478_v46 = vmul.f32 0.7978846, %v3222_v6  ;;  %v2462_v31 = vmul.f32 %v10003_v7, %v10003_v7  ;;  %v2711_v18 = vmul.f32 %v2455_v45, %v10000_v25  ;;  %8552 = vtanh.f32 %v3471_v51 }
 0x204   :  { %v3982_v24 = vadd.f32 1.0, %v8551_v19  ;;  %v1529_v44 = vpop.f32.mrf.mxu2  ;;  %v7126_v6 = vor.u32 %v8129_v11, %v7123_v12  ;;  %v7122_v15 = vor.u32 %v8133_v62, %v7121_v42  ;;  %v7379_v19 = vld [vmem:[#allocation5 + $0x230] sm:$0xf0]  ;;  %v4231_v42 = vmul.f32 0.5, %v3975_v34 }
 0x205   :  { %v2718_v22 = vmul.f32 %v2462_v31, %v10003_v7  ;;  %8554 = vtanh.f32 %v3478_v46  ;;  %v2967_v5 = vmul.f32 0.044715, %v2711_v18  ;;  %v1530_v54 = vadd.f32 %v1529_v44, %v9822_v49 }
 0x206   :  { %v1618_v30 = vpop.f32.mrf.mxu3  ;;  %v1354_v55 = vpop.f32.mrf.mxu0  ;;  %v4238_v31 = vmul.f32 0.5, %v3982_v24  ;;  %1861 = vmatpush.bf16.msra.mxu2 %v7126_v6  ;;  %v7382_v46 = vor.u32 %v8193_v29, %v7379_v19  ;;  %1683 = vmatpush.bf16.msra.mxu0 %v7122_v15 }
 0x207   :  { %v2974_v4 = vmul.f32 0.044715, %v2718_v22  ;;  %v1355_v45 = vadd.f32 %v1354_v55, %v9807_v50  ;;  %v3223_v61 = vadd.f32 %v2967_v5, %v10000_v25  ;;  %v10016_v20 = vadd.f32 %v1618_v30, %v1530_v54  ;;  %v7377_v54 = vld [vmem:[#allocation5 + $0x210] sm:$0xf] }
 0x208   :  { %v1443_v51 = vpop.f32.mrf.mxu1  ;;  %v4486_v22 = vmul.f32 %v4230_v41, %v9939_v10  ;;  %v4494_v11 = vmul.f32 %v4238_v31, %v9963_v36  ;;  %1950 = vmatpush.bf16.msra.mxu3 %v7382_v46  ;;  %v8197_v30 = vld [vmem:[#allocation5 + $0x22c] sm:$0xf0]  ;;  %v4487_v46 = vmul.f32 %v4231_v42, %v9960_v14 }
 0x209   :  { %v3230_v18 = vadd.f32 %v2974_v4, %v10003_v7  ;;  %v10019_v44 = vadd.f32 %v1443_v51, %v1355_v45  ;;  %1393 = vmatmul.bf16.gmra.mxu0 %v9357_v28  ;;  %v8553_v12 = vpop.eup %8552  ;;  %v3479_v62 = vmul.f32 0.7978846, %v3223_v61  ;;  %v2463_v24 = vmul.f32 %v10016_v20, %v10016_v20  ;;  %1571 = vmatmul.bf16.gmra.mxu2 %v9357_v28 }
 0x20a   :  { %v10031_v10 = vpack.c.bf16 %v4494_v11, %v4486_v22  ;;  %v3983_v36 = vadd.f32 1.0, %v8553_v12  ;;  %v7378_v6 = vor.u32 %v8197_v30, %v7377_v54 }
 0x20b   :  { %1482 = vmatmul.bf16.gmra.mxu1 %v9359_v56  ;;  %v3486_v5 = vmul.f32 0.7978846, %v3230_v18  ;;  %v2470_v4 = vmul.f32 %v10019_v44, %v10019_v44  ;;  %1660 = vmatmul.bf16.gmra.mxu3 %v9359_v56  ;;  %v8555_v41 = vpop.eup %8554  ;;  %8556 = vtanh.f32 %v3479_v62  ;;  %v2719_v61 = vmul.f32 %v2463_v24, %v10016_v20 }
 0x20c   :  { %12429 = vst [vmem:[#allocation55_spill] sm:$0xff] %v10031_v10  ;;  %v1532_v34 = vpop.f32.mrf.mxu2  ;;  %v4239_v29 = vmul.f32 0.5, %v3983_v36  ;;  %1772 = vmatpush.bf16.msra.mxu1 %v7378_v6  ;;  %v3990_v24 = vadd.f32 1.0, %v8555_v41 }
 0x20d   :  { %v2726_v55 = vmul.f32 %v2470_v4, %v10019_v44  ;;  %8558 = vtanh.f32 %v3486_v5  ;;  %v2975_v45 = vmul.f32 0.044715, %v2719_v61  ;;  %v1533_v51 = vadd.f32 %v1532_v34, %v9822_v49 }
 0x20e   :  { %v1621_v15 = vpop.f32.mrf.mxu3  ;;  %v1356_v19 = vpop.f32.mrf.mxu0  ;;  %v4495_v11 = vmul.f32 %v4239_v29, %v9976_v57  ;;  %v4246_v41 = vmul.f32 0.5, %v3990_v24 }
 0x20f   :  { %v2982_v31 = vmul.f32 0.044715, %v2726_v55  ;;  %v1357_v18 = vadd.f32 %v1356_v19, %v9807_v50  ;;  %v3231_v12 = vadd.f32 %v2975_v45, %v10016_v20  ;;  %v10040_v62 = vadd.f32 %v1621_v15, %v1533_v51 }
 0x210   :  { %v1445_v22 = vpop.f32.mrf.mxu1  ;;  %v10045_v36 = vpack.c.bf16 %v4495_v11, %v4487_v46  ;;  %v4502_v24 = vmul.f32 %v4246_v41, %v9981_v35 }
 0x211   :  { %v3238_v5 = vadd.f32 %v2982_v31, %v10019_v44  ;;  %v10043_v4 = vadd.f32 %v1445_v22, %v1357_v18  ;;  %v8557_v61 = vpop.eup %8556  ;;  %v3487_v54 = vmul.f32 0.7978846, %v3231_v12  ;;  %v2471_v30 = vmul.f32 %v10040_v62, %v10040_v62 }
 0x212   :  { %12430 = vst [vmem:[#allocation56_spill] sm:$0xff] %v10045_v36  ;;  %v3991_v45 = vadd.f32 1.0, %v8557_v61  ;;  %v8190_v36 = vld [vmem:[#allocation5 + $0x1f4] sm:$0xf0] }
 0x213   :  { %v8559_v55 = vpop.eup %8558  ;;  %v3494_v14 = vmul.f32 0.7978846, %v3238_v5  ;;  %v2478_v57 = vmul.f32 %v10043_v4, %v10043_v4  ;;  %v2727_v42 = vmul.f32 %v2471_v30, %v10040_v62  ;;  %8560 = vtanh.f32 %v3487_v54 }
 0x214   :  { %v3998_v34 = vadd.f32 1.0, %v8559_v55  ;;  %v1534_v29 = vpop.f32.mrf.mxu2  ;;  %v12431_v55 = vld [vmem:[#allocation23_spill] sm:$0xff]  ;;  %v4247_v35 = vmul.f32 0.5, %v3991_v45 }
 0x215   :  { %v2734_v6 = vmul.f32 %v2478_v57, %v10043_v4  ;;  %8562 = vtanh.f32 %v3494_v14  ;;  %v2983_v51 = vmul.f32 0.044715, %v2727_v42  ;;  %v1535_v15 = vadd.f32 %v1534_v29, %v9822_v49 }
 0x216   :  { %v1623_v19 = vpop.f32.mrf.mxu3  ;;  %v1359_v31 = vpop.f32.mrf.mxu0  ;;  %v4254_v18 = vmul.f32 0.5, %v3998_v34  ;;  %v12432_v34 = vld [vmem:[#allocation24_spill] sm:$0xff] }
 0x217   :  { %v2990_v22 = vmul.f32 0.044715, %v2734_v6  ;;  %v1360_v46 = vadd.f32 %v1359_v31, %v9807_v50  ;;  %v3239_v12 = vadd.f32 %v2983_v51, %v10040_v62  ;;  %v10056_v5 = vadd.f32 %v1623_v19, %v1535_v15 }
 0x218   :  { %v1448_v11 = vpop.f32.mrf.mxu1  ;;  %v4510_v54 = vmul.f32 %v4254_v18, %v10003_v7 }
 0x219   :  { %v3246_v61 = vadd.f32 %v2990_v22, %v10043_v4  ;;  %v10061_v30 = vadd.f32 %v1448_v11, %v1360_v46  ;;  %1398 = vmatmul.bf16.gmra.mxu0 %v12431_v55  ;;  %v8561_v14 = vpop.eup %8560  ;;  %v3495_v57 = vmul.f32 0.7978846, %v3239_v12  ;;  %v2479_v42 = vmul.f32 %v10056_v5, %v10056_v5  ;;  %1576 = vmatmul.bf16.gmra.mxu2 %v12431_v55 }
 0x21a   :  { %v10068_v6 = vpack.c.bf16 %v4510_v54, %v4502_v24  ;;  %v3999_v29 = vadd.f32 1.0, %v8561_v14  ;;  %v4503_v12 = vmul.f32 %v4247_v35, %v10000_v25 }
 0x21b   :  { %1487 = vmatmul.bf16.gmra.mxu1 %v12432_v34  ;;  %v3502_v41 = vmul.f32 0.7978846, %v3246_v61  ;;  %v2486_v7 = vmul.f32 %v10061_v30, %v10061_v30  ;;  %1665 = vmatmul.bf16.gmra.mxu3 %v12432_v34  ;;  %v8563_v51 = vpop.eup %8562  ;;  %8564 = vtanh.f32 %v3495_v57  ;;  %v2735_v15 = vmul.f32 %v2479_v42, %v10056_v5 }
 0x21c   :  { %12433 = vst [vmem:[#allocation57_spill] sm:$0xff] %v10068_v6  ;;  %v1537_v31 = vpop.f32.mrf.mxu2  ;;  %v4255_v18 = vmul.f32 0.5, %v3999_v29  ;;  %v4006_v57 = vadd.f32 1.0, %v8563_v51 }
 0x21d   :  { %v2742_v19 = vmul.f32 %v2486_v7, %v10061_v30  ;;  %8566 = vtanh.f32 %v3502_v41  ;;  %v2991_v22 = vmul.f32 0.044715, %v2735_v15  ;;  %v1538_v46 = vadd.f32 %v1537_v31, %v9822_v49 }
 0x21e   :  { %v1626_v45 = vpop.f32.mrf.mxu3  ;;  %v1361_v11 = vpop.f32.mrf.mxu0  ;;  %v4511_v14 = vmul.f32 %v4255_v18, %v10016_v20  ;;  %v4262_v51 = vmul.f32 0.5, %v4006_v57  ;;  %v8250_v57 = vld [vmem:[#allocation5 + $0x3dc] sm:$0xf] }
 0x21f   :  { %v2998_v24 = vmul.f32 0.044715, %v2742_v19  ;;  %v1362_v54 = vadd.f32 %v1361_v11, %v9807_v50  ;;  %v3247_v42 = vadd.f32 %v2991_v22, %v10056_v5  ;;  %v10080_v7 = vadd.f32 %v1626_v45, %v1538_v46 }
 0x220   :  { %v1450_v61 = vpop.f32.mrf.mxu1  ;;  %v10085_v15 = vpack.c.bf16 %v4511_v14, %v4503_v12  ;;  %v8186_v12 = vld [vmem:[#allocation5 + $0x1dc] sm:$0xf] }
 0x221   :  { %v3254_v41 = vadd.f32 %v2998_v24, %v10061_v30  ;;  %v10083_v29 = vadd.f32 %v1450_v61, %v1362_v54  ;;  %v8565_v31 = vpop.eup %8564  ;;  %v3503_v6 = vmul.f32 0.7978846, %v3247_v42  ;;  %v2487_v25 = vmul.f32 %v10080_v7, %v10080_v7  ;;  %v7355_v24 = vld [vmem:[#allocation5 + $0x1f8] sm:$0xf0]  ;;  %v7353_v54 = vld [vmem:[#allocation5 + $0x1d8] sm:$0xf] }
 0x222   :  { %12434 = vst [vmem:[#allocation58_spill] sm:$0xff] %v10085_v15  ;;  %v4007_v46 = vadd.f32 1.0, %v8565_v31  ;;  %v7358_v15 = vor.u32 %v8186_v12, %v7355_v24  ;;  %v7354_v31 = vor.u32 %v8190_v36, %v7353_v54 }
 0x223   :  { %v8567_v35 = vpop.eup %8566  ;;  %v3510_v19 = vmul.f32 0.7978846, %v3254_v41  ;;  %v2494_v20 = vmul.f32 %v10083_v29, %v10083_v29  ;;  %v2743_v18 = vmul.f32 %v2487_v25, %v10080_v7  ;;  %8568 = vtanh.f32 %v3503_v6 }
 0x224   :  { %v4014_v22 = vadd.f32 1.0, %v8567_v35  ;;  %v1539_v11 = vpop.f32.mrf.mxu2  ;;  %v7611_v35 = vld [vmem:[#allocation5 + $0x3f8] sm:$0xf0]  ;;  %2210 = vmatpush.bf16.msrb.mxu2 %v7358_v15  ;;  %v4263_v15 = vmul.f32 0.5, %v4007_v46  ;;  %2032 = vmatpush.bf16.msrb.mxu0 %v7354_v31 }
 0x225   :  { %v2750_v45 = vmul.f32 %v2494_v20, %v10083_v29  ;;  %8570 = vtanh.f32 %v3510_v19  ;;  %v2999_v61 = vmul.f32 0.044715, %v2743_v18  ;;  %v1540_v14 = vadd.f32 %v1539_v11, %v9822_v49 }
 0x226   :  { %v1628_v42 = vpop.f32.mrf.mxu3  ;;  %v1364_v41 = vpop.f32.mrf.mxu0  ;;  %v4270_v20 = vmul.f32 0.5, %v4014_v22  ;;  %v7614_v19 = vor.u32 %v8250_v57, %v7611_v35 }
 0x227   :  { %v3006_v10 = vmul.f32 0.044715, %v2750_v45  ;;  %v1365_v25 = vadd.f32 %v1364_v41, %v9807_v50  ;;  %v3255_v34 = vadd.f32 %v2999_v61, %v10080_v7  ;;  %v10096_v55 = vadd.f32 %v1628_v42, %v1540_v14  ;;  %v7609_v61 = vld [vmem:[#allocation5 + $0x3d8] sm:$0xf] }
 0x228   :  { %v1453_v6 = vpop.f32.mrf.mxu1  ;;  %v4518_v45 = vmul.f32 %v4262_v51, %v10019_v44  ;;  %v4526_v12 = vmul.f32 %v4270_v20, %v10043_v4  ;;  %2299 = vmatpush.bf16.msrb.mxu3 %v7614_v19  ;;  %v8254_v14 = vld [vmem:[#allocation5 + $0x3f4] sm:$0xf0]  ;;  %v4519_v19 = vmul.f32 %v4263_v15, %v10040_v62 }
 0x229   :  { %v3262_v18 = vadd.f32 %v3006_v10, %v10083_v29  ;;  %v10099_v11 = vadd.f32 %v1453_v6, %v1365_v25  ;;  %1403 = vmatmul.bf16.gmra.mxu0 %v9445_v48  ;;  %v8569_v24 = vpop.eup %8568  ;;  %v3511_v36 = vmul.f32 0.7978846, %v3255_v34  ;;  %v2495_v22 = vmul.f32 %v10096_v55, %v10096_v55  ;;  %1581 = vmatmul.bf16.gmra.mxu2 %v9445_v48 }
 0x22a   :  { %v10111_v44 = vpack.c.bf16 %v4526_v12, %v4518_v45  ;;  %v4015_v4 = vadd.f32 1.0, %v8569_v24  ;;  %v7610_v41 = vor.u32 %v8254_v14, %v7609_v61 }
 0x22b   :  { %1492 = vmatmul.bf16.gmra.mxu1 %v9447_v60  ;;  %v3518_v54 = vmul.f32 0.7978846, %v3262_v18  ;;  %v2502_v10 = vmul.f32 %v10099_v11, %v10099_v11  ;;  %1670 = vmatmul.bf16.gmra.mxu3 %v9447_v60  ;;  %v8571_v51 = vpop.eup %8570  ;;  %8572 = vtanh.f32 %v3511_v36  ;;  %v2751_v34 = vmul.f32 %v2495_v22, %v10096_v55 }
 0x22c   :  { %12435 = vst [vmem:[#allocation59_spill] sm:$0xff] %v10111_v44  ;;  %v1542_v46 = vpop.f32.mrf.mxu2  ;;  %v4271_v57 = vmul.f32 0.5, %v4015_v4  ;;  %2121 = vmatpush.bf16.msrb.mxu1 %v7610_v41  ;;  %v4022_v22 = vadd.f32 1.0, %v8571_v51 }
 0x22d   :  { %v2758_v42 = vmul.f32 %v2502_v10, %v10099_v11  ;;  %8574 = vtanh.f32 %v3518_v54  ;;  %v3007_v25 = vmul.f32 0.044715, %v2751_v34  ;;  %v1543_v6 = vadd.f32 %v1542_v46, %v9822_v49 }
 0x22e   :  { %v1631_v31 = vpop.f32.mrf.mxu3  ;;  %v1366_v35 = vpop.f32.mrf.mxu0  ;;  %v4527_v12 = vmul.f32 %v4271_v57, %v10056_v5  ;;  %v4278_v51 = vmul.f32 0.5, %v4022_v22 }
 0x22f   :  { %v3014_v20 = vmul.f32 0.044715, %v2758_v42  ;;  %v1367_v18 = vadd.f32 %v1366_v35, %v9807_v50  ;;  %v3263_v24 = vadd.f32 %v3007_v25, %v10096_v55  ;;  %v10120_v36 = vadd.f32 %v1631_v31, %v1543_v6 }
 0x230   :  { %v1455_v45 = vpop.f32.mrf.mxu1  ;;  %v10125_v4 = vpack.c.bf16 %v4527_v12, %v4519_v19  ;;  %v4534_v22 = vmul.f32 %v4278_v51, %v10061_v30 }
 0x231   :  { %v3270_v54 = vadd.f32 %v3014_v20, %v10099_v11  ;;  %v10123_v10 = vadd.f32 %v1455_v45, %v1367_v18  ;;  %v8573_v34 = vpop.eup %8572  ;;  %v3519_v61 = vmul.f32 0.7978846, %v3263_v24  ;;  %v2503_v14 = vmul.f32 %v10120_v36, %v10120_v36 }
 0x232   :  { %12436 = vst [vmem:[#allocation60_spill] sm:$0xff] %v10125_v4  ;;  %v4023_v25 = vadd.f32 1.0, %v8573_v34 }
 0x233   :  { %v8575_v42 = vpop.eup %8574  ;;  %v3526_v62 = vmul.f32 0.7978846, %v3270_v54  ;;  %v2510_v5 = vmul.f32 %v10123_v10, %v10123_v10  ;;  %v2759_v15 = vmul.f32 %v2503_v14, %v10120_v36  ;;  %8576 = vtanh.f32 %v3519_v61 }
 0x234   :  { %v4030_v46 = vadd.f32 1.0, %v8575_v42  ;;  %v1544_v57 = vpop.f32.mrf.mxu2  ;;  %v4279_v30 = vmul.f32 0.5, %v4023_v25 }
 0x235   :  { %v2766_v41 = vmul.f32 %v2510_v5, %v10123_v10  ;;  %8578 = vtanh.f32 %v3526_v62  ;;  %v3015_v6 = vmul.f32 0.044715, %v2759_v15  ;;  %v1545_v31 = vadd.f32 %v1544_v57, %v9822_v49 }
 0x236   :  { %v1633_v35 = vpop.f32.mrf.mxu3  ;;  %v1369_v20 = vpop.f32.mrf.mxu0  ;;  %v4286_v18 = vmul.f32 0.5, %v4030_v46 }
 0x237   :  { %v3022_v45 = vmul.f32 0.044715, %v2766_v41  ;;  %v1370_v19 = vadd.f32 %v1369_v20, %v9807_v50  ;;  %v3271_v24 = vadd.f32 %v3015_v6, %v10120_v36  ;;  %v10136_v54 = vadd.f32 %v1633_v35, %v1545_v31 }
 0x238   :  { %v1458_v12 = vpop.f32.mrf.mxu1  ;;  %v4542_v61 = vmul.f32 %v4286_v18, %v10083_v29 }
 0x239   :  { %v3278_v34 = vadd.f32 %v3022_v45, %v10123_v10  ;;  %v10141_v14 = vadd.f32 %v1458_v12, %v1370_v19  ;;  %1684 = vmatmul.bf16.vlgmr.msra.gmra.mxu0 %v9094_v43  ;;  %v8577_v42 = vpop.eup %8576  ;;  %v3527_v62 = vmul.f32 0.7978846, %v3271_v24  ;;  %v2511_v5 = vmul.f32 %v10136_v54, %v10136_v54  ;;  %1862 = vmatmul.bf16.vlgmr.msra.gmra.mxu2 %v9094_v43 }
 0x23a   :  { %v10148_v15 = vpack.c.bf16 %v4542_v61, %v4534_v22  ;;  %v4031_v51 = vadd.f32 1.0, %v8577_v42  ;;  %v4535_v19 = vmul.f32 %v4279_v30, %v10080_v7 }
 0x23b   :  { %1773 = vmatmul.bf16.vlgmr.msra.gmra.mxu1 %v9096_v47  ;;  %v3534_v46 = vmul.f32 0.7978846, %v3278_v34  ;;  %v2518_v29 = vmul.f32 %v10141_v14, %v10141_v14  ;;  %1951 = vmatmul.bf16.vlgmr.msra.gmra.mxu3 %v9096_v47  ;;  %v8579_v41 = vpop.eup %8578  ;;  %8580 = vtanh.f32 %v3527_v62  ;;  %v2767_v57 = vmul.f32 %v2511_v5, %v10136_v54 }
 0x23c   :  { %12437 = vst [vmem:[#allocation61_spill] sm:$0xff] %v10148_v15  ;;  %v1547_v31 = vpop.f32.mrf.mxu2  ;;  %v4287_v35 = vmul.f32 0.5, %v4031_v51  ;;  %v4038_v34 = vadd.f32 1.0, %v8579_v41 }
 0x23d   :  { %v2774_v6 = vmul.f32 %v2518_v29, %v10141_v14  ;;  %8582 = vtanh.f32 %v3534_v46  ;;  %v3023_v20 = vmul.f32 0.044715, %v2767_v57  ;;  %v1548_v18 = vadd.f32 %v1547_v31, %v9822_v49 }
 0x23e   :  { %v1636_v25 = vpop.f32.mrf.mxu3  ;;  %v1371_v45 = vpop.f32.mrf.mxu0  ;;  %v4543_v61 = vmul.f32 %v4287_v35, %v10096_v55  ;;  %v4294_v41 = vmul.f32 0.5, %v4038_v34  ;;  %v8242_v34 = vld [vmem:[#allocation5 + $0x39c] sm:$0xf] }
 0x23f   :  { %v3030_v12 = vmul.f32 0.044715, %v2774_v6  ;;  %v1372_v24 = vadd.f32 %v1371_v45, %v9807_v50  ;;  %v3279_v42 = vadd.f32 %v3023_v20, %v10136_v54  ;;  %v10160_v62 = vadd.f32 %v1636_v25, %v1548_v18  ;;  %v8178_v45 = vld [vmem:[#allocation5 + $0x19c] sm:$0xf] }
 0x240   :  { %v1460_v22 = vpop.f32.mrf.mxu1  ;;  %v10165_v29 = vpack.c.bf16 %v4543_v61, %v4535_v19  ;;  %v7323_v19 = vld [vmem:[#allocation5 + $0x1b8] sm:$0xf0] }
 0x241   :  { %v3286_v5 = vadd.f32 %v3030_v12, %v10141_v14  ;;  %v10163_v46 = vadd.f32 %v1460_v22, %v1372_v24  ;;  %v8581_v51 = vpop.eup %8580  ;;  %v3535_v57 = vmul.f32 0.7978846, %v3279_v42  ;;  %v2519_v7 = vmul.f32 %v10160_v62, %v10160_v62  ;;  %v7321_v12 = vld [vmem:[#allocation5 + $0x198] sm:$0xf] }
 0x242   :  { %12438 = vst [vmem:[#allocation62_spill] sm:$0xff] %v10165_v29  ;;  %v4039_v20 = vadd.f32 1.0, %v8581_v51  ;;  %v8182_v29 = vld [vmem:[#allocation5 + $0x1b4] sm:$0xf0] }
 0x243   :  { %v8583_v30 = vpop.eup %8582  ;;  %v3542_v6 = vmul.f32 0.7978846, %v3286_v5  ;;  %v2526_v55 = vmul.f32 %v10163_v46, %v10163_v46  ;;  %v2775_v31 = vmul.f32 %v2519_v7, %v10160_v62  ;;  %8584 = vtanh.f32 %v3535_v57 }
 0x244   :  { %v4046_v35 = vadd.f32 1.0, %v8583_v30  ;;  %v1549_v25 = vpop.f32.mrf.mxu2  ;;  %v7326_v5 = vor.u32 %v8178_v45, %v7323_v19  ;;  %v7322_v51 = vor.u32 %v8182_v29, %v7321_v12  ;;  %v7579_v30 = vld [vmem:[#allocation5 + $0x3b8] sm:$0xf0]  ;;  %v4295_v12 = vmul.f32 0.5, %v4039_v20 }
 0x245   :  { %v2782_v18 = vmul.f32 %v2526_v55, %v10163_v46  ;;  %8586 = vtanh.f32 %v3542_v6  ;;  %v3031_v24 = vmul.f32 0.044715, %v2775_v31  ;;  %v1550_v22 = vadd.f32 %v1549_v25, %v9822_v49 }
 0x246   :  { %v1638_v61 = vpop.f32.mrf.mxu3  ;;  %v1374_v42 = vpop.f32.mrf.mxu0  ;;  %v4302_v55 = vmul.f32 0.5, %v4046_v35  ;;  %2211 = vmatpush.bf16.msrb.mxu2 %v7326_v5  ;;  %v7582_v6 = vor.u32 %v8242_v34, %v7579_v30  ;;  %2033 = vmatpush.bf16.msrb.mxu0 %v7322_v51 }
 0x247   :  { %v3038_v15 = vmul.f32 0.044715, %v2782_v18  ;;  %v1375_v7 = vadd.f32 %v1374_v42, %v9807_v50  ;;  %v3287_v4 = vadd.f32 %v3031_v24, %v10160_v62  ;;  %v10176_v44 = vadd.f32 %v1638_v61, %v1550_v22  ;;  %v7577_v22 = vld [vmem:[#allocation5 + $0x398] sm:$0xf] }
 0x248   :  { %v1463_v57 = vpop.f32.mrf.mxu1  ;;  %v4550_v18 = vmul.f32 %v4294_v41, %v10099_v11  ;;  %v4558_v45 = vmul.f32 %v4302_v55, %v10123_v10  ;;  %2300 = vmatpush.bf16.msrb.mxu3 %v7582_v6  ;;  %v8246_v61 = vld [vmem:[#allocation5 + $0x3b4] sm:$0xf0]  ;;  %v4551_v6 = vmul.f32 %v4295_v12, %v10120_v36 }
 0x249   :  { %v3294_v31 = vadd.f32 %v3038_v15, %v10163_v46  ;;  %v10179_v25 = vadd.f32 %v1463_v57, %v1375_v7  ;;  %1689 = vmatmul.bf16.gmra.mxu0 %v9102_v2  ;;  %v8585_v19 = vpop.eup %8584  ;;  %v3543_v29 = vmul.f32 0.7978846, %v3287_v4  ;;  %v2527_v35 = vmul.f32 %v10176_v44, %v10176_v44  ;;  %1867 = vmatmul.bf16.gmra.mxu2 %v9102_v2 }
 0x24a   :  { %v10191_v11 = vpack.c.bf16 %v4558_v45, %v4550_v18  ;;  %v4047_v10 = vadd.f32 1.0, %v8585_v19  ;;  %v7578_v5 = vor.u32 %v8246_v61, %v7577_v22 }
 0x24b   :  { %1778 = vmatmul.bf16.gmra.mxu1 %v9104_v3  ;;  %v3550_v24 = vmul.f32 0.7978846, %v3294_v31  ;;  %v2534_v15 = vmul.f32 %v10179_v25, %v10179_v25  ;;  %1956 = vmatmul.bf16.gmra.mxu3 %v9104_v3  ;;  %v8587_v41 = vpop.eup %8586  ;;  %8588 = vtanh.f32 %v3543_v29  ;;  %v2783_v4 = vmul.f32 %v2527_v35, %v10176_v44 }
 0x24c   :  { %12439 = vst [vmem:[#allocation63_spill] sm:$0xff] %v10191_v11  ;;  %v1552_v20 = vpop.f32.mrf.mxu2  ;;  %v4303_v34 = vmul.f32 0.5, %v4047_v10  ;;  %2122 = vmatpush.bf16.msrb.mxu1 %v7578_v5  ;;  %v4054_v35 = vadd.f32 1.0, %v8587_v41 }
 0x24d   :  { %v2790_v42 = vmul.f32 %v2534_v15, %v10179_v25  ;;  %8590 = vtanh.f32 %v3550_v24  ;;  %v3039_v7 = vmul.f32 0.044715, %v2783_v4  ;;  %v1553_v57 = vadd.f32 %v1552_v20, %v9822_v49 }
 0x24e   :  { %v1641_v51 = vpop.f32.mrf.mxu3  ;;  %v1376_v30 = vpop.f32.mrf.mxu0  ;;  %v4559_v45 = vmul.f32 %v4303_v34, %v10136_v54  ;;  %v4310_v41 = vmul.f32 0.5, %v4054_v35 }
 0x24f   :  { %v3046_v55 = vmul.f32 0.044715, %v2790_v42  ;;  %v1377_v31 = vadd.f32 %v1376_v30, %v9807_v50  ;;  %v3295_v19 = vadd.f32 %v3039_v7, %v10176_v44  ;;  %v10200_v29 = vadd.f32 %v1641_v51, %v1553_v57 }
 0x250   :  { %v1465_v18 = vpop.f32.mrf.mxu1  ;;  %v10205_v10 = vpack.c.bf16 %v4559_v45, %v4551_v6  ;;  %v4566_v35 = vmul.f32 %v4310_v41, %v10141_v14 }
 0x251   :  { %v3302_v24 = vadd.f32 %v3046_v55, %v10179_v25  ;;  %v10203_v15 = vadd.f32 %v1465_v18, %v1377_v31  ;;  %v8589_v4 = vpop.eup %8588  ;;  %v3551_v22 = vmul.f32 0.7978846, %v3295_v19  ;;  %v2535_v61 = vmul.f32 %v10200_v29, %v10200_v29 }
 0x252   :  { %12440 = vst [vmem:[#allocation64_spill] sm:$0xff] %v10205_v10  ;;  %v4055_v7 = vadd.f32 1.0, %v8589_v4 }
 0x253   :  { %v8591_v42 = vpop.eup %8590  ;;  %v3558_v36 = vmul.f32 0.7978846, %v3302_v24  ;;  %v2542_v54 = vmul.f32 %v10203_v15, %v10203_v15  ;;  %v2791_v12 = vmul.f32 %v2535_v61, %v10200_v29  ;;  %8592 = vtanh.f32 %v3551_v22 }
 0x254   :  { %v4062_v20 = vadd.f32 1.0, %v8591_v42  ;;  %v1554_v34 = vpop.f32.mrf.mxu2  ;;  %v4311_v14 = vmul.f32 0.5, %v4055_v7 }
 0x255   :  { %v2798_v5 = vmul.f32 %v2542_v54, %v10203_v15  ;;  %8594 = vtanh.f32 %v3558_v36  ;;  %v3047_v57 = vmul.f32 0.044715, %v2791_v12  ;;  %v1555_v51 = vadd.f32 %v1554_v34, %v9822_v49 }
 0x256   :  { %v1643_v30 = vpop.f32.mrf.mxu3  ;;  %v1379_v55 = vpop.f32.mrf.mxu0  ;;  %v4318_v31 = vmul.f32 0.5, %v4062_v20 }
 0x257   :  { %v3054_v18 = vmul.f32 0.044715, %v2798_v5  ;;  %v1380_v6 = vadd.f32 %v1379_v55, %v9807_v50  ;;  %v3303_v19 = vadd.f32 %v3047_v57, %v10200_v29  ;;  %v10216_v24 = vadd.f32 %v1643_v30, %v1555_v51 }
 0x258   :  { %v1468_v45 = vpop.f32.mrf.mxu1  ;;  %v4574_v22 = vmul.f32 %v4318_v31, %v10163_v46 }
 0x259   :  { %v3310_v4 = vadd.f32 %v3054_v18, %v10203_v15  ;;  %v10221_v61 = vadd.f32 %v1468_v45, %v1380_v6  ;;  %1694 = vmatmul.bf16.gmra.mxu0 %v9110_v8  ;;  %v8593_v42 = vpop.eup %8592  ;;  %v3559_v36 = vmul.f32 0.7978846, %v3303_v19  ;;  %v2543_v54 = vmul.f32 %v10216_v24, %v10216_v24  ;;  %1872 = vmatmul.bf16.gmra.mxu2 %v9110_v8 }
 0x25a   :  { %v10228_v12 = vpack.c.bf16 %v4574_v22, %v4566_v35  ;;  %v4063_v41 = vadd.f32 1.0, %v8593_v42  ;;  %v4567_v6 = vmul.f32 %v4311_v14, %v10160_v62 }
 0x25b   :  { %1783 = vmatmul.bf16.gmra.mxu1 %v9112_v9  ;;  %v3566_v20 = vmul.f32 0.7978846, %v3310_v4  ;;  %v2550_v46 = vmul.f32 %v10221_v61, %v10221_v61  ;;  %1961 = vmatmul.bf16.gmra.mxu3 %v9112_v9  ;;  %v8595_v5 = vpop.eup %8594  ;;  %8596 = vtanh.f32 %v3559_v36  ;;  %v2799_v34 = vmul.f32 %v2543_v54, %v10216_v24 }
 0x25c   :  { %12441 = vst [vmem:[#allocation65_spill] sm:$0xff] %v10228_v12  ;;  %v1557_v51 = vpop.f32.mrf.mxu2  ;;  %v4319_v30 = vmul.f32 0.5, %v4063_v41  ;;  %v4070_v4 = vadd.f32 1.0, %v8595_v5 }
 0x25d   :  { %v2806_v57 = vmul.f32 %v2550_v46, %v10221_v61  ;;  %8598 = vtanh.f32 %v3566_v20  ;;  %v3055_v55 = vmul.f32 0.044715, %v2799_v34  ;;  %v1558_v31 = vadd.f32 %v1557_v51, %v9822_v49 }
 0x25e   :  { %v1646_v7 = vpop.f32.mrf.mxu3  ;;  %v1381_v18 = vpop.f32.mrf.mxu0  ;;  %v4575_v22 = vmul.f32 %v4319_v30, %v10176_v44  ;;  %v4326_v5 = vmul.f32 0.5, %v4070_v4  ;;  %v8234_v4 = vld [vmem:[#allocation5 + $0x35c] sm:$0xf] }
 0x25f   :  { %v3062_v45 = vmul.f32 0.044715, %v2806_v57  ;;  %v1382_v19 = vadd.f32 %v1381_v18, %v9807_v50  ;;  %v3311_v42 = vadd.f32 %v3055_v55, %v10216_v24  ;;  %v10240_v36 = vadd.f32 %v1646_v7, %v1558_v31  ;;  %v8170_v18 = vld [vmem:[#allocation5 + $0x15c] sm:$0xf] }
 0x260   :  { %v1470_v35 = vpop.f32.mrf.mxu1  ;;  %v10245_v46 = vpack.c.bf16 %v4575_v22, %v4567_v6  ;;  %v7291_v6 = vld [vmem:[#allocation5 + $0x178] sm:$0xf0] }
 0x261   :  { %v3318_v54 = vadd.f32 %v3062_v45, %v10221_v61  ;;  %v10243_v20 = vadd.f32 %v1470_v35, %v1382_v19  ;;  %v8597_v41 = vpop.eup %8596  ;;  %v3567_v34 = vmul.f32 0.7978846, %v3311_v42  ;;  %v2551_v62 = vmul.f32 %v10240_v36, %v10240_v36  ;;  %v7289_v45 = vld [vmem:[#allocation5 + $0x158] sm:$0xf] }
 0x262   :  { %12442 = vst [vmem:[#allocation66_spill] sm:$0xff] %v10245_v46  ;;  %v4071_v55 = vadd.f32 1.0, %v8597_v41  ;;  %v8174_v46 = vld [vmem:[#allocation5 + $0x174] sm:$0xf0] }
 0x263   :  { %v8599_v14 = vpop.eup %8598  ;;  %v3574_v57 = vmul.f32 0.7978846, %v3318_v54  ;;  %v2558_v44 = vmul.f32 %v10243_v20, %v10243_v20  ;;  %v2807_v51 = vmul.f32 %v2551_v62, %v10240_v36  ;;  %8600 = vtanh.f32 %v3567_v34 }
 0x264   :  { %v4078_v30 = vadd.f32 1.0, %v8599_v14  ;;  %v1559_v7 = vpop.f32.mrf.mxu2  ;;  %v7294_v54 = vor.u32 %v8170_v18, %v7291_v6  ;;  %v7290_v41 = vor.u32 %v8174_v46, %v7289_v45  ;;  %v7547_v14 = vld [vmem:[#allocation5 + $0x378] sm:$0xf0]  ;;  %v4327_v45 = vmul.f32 0.5, %v4071_v55 }
 0x265   :  { %v2814_v31 = vmul.f32 %v2558_v44, %v10243_v20  ;;  %8602 = vtanh.f32 %v3574_v57  ;;  %v3063_v19 = vmul.f32 0.044715, %v2807_v51  ;;  %v1560_v35 = vadd.f32 %v1559_v7, %v9822_v49 }
 0x266   :  { %v1648_v22 = vpop.f32.mrf.mxu3  ;;  %v1384_v42 = vpop.f32.mrf.mxu0  ;;  %v4334_v44 = vmul.f32 0.5, %v4078_v30  ;;  %2212 = vmatpush.bf16.msrb.mxu2 %v7294_v54  ;;  %v7550_v57 = vor.u32 %v8234_v4, %v7547_v14  ;;  %2034 = vmatpush.bf16.msrb.mxu0 %v7290_v41 }
 0x267   :  { %v3070_v12 = vmul.f32 0.044715, %v2814_v31  ;;  %v1385_v62 = vadd.f32 %v1384_v42, %v9807_v50  ;;  %v3319_v10 = vadd.f32 %v3063_v19, %v10240_v36  ;;  %v10256_v11 = vadd.f32 %v1648_v22, %v1560_v35  ;;  %v7545_v35 = vld [vmem:[#allocation5 + $0x358] sm:$0xf] }
 0x268   :  { %v1473_v34 = vpop.f32.mrf.mxu1  ;;  %v4582_v31 = vmul.f32 %v4326_v5, %v10179_v25  ;;  %v4590_v18 = vmul.f32 %v4334_v44, %v10203_v15  ;;  %2301 = vmatpush.bf16.msrb.mxu3 %v7550_v57  ;;  %v8238_v22 = vld [vmem:[#allocation5 + $0x374] sm:$0xf0]  ;;  %v4583_v57 = vmul.f32 %v4327_v45, %v10200_v29 }
 0x269   :  { %v3326_v51 = vadd.f32 %v3070_v12, %v10243_v20  ;;  %v10259_v7 = vadd.f32 %v1473_v34, %v1385_v62  ;;  %1699 = vmatmul.bf16.gmra.mxu0 %v9118_v26  ;;  %v8601_v6 = vpop.eup %8600  ;;  %v3575_v46 = vmul.f32 0.7978846, %v3319_v10  ;;  %v2559_v30 = vmul.f32 %v10256_v11, %v10256_v11  ;;  %1877 = vmatmul.bf16.gmra.mxu2 %v9118_v26 }
 0x26a   :  { %v10271_v25 = vpack.c.bf16 %v4590_v18, %v4582_v31  ;;  %v4079_v15 = vadd.f32 1.0, %v8601_v6  ;;  %v7546_v54 = vor.u32 %v8238_v22, %v7545_v35 }
 0x26b   :  { %1788 = vmatmul.bf16.gmra.mxu1 %v9120_v27  ;;  %v3582_v19 = vmul.f32 0.7978846, %v3326_v51  ;;  %v2566_v12 = vmul.f32 %v10259_v7, %v10259_v7  ;;  %1966 = vmatmul.bf16.gmra.mxu3 %v9120_v27  ;;  %v8603_v5 = vpop.eup %8602  ;;  %8604 = vtanh.f32 %v3575_v46  ;;  %v2815_v10 = vmul.f32 %v2559_v30, %v10256_v11 }
 0x26c   :  { %12443 = vst [vmem:[#allocation67_spill] sm:$0xff] %v10271_v25  ;;  %v1562_v55 = vpop.f32.mrf.mxu2  ;;  %v4335_v4 = vmul.f32 0.5, %v4079_v15  ;;  %2123 = vmatpush.bf16.msrb.mxu1 %v7546_v54  ;;  %v4086_v30 = vadd.f32 1.0, %v8603_v5 }
 0x26d   :  { %v2822_v42 = vmul.f32 %v2566_v12, %v10259_v7  ;;  %8606 = vtanh.f32 %v3582_v19  ;;  %v3071_v62 = vmul.f32 0.044715, %v2815_v10  ;;  %v1563_v34 = vadd.f32 %v1562_v55, %v9822_v49 }
 0x26e   :  { %v1651_v41 = vpop.f32.mrf.mxu3  ;;  %v1386_v14 = vpop.f32.mrf.mxu0  ;;  %v4591_v18 = vmul.f32 %v4335_v4, %v10216_v24  ;;  %v4342_v5 = vmul.f32 0.5, %v4086_v30 }
 0x26f   :  { %v3078_v44 = vmul.f32 0.044715, %v2822_v42  ;;  %v1387_v51 = vadd.f32 %v1386_v14, %v9807_v50  ;;  %v3327_v6 = vadd.f32 %v3071_v62, %v10256_v11  ;;  %v10280_v46 = vadd.f32 %v1651_v41, %v1563_v34 }
 0x270   :  { %v1475_v31 = vpop.f32.mrf.mxu1  ;;  %v10285_v15 = vpack.c.bf16 %v4591_v18, %v4583_v57  ;;  %v4598_v30 = vmul.f32 %v4342_v5, %v10221_v61 }
 0x271   :  { %v3334_v19 = vadd.f32 %v3078_v44, %v10259_v7  ;;  %v10283_v12 = vadd.f32 %v1475_v31, %v1387_v51  ;;  %v8605_v10 = vpop.eup %8604  ;;  %v3583_v35 = vmul.f32 0.7978846, %v3327_v6  ;;  %v2567_v22 = vmul.f32 %v10280_v46, %v10280_v46 }
 0x272   :  { %12444 = vst [vmem:[#allocation68_spill] sm:$0xff] %v10285_v15  ;;  %v4087_v62 = vadd.f32 1.0, %v8605_v10 }
 0x273   :  { %v8607_v42 = vpop.eup %8606  ;;  %v3590_v29 = vmul.f32 0.7978846, %v3334_v19  ;;  %v2574_v24 = vmul.f32 %v10283_v12, %v10283_v12  ;;  %v2823_v45 = vmul.f32 %v2567_v22, %v10280_v46  ;;  %8608 = vtanh.f32 %v3583_v35 }
 0x274   :  { %v4094_v55 = vadd.f32 1.0, %v8607_v42  ;;  %v1564_v4 = vpop.f32.mrf.mxu2  ;;  %v4343_v61 = vmul.f32 0.5, %v4087_v62 }
 0x275   :  { %v2830_v54 = vmul.f32 %v2574_v24, %v10283_v12  ;;  %8610 = vtanh.f32 %v3590_v29  ;;  %v3079_v34 = vmul.f32 0.044715, %v2823_v45  ;;  %v1565_v41 = vadd.f32 %v1564_v4, %v9822_v49 }
 0x276   :  { %v1653_v14 = vpop.f32.mrf.mxu3  ;;  %v1389_v44 = vpop.f32.mrf.mxu0  ;;  %v4350_v51 = vmul.f32 0.5, %v4094_v55 }
 0x277   :  { %v3086_v31 = vmul.f32 0.044715, %v2830_v54  ;;  %v1390_v57 = vadd.f32 %v1389_v44, %v9807_v50  ;;  %v3335_v6 = vadd.f32 %v3079_v34, %v10280_v46  ;;  %v10296_v19 = vadd.f32 %v1653_v14, %v1565_v41 }
 0x278   :  { %v1478_v18 = vpop.f32.mrf.mxu1  ;;  %v4606_v35 = vmul.f32 %v4350_v51, %v10243_v20 }
 0x279   :  { %v3342_v10 = vadd.f32 %v3086_v31, %v10283_v12  ;;  %v10301_v22 = vadd.f32 %v1478_v18, %v1390_v57  ;;  %1704 = vmatmul.bf16.gmra.mxu0 %v9126_v32  ;;  %v8609_v42 = vpop.eup %8608  ;;  %v3591_v29 = vmul.f32 0.7978846, %v3335_v6  ;;  %v2575_v24 = vmul.f32 %v10296_v19, %v10296_v19  ;;  %1882 = vmatmul.bf16.gmra.mxu2 %v9126_v32 }
 0x27a   :  { %v10308_v45 = vpack.c.bf16 %v4606_v35, %v4598_v30  ;;  %v4095_v5 = vadd.f32 1.0, %v8609_v42  ;;  %v4599_v57 = vmul.f32 %v4343_v61, %v10240_v36 }
 0x27b   :  { %1793 = vmatmul.bf16.gmra.mxu1 %v9128_v33  ;;  %v3598_v55 = vmul.f32 0.7978846, %v3342_v10  ;;  %v2582_v20 = vmul.f32 %v10301_v22, %v10301_v22  ;;  %1971 = vmatmul.bf16.gmra.mxu3 %v9128_v33  ;;  %v8611_v54 = vpop.eup %8610  ;;  %8612 = vtanh.f32 %v3591_v29  ;;  %v2831_v4 = vmul.f32 %v2575_v24, %v10296_v19 }
 0x27c   :  { %12445 = vst [vmem:[#allocation69_spill] sm:$0xff] %v10308_v45  ;;  %v1567_v41 = vpop.f32.mrf.mxu2  ;;  %v4351_v14 = vmul.f32 0.5, %v4095_v5  ;;  %v4102_v10 = vadd.f32 1.0, %v8611_v54 }
 0x27d   :  { %v2838_v34 = vmul.f32 %v2582_v20, %v10301_v22  ;;  %8614 = vtanh.f32 %v3598_v55  ;;  %v3087_v44 = vmul.f32 0.044715, %v2831_v4  ;;  %v1568_v51 = vadd.f32 %v1567_v41, %v9822_v49 }
 0x27e   :  { %v1656_v62 = vpop.f32.mrf.mxu3  ;;  %v1391_v31 = vpop.f32.mrf.mxu0  ;;  %v4607_v35 = vmul.f32 %v4351_v14, %v10256_v11  ;;  %v4358_v54 = vmul.f32 0.5, %v4102_v10  ;;  %v8226_v10 = vld [vmem:[#allocation5 + $0x31c] sm:$0xf] }
 0x27f   :  { %v3094_v18 = vmul.f32 0.044715, %v2838_v34  ;;  %v1392_v6 = vadd.f32 %v1391_v31, %v9807_v50  ;;  %v3343_v42 = vadd.f32 %v3087_v44, %v10296_v19  ;;  %v10320_v29 = vadd.f32 %v1656_v62, %v1568_v51  ;;  %v8162_v31 = vld [vmem:[#allocation5 + $0x11c] sm:$0xf] }
 0x280   :  { %v1480_v30 = vpop.f32.mrf.mxu1  ;;  %v10325_v20 = vpack.c.bf16 %v4607_v35, %v4599_v57  ;;  %v7259_v57 = vld [vmem:[#allocation5 + $0x138] sm:$0xf0] }
 0x281   :  { %v3350_v24 = vadd.f32 %v3094_v18, %v10301_v22  ;;  %v10323_v55 = vadd.f32 %v1480_v30, %v1392_v6  ;;  %v8613_v5 = vpop.eup %8612  ;;  %v3599_v4 = vmul.f32 0.7978846, %v3343_v42  ;;  %v2583_v36 = vmul.f32 %v10320_v29, %v10320_v29  ;;  %v7257_v18 = vld [vmem:[#allocation5 + $0x118] sm:$0xf] }
 0x282   :  { %12446 = vst [vmem:[#allocation70_spill] sm:$0xff] %v10325_v20  ;;  %v4103_v44 = vadd.f32 1.0, %v8613_v5  ;;  %v8166_v20 = vld [vmem:[#allocation5 + $0x134] sm:$0xf0] }
 0x283   :  { %v8615_v61 = vpop.eup %8614  ;;  %v3606_v34 = vmul.f32 0.7978846, %v3350_v24  ;;  %v2590_v11 = vmul.f32 %v10323_v55, %v10323_v55  ;;  %v2839_v41 = vmul.f32 %v2583_v36, %v10320_v29  ;;  %8616 = vtanh.f32 %v3599_v4 }
 0x284   :  { %v4110_v14 = vadd.f32 1.0, %v8615_v61  ;;  %v1569_v62 = vpop.f32.mrf.mxu2  ;;  %v7262_v24 = vor.u32 %v8162_v31, %v7259_v57  ;;  %v7258_v5 = vor.u32 %v8166_v20, %v7257_v18  ;;  %v7515_v61 = vld [vmem:[#allocation5 + $0x338] sm:$0xf0]  ;;  %v4359_v18 = vmul.f32 0.5, %v4103_v44 }
 0x285   :  { %v2846_v51 = vmul.f32 %v2590_v11, %v10323_v55  ;;  %8618 = vtanh.f32 %v3606_v34  ;;  %v3095_v6 = vmul.f32 0.044715, %v2839_v41  ;;  %v1570_v30 = vadd.f32 %v1569_v62, %v9822_v49 }
 0x286   :  { %v1658_v35 = vpop.f32.mrf.mxu3  ;;  %v1394_v42 = vpop.f32.mrf.mxu0  ;;  %v4366_v11 = vmul.f32 0.5, %v4110_v14  ;;  %2213 = vmatpush.bf16.msrb.mxu2 %v7262_v24  ;;  %v7518_v34 = vor.u32 %v8226_v10, %v7515_v61  ;;  %2035 = vmatpush.bf16.msrb.mxu0 %v7258_v5 }
 0x287   :  { %v3102_v45 = vmul.f32 0.044715, %v2846_v51  ;;  %v1395_v36 = vadd.f32 %v1394_v42, %v9807_v50  ;;  %v3351_v15 = vadd.f32 %v3095_v6, %v10320_v29  ;;  %v10336_v25 = vadd.f32 %v1658_v35, %v1570_v30  ;;  %v7513_v30 = vld [vmem:[#allocation5 + $0x318] sm:$0xf] }
 0x288   :  { %v1483_v4 = vpop.f32.mrf.mxu1  ;;  %v4614_v51 = vmul.f32 %v4358_v54, %v10259_v7  ;;  %v4622_v31 = vmul.f32 %v4366_v11, %v10283_v12  ;;  %2302 = vmatpush.bf16.msrb.mxu3 %v7518_v34  ;;  %v8230_v35 = vld [vmem:[#allocation5 + $0x334] sm:$0xf0]  ;;  %v4615_v34 = vmul.f32 %v4359_v18, %v10280_v46 }
 0x289   :  { %v3358_v41 = vadd.f32 %v3102_v45, %v10323_v55  ;;  %v10339_v62 = vadd.f32 %v1483_v4, %v1395_v36  ;;  %1709 = vmatmul.bf16.gmra.mxu0 %v9134_v52  ;;  %v8617_v57 = vpop.eup %8616  ;;  %v3607_v20 = vmul.f32 0.7978846, %v3351_v15  ;;  %v2591_v14 = vmul.f32 %v10336_v25, %v10336_v25  ;;  %1887 = vmatmul.bf16.gmra.mxu2 %v9134_v52 }
 0x28a   :  { %v10351_v7 = vpack.c.bf16 %v4622_v31, %v4614_v51  ;;  %v4111_v12 = vadd.f32 1.0, %v8617_v57  ;;  %v7514_v44 = vor.u32 %v8230_v35, %v7513_v30 }
 0x28b   :  { %1798 = vmatmul.bf16.gmra.mxu1 %v9136_v53  ;;  %v3614_v6 = vmul.f32 0.7978846, %v3358_v41  ;;  %v2598_v45 = vmul.f32 %v10339_v62, %v10339_v62  ;;  %1976 = vmatmul.bf16.gmra.mxu3 %v9136_v53  ;;  %v8619_v54 = vpop.eup %8618  ;;  %v2847_v15 = vmul.f32 %v2591_v14, %v10336_v25 }
 0x28c   :  { %12447 = vst [vmem:[#allocation71_spill] sm:$0xff] %v10351_v7  ;;  %v1572_v24 = vpop.f32.mrf.mxu2  ;;  %v4367_v10 = vmul.f32 0.5, %v4111_v12  ;;  %2124 = vmatpush.bf16.msrb.mxu1 %v7514_v44 }
 0x28d   :  { %v2854_v42 = vmul.f32 %v2598_v45, %v10339_v62  ;;  %8620 = vtanh.f32 %v3614_v6  ;;  %v3103_v36 = vmul.f32 0.044715, %v2847_v15  ;;  %v1573_v4 = vadd.f32 %v1572_v24, %v9822_v49 }
 0x28e   :  { %8622 = vtanh.f32 %v3607_v20  ;;  %v1661_v5 = vpop.f32.mrf.mxu3  ;;  %v1396_v61 = vpop.f32.mrf.mxu0  ;;  %v4623_v31 = vmul.f32 %v4367_v10, %v10296_v19  ;;  %v4118_v6 = vadd.f32 1.0, %v8619_v54 }
 0x28f   :  { %v3110_v11 = vmul.f32 0.044715, %v2854_v42  ;;  %v1397_v41 = vadd.f32 %v1396_v61, %v9807_v50  ;;  %v3359_v57 = vadd.f32 %v3103_v36, %v10336_v25  ;;  %v10360_v14 = vadd.f32 %v1661_v5, %v1573_v4 }
 0x290   :  { %v1485_v51 = vpop.f32.mrf.mxu1  ;;  %v10365_v12 = vpack.c.bf16 %v4623_v31, %v4615_v34  ;;  %v4374_v54 = vmul.f32 0.5, %v4118_v6 }
 0x291   :  { %v3366_v20 = vadd.f32 %v3110_v11, %v10339_v62  ;;  %v10363_v45 = vadd.f32 %v1485_v51, %v1397_v41  ;;  %v3615_v15 = vmul.f32 0.7978846, %v3359_v57  ;;  %v2599_v30 = vmul.f32 %v10360_v14, %v10360_v14 }
 0x292   :  { %12448 = vst [vmem:[#allocation72_spill] sm:$0xff] %v10365_v12  ;;  %v4630_v6 = vmul.f32 %v4374_v54, %v10301_v22 }
 0x293   :  { %v8621_v35 = vpop.eup %8620  ;;  %v3622_v42 = vmul.f32 0.7978846, %v3366_v20  ;;  %v2606_v46 = vmul.f32 %v10363_v45, %v10363_v45  ;;  %v2855_v18 = vmul.f32 %v2599_v30, %v10360_v14  ;;  %8624 = vtanh.f32 %v3615_v15 }
 0x294   :  { %v8623_v19 = vpop.eup %8622  ;;  %v4126_v24 = vadd.f32 1.0, %v8621_v35  ;;  %v1574_v10 = vpop.f32.mrf.mxu2 }
 0x295   :  { %v2862_v44 = vmul.f32 %v2606_v46, %v10363_v45  ;;  %v3111_v36 = vmul.f32 0.044715, %v2855_v18  ;;  %v1575_v4 = vadd.f32 %v1574_v10, %v9822_v49  ;;  %8626 = vtanh.f32 %v3622_v42 }
 0x296   :  { %v1663_v5 = vpop.f32.mrf.mxu3  ;;  %v1399_v61 = vpop.f32.mrf.mxu0  ;;  %v4382_v11 = vmul.f32 0.5, %v4126_v24  ;;  %v4119_v31 = vadd.f32 1.0, %v8623_v19 }
 0x297   :  { %v3118_v41 = vmul.f32 0.044715, %v2862_v44  ;;  %v1400_v51 = vadd.f32 %v1399_v61, %v9807_v50  ;;  %v3367_v57 = vadd.f32 %v3111_v36, %v10360_v14  ;;  %v10376_v20 = vadd.f32 %v1663_v5, %v1575_v4 }
 0x298   :  { %v1488_v34 = vpop.f32.mrf.mxu1  ;;  %v4638_v15 = vmul.f32 %v4382_v11, %v10323_v55  ;;  %v4375_v54 = vmul.f32 0.5, %v4119_v31 }
 0x299   :  { %v3374_v30 = vadd.f32 %v3118_v41, %v10363_v45  ;;  %v10381_v35 = vadd.f32 %v1488_v34, %v1400_v51  ;;  %1714 = vmatmul.bf16.gmra.mxu0 %v9142_v58  ;;  %v8625_v42 = vpop.eup %8624  ;;  %v3623_v46 = vmul.f32 0.7978846, %v3367_v57  ;;  %v2607_v18 = vmul.f32 %v10376_v20, %v10376_v20  ;;  %1892 = vmatmul.bf16.gmra.mxu2 %v9142_v58 }
 0x29a   :  { %v10388_v19 = vpack.c.bf16 %v4638_v15, %v4630_v6  ;;  %v4127_v24 = vadd.f32 1.0, %v8625_v42  ;;  %v4631_v31 = vmul.f32 %v4375_v54, %v10320_v29 }
 0x29b   :  { %1803 = vmatmul.bf16.gmra.mxu1 %v9144_v59  ;;  %v3630_v22 = vmul.f32 0.7978846, %v3374_v30  ;;  %v2614_v55 = vmul.f32 %v10381_v35, %v10381_v35  ;;  %1981 = vmatmul.bf16.gmra.mxu3 %v9144_v59  ;;  %8628 = vtanh.f32 %v3623_v46  ;;  %v2863_v44 = vmul.f32 %v2607_v18, %v10376_v20  ;;  %v8627_v10 = vpop.eup %8626 }
 0x29c   :  { %12449 = vst [vmem:[#allocation73_spill] sm:$0xff] %v10388_v19  ;;  %v1577_v4 = vpop.f32.mrf.mxu2  ;;  %v4383_v5 = vmul.f32 0.5, %v4127_v24  ;;  %v4134_v46 = vadd.f32 1.0, %v8627_v10 }
 0x29d   :  { %v2870_v36 = vmul.f32 %v2614_v55, %v10381_v35  ;;  %8630 = vtanh.f32 %v3630_v22  ;;  %v3119_v61 = vmul.f32 0.044715, %v2863_v44  ;;  %v1578_v11 = vadd.f32 %v1577_v4, %v9822_v49 }
 0x29e   :  { %v1666_v41 = vpop.f32.mrf.mxu3  ;;  %v1401_v51 = vpop.f32.mrf.mxu0  ;;  %v4639_v15 = vmul.f32 %v4383_v5, %v10336_v25  ;;  %v4390_v10 = vmul.f32 0.5, %v4134_v46 }
 0x29f   :  { %v3126_v34 = vmul.f32 0.044715, %v2870_v36  ;;  %v1402_v57 = vadd.f32 %v1401_v51, %v9807_v50  ;;  %v3375_v30 = vadd.f32 %v3119_v61, %v10376_v20  ;;  %v10400_v42 = vadd.f32 %v1666_v41, %v1578_v11 }
 0x2a0   :  { %v1490_v6 = vpop.f32.mrf.mxu1  ;;  %v10405_v55 = vpack.c.bf16 %v4639_v15, %v4631_v31  ;;  %v4646_v46 = vmul.f32 %v4390_v10, %v10339_v62 }
 0x2a1   :  { %v3382_v18 = vadd.f32 %v3126_v34, %v10381_v35  ;;  %v10403_v22 = vadd.f32 %v1490_v6, %v1402_v57  ;;  %v8629_v24 = vpop.eup %8628  ;;  %v3631_v44 = vmul.f32 0.7978846, %v3375_v30  ;;  %v2615_v36 = vmul.f32 %v10400_v42, %v10400_v42 }
 0x2a2   :  { %12450 = vst [vmem:[#allocation74_spill] sm:$0xff] %v10405_v55  ;;  %v4135_v41 = vadd.f32 1.0, %v8629_v24 }
 0x2a3   :  { %v8631_v4 = vpop.eup %8630  ;;  %v3638_v29 = vmul.f32 0.7978846, %v3382_v18  ;;  %v2622_v25 = vmul.f32 %v10403_v22, %v10403_v22  ;;  %v2871_v54 = vmul.f32 %v2615_v36, %v10400_v42  ;;  %8632 = vtanh.f32 %v3631_v44 }
 0x2a4   :  { %v4142_v5 = vadd.f32 1.0, %v8631_v4  ;;  %v1579_v11 = vpop.f32.mrf.mxu2  ;;  %v4391_v62 = vmul.f32 0.5, %v4135_v41 }
 0x2a5   :  { %v2878_v61 = vmul.f32 %v2622_v25, %v10403_v22  ;;  %8634 = vtanh.f32 %v3638_v29  ;;  %v3127_v51 = vmul.f32 0.044715, %v2871_v54  ;;  %v1580_v34 = vadd.f32 %v1579_v11, %v9822_v49 }
 0x2a6   :  { %v1668_v57 = vpop.f32.mrf.mxu3  ;;  %v1404_v6 = vpop.f32.mrf.mxu0  ;;  %v4398_v31 = vmul.f32 0.5, %v4142_v5 }
 0x2a7   :  { %v3134_v15 = vmul.f32 0.044715, %v2878_v61  ;;  %v1405_v30 = vadd.f32 %v1404_v6, %v9807_v50  ;;  %v3383_v36 = vadd.f32 %v3127_v51, %v10400_v42  ;;  %v10416_v4 = vadd.f32 %v1668_v57, %v1580_v34 }
 0x2a8   :  { %v1493_v18 = vpop.f32.mrf.mxu1  ;;  %v4654_v44 = vmul.f32 %v4398_v31, %v10363_v45 }
 0x2a9   :  { %v3390_v24 = vadd.f32 %v3134_v15, %v10403_v22  ;;  %v10421_v29 = vadd.f32 %v1493_v18, %v1405_v30  ;;  %1719 = vmatmul.bf16.gmra.mxu0 %v9150_v0  ;;  %v8633_v25 = vpop.eup %8632  ;;  %v3639_v54 = vmul.f32 0.7978846, %v3383_v36  ;;  %v2623_v5 = vmul.f32 %v10416_v4, %v10416_v4  ;;  %1897 = vmatmul.bf16.gmra.mxu2 %v9150_v0 }
 0x2aa   :  { %v10428_v61 = vpack.c.bf16 %v4654_v44, %v4646_v46  ;;  %v4143_v11 = vadd.f32 1.0, %v8633_v25  ;;  %v4647_v36 = vmul.f32 %v4391_v62, %v10360_v14  ;;  %v8158_v14 = vld [vmem:[#allocation5 + $0xf4] sm:$0xf0]  ;;  %v8218_v62 = vld [vmem:[#allocation5 + $0x2dc] sm:$0xf] }
 0x2ab   :  { %1808 = vmatmul.bf16.gmra.mxu1 %v9152_v1  ;;  %v3646_v10 = vmul.f32 0.7978846, %v3390_v24  ;;  %v2630_v45 = vmul.f32 %v10421_v29, %v10421_v29  ;;  %1986 = vmatmul.bf16.gmra.mxu3 %v9152_v1  ;;  %v8635_v51 = vpop.eup %8634  ;;  %8636 = vtanh.f32 %v3639_v54  ;;  %v2879_v34 = vmul.f32 %v2623_v5, %v10416_v4 }
 0x2ac   :  { %12451 = vst [vmem:[#allocation75_spill] sm:$0xff] %v10428_v61  ;;  %v1582_v6 = vpop.f32.mrf.mxu2  ;;  %v4399_v31 = vmul.f32 0.5, %v4143_v11  ;;  %v4150_v54 = vadd.f32 1.0, %v8635_v51  ;;  %v8154_v11 = vld [vmem:[#allocation5 + $0xdc] sm:$0xf] }
 0x2ad   :  { %v2886_v57 = vmul.f32 %v2630_v45, %v10421_v29  ;;  %8638 = vtanh.f32 %v3646_v10  ;;  %v3135_v15 = vmul.f32 0.044715, %v2879_v34  ;;  %v1583_v30 = vadd.f32 %v1582_v6, %v9822_v49  ;;  %v7227_v10 = vld [vmem:[#allocation5 + $0xf8] sm:$0xf0]  ;;  %v7225_v34 = vld [vmem:[#allocation5 + $0xd8] sm:$0xf] }
 0x2ae   :  { %v1671_v41 = vpop.f32.mrf.mxu3  ;;  %v1406_v18 = vpop.f32.mrf.mxu0  ;;  %v4655_v25 = vmul.f32 %v4399_v31, %v10376_v20  ;;  %v7230_v55 = vor.u32 %v8154_v11, %v7227_v10  ;;  %v7226_v31 = vor.u32 %v8158_v14, %v7225_v34  ;;  %v4406_v11 = vmul.f32 0.5, %v4150_v54 }
 0x2af   :  { %v3142_v46 = vmul.f32 0.044715, %v2886_v57  ;;  %v1407_v44 = vadd.f32 %v1406_v18, %v9807_v50  ;;  %v3391_v5 = vadd.f32 %v3135_v15, %v10416_v4  ;;  %v10440_v45 = vadd.f32 %v1671_v41, %v1583_v30  ;;  %v7483_v57 = vld [vmem:[#allocation5 + $0x2f8] sm:$0xf0] }
 0x2b0   :  { %v1495_v24 = vpop.f32.mrf.mxu1  ;;  %v10445_v50 = vpack.c.bf16 %v4655_v25, %v4647_v36  ;;  %v7486_v15 = vor.u32 %v8218_v62, %v7483_v57  ;;  %2214 = vmatpush.bf16.msrb.mxu2 %v7230_v55  ;;  %2036 = vmatpush.bf16.msrb.mxu0 %v7226_v31  ;;  %v8222_v31 = vld [vmem:[#allocation5 + $0x2f4] sm:$0xf0] }
 0x2b1   :  { %v3398_v6 = vadd.f32 %v3142_v46, %v10421_v29  ;;  %v10443_v61 = vadd.f32 %v1495_v24, %v1407_v44  ;;  %v8637_v18 = vpop.eup %8636  ;;  %v3647_v20 = vmul.f32 0.7978846, %v3391_v5  ;;  %v2631_v51 = vmul.f32 %v10440_v45, %v10440_v45  ;;  %v8907_v44 = vld [vmem:[#allocation7] sm:$0xff] }
 0x2b2   :  { %12452 = vst [vmem:[#allocation76_spill] sm:$0xff] %v10445_v50  ;;  %v10451_v24 = vperm.slane %v8907_v44, 4  ;;  %2303 = vmatpush.bf16.msrb.mxu3 %v7486_v15  ;;  %v4151_v34 = vadd.f32 1.0, %v8637_v18  ;;  %v4662_v15 = vmul.f32 %v4406_v11, %v10381_v35 }
 0x2b3   :  { %v8639_v30 = vpop.eup %8638  ;;  %v3654_v41 = vmul.f32 0.7978846, %v3398_v6  ;;  %v2638_v46 = vmul.f32 %v10443_v61, %v10443_v61  ;;  %v2887_v36 = vmul.f32 %v2631_v51, %v10440_v45  ;;  %8640 = vtanh.f32 %v3647_v20  ;;  %v7481_v51 = vld [vmem:[#allocation5 + $0x2d8] sm:$0xf] }
 0x2b4   :  { %v4158_v25 = vadd.f32 1.0, %v8639_v30  ;;  %v1584_v10 = vpop.f32.mrf.mxu2  ;;  %v7482_v18 = vor.u32 %v8222_v31, %v7481_v51 }
 0x2b5   :  { %v2894_v5 = vmul.f32 %v2638_v46, %v10443_v61  ;;  %8642 = vtanh.f32 %v3654_v41  ;;  %v3143_v6 = vmul.f32 0.044715, %v2887_v36  ;;  %v1585_v14 = vadd.f32 %v1584_v10, %v9822_v49 }
 0x2b6   :  { %v1673_v62 = vpop.f32.mrf.mxu3  ;;  %v1685_v57 = vpop.f32.mrf.mxu0  ;;  %v4414_v50 = vmul.f32 0.5, %v4158_v25  ;;  %v10466_v36 = vperm.slane %v8907_v44, 5  ;;  %2125 = vmatpush.bf16.msrb.mxu1 %v7482_v18 }
 0x2b7   :  { %v3150_v19 = vmul.f32 0.044715, %v2894_v5  ;;  %v1686_v55 = vadd.f32 %v1685_v57, %v10451_v24  ;;  %v3399_v20 = vadd.f32 %v3143_v6, %v10440_v45  ;;  %v10459_v30 = vadd.f32 %v1673_v62, %v1585_v14 }
 0x2b8   :  { %v1774_v54 = vpop.f32.mrf.mxu1  ;;  %v4670_v41 = vmul.f32 %v4414_v50, %v10403_v22  ;;  %v4407_v22 = vmul.f32 0.5, %v4151_v34 }
 0x2b9   :  { %v3406_v49 = vadd.f32 %v3150_v19, %v10443_v61  ;;  %v10463_v46 = vadd.f32 %v1774_v54, %v1686_v55  ;;  %1724 = vmatmul.bf16.gmra.mxu0 %v9160_v21  ;;  %v8641_v25 = vpop.eup %8640  ;;  %v3655_v5 = vmul.f32 0.7978846, %v3399_v20  ;;  %v2639_v35 = vmul.f32 %v10459_v30, %v10459_v30  ;;  %1902 = vmatmul.bf16.gmra.mxu2 %v9160_v21 }
 0x2ba   :  { %v10472_v11 = vpack.c.bf16 %v4670_v41, %v4662_v15  ;;  %v4159_v44 = vadd.f32 1.0, %v8641_v25  ;;  %v4663_v31 = vmul.f32 %v4407_v22, %v10400_v42 }
 0x2bb   :  { %1813 = vmatmul.bf16.gmra.mxu1 %v9162_v23  ;;  %v3662_v50 = vmul.f32 0.7978846, %v3406_v49  ;;  %v2392_v19 = vmul.f32 %v10463_v46, %v10463_v46  ;;  %1991 = vmatmul.bf16.gmra.mxu3 %v9162_v23  ;;  %v8643_v10 = vpop.eup %8642  ;;  %8644 = vtanh.f32 %v3655_v5  ;;  %v2895_v6 = vmul.f32 %v2639_v35, %v10459_v30 }
 0x2bc   :  { %12453 = vst [vmem:[#allocation77_spill] sm:$0xff] %v10472_v11  ;;  %v1863_v62 = vpop.f32.mrf.mxu2  ;;  %v4415_v57 = vmul.f32 0.5, %v4159_v44  ;;  %v4166_v49 = vadd.f32 1.0, %v8643_v10 }
 0x2bd   :  { %v2648_v14 = vmul.f32 %v2392_v19, %v10463_v46  ;;  %8646 = vtanh.f32 %v3662_v50  ;;  %v3151_v55 = vmul.f32 0.044715, %v2895_v6  ;;  %v1864_v34 = vadd.f32 %v1863_v62, %v10466_v36 }
 0x2be   :  { %v1952_v54 = vpop.f32.mrf.mxu3  ;;  %v1687_v51 = vpop.f32.mrf.mxu0  ;;  %v4671_v41 = vmul.f32 %v4415_v57, %v10416_v4  ;;  %v4422_v10 = vmul.f32 0.5, %v4166_v49  ;;  %v8210_v49 = vld [vmem:[#allocation5 + $0x29c] sm:$0xf] }
 0x2bf   :  { %v2904_v15 = vmul.f32 0.044715, %v2648_v14  ;;  %v1688_v20 = vadd.f32 %v1687_v51, %v10451_v24  ;;  %v3407_v25 = vadd.f32 %v3151_v55, %v10459_v30  ;;  %v10484_v5 = vadd.f32 %v1952_v54, %v1864_v34  ;;  %v8146_v51 = vld [vmem:[#allocation5 + $0x9c] sm:$0xf] }
 0x2c0   :  { %v1776_v18 = vpop.f32.mrf.mxu1  ;;  %v10489_v19 = vpack.c.bf16 %v4671_v41, %v4663_v31  ;;  %v7195_v31 = vld [vmem:[#allocation5 + $0xb8] sm:$0xf0] }
 0x2c1   :  { %v3160_v35 = vadd.f32 %v2904_v15, %v10463_v46  ;;  %v10487_v50 = vadd.f32 %v1776_v18, %v1688_v20  ;;  %v8645_v44 = vpop.eup %8644  ;;  %v3663_v6 = vmul.f32 0.7978846, %v3407_v25  ;;  %v2393_v42 = vmul.f32 %v10484_v5, %v10484_v5  ;;  %v7193_v15 = vld [vmem:[#allocation5 + $0x98] sm:$0xf] }
 0x2c2   :  { %12454 = vst [vmem:[#allocation78_spill] sm:$0xff] %v10489_v19  ;;  %v4167_v55 = vadd.f32 1.0, %v8645_v44  ;;  %v8150_v19 = vld [vmem:[#allocation5 + $0xb4] sm:$0xf0] }
 0x2c3   :  { %v8647_v22 = vpop.eup %8646  ;;  %v3416_v14 = vmul.f32 0.7978846, %v3160_v35  ;;  %v2400_v4 = vmul.f32 %v10487_v50, %v10487_v50  ;;  %v2649_v62 = vmul.f32 %v2393_v42, %v10484_v5  ;;  %8648 = vtanh.f32 %v3663_v6 }
 0x2c4   :  { %v4174_v57 = vadd.f32 1.0, %v8647_v22  ;;  %v1865_v54 = vpop.f32.mrf.mxu2  ;;  %v7198_v35 = vor.u32 %v8146_v51, %v7195_v31  ;;  %v7194_v44 = vor.u32 %v8150_v19, %v7193_v15  ;;  %v7451_v22 = vld [vmem:[#allocation5 + $0x2b8] sm:$0xf0]  ;;  %v4423_v15 = vmul.f32 0.5, %v4167_v55 }
 0x2c5   :  { %v2656_v34 = vmul.f32 %v2400_v4, %v10487_v50  ;;  %8650 = vtanh.f32 %v3416_v14  ;;  %v2905_v20 = vmul.f32 0.044715, %v2649_v62  ;;  %v1866_v18 = vadd.f32 %v1865_v54, %v10466_v36 }
 0x2c6   :  { %v1954_v41 = vpop.f32.mrf.mxu3  ;;  %v1690_v25 = vpop.f32.mrf.mxu0  ;;  %v4430_v4 = vmul.f32 0.5, %v4174_v57  ;;  %2215 = vmatpush.bf16.msrb.mxu2 %v7198_v35  ;;  %v7454_v14 = vor.u32 %v8210_v49, %v7451_v22  ;;  %2037 = vmatpush.bf16.msrb.mxu0 %v7194_v44 }
 0x2c7   :  { %v2912_v11 = vmul.f32 0.044715, %v2656_v34  ;;  %v1691_v42 = vadd.f32 %v1690_v25, %v10451_v24  ;;  %v3161_v12 = vadd.f32 %v2905_v20, %v10484_v5  ;;  %v10500_v7 = vadd.f32 %v1954_v41, %v1866_v18  ;;  %v7449_v18 = vld [vmem:[#allocation5 + $0x298] sm:$0xf] }
 0x2c8   :  { %v1779_v6 = vpop.f32.mrf.mxu1  ;;  %v4678_v34 = vmul.f32 %v4422_v10, %v10421_v29  ;;  %v4686_v51 = vmul.f32 %v4430_v4, %v10443_v61  ;;  %2304 = vmatpush.bf16.msrb.mxu3 %v7454_v14  ;;  %v8214_v41 = vld [vmem:[#allocation5 + $0x2b4] sm:$0xf0]  ;;  %v4679_v14 = vmul.f32 %v4423_v15, %v10440_v45 }
 0x2c9   :  { %v3168_v62 = vadd.f32 %v2912_v11, %v10487_v50  ;;  %v10503_v54 = vadd.f32 %v1779_v6, %v1691_v42  ;;  %1729 = vmatmul.bf16.gmra.mxu0 %v9189_v63  ;;  %v8649_v31 = vpop.eup %8648  ;;  %v3417_v19 = vmul.f32 0.7978846, %v3161_v12  ;;  %v2401_v57 = vmul.f32 %v10500_v7, %v10500_v7  ;;  %1907 = vmatmul.bf16.gmra.mxu2 %v9189_v63 }
 0x2ca   :  { %v10515_v29 = vpack.c.bf16 %v4686_v51, %v4678_v34  ;;  %v4175_v61 = vadd.f32 1.0, %v8649_v31  ;;  %v7450_v35 = vor.u32 %v8214_v41, %v7449_v18 }
 0x2cb   :  { %1818 = vmatmul.bf16.gmra.mxu1 %v9192_v13  ;;  %v3424_v20 = vmul.f32 0.7978846, %v3168_v62  ;;  %v2408_v11 = vmul.f32 %v10503_v54, %v10503_v54  ;;  %1996 = vmatmul.bf16.gmra.mxu3 %v9192_v13  ;;  %v8651_v10 = vpop.eup %8650  ;;  %8652 = vtanh.f32 %v3417_v19  ;;  %v2657_v12 = vmul.f32 %v2401_v57, %v10500_v7 }
 0x2cc   :  { %12455 = vst [vmem:[#allocation79_spill] sm:$0xff] %v10515_v29  ;;  %v1868_v25 = vpop.f32.mrf.mxu2  ;;  %v4431_v49 = vmul.f32 0.5, %v4175_v61  ;;  %2126 = vmatpush.bf16.msrb.mxu1 %v7450_v35  ;;  %v3928_v31 = vadd.f32 1.0, %v8651_v10 }
 0x2cd   :  { %8654 = vtanh.f32 %v3424_v20  ;;  %v2664_v55 = vmul.f32 %v2408_v11, %v10503_v54  ;;  %v2913_v42 = vmul.f32 0.044715, %v2657_v12  ;;  %v1869_v6 = vadd.f32 %v1868_v25, %v10466_v36 }
 0x2ce   :  { %v1957_v44 = vpop.f32.mrf.mxu3  ;;  %v1692_v22 = vpop.f32.mrf.mxu0  ;;  %v4687_v51 = vmul.f32 %v4431_v49, %v10459_v30  ;;  %v4184_v15 = vmul.f32 0.5, %v3928_v31 }
 0x2cf   :  { %v2920_v4 = vmul.f32 0.044715, %v2664_v55  ;;  %v1693_v62 = vadd.f32 %v1692_v22, %v10451_v24  ;;  %v3169_v19 = vadd.f32 %v2913_v42, %v10500_v7  ;;  %v10524_v57 = vadd.f32 %v1957_v44, %v1869_v6 }
 0x2d0   :  { %v1781_v34 = vpop.f32.mrf.mxu1  ;;  %v10529_v61 = vpack.c.bf16 %v4687_v51, %v4679_v14  ;;  %v4440_v31 = vmul.f32 %v4184_v15, %v10463_v46 }
 0x2d1   :  { %v3176_v20 = vadd.f32 %v2920_v4, %v10503_v54  ;;  %v10527_v11 = vadd.f32 %v1781_v34, %v1693_v62  ;;  %v8653_v12 = vpop.eup %8652  ;;  %v3425_v18 = vmul.f32 0.7978846, %v3169_v19  ;;  %v2409_v41 = vmul.f32 %v10524_v57, %v10524_v57 }
 0x2d2   :  { %12456 = vst [vmem:[#allocation80_spill] sm:$0xff] %v10529_v61  ;;  %v3929_v35 = vadd.f32 1.0, %v8653_v12 }
 0x2d3   :  { %v8655_v55 = vpop.eup %8654  ;;  %v3432_v45 = vmul.f32 0.7978846, %v3176_v20  ;;  %v2416_v30 = vmul.f32 %v10527_v11, %v10527_v11  ;;  %8656 = vtanh.f32 %v3425_v18  ;;  %v2665_v25 = vmul.f32 %v2409_v41, %v10524_v57 }
 0x2d4   :  { %v3936_v10 = vadd.f32 1.0, %v8655_v55  ;;  %v1870_v42 = vpop.f32.mrf.mxu2 }
 0x2d5   :  { %v2672_v49 = vmul.f32 %v2416_v30, %v10527_v11  ;;  %8658 = vtanh.f32 %v3432_v45  ;;  %v2921_v44 = vmul.f32 0.044715, %v2665_v25  ;;  %v1871_v22 = vadd.f32 %v1870_v42, %v10466_v36 }
 0x2d6   :  { %v4192_v6 = vmul.f32 0.5, %v3936_v10  ;;  %v1959_v4 = vpop.f32.mrf.mxu3  ;;  %v1695_v62 = vpop.f32.mrf.mxu0  ;;  %v4185_v45 = vmul.f32 0.5, %v3929_v35 }
 0x2d7   :  { %v2928_v34 = vmul.f32 0.044715, %v2672_v49  ;;  %v1696_v14 = vadd.f32 %v1695_v62, %v10451_v24  ;;  %v3177_v20 = vadd.f32 %v2921_v44, %v10524_v57  ;;  %v10542_v12 = vadd.f32 %v1959_v4, %v1871_v22 }
 0x2d8   :  { %v1784_v51 = vpop.f32.mrf.mxu1  ;;  %v4448_v19 = vmul.f32 %v4192_v6, %v10487_v50  ;;  %v4441_v22 = vmul.f32 %v4185_v45, %v10484_v5 }
 0x2d9   :  { %v3184_v18 = vadd.f32 %v2928_v34, %v10527_v11  ;;  %v10545_v41 = vadd.f32 %v1784_v51, %v1696_v14  ;;  %1734 = vmatmul.bf16.gmra.mxu0 %v9225_v38  ;;  %v8657_v55 = vpop.eup %8656  ;;  %v3433_v10 = vmul.f32 0.7978846, %v3177_v20  ;;  %v2417_v46 = vmul.f32 %v10542_v12, %v10542_v12  ;;  %1912 = vmatmul.bf16.gmra.mxu2 %v9225_v38 }
 0x2da   :  { %v10548_v30 = vpack.c.bf16 %v4448_v19, %v4440_v31  ;;  %v3937_v50 = vadd.f32 1.0, %v8657_v55 }
 0x2db   :  { %1823 = vmatmul.bf16.gmra.mxu1 %v9227_v39  ;;  %v3440_v15 = vmul.f32 0.7978846, %v3184_v18  ;;  %v2424_v25 = vmul.f32 %v10545_v41, %v10545_v41  ;;  %2001 = vmatmul.bf16.gmra.mxu3 %v9227_v39  ;;  %v8659_v49 = vpop.eup %8658  ;;  %8660 = vtanh.f32 %v3433_v10  ;;  %v2673_v35 = vmul.f32 %v2417_v46, %v10542_v12 }
 0x2dc   :  { %12457 = vst [vmem:[#allocation81_spill] sm:$0xff] %v10548_v30  ;;  %v4193_v42 = vmul.f32 0.5, %v3937_v50  ;;  %v1873_v44 = vpop.f32.mrf.mxu2  ;;  %v3944_v18 = vadd.f32 1.0, %v8659_v49 }
 0x2dd   :  { %v2680_v6 = vmul.f32 %v2424_v25, %v10545_v41  ;;  %8662 = vtanh.f32 %v3440_v15  ;;  %v2929_v4 = vmul.f32 0.044715, %v2673_v35  ;;  %v1874_v62 = vadd.f32 %v1873_v44, %v10466_v36 }
 0x2de   :  { %v1962_v34 = vpop.f32.mrf.mxu3  ;;  %v1697_v14 = vpop.f32.mrf.mxu0  ;;  %v4449_v51 = vmul.f32 %v4193_v42, %v10500_v7  ;;  %v4200_v42 = vmul.f32 0.5, %v3944_v18  ;;  %v8202_v18 = vld [vmem:[#allocation5 + $0x25c] sm:$0xf] }
 0x2df   :  { %v2936_v31 = vmul.f32 0.044715, %v2680_v6  ;;  %v1698_v19 = vadd.f32 %v1697_v14, %v10451_v24  ;;  %v3185_v55 = vadd.f32 %v2929_v4, %v10542_v12  ;;  %v10564_v10 = vadd.f32 %v1962_v34, %v1874_v62  ;;  %v8138_v34 = vld [vmem:[#allocation5 + $0x5c] sm:$0xf] }
 0x2e0   :  { %v1786_v20 = vpop.f32.mrf.mxu1  ;;  %v10566_v46 = vpack.c.bf16 %v4449_v51, %v4441_v22  ;;  %v7163_v14 = vld [vmem:[#allocation5 + $0x78] sm:$0xf0]  ;;  %v7161_v51 = vld [vmem:[#allocation5 + $0x58] sm:$0xf] }
 0x2e1   :  { %v3192_v5 = vadd.f32 %v2936_v31, %v10545_v41  ;;  %v10569_v45 = vadd.f32 %v1786_v20, %v1698_v19  ;;  %v8661_v50 = vpop.eup %8660  ;;  %v3441_v15 = vmul.f32 0.7978846, %v3185_v55  ;;  %v2425_v7 = vmul.f32 %v10564_v10, %v10564_v10 }
 0x2e2   :  { %12458 = vst [vmem:[#allocation82_spill] sm:$0xff] %v10566_v46  ;;  %v3945_v22 = vadd.f32 1.0, %v8661_v50  ;;  %v8142_v46 = vld [vmem:[#allocation5 + $0x74] sm:$0xf0] }
 0x2e3   :  { %v8663_v25 = vpop.eup %8662  ;;  %v3448_v35 = vmul.f32 0.7978846, %v3192_v5  ;;  %v2432_v49 = vmul.f32 %v10569_v45, %v10569_v45  ;;  %v2681_v6 = vmul.f32 %v2425_v7, %v10564_v10  ;;  %8664 = vtanh.f32 %v3441_v15 }
 0x2e4   :  { %v3952_v44 = vadd.f32 1.0, %v8663_v25  ;;  %v1875_v62 = vpop.f32.mrf.mxu2  ;;  %v7166_v5 = vor.u32 %v8138_v34, %v7163_v14  ;;  %v7162_v50 = vor.u32 %v8142_v46, %v7161_v51  ;;  %v7419_v25 = vld [vmem:[#allocation5 + $0x278] sm:$0xf0]  ;;  %v4201_v51 = vmul.f32 0.5, %v3945_v22 }
 0x2e5   :  { %v2688_v4 = vmul.f32 %v2432_v49, %v10569_v45  ;;  %8666 = vtanh.f32 %v3448_v35  ;;  %v2937_v31 = vmul.f32 0.044715, %v2681_v6  ;;  %v1876_v19 = vadd.f32 %v1875_v62, %v10466_v36 }
 0x2e6   :  { %v1964_v20 = vpop.f32.mrf.mxu3  ;;  %v1700_v55 = vpop.f32.mrf.mxu0  ;;  %v4208_v49 = vmul.f32 0.5, %v3952_v44  ;;  %2216 = vmatpush.bf16.msrb.mxu2 %v7166_v5  ;;  %v7422_v35 = vor.u32 %v8202_v18, %v7419_v25  ;;  %2038 = vmatpush.bf16.msrb.mxu0 %v7162_v50 }
 0x2e7   :  { %v2944_v30 = vmul.f32 0.044715, %v2688_v4  ;;  %v1701_v7 = vadd.f32 %v1700_v55, %v10451_v24  ;;  %v3193_v61 = vadd.f32 %v2937_v31, %v10564_v10  ;;  %v10580_v29 = vadd.f32 %v1964_v20, %v1876_v19  ;;  %v7417_v19 = vld [vmem:[#allocation5 + $0x258] sm:$0xf] }
 0x2e8   :  { %v1789_v15 = vpop.f32.mrf.mxu1  ;;  %v4456_v4 = vmul.f32 %v4200_v42, %v10503_v54  ;;  %v4464_v34 = vmul.f32 %v4208_v49, %v10527_v11  ;;  %2305 = vmatpush.bf16.msrb.mxu3 %v7422_v35  ;;  %v8206_v20 = vld [vmem:[#allocation5 + $0x274] sm:$0xf0]  ;;  %v4457_v35 = vmul.f32 %v4201_v51, %v10524_v57 }
 0x2e9   :  { %v3200_v6 = vadd.f32 %v2944_v30, %v10569_v45  ;;  %v10583_v62 = vadd.f32 %v1789_v15, %v1701_v7  ;;  %1739 = vmatmul.bf16.gmra.mxu0 %v9269_v16  ;;  %v8665_v14 = vpop.eup %8664  ;;  %v3449_v46 = vmul.f32 0.7978846, %v3193_v61  ;;  %v2433_v44 = vmul.f32 %v10580_v29, %v10580_v29  ;;  %1917 = vmatmul.bf16.gmra.mxu2 %v9269_v16 }
 0x2ea   :  { %v10595_v54 = vpack.c.bf16 %v4464_v34, %v4456_v4  ;;  %v3953_v11 = vadd.f32 1.0, %v8665_v14  ;;  %v7418_v5 = vor.u32 %v8206_v20, %v7417_v19 }
 0x2eb   :  { %1828 = vmatmul.bf16.gmra.mxu1 %v9271_v17  ;;  %v3456_v31 = vmul.f32 0.7978846, %v3200_v6  ;;  %v2440_v30 = vmul.f32 %v10583_v62, %v10583_v62  ;;  %2006 = vmatmul.bf16.gmra.mxu3 %v9271_v17  ;;  %v8667_v42 = vpop.eup %8666  ;;  %8668 = vtanh.f32 %v3449_v46  ;;  %v2689_v61 = vmul.f32 %v2433_v44, %v10580_v29 }
 0x2ec   :  { %12459 = vst [vmem:[#allocation83_spill] sm:$0xff] %v10595_v54  ;;  %v1878_v22 = vpop.f32.mrf.mxu2  ;;  %v4209_v18 = vmul.f32 0.5, %v3953_v11  ;;  %2127 = vmatpush.bf16.msrb.mxu1 %v7418_v5  ;;  %v3960_v44 = vadd.f32 1.0, %v8667_v42 }
 0x2ed   :  { %v2696_v55 = vmul.f32 %v2440_v30, %v10583_v62  ;;  %8670 = vtanh.f32 %v3456_v31  ;;  %v2945_v7 = vmul.f32 0.044715, %v2689_v61  ;;  %v1879_v15 = vadd.f32 %v1878_v22, %v10466_v36 }
 0x2ee   :  { %v1967_v50 = vpop.f32.mrf.mxu3  ;;  %v1702_v25 = vpop.f32.mrf.mxu0  ;;  %v4465_v34 = vmul.f32 %v4209_v18, %v10542_v12  ;;  %v4216_v42 = vmul.f32 0.5, %v3960_v44 }
 0x2ef   :  { %v2952_v49 = vmul.f32 0.044715, %v2696_v55  ;;  %v1703_v6 = vadd.f32 %v1702_v25, %v10451_v24  ;;  %v3201_v14 = vadd.f32 %v2945_v7, %v10580_v29  ;;  %v10604_v46 = vadd.f32 %v1967_v50, %v1879_v15 }
 0x2f0   :  { %v1791_v4 = vpop.f32.mrf.mxu1  ;;  %v10609_v11 = vpack.c.bf16 %v4465_v34, %v4457_v35  ;;  %v4472_v44 = vmul.f32 %v4216_v42, %v10545_v41 }
 0x2f1   :  { %v3208_v31 = vadd.f32 %v2952_v49, %v10583_v62  ;;  %v10607_v30 = vadd.f32 %v1791_v4, %v1703_v6  ;;  %v8669_v61 = vpop.eup %8668  ;;  %v3457_v19 = vmul.f32 0.7978846, %v3201_v14  ;;  %v2441_v20 = vmul.f32 %v10604_v46, %v10604_v46 }
 0x2f2   :  { %12460 = vst [vmem:[#allocation84_spill] sm:$0xff] %v10609_v11  ;;  %v3961_v7 = vadd.f32 1.0, %v8669_v61 }
 0x2f3   :  { %v8671_v55 = vpop.eup %8670  ;;  %v3464_v57 = vmul.f32 0.7978846, %v3208_v31  ;;  %v2448_v12 = vmul.f32 %v10607_v30, %v10607_v30  ;;  %v2697_v51 = vmul.f32 %v2441_v20, %v10604_v46  ;;  %8672 = vtanh.f32 %v3457_v19 }
 0x2f4   :  { %v3968_v22 = vadd.f32 1.0, %v8671_v55  ;;  %v1880_v18 = vpop.f32.mrf.mxu2  ;;  %v4217_v41 = vmul.f32 0.5, %v3961_v7 }
 0x2f5   :  { %v2704_v5 = vmul.f32 %v2448_v12, %v10607_v30  ;;  %8674 = vtanh.f32 %v3464_v57  ;;  %v2953_v15 = vmul.f32 0.044715, %v2697_v51  ;;  %v1881_v50 = vadd.f32 %v1880_v18, %v10466_v36 }
 0x2f6   :  { %v1969_v25 = vpop.f32.mrf.mxu3  ;;  %v1705_v49 = vpop.f32.mrf.mxu0  ;;  %v4224_v6 = vmul.f32 0.5, %v3968_v22 }
 0x2f7   :  { %v2960_v4 = vmul.f32 0.044715, %v2704_v5  ;;  %v1706_v35 = vadd.f32 %v1705_v49, %v10451_v24  ;;  %v3209_v14 = vadd.f32 %v2953_v15, %v10604_v46  ;;  %v10620_v31 = vadd.f32 %v1969_v25, %v1881_v50 }
 0x2f8   :  { %v1794_v34 = vpop.f32.mrf.mxu1  ;;  %v4480_v19 = vmul.f32 %v4224_v6, %v10569_v45 }
 0x2f9   :  { %v3216_v61 = vadd.f32 %v2960_v4, %v10607_v30  ;;  %v10625_v20 = vadd.f32 %v1794_v34, %v1706_v35  ;;  %1744 = vmatmul.bf16.gmra.mxu0 %v9313_v37  ;;  %v8673_v55 = vpop.eup %8672  ;;  %v3465_v57 = vmul.f32 0.7978846, %v3209_v14  ;;  %v2449_v12 = vmul.f32 %v10620_v31, %v10620_v31  ;;  %1922 = vmatmul.bf16.gmra.mxu2 %v9313_v37 }
 0x2fa   :  { %v10632_v51 = vpack.c.bf16 %v4480_v19, %v4472_v44  ;;  %v3969_v42 = vadd.f32 1.0, %v8673_v55  ;;  %v4473_v35 = vmul.f32 %v4217_v41, %v10564_v10 }
 0x2fb   :  { %1833 = vmatmul.bf16.gmra.mxu1 %v9315_v40  ;;  %v3472_v22 = vmul.f32 0.7978846, %v3216_v61  ;;  %v2456_v45 = vmul.f32 %v10625_v20, %v10625_v20  ;;  %2011 = vmatmul.bf16.gmra.mxu3 %v9315_v40  ;;  %v8675_v5 = vpop.eup %8674  ;;  %8676 = vtanh.f32 %v3465_v57  ;;  %v2705_v18 = vmul.f32 %v2449_v12, %v10620_v31 }
 0x2fc   :  { %12461 = vst [vmem:[#allocation85_spill] sm:$0xff] %v10632_v51  ;;  %v1883_v50 = vpop.f32.mrf.mxu2  ;;  %v4225_v25 = vmul.f32 0.5, %v3969_v42  ;;  %v3976_v61 = vadd.f32 1.0, %v8675_v5 }
 0x2fd   :  { %v2712_v15 = vmul.f32 %v2456_v45, %v10625_v20  ;;  %8678 = vtanh.f32 %v3472_v22  ;;  %v2961_v49 = vmul.f32 0.044715, %v2705_v18  ;;  %v1884_v6 = vadd.f32 %v1883_v50, %v10466_v36 }
 0x2fe   :  { %v1972_v7 = vpop.f32.mrf.mxu3  ;;  %v1707_v4 = vpop.f32.mrf.mxu0  ;;  %v4481_v19 = vmul.f32 %v4225_v25, %v10580_v29  ;;  %v4232_v5 = vmul.f32 0.5, %v3976_v61  ;;  %v8194_v61 = vld [vmem:[#allocation5 + $0x21c] sm:$0xf] }
 0x2ff   :  { %v2968_v34 = vmul.f32 0.044715, %v2712_v15  ;;  %v1708_v14 = vadd.f32 %v1707_v4, %v10451_v24  ;;  %v3217_v55 = vadd.f32 %v2961_v49, %v10620_v31  ;;  %v10644_v57 = vadd.f32 %v1972_v7, %v1884_v6  ;;  %v8130_v4 = vld [vmem:[#allocation5 + $0x1c] sm:$0xf] }
 0x300   :  { %v1796_v44 = vpop.f32.mrf.mxu1  ;;  %v10649_v45 = vpack.c.bf16 %v4481_v19, %v4473_v35  ;;  %v7131_v35 = vld [vmem:[#allocation5 + $0x38] sm:$0xf0] }
 0x301   :  { %v3224_v12 = vadd.f32 %v2968_v34, %v10625_v20  ;;  %v10647_v22 = vadd.f32 %v1796_v44, %v1708_v14  ;;  %v8677_v42 = vpop.eup %8676  ;;  %v3473_v18 = vmul.f32 0.7978846, %v3217_v55  ;;  %v2457_v10 = vmul.f32 %v10644_v57, %v10644_v57  ;;  %v7129_v34 = vld [vmem:[#allocation5 + $0x18] sm:$0xf] }
 0x302   :  { %12462 = vst [vmem:[#allocation86_spill] sm:$0xff] %v10649_v45  ;;  %v3977_v49 = vadd.f32 1.0, %v8677_v42  ;;  %v8134_v45 = vld [vmem:[#allocation5 + $0x34] sm:$0xf0] }
 0x303   :  { %v8679_v41 = vpop.eup %8678  ;;  %v3480_v15 = vmul.f32 0.7978846, %v3224_v12  ;;  %v2464_v29 = vmul.f32 %v10647_v22, %v10647_v22  ;;  %v2713_v50 = vmul.f32 %v2457_v10, %v10644_v57  ;;  %8680 = vtanh.f32 %v3473_v18 }
 0x304   :  { %v3984_v25 = vadd.f32 1.0, %v8679_v41  ;;  %v1885_v7 = vpop.f32.mrf.mxu2  ;;  %v7134_v12 = vor.u32 %v8130_v4, %v7131_v35  ;;  %v7130_v42 = vor.u32 %v8134_v45, %v7129_v34  ;;  %v7387_v41 = vld [vmem:[#allocation5 + $0x238] sm:$0xf0]  ;;  %v4233_v34 = vmul.f32 0.5, %v3977_v49 }
 0x305   :  { %v2720_v6 = vmul.f32 %v2464_v29, %v10647_v22  ;;  %8682 = vtanh.f32 %v3480_v15  ;;  %v2969_v14 = vmul.f32 0.044715, %v2713_v50  ;;  %v1886_v44 = vadd.f32 %v1885_v7, %v10466_v36 }
 0x306   :  { %v1974_v19 = vpop.f32.mrf.mxu3  ;;  %v1710_v55 = vpop.f32.mrf.mxu0  ;;  %v4240_v29 = vmul.f32 0.5, %v3984_v25  ;;  %2217 = vmatpush.bf16.msrb.mxu2 %v7134_v12  ;;  %v7390_v15 = vor.u32 %v8194_v61, %v7387_v41  ;;  %2039 = vmatpush.bf16.msrb.mxu0 %v7130_v42 }
 0x307   :  { %v2976_v51 = vmul.f32 0.044715, %v2720_v6  ;;  %v1711_v10 = vadd.f32 %v1710_v55, %v10451_v24  ;;  %v3225_v11 = vadd.f32 %v2969_v14, %v10644_v57  ;;  %v10660_v54 = vadd.f32 %v1974_v19, %v1886_v44  ;;  %v7385_v44 = vld [vmem:[#allocation5 + $0x218] sm:$0xf] }
 0x308   :  { %v1799_v18 = vpop.f32.mrf.mxu1  ;;  %v4488_v6 = vmul.f32 %v4232_v5, %v10583_v62  ;;  %v4496_v4 = vmul.f32 %v4240_v29, %v10607_v30  ;;  %2306 = vmatpush.bf16.msrb.mxu3 %v7390_v15  ;;  %v8198_v19 = vld [vmem:[#allocation5 + $0x234] sm:$0xf0]  ;;  %v4489_v15 = vmul.f32 %v4233_v34, %v10604_v46 }
 0x309   :  { %v3232_v50 = vadd.f32 %v2976_v51, %v10647_v22  ;;  %v10663_v7 = vadd.f32 %v1799_v18, %v1711_v10  ;;  %1749 = vmatmul.bf16.gmra.mxu0 %v9357_v28  ;;  %v8681_v35 = vpop.eup %8680  ;;  %v3481_v45 = vmul.f32 0.7978846, %v3225_v11  ;;  %v2465_v25 = vmul.f32 %v10660_v54, %v10660_v54  ;;  %1927 = vmatmul.bf16.gmra.mxu2 %v9357_v28 }
 0x30a   :  { %v10675_v62 = vpack.c.bf16 %v4496_v4, %v4488_v6  ;;  %v3985_v30 = vadd.f32 1.0, %v8681_v35  ;;  %v7386_v12 = vor.u32 %v8198_v19, %v7385_v44 }
 0x30b   :  { %1838 = vmatmul.bf16.gmra.mxu1 %v9359_v56  ;;  %v3488_v14 = vmul.f32 0.7978846, %v3232_v50  ;;  %v2472_v51 = vmul.f32 %v10663_v7, %v10663_v7  ;;  %2016 = vmatmul.bf16.gmra.mxu3 %v9359_v56  ;;  %v8683_v5 = vpop.eup %8682  ;;  %8684 = vtanh.f32 %v3481_v45  ;;  %v2721_v11 = vmul.f32 %v2465_v25, %v10660_v54 }
 0x30c   :  { %12463 = vst [vmem:[#allocation87_spill] sm:$0xff] %v10675_v62  ;;  %v1888_v49 = vpop.f32.mrf.mxu2  ;;  %v4241_v61 = vmul.f32 0.5, %v3985_v30  ;;  %2128 = vmatpush.bf16.msrb.mxu1 %v7386_v12  ;;  %v3992_v25 = vadd.f32 1.0, %v8683_v5 }
 0x30d   :  { %v2728_v55 = vmul.f32 %v2472_v51, %v10663_v7  ;;  %8686 = vtanh.f32 %v3488_v14  ;;  %v2977_v10 = vmul.f32 0.044715, %v2721_v11  ;;  %v1889_v18 = vadd.f32 %v1888_v49, %v10466_v36 }
 0x30e   :  { %v1977_v42 = vpop.f32.mrf.mxu3  ;;  %v1712_v41 = vpop.f32.mrf.mxu0  ;;  %v4497_v4 = vmul.f32 %v4241_v61, %v10620_v31  ;;  %v4248_v5 = vmul.f32 0.5, %v3992_v25 }
 0x30f   :  { %v2984_v29 = vmul.f32 0.044715, %v2728_v55  ;;  %v1713_v50 = vadd.f32 %v1712_v41, %v10451_v24  ;;  %v3233_v35 = vadd.f32 %v2977_v10, %v10660_v54  ;;  %v10684_v45 = vadd.f32 %v1977_v42, %v1889_v18 }
 0x310   :  { %v1801_v6 = vpop.f32.mrf.mxu1  ;;  %v10689_v30 = vpack.c.bf16 %v4497_v4, %v4489_v15  ;;  %v4504_v25 = vmul.f32 %v4248_v5, %v10625_v20 }
 0x311   :  { %v3240_v14 = vadd.f32 %v2984_v29, %v10663_v7  ;;  %v10687_v51 = vadd.f32 %v1801_v6, %v1713_v50  ;;  %v8685_v11 = vpop.eup %8684  ;;  %v3489_v44 = vmul.f32 0.7978846, %v3233_v35  ;;  %v2473_v19 = vmul.f32 %v10684_v45, %v10684_v45 }
 0x312   :  { %12464 = vst [vmem:[#allocation88_spill] sm:$0xff] %v10689_v30  ;;  %v3993_v10 = vadd.f32 1.0, %v8685_v11  ;;  %v8270_v30 = vld [vmem:[#allocation8 + $0x74] sm:$0xf0] }
 0x313   :  { %v8687_v55 = vpop.eup %8686  ;;  %v3496_v46 = vmul.f32 0.7978846, %v3240_v14  ;;  %v2480_v31 = vmul.f32 %v10687_v51, %v10687_v51  ;;  %v2729_v34 = vmul.f32 %v2473_v19, %v10684_v45  ;;  %8688 = vtanh.f32 %v3489_v44 }
 0x314   :  { %v4000_v49 = vadd.f32 1.0, %v8687_v55  ;;  %v1890_v61 = vpop.f32.mrf.mxu2  ;;  %v12465_v55 = vld [vmem:[#allocation23_spill] sm:$0xff]  ;;  %v4249_v20 = vmul.f32 0.5, %v3993_v10 }
 0x315   :  { %v2736_v12 = vmul.f32 %v2480_v31, %v10687_v51  ;;  %8690 = vtanh.f32 %v3496_v46  ;;  %v2985_v18 = vmul.f32 0.044715, %v2729_v34  ;;  %v1891_v42 = vadd.f32 %v1890_v61, %v10466_v36 }
 0x316   :  { %v1979_v41 = vpop.f32.mrf.mxu3  ;;  %v1715_v29 = vpop.f32.mrf.mxu0  ;;  %v4256_v50 = vmul.f32 0.5, %v4000_v49  ;;  %v12466_v49 = vld [vmem:[#allocation24_spill] sm:$0xff] }
 0x317   :  { %v2992_v6 = vmul.f32 0.044715, %v2736_v12  ;;  %v1716_v15 = vadd.f32 %v1715_v29, %v10451_v24  ;;  %v3241_v35 = vadd.f32 %v2985_v18, %v10684_v45  ;;  %v10700_v14 = vadd.f32 %v1979_v41, %v1891_v42 }
 0x318   :  { %v1804_v4 = vpop.f32.mrf.mxu1  ;;  %v4512_v44 = vmul.f32 %v4256_v50, %v10647_v22 }
 0x319   :  { %v3248_v11 = vadd.f32 %v2992_v6, %v10687_v51  ;;  %v10705_v19 = vadd.f32 %v1804_v4, %v1716_v15  ;;  %1754 = vmatmul.bf16.gmra.mxu0 %v12465_v55  ;;  %v8689_v46 = vpop.eup %8688  ;;  %v3497_v31 = vmul.f32 0.7978846, %v3241_v35  ;;  %v2481_v34 = vmul.f32 %v10700_v14, %v10700_v14  ;;  %1932 = vmatmul.bf16.gmra.mxu2 %v12465_v55 }
 0x31a   :  { %v10712_v12 = vpack.c.bf16 %v4512_v44, %v4504_v25  ;;  %v4001_v61 = vadd.f32 1.0, %v8689_v46  ;;  %v4505_v35 = vmul.f32 %v4249_v20, %v10644_v57 }
 0x31b   :  { %1843 = vmatmul.bf16.gmra.mxu1 %v12466_v49  ;;  %v3504_v5 = vmul.f32 0.7978846, %v3248_v11  ;;  %v2488_v22 = vmul.f32 %v10705_v19, %v10705_v19  ;;  %2021 = vmatmul.bf16.gmra.mxu3 %v12466_v49  ;;  %v8691_v18 = vpop.eup %8690  ;;  %8692 = vtanh.f32 %v3497_v31  ;;  %v2737_v42 = vmul.f32 %v2481_v34, %v10700_v14 }
 0x31c   :  { %12467 = vst [vmem:[#allocation89_spill] sm:$0xff] %v10712_v12  ;;  %v1893_v29 = vpop.f32.mrf.mxu2  ;;  %v4257_v50 = vmul.f32 0.5, %v4001_v61  ;;  %v4008_v31 = vadd.f32 1.0, %v8691_v18 }
 0x31d   :  { %v2744_v41 = vmul.f32 %v2488_v22, %v10705_v19  ;;  %8694 = vtanh.f32 %v3504_v5  ;;  %v2993_v6 = vmul.f32 0.044715, %v2737_v42  ;;  %v1894_v15 = vadd.f32 %v1893_v29, %v10466_v36 }
 0x31e   :  { %v1982_v10 = vpop.f32.mrf.mxu3  ;;  %v1717_v4 = vpop.f32.mrf.mxu0  ;;  %v4513_v46 = vmul.f32 %v4257_v50, %v10660_v54  ;;  %v4264_v18 = vmul.f32 0.5, %v4008_v31  ;;  %v7865_v31 = vld [vmem:[#allocation8 + $0x1f0] sm:$0xf] }
 0x31f   :  { %v3000_v25 = vmul.f32 0.044715, %v2744_v41  ;;  %v1718_v44 = vadd.f32 %v1717_v4, %v10451_v24  ;;  %v3249_v34 = vadd.f32 %v2993_v6, %v10700_v14  ;;  %v10724_v22 = vadd.f32 %v1982_v10, %v1894_v15 }
 0x320   :  { %v1806_v11 = vpop.f32.mrf.mxu1  ;;  %v10729_v42 = vpack.c.bf16 %v4513_v46, %v4505_v35  ;;  %v7801_v35 = vld [vmem:[#allocation8 + $0x170] sm:$0xf] }
 0x321   :  { %v3256_v5 = vadd.f32 %v3000_v25, %v10705_v19  ;;  %v10727_v61 = vadd.f32 %v1806_v11, %v1718_v44  ;;  %v8693_v29 = vpop.eup %8692  ;;  %v3505_v12 = vmul.f32 0.7978846, %v3249_v34  ;;  %v2489_v57 = vmul.f32 %v10724_v22, %v10724_v22  ;;  %v8302_v25 = vld [vmem:[#allocation8 + $0x174] sm:$0xf0]  ;;  %v7673_v44 = vld [vmem:[#allocation8 + $0x70] sm:$0xf] }
 0x322   :  { %12468 = vst [vmem:[#allocation90_spill] sm:$0xff] %v10729_v42  ;;  %v4009_v15 = vadd.f32 1.0, %v8693_v29  ;;  %v7802_v42 = vor.u32 %v8302_v25, %v7801_v35  ;;  %v7674_v29 = vor.u32 %v8270_v30, %v7673_v44 }
 0x323   :  { %v8695_v20 = vpop.eup %8694  ;;  %v3512_v41 = vmul.f32 0.7978846, %v3256_v5  ;;  %v2496_v54 = vmul.f32 %v10727_v61, %v10727_v61  ;;  %v2745_v50 = vmul.f32 %v2489_v57, %v10724_v22  ;;  %8696 = vtanh.f32 %v3505_v12 }
 0x324   :  { %v4016_v6 = vadd.f32 1.0, %v8695_v20  ;;  %v1895_v4 = vpop.f32.mrf.mxu2  ;;  %v8318_v20 = vld [vmem:[#allocation8 + $0x1f4] sm:$0xf0]  ;;  %5772 = vmatpush.bf16.msra.mxu2 %v7802_v42  ;;  %v4265_v42 = vmul.f32 0.5, %v4009_v15  ;;  %5594 = vmatpush.bf16.msra.mxu0 %v7674_v29 }
 0x325   :  { %v2752_v10 = vmul.f32 %v2496_v54, %v10727_v61  ;;  %8698 = vtanh.f32 %v3512_v41  ;;  %v3001_v11 = vmul.f32 0.044715, %v2745_v50  ;;  %v1896_v46 = vadd.f32 %v1895_v4, %v10466_v36 }
 0x326   :  { %v1984_v34 = vpop.f32.mrf.mxu3  ;;  %v1720_v5 = vpop.f32.mrf.mxu0  ;;  %v4272_v54 = vmul.f32 0.5, %v4016_v6  ;;  %v7866_v41 = vor.u32 %v8318_v20, %v7865_v31 }
 0x327   :  { %v3008_v62 = vmul.f32 0.044715, %v2752_v10  ;;  %v1721_v57 = vadd.f32 %v1720_v5, %v10451_v24  ;;  %v3257_v49 = vadd.f32 %v3001_v11, %v10724_v22  ;;  %v10740_v55 = vadd.f32 %v1984_v34, %v1896_v46  ;;  %v7737_v11 = vld [vmem:[#allocation8 + $0xf0] sm:$0xf]  ;;  %v8286_v46 = vld [vmem:[#allocation8 + $0xf4] sm:$0xf0] }
 0x328   :  { %v1809_v12 = vpop.f32.mrf.mxu1  ;;  %v4520_v10 = vmul.f32 %v4264_v18, %v10663_v7  ;;  %v4528_v35 = vmul.f32 %v4272_v54, %v10687_v51  ;;  %5861 = vmatpush.bf16.msra.mxu3 %v7866_v41  ;;  %v7738_v5 = vor.u32 %v8286_v46, %v7737_v11  ;;  %v4521_v41 = vmul.f32 %v4265_v42, %v10684_v45 }
 0x329   :  { %v3264_v50 = vadd.f32 %v3008_v62, %v10727_v61  ;;  %v10743_v4 = vadd.f32 %v1809_v12, %v1721_v57  ;;  %1759 = vmatmul.bf16.gmra.mxu0 %v9445_v48  ;;  %v8697_v25 = vpop.eup %8696  ;;  %v3513_v30 = vmul.f32 0.7978846, %v3257_v49  ;;  %v2497_v6 = vmul.f32 %v10740_v55, %v10740_v55  ;;  %1937 = vmatmul.bf16.gmra.mxu2 %v9445_v48 }
 0x32a   :  { %v10755_v7 = vpack.c.bf16 %v4528_v35, %v4520_v10  ;;  %v4017_v51 = vadd.f32 1.0, %v8697_v25  ;;  %5683 = vmatpush.bf16.msra.mxu1 %v7738_v5 }
 0x32b   :  { %1848 = vmatmul.bf16.gmra.mxu1 %v9447_v60  ;;  %v3520_v44 = vmul.f32 0.7978846, %v3264_v50  ;;  %v2504_v62 = vmul.f32 %v10743_v4, %v10743_v4  ;;  %2026 = vmatmul.bf16.gmra.mxu3 %v9447_v60  ;;  %v8699_v18 = vpop.eup %8698  ;;  %8700 = vtanh.f32 %v3513_v30  ;;  %v2753_v49 = vmul.f32 %v2497_v6, %v10740_v55 }
 0x32c   :  { %v1898_v15 = vpop.f32.mrf.mxu2  ;;  %v4273_v31 = vmul.f32 0.5, %v4017_v51  ;;  %v4024_v6 = vadd.f32 1.0, %v8699_v18 }
 0x32d   :  { %v2760_v34 = vmul.f32 %v2504_v62, %v10743_v4  ;;  %8702 = vtanh.f32 %v3520_v44  ;;  %v3009_v57 = vmul.f32 0.044715, %v2753_v49  ;;  %v1899_v12 = vadd.f32 %v1898_v15, %v10466_v36 }
 0x32e   :  { %v1987_v29 = vpop.f32.mrf.mxu3  ;;  %v1722_v20 = vpop.f32.mrf.mxu0  ;;  %v4529_v35 = vmul.f32 %v4273_v31, %v10700_v14  ;;  %v4280_v18 = vmul.f32 0.5, %v4024_v6 }
 0x32f   :  { %v3016_v54 = vmul.f32 0.044715, %v2760_v34  ;;  %v1723_v50 = vadd.f32 %v1722_v20, %v10451_v24  ;;  %v3265_v25 = vadd.f32 %v3009_v57, %v10740_v55  ;;  %v10764_v30 = vadd.f32 %v1987_v29, %v1899_v12 }
 0x330   :  { %v1811_v10 = vpop.f32.mrf.mxu1  ;;  %v10769_v51 = vpack.c.bf16 %v4529_v35, %v4521_v41  ;;  %v4536_v6 = vmul.f32 %v4280_v18, %v10705_v19 }
 0x331   :  { %v3272_v44 = vadd.f32 %v3016_v54, %v10743_v4  ;;  %v10767_v62 = vadd.f32 %v1811_v10, %v1723_v50  ;;  %v8701_v49 = vpop.eup %8700  ;;  %v3521_v11 = vmul.f32 0.7978846, %v3265_v25  ;;  %v2505_v46 = vmul.f32 %v10764_v30, %v10764_v30 }
 0x332   :  { %v4025_v57 = vadd.f32 1.0, %v8701_v49 }
 0x333   :  { %v8703_v34 = vpop.eup %8702  ;;  %v3528_v45 = vmul.f32 0.7978846, %v3272_v44  ;;  %v2512_v14 = vmul.f32 %v10767_v62, %v10767_v62  ;;  %v2761_v42 = vmul.f32 %v2505_v46, %v10764_v30  ;;  %8704 = vtanh.f32 %v3521_v11 }
 0x334   :  { %v4032_v15 = vadd.f32 1.0, %v8703_v34  ;;  %v1900_v31 = vpop.f32.mrf.mxu2  ;;  %v4281_v19 = vmul.f32 0.5, %v4025_v57 }
 0x335   :  { %v2768_v5 = vmul.f32 %v2512_v14, %v10767_v62  ;;  %8706 = vtanh.f32 %v3528_v45  ;;  %v3017_v12 = vmul.f32 0.044715, %v2761_v42  ;;  %v1901_v29 = vadd.f32 %v1900_v31, %v10466_v36 }
 0x336   :  { %v1989_v20 = vpop.f32.mrf.mxu3  ;;  %v1725_v54 = vpop.f32.mrf.mxu0  ;;  %v4288_v50 = vmul.f32 0.5, %v4032_v15 }
 0x337   :  { %v3024_v10 = vmul.f32 0.044715, %v2768_v5  ;;  %v1726_v41 = vadd.f32 %v1725_v54, %v10451_v24  ;;  %v3273_v25 = vadd.f32 %v3017_v12, %v10764_v30  ;;  %v10780_v44 = vadd.f32 %v1989_v20, %v1901_v29 }
 0x338   :  { %v1814_v35 = vpop.f32.mrf.mxu1  ;;  %v4544_v11 = vmul.f32 %v4288_v50, %v10727_v61 }
 0x339   :  { %v3280_v49 = vadd.f32 %v3024_v10, %v10767_v62  ;;  %v10785_v46 = vadd.f32 %v1814_v35, %v1726_v41  ;;  %2040 = vmatmul.bf16.vlgmr.msrb.gmra.mxu0 %v9094_v43  ;;  %v8705_v34 = vpop.eup %8704  ;;  %v3529_v45 = vmul.f32 0.7978846, %v3273_v25  ;;  %v2513_v14 = vmul.f32 %v10780_v44, %v10780_v44  ;;  %2218 = vmatmul.bf16.vlgmr.msrb.gmra.mxu2 %v9094_v43 }
 0x33a   :  { %v10792_v42 = vpack.c.bf16 %v4544_v11, %v4536_v6  ;;  %v4033_v18 = vadd.f32 1.0, %v8705_v34  ;;  %v4537_v10 = vmul.f32 %v4281_v19, %v10724_v22 }
 0x33b   :  { %2129 = vmatmul.bf16.vlgmr.msrb.gmra.mxu1 %v9096_v47  ;;  %v3536_v15 = vmul.f32 0.7978846, %v3280_v49  ;;  %v2520_v61 = vmul.f32 %v10785_v46, %v10785_v46  ;;  %2307 = vmatmul.bf16.vlgmr.msrb.gmra.mxu3 %v9096_v47  ;;  %v8707_v5 = vpop.eup %8706  ;;  %8708 = vtanh.f32 %v3529_v45  ;;  %v2769_v31 = vmul.f32 %v2513_v14, %v10780_v44 }
 0x33c   :  { %12469 = vst [vmem:[#allocation91_spill] sm:$0xff] %v10792_v42  ;;  %v1903_v29 = vpop.f32.mrf.mxu2  ;;  %v4289_v20 = vmul.f32 0.5, %v4033_v18  ;;  %v4040_v6 = vadd.f32 1.0, %v8707_v5 }
 0x33d   :  { %v2776_v12 = vmul.f32 %v2520_v61, %v10785_v46  ;;  %8710 = vtanh.f32 %v3536_v15  ;;  %v3025_v43 = vmul.f32 0.044715, %v2769_v31  ;;  %v1904_v54 = vadd.f32 %v1903_v29, %v10466_v36 }
 0x33e   :  { %v1992_v57 = vpop.f32.mrf.mxu3  ;;  %v1727_v50 = vpop.f32.mrf.mxu0  ;;  %v4545_v25 = vmul.f32 %v4289_v20, %v10740_v55  ;;  %v4296_v5 = vmul.f32 0.5, %v4040_v6  ;;  %v7857_v6 = vld [vmem:[#allocation8 + $0x1e0] sm:$0xf] }
 0x33f   :  { %v3032_v41 = vmul.f32 0.044715, %v2776_v12  ;;  %v1728_v47 = vadd.f32 %v1727_v50, %v10451_v24  ;;  %v3281_v11 = vadd.f32 %v3025_v43, %v10780_v44  ;;  %v10804_v49 = vadd.f32 %v1992_v57, %v1904_v54  ;;  %v7793_v54 = vld [vmem:[#allocation8 + $0x160] sm:$0xf]  ;;  %v8300_v57 = vld [vmem:[#allocation8 + $0x164] sm:$0xf0] }
 0x340   :  { %v1816_v35 = vpop.f32.mrf.mxu1  ;;  %v10809_v14 = vpack.c.bf16 %v4545_v25, %v4537_v10  ;;  %v7665_v50 = vld [vmem:[#allocation8 + $0x60] sm:$0xf]  ;;  %v7794_v25 = vor.u32 %v8300_v57, %v7793_v54 }
 0x341   :  { %v3288_v34 = vadd.f32 %v3032_v41, %v10785_v46  ;;  %v10807_v45 = vadd.f32 %v1816_v35, %v1728_v47  ;;  %v8709_v15 = vpop.eup %8708  ;;  %v3537_v61 = vmul.f32 0.7978846, %v3281_v11  ;;  %v2521_v22 = vmul.f32 %v10804_v49, %v10804_v49  ;;  %v8268_v11 = vld [vmem:[#allocation8 + $0x64] sm:$0xf0] }
 0x342   :  { %12470 = vst [vmem:[#allocation92_spill] sm:$0xff] %v10809_v14  ;;  %v4041_v29 = vadd.f32 1.0, %v8709_v15  ;;  %v7666_v15 = vor.u32 %v8268_v11, %v7665_v50  ;;  %5773 = vmatpush.bf16.msra.mxu2 %v7794_v25  ;;  %v8284_v25 = vld [vmem:[#allocation8 + $0xe4] sm:$0xf0] }
 0x343   :  { %v8711_v19 = vpop.eup %8710  ;;  %v3544_v18 = vmul.f32 0.7978846, %v3288_v34  ;;  %v2528_v55 = vmul.f32 %v10807_v45, %v10807_v45  ;;  %v2777_v31 = vmul.f32 %v2521_v22, %v10804_v49  ;;  %8712 = vtanh.f32 %v3537_v61 }
 0x344   :  { %v4048_v12 = vadd.f32 1.0, %v8711_v19  ;;  %v1905_v43 = vpop.f32.mrf.mxu2  ;;  %v8316_v19 = vld [vmem:[#allocation8 + $0x1e4] sm:$0xf0]  ;;  %5595 = vmatpush.bf16.msra.mxu0 %v7666_v15 }
 0x345   :  { %v2784_v20 = vmul.f32 %v2528_v55, %v10807_v45  ;;  %8714 = vtanh.f32 %v3544_v18  ;;  %v3033_v10 = vmul.f32 0.044715, %v2777_v31  ;;  %v1906_v41 = vadd.f32 %v1905_v43, %v10466_v36 }
 0x346   :  { %v1994_v47 = vpop.f32.mrf.mxu3  ;;  %v1730_v35 = vpop.f32.mrf.mxu0  ;;  %v4304_v55 = vmul.f32 0.5, %v4048_v12  ;;  %v7858_v18 = vor.u32 %v8316_v19, %v7857_v6 }
 0x347   :  { %v3040_v34 = vmul.f32 0.044715, %v2784_v20  ;;  %v1731_v22 = vadd.f32 %v1730_v35, %v10451_v24  ;;  %v3289_v14 = vadd.f32 %v3033_v10, %v10804_v49  ;;  %v10820_v42 = vadd.f32 %v1994_v47, %v1906_v41  ;;  %v7729_v35 = vld [vmem:[#allocation8 + $0xe0] sm:$0xf] }
 0x348   :  { %v1819_v61 = vpop.f32.mrf.mxu1  ;;  %v4552_v20 = vmul.f32 %v4296_v5, %v10743_v4  ;;  %v4560_v54 = vmul.f32 %v4304_v55, %v10767_v62  ;;  %v4297_v10 = vmul.f32 0.5, %v4041_v29  ;;  %5862 = vmatpush.bf16.msra.mxu3 %v7858_v18  ;;  %v7730_v11 = vor.u32 %v8284_v25, %v7729_v35 }
 0x349   :  { %v3296_v31 = vadd.f32 %v3040_v34, %v10807_v45  ;;  %v10823_v43 = vadd.f32 %v1819_v61, %v1731_v22  ;;  %2045 = vmatmul.bf16.gmra.mxu0 %v9102_v2  ;;  %v8713_v57 = vpop.eup %8712  ;;  %v3545_v50 = vmul.f32 0.7978846, %v3289_v14  ;;  %v2529_v12 = vmul.f32 %v10820_v42, %v10820_v42  ;;  %2223 = vmatmul.bf16.gmra.mxu2 %v9102_v2 }
 0x34a   :  { %v10835_v4 = vpack.c.bf16 %v4560_v54, %v4552_v20  ;;  %v4049_v62 = vadd.f32 1.0, %v8713_v57  ;;  %5684 = vmatpush.bf16.msra.mxu1 %v7730_v11  ;;  %v4553_v18 = vmul.f32 %v4297_v10, %v10764_v30 }
 0x34b   :  { %2134 = vmatmul.bf16.gmra.mxu1 %v9104_v3  ;;  %v3552_v41 = vmul.f32 0.7978846, %v3296_v31  ;;  %v2536_v47 = vmul.f32 %v10823_v43, %v10823_v43  ;;  %2312 = vmatmul.bf16.gmra.mxu3 %v9104_v3  ;;  %v8715_v5 = vpop.eup %8714  ;;  %8716 = vtanh.f32 %v3545_v50  ;;  %v2785_v14 = vmul.f32 %v2529_v12, %v10820_v42 }
 0x34c   :  { %v1908_v29 = vpop.f32.mrf.mxu2  ;;  %v4305_v6 = vmul.f32 0.5, %v4049_v62  ;;  %v4056_v57 = vadd.f32 1.0, %v8715_v5 }
 0x34d   :  { %v2792_v2 = vmul.f32 %v2536_v47, %v10823_v43  ;;  %8718 = vtanh.f32 %v3552_v41  ;;  %v3041_v34 = vmul.f32 0.044715, %v2785_v14  ;;  %v1909_v3 = vadd.f32 %v1908_v29, %v10466_v36 }
 0x34e   :  { %v1997_v22 = vpop.f32.mrf.mxu3  ;;  %v1732_v61 = vpop.f32.mrf.mxu0  ;;  %v4561_v31 = vmul.f32 %v4305_v6, %v10780_v44  ;;  %v4312_v5 = vmul.f32 0.5, %v4056_v57 }
 0x34f   :  { %v3048_v15 = vmul.f32 0.044715, %v2792_v2  ;;  %v1733_v19 = vadd.f32 %v1732_v61, %v10451_v24  ;;  %v3297_v20 = vadd.f32 %v3041_v34, %v10820_v42  ;;  %v10844_v54 = vadd.f32 %v1997_v22, %v1909_v3 }
 0x350   :  { %v1821_v55 = vpop.f32.mrf.mxu1  ;;  %v10849_v41 = vpack.c.bf16 %v4561_v31, %v4553_v18 }
 0x351   :  { %v3304_v50 = vadd.f32 %v3048_v15, %v10823_v43  ;;  %v10847_v12 = vadd.f32 %v1821_v55, %v1733_v19  ;;  %v8717_v47 = vpop.eup %8716  ;;  %v3553_v62 = vmul.f32 0.7978846, %v3297_v20  ;;  %v2537_v14 = vmul.f32 %v10844_v54, %v10844_v54 }
 0x352   :  { %v4057_v11 = vadd.f32 1.0, %v8717_v47  ;;  %v4568_v20 = vmul.f32 %v4312_v5, %v10785_v46 }
 0x353   :  { %v8719_v35 = vpop.eup %8718  ;;  %v3560_v30 = vmul.f32 0.7978846, %v3304_v50  ;;  %v2544_v44 = vmul.f32 %v10847_v12, %v10847_v12  ;;  %v2793_v10 = vmul.f32 %v2537_v14, %v10844_v54  ;;  %8720 = vtanh.f32 %v3553_v62 }
 0x354   :  { %v4064_v25 = vadd.f32 1.0, %v8719_v35  ;;  %v1910_v29 = vpop.f32.mrf.mxu2  ;;  %v4313_v46 = vmul.f32 0.5, %v4057_v11 }
 0x355   :  { %v2800_v2 = vmul.f32 %v2544_v44, %v10847_v12  ;;  %8722 = vtanh.f32 %v3560_v30  ;;  %v3049_v6 = vmul.f32 0.044715, %v2793_v10  ;;  %v1911_v34 = vadd.f32 %v1910_v29, %v10466_v36 }
 0x356   :  { %v1999_v3 = vpop.f32.mrf.mxu3  ;;  %v1735_v22 = vpop.f32.mrf.mxu0  ;;  %v4320_v61 = vmul.f32 0.5, %v4064_v25 }
 0x357   :  { %v3056_v15 = vmul.f32 0.044715, %v2800_v2  ;;  %v1736_v19 = vadd.f32 %v1735_v22, %v10451_v24  ;;  %v3305_v18 = vadd.f32 %v3049_v6, %v10844_v54  ;;  %v10860_v31 = vadd.f32 %v1999_v3, %v1911_v34 }
 0x358   :  { %v1824_v55 = vpop.f32.mrf.mxu1  ;;  %v4576_v57 = vmul.f32 %v4320_v61, %v10807_v45  ;;  %v4569_v22 = vmul.f32 %v4313_v46, %v10804_v49 }
 0x359   :  { %v3312_v50 = vadd.f32 %v3056_v15, %v10847_v12  ;;  %v10865_v47 = vadd.f32 %v1824_v55, %v1736_v19  ;;  %2050 = vmatmul.bf16.gmra.mxu0 %v9110_v8  ;;  %v8721_v62 = vpop.eup %8720  ;;  %v3561_v14 = vmul.f32 0.7978846, %v3305_v18  ;;  %v2545_v35 = vmul.f32 %v10860_v31, %v10860_v31  ;;  %2228 = vmatmul.bf16.gmra.mxu2 %v9110_v8 }
 0x35a   :  { %v10872_v30 = vpack.c.bf16 %v4576_v57, %v4568_v20  ;;  %v4065_v10 = vadd.f32 1.0, %v8721_v62 }
 0x35b   :  { %2139 = vmatmul.bf16.gmra.mxu1 %v9112_v9  ;;  %v3568_v44 = vmul.f32 0.7978846, %v3312_v50  ;;  %v2552_v45 = vmul.f32 %v10865_v47, %v10865_v47  ;;  %2317 = vmatmul.bf16.gmra.mxu3 %v9112_v9  ;;  %v8723_v25 = vpop.eup %8722  ;;  %8724 = vtanh.f32 %v3561_v14  ;;  %v2801_v5 = vmul.f32 %v2545_v35, %v10860_v31 }
 0x35c   :  { %v1913_v29 = vpop.f32.mrf.mxu2  ;;  %v4321_v6 = vmul.f32 0.5, %v4065_v10  ;;  %v4072_v55 = vadd.f32 1.0, %v8723_v25 }
 0x35d   :  { %v2808_v2 = vmul.f32 %v2552_v45, %v10865_v47  ;;  %8726 = vtanh.f32 %v3568_v44  ;;  %v3057_v8 = vmul.f32 0.044715, %v2801_v5  ;;  %v1914_v34 = vadd.f32 %v1913_v29, %v10466_v36 }
 0x35e   :  { %v2002_v11 = vpop.f32.mrf.mxu3  ;;  %v1737_v3 = vpop.f32.mrf.mxu0  ;;  %v4577_v19 = vmul.f32 %v4321_v6, %v10820_v42  ;;  %v4328_v45 = vmul.f32 0.5, %v4072_v55  ;;  %v7785_v6 = vld [vmem:[#allocation8 + $0x150] sm:$0xf] }
 0x35f   :  { %v3064_v61 = vmul.f32 0.044715, %v2808_v2  ;;  %v1738_v9 = vadd.f32 %v1737_v3, %v10451_v24  ;;  %v3313_v18 = vadd.f32 %v3057_v8, %v10860_v31  ;;  %v10884_v20 = vadd.f32 %v2002_v11, %v1914_v34  ;;  %v8298_v8 = vld [vmem:[#allocation8 + $0x154] sm:$0xf0]  ;;  %v7657_v34 = vld [vmem:[#allocation8 + $0x50] sm:$0xf] }
 0x360   :  { %v1826_v15 = vpop.f32.mrf.mxu1  ;;  %v10889_v62 = vpack.c.bf16 %v4577_v19, %v4569_v22  ;;  %v7849_v19 = vld [vmem:[#allocation8 + $0x1d0] sm:$0xf] }
 0x361   :  { %v3320_v57 = vadd.f32 %v3064_v61, %v10865_v47  ;;  %v10887_v50 = vadd.f32 %v1826_v15, %v1738_v9  ;;  %v8725_v14 = vpop.eup %8724  ;;  %v3569_v35 = vmul.f32 0.7978846, %v3313_v18  ;;  %v2553_v49 = vmul.f32 %v10884_v20, %v10884_v20  ;;  %v8266_v15 = vld [vmem:[#allocation8 + $0x54] sm:$0xf0] }
 0x362   :  { %v4073_v5 = vadd.f32 1.0, %v8725_v14  ;;  %v7786_v9 = vor.u32 %v8298_v8, %v7785_v6  ;;  %v7658_v14 = vor.u32 %v8266_v15, %v7657_v34  ;;  %v8282_v15 = vld [vmem:[#allocation8 + $0xd4] sm:$0xf0] }
 0x363   :  { %v8727_v46 = vpop.eup %8726  ;;  %v3576_v44 = vmul.f32 0.7978846, %v3320_v57  ;;  %v2560_v42 = vmul.f32 %v10887_v50, %v10887_v50  ;;  %v2809_v10 = vmul.f32 %v2553_v49, %v10884_v20  ;;  %8728 = vtanh.f32 %v3569_v35  ;;  %v8314_v35 = vld [vmem:[#allocation8 + $0x1d4] sm:$0xf0] }
 0x364   :  { %v4080_v25 = vadd.f32 1.0, %v8727_v46  ;;  %v1915_v29 = vpop.f32.mrf.mxu2  ;;  %5774 = vmatpush.bf16.msra.mxu2 %v7786_v9  ;;  %5596 = vmatpush.bf16.msra.mxu0 %v7658_v14  ;;  %v7721_v9 = vld [vmem:[#allocation8 + $0xd0] sm:$0xf] }
 0x365   :  { %v2816_v2 = vmul.f32 %v2560_v42, %v10887_v50  ;;  %8730 = vtanh.f32 %v3576_v44  ;;  %v3065_v11 = vmul.f32 0.044715, %v2809_v10  ;;  %v1916_v3 = vadd.f32 %v1915_v29, %v10466_v36 }
 0x366   :  { %v2004_v22 = vpop.f32.mrf.mxu3  ;;  %v1740_v61 = vpop.f32.mrf.mxu0  ;;  %v4336_v49 = vmul.f32 0.5, %v4080_v25  ;;  %v7850_v44 = vor.u32 %v8314_v35, %v7849_v19  ;;  %v7722_v19 = vor.u32 %v8282_v15, %v7721_v9 }
 0x367   :  { %v3072_v55 = vmul.f32 0.044715, %v2816_v2  ;;  %v1741_v18 = vadd.f32 %v1740_v61, %v10451_v24  ;;  %v3321_v46 = vadd.f32 %v3065_v11, %v10884_v20  ;;  %v10900_v42 = vadd.f32 %v2004_v22, %v1916_v3 }
 0x368   :  { %v1829_v57 = vpop.f32.mrf.mxu1  ;;  %v4584_v2 = vmul.f32 %v4328_v45, %v10823_v43  ;;  %v4592_v6 = vmul.f32 %v4336_v49, %v10847_v12  ;;  %v4329_v11 = vmul.f32 0.5, %v4073_v5  ;;  %5863 = vmatpush.bf16.msra.mxu3 %v7850_v44  ;;  %5685 = vmatpush.bf16.msra.mxu1 %v7722_v19 }
 0x369   :  { %v3328_v10 = vadd.f32 %v3072_v55, %v10887_v50  ;;  %v10903_v29 = vadd.f32 %v1829_v57, %v1741_v18  ;;  %2055 = vmatmul.bf16.gmra.mxu0 %v9118_v26  ;;  %v8729_v8 = vpop.eup %8728  ;;  %v3577_v34 = vmul.f32 0.7978846, %v3321_v46  ;;  %v2561_v25 = vmul.f32 %v10900_v42, %v10900_v42  ;;  %2233 = vmatmul.bf16.gmra.mxu2 %v9118_v26 }
 0x36a   :  { %v10915_v43 = vpack.c.bf16 %v4592_v6, %v4584_v2  ;;  %v4081_v12 = vadd.f32 1.0, %v8729_v8  ;;  %v4585_v44 = vmul.f32 %v4329_v11, %v10844_v54 }
 0x36b   :  { %2144 = vmatmul.bf16.gmra.mxu1 %v9120_v27  ;;  %v3584_v3 = vmul.f32 0.7978846, %v3328_v10  ;;  %v2568_v22 = vmul.f32 %v10903_v29, %v10903_v29  ;;  %2322 = vmatmul.bf16.gmra.mxu3 %v9120_v27  ;;  %v8731_v45 = vpop.eup %8730  ;;  %8732 = vtanh.f32 %v3577_v34  ;;  %v2817_v61 = vmul.f32 %v2561_v25, %v10900_v42 }
 0x36c   :  { %v1918_v5 = vpop.f32.mrf.mxu2  ;;  %v4337_v55 = vmul.f32 0.5, %v4081_v12  ;;  %v4088_v8 = vadd.f32 1.0, %v8731_v45 }
 0x36d   :  { %v2824_v26 = vmul.f32 %v2568_v22, %v10903_v29  ;;  %8734 = vtanh.f32 %v3584_v3  ;;  %v3073_v18 = vmul.f32 0.044715, %v2817_v61  ;;  %v1919_v27 = vadd.f32 %v1918_v5, %v10466_v36 }
 0x36e   :  { %v2007_v57 = vpop.f32.mrf.mxu3  ;;  %v1742_v14 = vpop.f32.mrf.mxu0  ;;  %v4593_v10 = vmul.f32 %v4337_v55, %v10860_v31  ;;  %v4344_v45 = vmul.f32 0.5, %v4088_v8 }
 0x36f   :  { %v3080_v35 = vmul.f32 0.044715, %v2824_v26  ;;  %v1743_v49 = vadd.f32 %v1742_v14, %v10451_v24  ;;  %v3329_v2 = vadd.f32 %v3073_v18, %v10900_v42  ;;  %v10924_v6 = vadd.f32 %v2007_v57, %v1919_v27 }
 0x370   :  { %v1831_v46 = vpop.f32.mrf.mxu1  ;;  %v10929_v3 = vpack.c.bf16 %v4593_v10, %v4585_v44 }
 0x371   :  { %v3336_v34 = vadd.f32 %v3080_v35, %v10903_v29  ;;  %v10927_v25 = vadd.f32 %v1831_v46, %v1743_v49  ;;  %v8733_v22 = vpop.eup %8732  ;;  %v3585_v12 = vmul.f32 0.7978846, %v3329_v2  ;;  %v2569_v61 = vmul.f32 %v10924_v6, %v10924_v6 }
 0x372   :  { %v4089_v19 = vadd.f32 1.0, %v8733_v22  ;;  %v4600_v2 = vmul.f32 %v4344_v45, %v10865_v47 }
 0x373   :  { %v8735_v9 = vpop.eup %8734  ;;  %v3592_v54 = vmul.f32 0.7978846, %v3336_v34  ;;  %v2576_v31 = vmul.f32 %v10927_v25, %v10927_v25  ;;  %v2825_v11 = vmul.f32 %v2569_v61, %v10924_v6  ;;  %8736 = vtanh.f32 %v3585_v12 }
 0x374   :  { %v4096_v15 = vadd.f32 1.0, %v8735_v9  ;;  %v1920_v5 = vpop.f32.mrf.mxu2  ;;  %v4345_v47 = vmul.f32 0.5, %v4089_v19 }
 0x375   :  { %v2832_v26 = vmul.f32 %v2576_v31, %v10927_v25  ;;  %8738 = vtanh.f32 %v3592_v54  ;;  %v3081_v55 = vmul.f32 0.044715, %v2825_v11  ;;  %v1921_v18 = vadd.f32 %v1920_v5, %v10466_v36 }
 0x376   :  { %v2009_v27 = vpop.f32.mrf.mxu3  ;;  %v1745_v57 = vpop.f32.mrf.mxu0  ;;  %v4352_v14 = vmul.f32 0.5, %v4096_v15 }
 0x377   :  { %v3088_v35 = vmul.f32 0.044715, %v2832_v26  ;;  %v1746_v49 = vadd.f32 %v1745_v57, %v10451_v24  ;;  %v3337_v44 = vadd.f32 %v3081_v55, %v10924_v6  ;;  %v10940_v10 = vadd.f32 %v2009_v27, %v1921_v18 }
 0x378   :  { %v1834_v46 = vpop.f32.mrf.mxu1  ;;  %v4608_v8 = vmul.f32 %v4352_v14, %v10887_v50  ;;  %v4601_v57 = vmul.f32 %v4345_v47, %v10884_v20 }
 0x379   :  { %v3344_v34 = vadd.f32 %v3088_v35, %v10927_v25  ;;  %v10945_v22 = vadd.f32 %v1834_v46, %v1746_v49  ;;  %2060 = vmatmul.bf16.gmra.mxu0 %v9126_v32  ;;  %v8737_v12 = vpop.eup %8736  ;;  %v3593_v61 = vmul.f32 0.7978846, %v3337_v44  ;;  %v2577_v9 = vmul.f32 %v10940_v10, %v10940_v10  ;;  %2238 = vmatmul.bf16.gmra.mxu2 %v9126_v32 }
 0x37a   :  { %v10952_v54 = vpack.c.bf16 %v4608_v8, %v4600_v2  ;;  %v4097_v11 = vadd.f32 1.0, %v8737_v12 }
 0x37b   :  { %2149 = vmatmul.bf16.gmra.mxu1 %v9128_v33  ;;  %v3600_v31 = vmul.f32 0.7978846, %v3344_v34  ;;  %v2584_v50 = vmul.f32 %v10945_v22, %v10945_v22  ;;  %2327 = vmatmul.bf16.gmra.mxu3 %v9128_v33  ;;  %v8739_v15 = vpop.eup %8738  ;;  %8740 = vtanh.f32 %v3593_v61  ;;  %v2833_v45 = vmul.f32 %v2577_v9, %v10940_v10 }
 0x37c   :  { %v1923_v5 = vpop.f32.mrf.mxu2  ;;  %v4353_v55 = vmul.f32 0.5, %v4097_v11  ;;  %v4104_v46 = vadd.f32 1.0, %v8739_v15 }
 0x37d   :  { %v2840_v26 = vmul.f32 %v2584_v50, %v10945_v22  ;;  %8742 = vtanh.f32 %v3600_v31  ;;  %v3089_v32 = vmul.f32 0.044715, %v2833_v45  ;;  %v1924_v18 = vadd.f32 %v1923_v5, %v10466_v36 }
 0x37e   :  { %v2012_v19 = vpop.f32.mrf.mxu3  ;;  %v1747_v27 = vpop.f32.mrf.mxu0  ;;  %v4609_v49 = vmul.f32 %v4353_v55, %v10900_v42  ;;  %v4360_v50 = vmul.f32 0.5, %v4104_v46  ;;  %v7777_v55 = vld [vmem:[#allocation8 + $0x140] sm:$0xf] }
 0x37f   :  { %v3096_v14 = vmul.f32 0.044715, %v2840_v26  ;;  %v1748_v33 = vadd.f32 %v1747_v27, %v10451_v24  ;;  %v3345_v44 = vadd.f32 %v3089_v32, %v10940_v10  ;;  %v10964_v2 = vadd.f32 %v2012_v19, %v1924_v18  ;;  %v8296_v32 = vld [vmem:[#allocation8 + $0x144] sm:$0xf0]  ;;  %v7649_v18 = vld [vmem:[#allocation8 + $0x40] sm:$0xf] }
 0x380   :  { %v1836_v35 = vpop.f32.mrf.mxu1  ;;  %v10969_v12 = vpack.c.bf16 %v4609_v49, %v4601_v57  ;;  %v7841_v49 = vld [vmem:[#allocation8 + $0x1c0] sm:$0xf] }
 0x381   :  { %v3352_v8 = vadd.f32 %v3096_v14, %v10945_v22  ;;  %v10967_v34 = vadd.f32 %v1836_v35, %v1748_v33  ;;  %v8741_v61 = vpop.eup %8740  ;;  %v3601_v9 = vmul.f32 0.7978846, %v3345_v44  ;;  %v2585_v20 = vmul.f32 %v10964_v2, %v10964_v2  ;;  %v8264_v35 = vld [vmem:[#allocation8 + $0x44] sm:$0xf0] }
 0x382   :  { %12471 = vst [vmem:[#allocation93_spill] sm:$0xff] %v10969_v12  ;;  %v4105_v45 = vadd.f32 1.0, %v8741_v61  ;;  %v7778_v33 = vor.u32 %v8296_v32, %v7777_v55  ;;  %v7650_v61 = vor.u32 %v8264_v35, %v7649_v18  ;;  %v8280_v35 = vld [vmem:[#allocation8 + $0xc4] sm:$0xf0] }
 0x383   :  { %v8743_v47 = vpop.eup %8742  ;;  %v3608_v31 = vmul.f32 0.7978846, %v3352_v8  ;;  %v2592_v42 = vmul.f32 %v10967_v34, %v10967_v34  ;;  %v2841_v11 = vmul.f32 %v2585_v20, %v10964_v2  ;;  %8744 = vtanh.f32 %v3601_v9  ;;  %v8312_v9 = vld [vmem:[#allocation8 + $0x1c4] sm:$0xf0] }
 0x384   :  { %v4112_v15 = vadd.f32 1.0, %v8743_v47  ;;  %v1925_v5 = vpop.f32.mrf.mxu2  ;;  %5775 = vmatpush.bf16.msra.mxu2 %v7778_v33  ;;  %5597 = vmatpush.bf16.msra.mxu0 %v7650_v61  ;;  %v7713_v33 = vld [vmem:[#allocation8 + $0xc0] sm:$0xf] }
 0x385   :  { %v2848_v26 = vmul.f32 %v2592_v42, %v10967_v34  ;;  %8746 = vtanh.f32 %v3608_v31  ;;  %v3097_v19 = vmul.f32 0.044715, %v2841_v11  ;;  %v1926_v27 = vadd.f32 %v1925_v5, %v10466_v36 }
 0x386   :  { %v2014_v57 = vpop.f32.mrf.mxu3  ;;  %v1750_v14 = vpop.f32.mrf.mxu0  ;;  %v4368_v20 = vmul.f32 0.5, %v4112_v15  ;;  %v7842_v31 = vor.u32 %v8312_v9, %v7841_v49 }
 0x387   :  { %v3104_v46 = vmul.f32 0.044715, %v2848_v26  ;;  %v1751_v44 = vadd.f32 %v1750_v14, %v10451_v24  ;;  %v3353_v47 = vadd.f32 %v3097_v19, %v10964_v2  ;;  %v10980_v42 = vadd.f32 %v2014_v57, %v1926_v27 }
 0x388   :  { %v1839_v8 = vpop.f32.mrf.mxu1  ;;  %v4616_v26 = vmul.f32 %v4360_v50, %v10903_v29  ;;  %v4624_v55 = vmul.f32 %v4368_v20, %v10927_v25  ;;  %v4361_v19 = vmul.f32 0.5, %v4105_v45  ;;  %5864 = vmatpush.bf16.msra.mxu3 %v7842_v31  ;;  %v7714_v45 = vor.u32 %v8280_v35, %v7713_v33 }
 0x389   :  { %v3360_v11 = vadd.f32 %v3104_v46, %v10967_v34  ;;  %v10983_v5 = vadd.f32 %v1839_v8, %v1751_v44  ;;  %2065 = vmatmul.bf16.gmra.mxu0 %v9134_v52  ;;  %v8745_v32 = vpop.eup %8744  ;;  %v3609_v18 = vmul.f32 0.7978846, %v3353_v47  ;;  %v2593_v15 = vmul.f32 %v10980_v42, %v10980_v42  ;;  %2243 = vmatmul.bf16.gmra.mxu2 %v9134_v52 }
 0x38a   :  { %v10995_v29 = vpack.c.bf16 %v4624_v55, %v4616_v26  ;;  %v4113_v25 = vadd.f32 1.0, %v8745_v32  ;;  %5686 = vmatpush.bf16.msra.mxu1 %v7714_v45  ;;  %v4617_v31 = vmul.f32 %v4361_v19, %v10924_v6 }
 0x38b   :  { %2154 = vmatmul.bf16.gmra.mxu1 %v9136_v53  ;;  %v3616_v27 = vmul.f32 0.7978846, %v3360_v11  ;;  %v2600_v57 = vmul.f32 %v10983_v5, %v10983_v5  ;;  %2332 = vmatmul.bf16.gmra.mxu3 %v9136_v53  ;;  %v8747_v50 = vpop.eup %8746  ;;  %v2849_v14 = vmul.f32 %v2593_v15, %v10980_v42 }
 0x38c   :  { %12472 = vst [vmem:[#allocation94_spill] sm:$0xff] %v10995_v29  ;;  %v1928_v52 = vpop.f32.mrf.mxu2  ;;  %v4369_v46 = vmul.f32 0.5, %v4113_v25  ;;  %v4120_v32 = vadd.f32 1.0, %v8747_v50 }
 0x38d   :  { %v2856_v49 = vmul.f32 %v2600_v57, %v10983_v5  ;;  %8748 = vtanh.f32 %v3616_v27  ;;  %v3105_v44 = vmul.f32 0.044715, %v2849_v14  ;;  %v1929_v53 = vadd.f32 %v1928_v52, %v10466_v36 }
 0x38e   :  { %8750 = vtanh.f32 %v3609_v18  ;;  %v2017_v8 = vpop.f32.mrf.mxu3  ;;  %v1752_v61 = vpop.f32.mrf.mxu0  ;;  %v4625_v11 = vmul.f32 %v4369_v46, %v10940_v10  ;;  %v4376_v50 = vmul.f32 0.5, %v4120_v32 }
 0x38f   :  { %v3112_v9 = vmul.f32 0.044715, %v2856_v49  ;;  %v1753_v20 = vadd.f32 %v1752_v61, %v10451_v24  ;;  %v3361_v26 = vadd.f32 %v3105_v44, %v10980_v42  ;;  %v11004_v55 = vadd.f32 %v2017_v8, %v1929_v53 }
 0x390   :  { %v1841_v47 = vpop.f32.mrf.mxu1  ;;  %v11009_v27 = vpack.c.bf16 %v4625_v11, %v4617_v31 }
 0x391   :  { %v3368_v18 = vadd.f32 %v3112_v9, %v10983_v5  ;;  %v11007_v15 = vadd.f32 %v1841_v47, %v1753_v20  ;;  %v3617_v57 = vmul.f32 0.7978846, %v3361_v26  ;;  %v2601_v25 = vmul.f32 %v11004_v55, %v11004_v55 }
 0x392   :  { %12473 = vst [vmem:[#allocation95_spill] sm:$0xff] %v11009_v27  ;;  %v4632_v26 = vmul.f32 %v4376_v50, %v10945_v22  ;;  %v8328_v27 = vld [vmem:[#allocation8 + $0x244] sm:$0xf0] }
 0x393   :  { %v8749_v14 = vpop.eup %8748  ;;  %v3624_v33 = vmul.f32 0.7978846, %v3368_v18  ;;  %v2608_v6 = vmul.f32 %v11007_v15, %v11007_v15  ;;  %v2857_v19 = vmul.f32 %v2601_v25, %v11004_v55  ;;  %8752 = vtanh.f32 %v3617_v57 }
 0x394   :  { %v8751_v10 = vpop.eup %8750  ;;  %v4128_v35 = vadd.f32 1.0, %v8749_v14  ;;  %v1930_v52 = vpop.f32.mrf.mxu2 }
 0x395   :  { %v2864_v49 = vmul.f32 %v2608_v6, %v11007_v15  ;;  %v3113_v45 = vmul.f32 0.044715, %v2857_v19  ;;  %v1931_v46 = vadd.f32 %v1930_v52, %v10466_v36  ;;  %8754 = vtanh.f32 %v3624_v33 }
 0x396   :  { %v2019_v44 = vpop.f32.mrf.mxu3  ;;  %v1755_v53 = vpop.f32.mrf.mxu0  ;;  %v4384_v8 = vmul.f32 0.5, %v4128_v35  ;;  %v4121_v47 = vadd.f32 1.0, %v8751_v10 }
 0x397   :  { %v3120_v61 = vmul.f32 0.044715, %v2864_v49  ;;  %v1756_v9 = vadd.f32 %v1755_v53, %v10451_v24  ;;  %v3369_v31 = vadd.f32 %v3113_v45, %v11004_v55  ;;  %v11020_v11 = vadd.f32 %v2019_v44, %v1931_v46 }
 0x398   :  { %v1844_v20 = vpop.f32.mrf.mxu1  ;;  %v4640_v32 = vmul.f32 %v4384_v8, %v10967_v34  ;;  %v4377_v19 = vmul.f32 0.5, %v4121_v47 }
 0x399   :  { %v3376_v18 = vadd.f32 %v3120_v61, %v11007_v15  ;;  %v11025_v57 = vadd.f32 %v1844_v20, %v1756_v9  ;;  %2070 = vmatmul.bf16.gmra.mxu0 %v9142_v58  ;;  %v8753_v25 = vpop.eup %8752  ;;  %v3625_v14 = vmul.f32 0.7978846, %v3369_v31  ;;  %v2609_v33 = vmul.f32 %v11020_v11, %v11020_v11  ;;  %2248 = vmatmul.bf16.gmra.mxu2 %v9142_v58 }
 0x39a   :  { %v11032_v6 = vpack.c.bf16 %v4640_v32, %v4632_v26  ;;  %v4129_v10 = vadd.f32 1.0, %v8753_v25  ;;  %v4633_v9 = vmul.f32 %v4377_v19, %v10964_v2 }
 0x39b   :  { %2159 = vmatmul.bf16.gmra.mxu1 %v9144_v59  ;;  %v3632_v22 = vmul.f32 0.7978846, %v3376_v18  ;;  %v2616_v34 = vmul.f32 %v11025_v57, %v11025_v57  ;;  %2337 = vmatmul.bf16.gmra.mxu3 %v9144_v59  ;;  %8756 = vtanh.f32 %v3625_v14  ;;  %v2865_v35 = vmul.f32 %v2609_v33, %v11020_v11  ;;  %v8755_v50 = vpop.eup %8754 }
 0x39c   :  { %12474 = vst [vmem:[#allocation96_spill] sm:$0xff] %v11032_v6  ;;  %v1933_v52 = vpop.f32.mrf.mxu2  ;;  %v4385_v45 = vmul.f32 0.5, %v4129_v10  ;;  %v4136_v26 = vadd.f32 1.0, %v8755_v50 }
 0x39d   :  { %v2872_v49 = vmul.f32 %v2616_v34, %v11025_v57  ;;  %8758 = vtanh.f32 %v3632_v22  ;;  %v3121_v58 = vmul.f32 0.044715, %v2865_v35  ;;  %v1934_v46 = vadd.f32 %v1933_v52, %v10466_v36 }
 0x39e   :  { %v2022_v44 = vpop.f32.mrf.mxu3  ;;  %v1757_v53 = vpop.f32.mrf.mxu0  ;;  %v4641_v20 = vmul.f32 %v4385_v45, %v10980_v42  ;;  %v4392_v35 = vmul.f32 0.5, %v4136_v26 }
 0x39f   :  { %v3128_v8 = vmul.f32 0.044715, %v2872_v49  ;;  %v1758_v61 = vadd.f32 %v1757_v53, %v10451_v24  ;;  %v3377_v47 = vadd.f32 %v3121_v58, %v11020_v11  ;;  %v11044_v31 = vadd.f32 %v2022_v44, %v1934_v46 }
 0x3a0   :  { %v1846_v59 = vpop.f32.mrf.mxu1  ;;  %v11049_v25 = vpack.c.bf16 %v4641_v20, %v4633_v9 }
 0x3a1   :  { %v3384_v32 = vadd.f32 %v3128_v8, %v11025_v57  ;;  %v11047_v18 = vadd.f32 %v1846_v59, %v1758_v61  ;;  %v8757_v14 = vpop.eup %8756  ;;  %v3633_v33 = vmul.f32 0.7978846, %v3377_v47  ;;  %v2617_v22 = vmul.f32 %v11044_v31, %v11044_v31 }
 0x3a2   :  { %12475 = vst [vmem:[#allocation97_spill] sm:$0xff] %v11049_v25  ;;  %v4137_v52 = vadd.f32 1.0, %v8757_v14  ;;  %v4648_v47 = vmul.f32 %v4392_v35, %v10983_v5 }
 0x3a3   :  { %v8759_v34 = vpop.eup %8758  ;;  %v3640_v2 = vmul.f32 0.7978846, %v3384_v32  ;;  %v2624_v42 = vmul.f32 %v11047_v18, %v11047_v18  ;;  %v2873_v10 = vmul.f32 %v2617_v22, %v11044_v31  ;;  %8760 = vtanh.f32 %v3633_v33 }
 0x3a4   :  { %v4144_v19 = vadd.f32 1.0, %v8759_v34  ;;  %v1935_v49 = vpop.f32.mrf.mxu2  ;;  %v4393_v5 = vmul.f32 0.5, %v4137_v52 }
 0x3a5   :  { %v2880_v50 = vmul.f32 %v2624_v42, %v11047_v18  ;;  %8762 = vtanh.f32 %v3640_v2  ;;  %v3129_v45 = vmul.f32 0.044715, %v2873_v10  ;;  %v1936_v58 = vadd.f32 %v1935_v49, %v10466_v36 }
 0x3a6   :  { %v2024_v46 = vpop.f32.mrf.mxu3  ;;  %v1760_v44 = vpop.f32.mrf.mxu0  ;;  %v4400_v53 = vmul.f32 0.5, %v4144_v19 }
 0x3a7   :  { %v3136_v8 = vmul.f32 0.044715, %v2880_v50  ;;  %v1761_v61 = vadd.f32 %v1760_v44, %v10451_v24  ;;  %v3385_v9 = vadd.f32 %v3129_v45, %v11044_v31  ;;  %v11060_v20 = vadd.f32 %v2024_v46, %v1936_v58 }
 0x3a8   :  { %v1849_v59 = vpop.f32.mrf.mxu1  ;;  %v4656_v26 = vmul.f32 %v4400_v53, %v11007_v15  ;;  %v4649_v44 = vmul.f32 %v4393_v5, %v11004_v55  ;;  %v8262_v55 = vld [vmem:[#allocation8 + $0x34] sm:$0xf0]  ;;  %v7833_v5 = vld [vmem:[#allocation8 + $0x1b0] sm:$0xf] }
 0x3a9   :  { %v3392_v32 = vadd.f32 %v3136_v8, %v11047_v18  ;;  %v11065_v14 = vadd.f32 %v1849_v59, %v1761_v61  ;;  %2075 = vmatmul.bf16.gmra.mxu0 %v9150_v0  ;;  %v8761_v33 = vpop.eup %8760  ;;  %v3641_v22 = vmul.f32 0.7978846, %v3385_v9  ;;  %v2625_v34 = vmul.f32 %v11060_v20, %v11060_v20  ;;  %2253 = vmatmul.bf16.gmra.mxu2 %v9150_v0 }
 0x3aa   :  { %v11072_v2 = vpack.c.bf16 %v4656_v26, %v4648_v47  ;;  %v4145_v10 = vadd.f32 1.0, %v8761_v33  ;;  %v7769_v26 = vld [vmem:[#allocation8 + $0x130] sm:$0xf] }
 0x3ab   :  { %2164 = vmatmul.bf16.gmra.mxu1 %v9152_v1  ;;  %v3648_v42 = vmul.f32 0.7978846, %v3392_v32  ;;  %v2632_v15 = vmul.f32 %v11065_v14, %v11065_v14  ;;  %2342 = vmatmul.bf16.gmra.mxu3 %v9152_v1  ;;  %v8763_v19 = vpop.eup %8762  ;;  %8764 = vtanh.f32 %v3641_v22  ;;  %v2881_v35 = vmul.f32 %v2625_v34, %v11060_v20  ;;  %v8294_v32 = vld [vmem:[#allocation8 + $0x134] sm:$0xf0]  ;;  %v7641_v33 = vld [vmem:[#allocation8 + $0x30] sm:$0xf] }
 0x3ac   :  { %12476 = vst [vmem:[#allocation98_spill] sm:$0xff] %v11072_v2  ;;  %v1938_v49 = vpop.f32.mrf.mxu2  ;;  %v4401_v45 = vmul.f32 0.5, %v4145_v10  ;;  %v4152_v59 = vadd.f32 1.0, %v8763_v19 }
 0x3ad   :  { %v2888_v50 = vmul.f32 %v2632_v15, %v11065_v14  ;;  %8766 = vtanh.f32 %v3648_v42  ;;  %v3137_v0 = vmul.f32 0.044715, %v2881_v35  ;;  %v1939_v58 = vadd.f32 %v1938_v49, %v10466_v36  ;;  %v8310_v15 = vld [vmem:[#allocation8 + $0x1b4] sm:$0xf0] }
 0x3ae   :  { %v2027_v52 = vpop.f32.mrf.mxu3  ;;  %v1762_v46 = vpop.f32.mrf.mxu0  ;;  %v4657_v61 = vmul.f32 %v4401_v45, %v11020_v11  ;;  %v7770_v42 = vor.u32 %v8294_v32, %v7769_v26  ;;  %v7642_v35 = vor.u32 %v8262_v55, %v7641_v33 }
 0x3af   :  { %v3144_v53 = vmul.f32 0.044715, %v2888_v50  ;;  %v1763_v1 = vadd.f32 %v1762_v46, %v10451_v24  ;;  %v3393_v9 = vadd.f32 %v3137_v0, %v11060_v20  ;;  %v11084_v47 = vadd.f32 %v2027_v52, %v1939_v58  ;;  %v8908_v58 = vld [vmem:[#allocation7] sm:$0xff] }
 0x3b0   :  { %v1851_v8 = vpop.f32.mrf.mxu1  ;;  %v11089_v24 = vpack.c.bf16 %v4657_v61, %v4649_v44  ;;  %v7834_v50 = vor.u32 %v8310_v15, %v7833_v5  ;;  %v11095_v52 = vperm.slane %v8908_v58, 6  ;;  %5776 = vmatpush.bf16.msra.mxu2 %v7770_v42  ;;  %v4408_v46 = vmul.f32 0.5, %v4152_v59  ;;  %5598 = vmatpush.bf16.msra.mxu0 %v7642_v35  ;;  %v7705_v5 = vld [vmem:[#allocation8 + $0xb0] sm:$0xf]  ;;  %v8278_v15 = vld [vmem:[#allocation8 + $0xb4] sm:$0xf0] }
 0x3b1   :  { %v3400_v22 = vadd.f32 %v3144_v53, %v11065_v14  ;;  %v11087_v34 = vadd.f32 %v1851_v8, %v1763_v1  ;;  %v8765_v10 = vpop.eup %8764  ;;  %v3649_v11 = vmul.f32 0.7978846, %v3393_v9  ;;  %v2633_v19 = vmul.f32 %v11084_v47, %v11084_v47 }
 0x3b2   :  { %12477 = vst [vmem:[#allocation99_spill] sm:$0xff] %v11089_v24  ;;  %5865 = vmatpush.bf16.msra.mxu3 %v7834_v50  ;;  %v4153_v61 = vadd.f32 1.0, %v8765_v10  ;;  %v7706_v10 = vor.u32 %v8278_v15, %v7705_v5  ;;  %v8330_v24 = vld [vmem:[#allocation8 + $0x254] sm:$0xf0] }
 0x3b3   :  { %v8767_v49 = vpop.eup %8766  ;;  %v3656_v45 = vmul.f32 0.7978846, %v3400_v22  ;;  %v2640_v0 = vmul.f32 %v11087_v34, %v11087_v34  ;;  %v2889_v44 = vmul.f32 %v2633_v19, %v11084_v47  ;;  %8768 = vtanh.f32 %v3649_v11 }
 0x3b4   :  { %v4160_v53 = vadd.f32 1.0, %v8767_v49  ;;  %v1940_v8 = vpop.f32.mrf.mxu2  ;;  %v4664_v19 = vmul.f32 %v4408_v46, %v11025_v57  ;;  %5687 = vmatpush.bf16.msra.mxu1 %v7706_v10 }
 0x3b5   :  { %v2896_v1 = vmul.f32 %v2640_v0, %v11087_v34  ;;  %8770 = vtanh.f32 %v3656_v45  ;;  %v3145_v9 = vmul.f32 0.044715, %v2889_v44  ;;  %v1941_v26 = vadd.f32 %v1940_v8, %v10466_v36 }
 0x3b6   :  { %v2029_v32 = vpop.f32.mrf.mxu3  ;;  %v2041_v33 = vpop.f32.mrf.mxu0  ;;  %v4416_v22 = vmul.f32 0.5, %v4160_v53  ;;  %v11110_v45 = vperm.slane %v8908_v58, 7 }
 0x3b7   :  { %v3152_v55 = vmul.f32 0.044715, %v2896_v1  ;;  %v2042_v59 = vadd.f32 %v2041_v33, %v11095_v52  ;;  %v3401_v11 = vadd.f32 %v3145_v9, %v11084_v47  ;;  %v11103_v35 = vadd.f32 %v2029_v32, %v1941_v26 }
 0x3b8   :  { %v2130_v42 = vpop.f32.mrf.mxu1  ;;  %v4672_v50 = vmul.f32 %v4416_v22, %v11047_v18  ;;  %v4409_v18 = vmul.f32 0.5, %v4153_v61 }
 0x3b9   :  { %v3408_v36 = vadd.f32 %v3152_v55, %v11087_v34  ;;  %v11107_v49 = vadd.f32 %v2130_v42, %v2042_v59  ;;  %2080 = vmatmul.bf16.gmra.mxu0 %v9160_v21  ;;  %v8769_v0 = vpop.eup %8768  ;;  %v3657_v44 = vmul.f32 0.7978846, %v3401_v11  ;;  %v2641_v57 = vmul.f32 %v11103_v35, %v11103_v35  ;;  %2258 = vmatmul.bf16.gmra.mxu2 %v9160_v21 }
 0x3ba   :  { %v11116_v46 = vpack.c.bf16 %v4672_v50, %v4664_v19  ;;  %v4161_v58 = vadd.f32 1.0, %v8769_v0  ;;  %v4665_v59 = vmul.f32 %v4409_v18, %v11044_v31 }
 0x3bb   :  { %2169 = vmatmul.bf16.gmra.mxu1 %v9162_v23  ;;  %v3664_v53 = vmul.f32 0.7978846, %v3408_v36  ;;  %v2394_v1 = vmul.f32 %v11107_v49, %v11107_v49  ;;  %2347 = vmatmul.bf16.gmra.mxu3 %v9162_v23  ;;  %v8771_v8 = vpop.eup %8770  ;;  %8772 = vtanh.f32 %v3657_v44  ;;  %v2897_v9 = vmul.f32 %v2641_v57, %v11103_v35 }
 0x3bc   :  { %12478 = vst [vmem:[#allocation100_spill] sm:$0xff] %v11116_v46  ;;  %v2219_v32 = vpop.f32.mrf.mxu2  ;;  %v4417_v33 = vmul.f32 0.5, %v4161_v58  ;;  %v4168_v19 = vadd.f32 1.0, %v8771_v8 }
 0x3bd   :  { %v2650_v26 = vmul.f32 %v2394_v1, %v11107_v49  ;;  %8774 = vtanh.f32 %v3664_v53  ;;  %v3153_v21 = vmul.f32 0.044715, %v2897_v9  ;;  %v2220_v61 = vadd.f32 %v2219_v32, %v11110_v45 }
 0x3be   :  { %v2308_v22 = vpop.f32.mrf.mxu3  ;;  %v2043_v55 = vpop.f32.mrf.mxu0  ;;  %v4673_v15 = vmul.f32 %v4417_v33, %v11060_v20  ;;  %v4424_v1 = vmul.f32 0.5, %v4168_v19  ;;  %v7761_v33 = vld [vmem:[#allocation8 + $0x120] sm:$0xf] }
 0x3bf   :  { %v2906_v42 = vmul.f32 0.044715, %v2650_v26  ;;  %v2044_v23 = vadd.f32 %v2043_v55, %v11095_v52  ;;  %v3409_v11 = vadd.f32 %v3153_v21, %v11103_v35  ;;  %v11128_v10 = vadd.f32 %v2308_v22, %v2220_v61  ;;  %v8292_v21 = vld [vmem:[#allocation8 + $0x124] sm:$0xf0]  ;;  %v7633_v61 = vld [vmem:[#allocation8 + $0x20] sm:$0xf] }
 0x3c0   :  { %v2132_v5 = vpop.f32.mrf.mxu1  ;;  %v11133_v0 = vpack.c.bf16 %v4673_v15, %v4665_v59  ;;  %v7825_v15 = vld [vmem:[#allocation8 + $0x1a0] sm:$0xf] }
 0x3c1   :  { %v3162_v50 = vadd.f32 %v2906_v42, %v11107_v49  ;;  %v11131_v36 = vadd.f32 %v2132_v5, %v2044_v23  ;;  %v8773_v44 = vpop.eup %8772  ;;  %v3665_v57 = vmul.f32 0.7978846, %v3409_v11  ;;  %v2395_v31 = vmul.f32 %v11128_v10, %v11128_v10  ;;  %v8260_v5 = vld [vmem:[#allocation8 + $0x24] sm:$0xf0] }
 0x3c2   :  { %12479 = vst [vmem:[#allocation101_spill] sm:$0xff] %v11133_v0  ;;  %v4169_v9 = vadd.f32 1.0, %v8773_v44  ;;  %v7762_v23 = vor.u32 %v8292_v21, %v7761_v33  ;;  %v7634_v44 = vor.u32 %v8260_v5, %v7633_v61  ;;  %v8276_v5 = vld [vmem:[#allocation8 + $0xa4] sm:$0xf0] }
 0x3c3   :  { %v8775_v18 = vpop.eup %8774  ;;  %v3418_v53 = vmul.f32 0.7978846, %v3162_v50  ;;  %v2402_v20 = vmul.f32 %v11131_v36, %v11131_v36  ;;  %v2651_v58 = vmul.f32 %v2395_v31, %v11128_v10  ;;  %8776 = vtanh.f32 %v3665_v57  ;;  %v8308_v57 = vld [vmem:[#allocation8 + $0x1a4] sm:$0xf0] }
 0x3c4   :  { %v4176_v8 = vadd.f32 1.0, %v8775_v18  ;;  %v2221_v32 = vpop.f32.mrf.mxu2  ;;  %5777 = vmatpush.bf16.msra.mxu2 %v7762_v23  ;;  %5599 = vmatpush.bf16.msra.mxu0 %v7634_v44  ;;  %v7697_v23 = vld [vmem:[#allocation8 + $0xa0] sm:$0xf] }
 0x3c5   :  { %v2658_v26 = vmul.f32 %v2402_v20, %v11131_v36  ;;  %8778 = vtanh.f32 %v3418_v53  ;;  %v2907_v22 = vmul.f32 0.044715, %v2651_v58  ;;  %v2222_v55 = vadd.f32 %v2221_v32, %v11110_v45 }
 0x3c6   :  { %v2310_v59 = vpop.f32.mrf.mxu3  ;;  %v2046_v42 = vpop.f32.mrf.mxu0  ;;  %v4432_v31 = vmul.f32 0.5, %v4176_v8  ;;  %v7826_v53 = vor.u32 %v8308_v57, %v7825_v15  ;;  %v7698_v15 = vor.u32 %v8276_v5, %v7697_v23 }
 0x3c7   :  { %v2914_v19 = vmul.f32 0.044715, %v2658_v26  ;;  %v2047_v11 = vadd.f32 %v2046_v42, %v11095_v52  ;;  %v3163_v18 = vadd.f32 %v2907_v22, %v11128_v10  ;;  %v11144_v20 = vadd.f32 %v2310_v59, %v2222_v55 }
 0x3c8   :  { %v2135_v50 = vpop.f32.mrf.mxu1  ;;  %v4680_v26 = vmul.f32 %v4424_v1, %v11065_v14  ;;  %v4688_v33 = vmul.f32 %v4432_v31, %v11087_v34  ;;  %v4425_v22 = vmul.f32 0.5, %v4169_v9  ;;  %5866 = vmatpush.bf16.msra.mxu3 %v7826_v53  ;;  %5688 = vmatpush.bf16.msra.mxu1 %v7698_v15 }
 0x3c9   :  { %v3170_v58 = vadd.f32 %v2914_v19, %v11131_v36  ;;  %v11147_v32 = vadd.f32 %v2135_v50, %v2047_v11  ;;  %2085 = vmatmul.bf16.gmra.mxu0 %v9189_v63  ;;  %v8777_v21 = vpop.eup %8776  ;;  %v3419_v61 = vmul.f32 0.7978846, %v3163_v18  ;;  %v2403_v8 = vmul.f32 %v11144_v20, %v11144_v20  ;;  %2263 = vmatmul.bf16.gmra.mxu2 %v9189_v63 }
 0x3ca   :  { %v11159_v14 = vpack.c.bf16 %v4688_v33, %v4680_v26  ;;  %v4177_v34 = vadd.f32 1.0, %v8777_v21  ;;  %v4681_v53 = vmul.f32 %v4425_v22, %v11084_v47 }
 0x3cb   :  { %2174 = vmatmul.bf16.gmra.mxu1 %v9192_v13  ;;  %v3426_v55 = vmul.f32 0.7978846, %v3170_v58  ;;  %v2410_v59 = vmul.f32 %v11147_v32, %v11147_v32  ;;  %2352 = vmatmul.bf16.gmra.mxu3 %v9192_v13  ;;  %v8779_v1 = vpop.eup %8778  ;;  %8780 = vtanh.f32 %v3419_v61  ;;  %v2659_v42 = vmul.f32 %v2403_v8, %v11144_v20 }
 0x3cc   :  { %12480 = vst [vmem:[#allocation102_spill] sm:$0xff] %v11159_v14  ;;  %v2224_v9 = vpop.f32.mrf.mxu2  ;;  %v4433_v19 = vmul.f32 0.5, %v4177_v34  ;;  %v3930_v26 = vadd.f32 1.0, %v8779_v1 }
 0x3cd   :  { %8782 = vtanh.f32 %v3426_v55  ;;  %v2666_v63 = vmul.f32 %v2410_v59, %v11147_v32  ;;  %v2915_v11 = vmul.f32 0.044715, %v2659_v42  ;;  %v2225_v13 = vadd.f32 %v2224_v9, %v11110_v45 }
 0x3ce   :  { %v2313_v50 = vpop.f32.mrf.mxu3  ;;  %v2048_v44 = vpop.f32.mrf.mxu0  ;;  %v4689_v58 = vmul.f32 %v4433_v19, %v11103_v35  ;;  %v4186_v22 = vmul.f32 0.5, %v3930_v26 }
 0x3cf   :  { %v2922_v57 = vmul.f32 0.044715, %v2666_v63  ;;  %v2049_v31 = vadd.f32 %v2048_v44, %v11095_v52  ;;  %v3171_v33 = vadd.f32 %v2915_v11, %v11144_v20  ;;  %v11168_v21 = vadd.f32 %v2313_v50, %v2225_v13 }
 0x3d0   :  { %v2137_v18 = vpop.f32.mrf.mxu1  ;;  %v11173_v55 = vpack.c.bf16 %v4689_v58, %v4681_v53  ;;  %v4442_v53 = vmul.f32 %v4186_v22, %v11107_v49 }
 0x3d1   :  { %v3178_v61 = vadd.f32 %v2922_v57, %v11147_v32  ;;  %v11171_v8 = vadd.f32 %v2137_v18, %v2049_v31  ;;  %v8781_v59 = vpop.eup %8780  ;;  %v3427_v34 = vmul.f32 0.7978846, %v3171_v33  ;;  %v2411_v42 = vmul.f32 %v11168_v21, %v11168_v21 }
 0x3d2   :  { %12481 = vst [vmem:[#allocation103_spill] sm:$0xff] %v11173_v55  ;;  %v3931_v63 = vadd.f32 1.0, %v8781_v59 }
 0x3d3   :  { %v8783_v23 = vpop.eup %8782  ;;  %v3434_v47 = vmul.f32 0.7978846, %v3178_v61  ;;  %v2418_v35 = vmul.f32 %v11171_v8, %v11171_v8  ;;  %8784 = vtanh.f32 %v3427_v34  ;;  %v2667_v5 = vmul.f32 %v2411_v42, %v11168_v21 }
 0x3d4   :  { %v3938_v1 = vadd.f32 1.0, %v8783_v23  ;;  %v2226_v15 = vpop.f32.mrf.mxu2  ;;  %v4187_v42 = vmul.f32 0.5, %v3931_v63 }
 0x3d5   :  { %v2674_v9 = vmul.f32 %v2418_v35, %v11171_v8  ;;  %8786 = vtanh.f32 %v3434_v47  ;;  %v2923_v11 = vmul.f32 0.044715, %v2667_v5  ;;  %v2227_v13 = vadd.f32 %v2226_v15, %v11110_v45 }
 0x3d6   :  { %v4194_v19 = vmul.f32 0.5, %v3938_v1  ;;  %v2315_v50 = vpop.f32.mrf.mxu3  ;;  %v2051_v44 = vpop.f32.mrf.mxu0 }
 0x3d7   :  { %v2930_v57 = vmul.f32 0.044715, %v2674_v9  ;;  %v2052_v31 = vadd.f32 %v2051_v44, %v11095_v52  ;;  %v3179_v26 = vadd.f32 %v2923_v11, %v11168_v21  ;;  %v11186_v33 = vadd.f32 %v2315_v50, %v2227_v13 }
 0x3d8   :  { %v2140_v18 = vpop.f32.mrf.mxu1  ;;  %v4450_v58 = vmul.f32 %v4194_v19, %v11131_v36  ;;  %v4443_v19 = vmul.f32 %v4187_v42, %v11128_v10 }
 0x3d9   :  { %v3186_v61 = vadd.f32 %v2930_v57, %v11171_v8  ;;  %v11189_v59 = vadd.f32 %v2140_v18, %v2052_v31  ;;  %2090 = vmatmul.bf16.gmra.mxu0 %v9225_v38  ;;  %v8785_v34 = vpop.eup %8784  ;;  %v3435_v47 = vmul.f32 0.7978846, %v3179_v26  ;;  %v2419_v49 = vmul.f32 %v11186_v33, %v11186_v33  ;;  %2268 = vmatmul.bf16.gmra.mxu2 %v9225_v38 }
 0x3da   :  { %v11192_v23 = vpack.c.bf16 %v4450_v58, %v4442_v53  ;;  %v3939_v36 = vadd.f32 1.0, %v8785_v34 }
 0x3db   :  { %2179 = vmatmul.bf16.gmra.mxu1 %v9227_v39  ;;  %v3442_v35 = vmul.f32 0.7978846, %v3186_v61  ;;  %v2426_v22 = vmul.f32 %v11189_v59, %v11189_v59  ;;  %2357 = vmatmul.bf16.gmra.mxu3 %v9227_v39  ;;  %v8787_v1 = vpop.eup %8786  ;;  %8788 = vtanh.f32 %v3435_v47  ;;  %v2675_v5 = vmul.f32 %v2419_v49, %v11186_v33 }
 0x3dc   :  { %12482 = vst [vmem:[#allocation104_spill] sm:$0xff] %v11192_v23  ;;  %v4195_v63 = vmul.f32 0.5, %v3939_v36  ;;  %v2229_v15 = vpop.f32.mrf.mxu2  ;;  %v3946_v18 = vadd.f32 1.0, %v8787_v1 }
 0x3dd   :  { %v2682_v9 = vmul.f32 %v2426_v22, %v11189_v59  ;;  %8790 = vtanh.f32 %v3442_v35  ;;  %v2931_v11 = vmul.f32 0.044715, %v2675_v5  ;;  %v2230_v38 = vadd.f32 %v2229_v15, %v11110_v45  ;;  %v7753_v15 = vld [vmem:[#allocation8 + $0x110] sm:$0xf] }
 0x3de   :  { %v2318_v13 = vpop.f32.mrf.mxu3  ;;  %v2053_v50 = vpop.f32.mrf.mxu0  ;;  %v4451_v44 = vmul.f32 %v4195_v63, %v11144_v20  ;;  %v4202_v35 = vmul.f32 0.5, %v3946_v18 }
 0x3df   :  { %v2938_v57 = vmul.f32 0.044715, %v2682_v9  ;;  %v2054_v39 = vadd.f32 %v2053_v50, %v11095_v52  ;;  %v3187_v53 = vadd.f32 %v2931_v11, %v11186_v33  ;;  %v11208_v58 = vadd.f32 %v2318_v13, %v2230_v38  ;;  %v7625_v11 = vld [vmem:[#allocation8 + $0x10] sm:$0xf] }
 0x3e0   :  { %v2142_v31 = vpop.f32.mrf.mxu1  ;;  %v11210_v26 = vpack.c.bf16 %v4451_v44, %v4443_v19  ;;  %v8290_v19 = vld [vmem:[#allocation8 + $0x114] sm:$0xf0] }
 0x3e1   :  { %v3194_v10 = vadd.f32 %v2938_v57, %v11189_v59  ;;  %v11213_v61 = vadd.f32 %v2142_v31, %v2054_v39  ;;  %v8789_v34 = vpop.eup %8788  ;;  %v3443_v42 = vmul.f32 0.7978846, %v3187_v53  ;;  %v2427_v20 = vmul.f32 %v11208_v58, %v11208_v58  ;;  %v8258_v39 = vld [vmem:[#allocation8 + $0x14] sm:$0xf0]  ;;  %v7817_v31 = vld [vmem:[#allocation8 + $0x190] sm:$0xf] }
 0x3e2   :  { %12483 = vst [vmem:[#allocation105_spill] sm:$0xff] %v11210_v26  ;;  %v3947_v5 = vadd.f32 1.0, %v8789_v34  ;;  %v7754_v57 = vor.u32 %v8290_v19, %v7753_v15  ;;  %v7626_v34 = vor.u32 %v8258_v39, %v7625_v11  ;;  %v8274_v39 = vld [vmem:[#allocation8 + $0x94] sm:$0xf0] }
 0x3e3   :  { %v8791_v47 = vpop.eup %8790  ;;  %v3450_v49 = vmul.f32 0.7978846, %v3194_v10  ;;  %v2434_v36 = vmul.f32 %v11213_v61, %v11213_v61  ;;  %v2683_v22 = vmul.f32 %v2427_v20, %v11208_v58  ;;  %8792 = vtanh.f32 %v3443_v42  ;;  %v8306_v42 = vld [vmem:[#allocation8 + $0x194] sm:$0xf0] }
 0x3e4   :  { %v3954_v1 = vadd.f32 1.0, %v8791_v47  ;;  %v2231_v9 = vpop.f32.mrf.mxu2  ;;  %5778 = vmatpush.bf16.msra.mxu2 %v7754_v57  ;;  %5600 = vmatpush.bf16.msra.mxu0 %v7626_v34  ;;  %v7689_v57 = vld [vmem:[#allocation8 + $0x90] sm:$0xf] }
 0x3e5   :  { %v2690_v63 = vmul.f32 %v2434_v36, %v11213_v61  ;;  %8794 = vtanh.f32 %v3450_v49  ;;  %v2939_v38 = vmul.f32 0.044715, %v2683_v22  ;;  %v2232_v13 = vadd.f32 %v2231_v9, %v11110_v45 }
 0x3e6   :  { %v2320_v50 = vpop.f32.mrf.mxu3  ;;  %v2056_v44 = vpop.f32.mrf.mxu0  ;;  %v4210_v20 = vmul.f32 0.5, %v3954_v1  ;;  %v7818_v49 = vor.u32 %v8306_v42, %v7817_v31  ;;  %v7690_v31 = vor.u32 %v8274_v39, %v7689_v57 }
 0x3e7   :  { %v2946_v18 = vmul.f32 0.044715, %v2690_v63  ;;  %v2057_v53 = vadd.f32 %v2056_v44, %v11095_v52  ;;  %v3195_v47 = vadd.f32 %v2939_v38, %v11208_v58  ;;  %v11224_v36 = vadd.f32 %v2320_v50, %v2232_v13 }
 0x3e8   :  { %v2145_v10 = vpop.f32.mrf.mxu1  ;;  %v4458_v63 = vmul.f32 %v4202_v35, %v11147_v32  ;;  %v4466_v15 = vmul.f32 %v4210_v20, %v11171_v8  ;;  %v4203_v38 = vmul.f32 0.5, %v3947_v5  ;;  %5867 = vmatpush.bf16.msra.mxu3 %v7818_v49  ;;  %5689 = vmatpush.bf16.msra.mxu1 %v7690_v31 }
 0x3e9   :  { %v3202_v22 = vadd.f32 %v2946_v18, %v11213_v61  ;;  %v11227_v9 = vadd.f32 %v2145_v10, %v2057_v53  ;;  %2095 = vmatmul.bf16.gmra.mxu0 %v9269_v16  ;;  %v8793_v19 = vpop.eup %8792  ;;  %v3451_v11 = vmul.f32 0.7978846, %v3195_v47  ;;  %v2435_v1 = vmul.f32 %v11224_v36, %v11224_v36  ;;  %2273 = vmatmul.bf16.gmra.mxu2 %v9269_v16 }
 0x3ea   :  { %v11239_v32 = vpack.c.bf16 %v4466_v15, %v4458_v63  ;;  %v3955_v8 = vadd.f32 1.0, %v8793_v19  ;;  %v4459_v49 = vmul.f32 %v4203_v38, %v11168_v21 }
 0x3eb   :  { %2184 = vmatmul.bf16.gmra.mxu1 %v9271_v17  ;;  %v3458_v13 = vmul.f32 0.7978846, %v3202_v22  ;;  %v2442_v50 = vmul.f32 %v11227_v9, %v11227_v9  ;;  %2362 = vmatmul.bf16.gmra.mxu3 %v9271_v17  ;;  %v8795_v35 = vpop.eup %8794  ;;  %8796 = vtanh.f32 %v3451_v11  ;;  %v2691_v44 = vmul.f32 %v2435_v1, %v11224_v36 }
 0x3ec   :  { %12484 = vst [vmem:[#allocation106_spill] sm:$0xff] %v11239_v32  ;;  %v2234_v5 = vpop.f32.mrf.mxu2  ;;  %v4211_v18 = vmul.f32 0.5, %v3955_v8  ;;  %v3962_v19 = vadd.f32 1.0, %v8795_v35 }
 0x3ed   :  { %v2698_v16 = vmul.f32 %v2442_v50, %v11227_v9  ;;  %8798 = vtanh.f32 %v3458_v13  ;;  %v2947_v53 = vmul.f32 0.044715, %v2691_v44  ;;  %v2235_v17 = vadd.f32 %v2234_v5, %v11110_v45 }
 0x3ee   :  { %v2323_v10 = vpop.f32.mrf.mxu3  ;;  %v2058_v34 = vpop.f32.mrf.mxu0  ;;  %v4467_v22 = vmul.f32 %v4211_v18, %v11186_v33  ;;  %v4218_v35 = vmul.f32 0.5, %v3962_v19 }
 0x3ef   :  { %v2954_v42 = vmul.f32 0.044715, %v2698_v16  ;;  %v2059_v20 = vadd.f32 %v2058_v34, %v11095_v52  ;;  %v3203_v63 = vadd.f32 %v2947_v53, %v11224_v36  ;;  %v11248_v15 = vadd.f32 %v2323_v10, %v2235_v17 }
 0x3f0   :  { %v2147_v47 = vpop.f32.mrf.mxu1  ;;  %v11253_v13 = vpack.c.bf16 %v4467_v22, %v4459_v49 }
 0x3f1   :  { %v3210_v11 = vadd.f32 %v2954_v42, %v11227_v9  ;;  %v11251_v1 = vadd.f32 %v2147_v47, %v2059_v20  ;;  %v8797_v50 = vpop.eup %8796  ;;  %v3459_v8 = vmul.f32 0.7978846, %v3203_v63  ;;  %v2443_v44 = vmul.f32 %v11248_v15, %v11248_v15 }
 0x3f2   :  { %12485 = vst [vmem:[#allocation107_spill] sm:$0xff] %v11253_v13  ;;  %v3963_v31 = vadd.f32 1.0, %v8797_v50  ;;  %v4474_v63 = vmul.f32 %v4218_v35, %v11189_v59 }
 0x3f3   :  { %v8799_v57 = vpop.eup %8798  ;;  %v3466_v21 = vmul.f32 0.7978846, %v3210_v11  ;;  %v2450_v33 = vmul.f32 %v11251_v1, %v11251_v1  ;;  %v2699_v38 = vmul.f32 %v2443_v44, %v11248_v15  ;;  %8800 = vtanh.f32 %v3459_v8 }
 0x3f4   :  { %v3970_v39 = vadd.f32 1.0, %v8799_v57  ;;  %v2236_v5 = vpop.f32.mrf.mxu2  ;;  %v4219_v59 = vmul.f32 0.5, %v3963_v31 }
 0x3f5   :  { %v2706_v16 = vmul.f32 %v2450_v33, %v11251_v1  ;;  %8802 = vtanh.f32 %v3466_v21  ;;  %v2955_v18 = vmul.f32 0.044715, %v2699_v38  ;;  %v2237_v53 = vadd.f32 %v2236_v5, %v11110_v45 }
 0x3f6   :  { %v2325_v17 = vpop.f32.mrf.mxu3  ;;  %v2061_v10 = vpop.f32.mrf.mxu0  ;;  %v4226_v34 = vmul.f32 0.5, %v3970_v39 }
 0x3f7   :  { %v2962_v42 = vmul.f32 0.044715, %v2706_v16  ;;  %v2062_v20 = vadd.f32 %v2061_v10, %v11095_v52  ;;  %v3211_v49 = vadd.f32 %v2955_v18, %v11248_v15  ;;  %v11264_v22 = vadd.f32 %v2325_v17, %v2237_v53 }
 0x3f8   :  { %v2150_v47 = vpop.f32.mrf.mxu1  ;;  %v4482_v19 = vmul.f32 %v4226_v34, %v11213_v61  ;;  %v4475_v10 = vmul.f32 %v4219_v59, %v11208_v58 }
 0x3f9   :  { %v3218_v11 = vadd.f32 %v2962_v42, %v11251_v1  ;;  %v11269_v50 = vadd.f32 %v2150_v47, %v2062_v20  ;;  %2100 = vmatmul.bf16.gmra.mxu0 %v9313_v37  ;;  %v8801_v8 = vpop.eup %8800  ;;  %v3467_v44 = vmul.f32 0.7978846, %v3211_v49  ;;  %v2451_v57 = vmul.f32 %v11264_v22, %v11264_v22  ;;  %2278 = vmatmul.bf16.gmra.mxu2 %v9313_v37 }
 0x3fa   :  { %v11276_v21 = vpack.c.bf16 %v4482_v19, %v4474_v63  ;;  %v3971_v38 = vadd.f32 1.0, %v8801_v8 }
 0x3fb   :  { %2189 = vmatmul.bf16.gmra.mxu1 %v9315_v40  ;;  %v3474_v33 = vmul.f32 0.7978846, %v3218_v11  ;;  %v2458_v61 = vmul.f32 %v11269_v50, %v11269_v50  ;;  %2367 = vmatmul.bf16.gmra.mxu3 %v9315_v40  ;;  %v8803_v39 = vpop.eup %8802  ;;  %8804 = vtanh.f32 %v3467_v44  ;;  %v2707_v35 = vmul.f32 %v2451_v57, %v11264_v22 }
 0x3fc   :  { %12486 = vst [vmem:[#allocation108_spill] sm:$0xff] %v11276_v21  ;;  %v2239_v5 = vpop.f32.mrf.mxu2  ;;  %v4227_v18 = vmul.f32 0.5, %v3971_v38  ;;  %v3978_v47 = vadd.f32 1.0, %v8803_v39 }
 0x3fd   :  { %v2714_v16 = vmul.f32 %v2458_v61, %v11269_v50  ;;  %8806 = vtanh.f32 %v3474_v33  ;;  %v2963_v37 = vmul.f32 0.044715, %v2707_v35  ;;  %v2240_v53 = vadd.f32 %v2239_v5, %v11110_v45 }
 0x3fe   :  { %v2328_v31 = vpop.f32.mrf.mxu3  ;;  %v2063_v17 = vpop.f32.mrf.mxu0  ;;  %v4483_v20 = vmul.f32 %v4227_v18, %v11224_v36  ;;  %v4234_v61 = vmul.f32 0.5, %v3978_v47  ;;  %v7745_v18 = vld [vmem:[#allocation8 + $0x100] sm:$0xf] }
 0x3ff   :  { %v2970_v34 = vmul.f32 0.044715, %v2714_v16  ;;  %v2064_v40 = vadd.f32 %v2063_v17, %v11095_v52  ;;  %v3219_v49 = vadd.f32 %v2963_v37, %v11264_v22  ;;  %v11288_v63 = vadd.f32 %v2328_v31, %v2240_v53  ;;  %v8288_v37 = vld [vmem:[#allocation8 + $0x104] sm:$0xf0]  ;;  %v7617_v53 = vld [vmem:[#allocation8] sm:$0xf] }
 0x400   :  { %v2152_v42 = vpop.f32.mrf.mxu1  ;;  %v11293_v8 = vpack.c.bf16 %v4483_v20, %v4475_v10  ;;  %v7809_v20 = vld [vmem:[#allocation8 + $0x180] sm:$0xf] }
 0x401   :  { %v3226_v19 = vadd.f32 %v2970_v34, %v11269_v50  ;;  %v11291_v11 = vadd.f32 %v2152_v42, %v2064_v40  ;;  %v8805_v44 = vpop.eup %8804  ;;  %v3475_v57 = vmul.f32 0.7978846, %v3219_v49  ;;  %v2459_v58 = vmul.f32 %v11288_v63, %v11288_v63  ;;  %v8256_v42 = vld [vmem:[#allocation8 + $0x4] sm:$0xf0] }
 0x402   :  { %12487 = vst [vmem:[#allocation109_spill] sm:$0xff] %v11293_v8  ;;  %v3979_v35 = vadd.f32 1.0, %v8805_v44  ;;  %v7746_v40 = vor.u32 %v8288_v37, %v7745_v18  ;;  %v7618_v44 = vor.u32 %v8256_v42, %v7617_v53  ;;  %v8272_v42 = vld [vmem:[#allocation8 + $0x84] sm:$0xf0] }
 0x403   :  { %v8807_v59 = vpop.eup %8806  ;;  %v3482_v33 = vmul.f32 0.7978846, %v3226_v19  ;;  %v2466_v36 = vmul.f32 %v11291_v11, %v11291_v11  ;;  %v2715_v38 = vmul.f32 %v2459_v58, %v11288_v63  ;;  %8808 = vtanh.f32 %v3475_v57  ;;  %v8304_v57 = vld [vmem:[#allocation8 + $0x184] sm:$0xf0] }
 0x404   :  { %v3986_v39 = vadd.f32 1.0, %v8807_v59  ;;  %v2241_v5 = vpop.f32.mrf.mxu2  ;;  %5779 = vmatpush.bf16.msra.mxu2 %v7746_v40  ;;  %5601 = vmatpush.bf16.msra.mxu0 %v7618_v44  ;;  %v7681_v40 = vld [vmem:[#allocation8 + $0x80] sm:$0xf] }
 0x405   :  { %v2722_v16 = vmul.f32 %v2466_v36, %v11291_v11  ;;  %8810 = vtanh.f32 %v3482_v33  ;;  %v2971_v31 = vmul.f32 0.044715, %v2715_v38  ;;  %v2242_v17 = vadd.f32 %v2241_v5, %v11110_v45 }
 0x406   :  { %v2330_v10 = vpop.f32.mrf.mxu3  ;;  %v2066_v34 = vpop.f32.mrf.mxu0  ;;  %v4242_v58 = vmul.f32 0.5, %v3986_v39  ;;  %v7810_v33 = vor.u32 %v8304_v57, %v7809_v20  ;;  %v7682_v20 = vor.u32 %v8272_v42, %v7681_v40 }
 0x407   :  { %v2978_v47 = vmul.f32 0.044715, %v2722_v16  ;;  %v2067_v49 = vadd.f32 %v2066_v34, %v11095_v52  ;;  %v3227_v59 = vadd.f32 %v2971_v31, %v11288_v63  ;;  %v11304_v36 = vadd.f32 %v2330_v10, %v2242_v17 }
 0x408   :  { %v2155_v19 = vpop.f32.mrf.mxu1  ;;  %v4490_v16 = vmul.f32 %v4234_v61, %v11227_v9  ;;  %v4498_v18 = vmul.f32 %v4242_v58, %v11251_v1  ;;  %v4235_v31 = vmul.f32 0.5, %v3979_v35  ;;  %5868 = vmatpush.bf16.msra.mxu3 %v7810_v33  ;;  %5690 = vmatpush.bf16.msra.mxu1 %v7682_v20 }
 0x409   :  { %v3234_v38 = vadd.f32 %v2978_v47, %v11291_v11  ;;  %v11307_v5 = vadd.f32 %v2155_v19, %v2067_v49  ;;  %2105 = vmatmul.bf16.gmra.mxu0 %v9357_v28  ;;  %v8809_v37 = vpop.eup %8808  ;;  %v3483_v53 = vmul.f32 0.7978846, %v3227_v59  ;;  %v2467_v39 = vmul.f32 %v11304_v36, %v11304_v36  ;;  %2283 = vmatmul.bf16.gmra.mxu2 %v9357_v28 }
 0x40a   :  { %v11319_v9 = vpack.c.bf16 %v4498_v18, %v4490_v16  ;;  %v3987_v1 = vadd.f32 1.0, %v8809_v37  ;;  %v4491_v33 = vmul.f32 %v4235_v31, %v11248_v15 }
 0x40b   :  { %2194 = vmatmul.bf16.gmra.mxu1 %v9359_v56  ;;  %v3490_v17 = vmul.f32 0.7978846, %v3234_v38  ;;  %v2474_v10 = vmul.f32 %v11307_v5, %v11307_v5  ;;  %2372 = vmatmul.bf16.gmra.mxu3 %v9359_v56  ;;  %v8811_v61 = vpop.eup %8810  ;;  %8812 = vtanh.f32 %v3483_v53  ;;  %v2723_v34 = vmul.f32 %v2467_v39, %v11304_v36 }
 0x40c   :  { %12488 = vst [vmem:[#allocation110_spill] sm:$0xff] %v11319_v9  ;;  %v2244_v35 = vpop.f32.mrf.mxu2  ;;  %v4243_v47 = vmul.f32 0.5, %v3987_v1  ;;  %v3994_v37 = vadd.f32 1.0, %v8811_v61 }
 0x40d   :  { %v2730_v28 = vmul.f32 %v2474_v10, %v11307_v5  ;;  %8814 = vtanh.f32 %v3490_v17  ;;  %v2979_v49 = vmul.f32 0.044715, %v2723_v34  ;;  %v2245_v56 = vadd.f32 %v2244_v35, %v11110_v45 }
 0x40e   :  { %v2333_v19 = vpop.f32.mrf.mxu3  ;;  %v2068_v44 = vpop.f32.mrf.mxu0  ;;  %v4499_v38 = vmul.f32 %v4243_v47, %v11264_v22  ;;  %v4250_v61 = vmul.f32 0.5, %v3994_v37 }
 0x40f   :  { %v2986_v57 = vmul.f32 0.044715, %v2730_v28  ;;  %v2069_v58 = vadd.f32 %v2068_v44, %v11095_v52  ;;  %v3235_v16 = vadd.f32 %v2979_v49, %v11304_v36  ;;  %v11328_v18 = vadd.f32 %v2333_v19, %v2245_v56 }
 0x410   :  { %v2157_v59 = vpop.f32.mrf.mxu1  ;;  %v11333_v17 = vpack.c.bf16 %v4499_v38, %v4491_v33 }
 0x411   :  { %v3242_v53 = vadd.f32 %v2986_v57, %v11307_v5  ;;  %v11331_v39 = vadd.f32 %v2157_v59, %v2069_v58  ;;  %v8813_v10 = vpop.eup %8812  ;;  %v3491_v1 = vmul.f32 0.7978846, %v3235_v16  ;;  %v2475_v34 = vmul.f32 %v11328_v18, %v11328_v18 }
 0x412   :  { %12489 = vst [vmem:[#allocation111_spill] sm:$0xff] %v11333_v17  ;;  %v3995_v20 = vadd.f32 1.0, %v8813_v10  ;;  %v4506_v16 = vmul.f32 %v4250_v61, %v11269_v50 }
 0x413   :  { %v8815_v40 = vpop.eup %8814  ;;  %v3498_v15 = vmul.f32 0.7978846, %v3242_v53  ;;  %v2482_v22 = vmul.f32 %v11331_v39, %v11331_v39  ;;  %v2731_v31 = vmul.f32 %v2475_v34, %v11328_v18  ;;  %8816 = vtanh.f32 %v3491_v1  ;;  %v12490_v1 = vld [vmem:[#allocation23_spill] sm:$0xff] }
 0x414   :  { %v4002_v42 = vadd.f32 1.0, %v8815_v40  ;;  %v2246_v35 = vpop.f32.mrf.mxu2  ;;  %v4251_v50 = vmul.f32 0.5, %v3995_v20 }
 0x415   :  { %v2738_v28 = vmul.f32 %v2482_v22, %v11331_v39  ;;  %8818 = vtanh.f32 %v3498_v15  ;;  %v2987_v47 = vmul.f32 0.044715, %v2731_v31  ;;  %v2247_v49 = vadd.f32 %v2246_v35, %v11110_v45  ;;  %v12491_v22 = vld [vmem:[#allocation24_spill] sm:$0xff] }
 0x416   :  { %v2335_v56 = vpop.f32.mrf.mxu3  ;;  %v2071_v19 = vpop.f32.mrf.mxu0  ;;  %v4258_v44 = vmul.f32 0.5, %v4002_v42 }
 0x417   :  { %v2994_v57 = vmul.f32 0.044715, %v2738_v28  ;;  %v2072_v58 = vadd.f32 %v2071_v19, %v11095_v52  ;;  %v3243_v33 = vadd.f32 %v2987_v47, %v11328_v18  ;;  %v11344_v38 = vadd.f32 %v2335_v56, %v2247_v49 }
 0x418   :  { %v2160_v59 = vpop.f32.mrf.mxu1  ;;  %v4514_v37 = vmul.f32 %v4258_v44, %v11291_v11 }
 0x419   :  { %v3250_v53 = vadd.f32 %v2994_v57, %v11331_v39  ;;  %v11349_v10 = vadd.f32 %v2160_v59, %v2072_v58  ;;  %2110 = vmatmul.bf16.gmra.mxu0 %v12490_v1  ;;  %v8817_v34 = vpop.eup %8816  ;;  %v3499_v40 = vmul.f32 0.7978846, %v3243_v33  ;;  %v2483_v15 = vmul.f32 %v11344_v38, %v11344_v38  ;;  %2288 = vmatmul.bf16.gmra.mxu2 %v12490_v1 }
 0x41a   :  { %v11356_v31 = vpack.c.bf16 %v4514_v37, %v4506_v16  ;;  %v4003_v61 = vadd.f32 1.0, %v8817_v34  ;;  %v4507_v58 = vmul.f32 %v4251_v50, %v11288_v63 }
 0x41b   :  { %2199 = vmatmul.bf16.gmra.mxu1 %v12491_v22  ;;  %v3506_v42 = vmul.f32 0.7978846, %v3250_v53  ;;  %v2490_v11 = vmul.f32 %v11349_v10, %v11349_v10  ;;  %2377 = vmatmul.bf16.gmra.mxu3 %v12491_v22  ;;  %v8819_v28 = vpop.eup %8818  ;;  %8820 = vtanh.f32 %v3499_v40  ;;  %v2739_v35 = vmul.f32 %v2483_v15, %v11344_v38 }
 0x41c   :  { %12492 = vst [vmem:[#allocation23_spill] sm:$0xff] %v11356_v31  ;;  %v2249_v49 = vpop.f32.mrf.mxu2  ;;  %v4259_v56 = vmul.f32 0.5, %v4003_v61  ;;  %v4010_v53 = vadd.f32 1.0, %v8819_v28 }
 0x41d   :  { %v2746_v47 = vmul.f32 %v2490_v11, %v11349_v10  ;;  %8822 = vtanh.f32 %v3506_v42  ;;  %v2995_v19 = vmul.f32 0.044715, %v2739_v35  ;;  %v2250_v44 = vadd.f32 %v2249_v49, %v11110_v45 }
 0x41e   :  { %v2338_v20 = vpop.f32.mrf.mxu3  ;;  %v2073_v57 = vpop.f32.mrf.mxu0  ;;  %v4515_v37 = vmul.f32 %v4259_v56, %v11304_v36  ;;  %v4266_v28 = vmul.f32 0.5, %v4010_v53  ;;  %v8121_v53 = vld [vmem:[#allocation8 + $0x3f0] sm:$0xf] }
 0x41f   :  { %v3002_v59 = vmul.f32 0.044715, %v2746_v47  ;;  %v2074_v33 = vadd.f32 %v2073_v57, %v11095_v52  ;;  %v3251_v1 = vadd.f32 %v2995_v19, %v11344_v38  ;;  %v11368_v34 = vadd.f32 %v2338_v20, %v2250_v44  ;;  %v8057_v44 = vld [vmem:[#allocation8 + $0x370] sm:$0xf]  ;;  %v8366_v20 = vld [vmem:[#allocation8 + $0x374] sm:$0xf0] }
 0x420   :  { %v2162_v16 = vpop.f32.mrf.mxu1  ;;  %v11373_v22 = vpack.c.bf16 %v4515_v37, %v4507_v58  ;;  %v7929_v57 = vld [vmem:[#allocation8 + $0x270] sm:$0xf]  ;;  %v8058_v37 = vor.u32 %v8366_v20, %v8057_v44 }
 0x421   :  { %v3258_v40 = vadd.f32 %v3002_v59, %v11349_v10  ;;  %v11371_v15 = vadd.f32 %v2162_v16, %v2074_v33  ;;  %v8821_v42 = vpop.eup %8820  ;;  %v3507_v11 = vmul.f32 0.7978846, %v3251_v1  ;;  %v2491_v63 = vmul.f32 %v11368_v34, %v11368_v34  ;;  %v8334_v1 = vld [vmem:[#allocation8 + $0x274] sm:$0xf0] }
 0x422   :  { %12493 = vst [vmem:[#allocation24_spill] sm:$0xff] %v11373_v22  ;;  %v4011_v49 = vadd.f32 1.0, %v8821_v42  ;;  %v7930_v42 = vor.u32 %v8334_v1, %v7929_v57  ;;  %6128 = vmatpush.bf16.msrb.mxu2 %v8058_v37  ;;  %v8350_v37 = vld [vmem:[#allocation8 + $0x2f4] sm:$0xf0] }
 0x423   :  { %v8823_v50 = vpop.eup %8822  ;;  %v3514_v61 = vmul.f32 0.7978846, %v3258_v40  ;;  %v2498_v36 = vmul.f32 %v11371_v15, %v11371_v15  ;;  %v2747_v35 = vmul.f32 %v2491_v63, %v11368_v34  ;;  %8824 = vtanh.f32 %v3507_v11 }
 0x424   :  { %v4018_v47 = vadd.f32 1.0, %v8823_v50  ;;  %v2251_v19 = vpop.f32.mrf.mxu2  ;;  %v8382_v50 = vld [vmem:[#allocation8 + $0x3f4] sm:$0xf0]  ;;  %5950 = vmatpush.bf16.msrb.mxu0 %v7930_v42 }
 0x425   :  { %v2754_v56 = vmul.f32 %v2498_v36, %v11371_v15  ;;  %8826 = vtanh.f32 %v3514_v61  ;;  %v3003_v58 = vmul.f32 0.044715, %v2747_v35  ;;  %v2252_v59 = vadd.f32 %v2251_v19, %v11110_v45 }
 0x426   :  { %v2340_v33 = vpop.f32.mrf.mxu3  ;;  %v2076_v16 = vpop.f32.mrf.mxu0  ;;  %v4274_v36 = vmul.f32 0.5, %v4018_v47  ;;  %v8122_v61 = vor.u32 %v8382_v50, %v8121_v53 }
 0x427   :  { %v3010_v40 = vmul.f32 0.044715, %v2754_v56  ;;  %v2077_v63 = vadd.f32 %v2076_v16, %v11095_v52  ;;  %v3259_v55 = vadd.f32 %v3003_v58, %v11368_v34  ;;  %v11384_v14 = vadd.f32 %v2340_v33, %v2252_v59  ;;  %v7993_v16 = vld [vmem:[#allocation8 + $0x2f0] sm:$0xf] }
 0x428   :  { %v2165_v11 = vpop.f32.mrf.mxu1  ;;  %v4522_v56 = vmul.f32 %v4266_v28, %v11307_v5  ;;  %v4530_v44 = vmul.f32 %v4274_v36, %v11331_v39  ;;  %v4267_v58 = vmul.f32 0.5, %v4011_v49  ;;  %6217 = vmatpush.bf16.msrb.mxu3 %v8122_v61  ;;  %v7994_v1 = vor.u32 %v8350_v37, %v7993_v16 }
 0x429   :  { %v3266_v35 = vadd.f32 %v3010_v40, %v11371_v15  ;;  %v11387_v19 = vadd.f32 %v2165_v11, %v2077_v63  ;;  %2115 = vmatmul.bf16.gmra.mxu0 %v9445_v48  ;;  %v8825_v20 = vpop.eup %8824  ;;  %v3515_v57 = vmul.f32 0.7978846, %v3259_v55  ;;  %v2499_v47 = vmul.f32 %v11384_v14, %v11384_v14  ;;  %2293 = vmatmul.bf16.gmra.mxu2 %v9445_v48 }
 0x42a   :  { %v11399_v5 = vpack.c.bf16 %v4530_v44, %v4522_v56  ;;  %v4019_v39 = vadd.f32 1.0, %v8825_v20  ;;  %6039 = vmatpush.bf16.msrb.mxu1 %v7994_v1  ;;  %v4523_v61 = vmul.f32 %v4267_v58, %v11328_v18 }
 0x42b   :  { %2204 = vmatmul.bf16.gmra.mxu1 %v9447_v60  ;;  %v3522_v59 = vmul.f32 0.7978846, %v3266_v35  ;;  %v2506_v33 = vmul.f32 %v11387_v19, %v11387_v19  ;;  %2382 = vmatmul.bf16.gmra.mxu3 %v9447_v60  ;;  %v8827_v28 = vpop.eup %8826  ;;  %8828 = vtanh.f32 %v3515_v57  ;;  %v2755_v55 = vmul.f32 %v2499_v47, %v11384_v14 }
 0x42c   :  { %12494 = vst [vmem:[#allocation112_spill] sm:$0xff] %v11399_v5  ;;  %v2254_v49 = vpop.f32.mrf.mxu2  ;;  %v4275_v53 = vmul.f32 0.5, %v4019_v39  ;;  %v4026_v20 = vadd.f32 1.0, %v8827_v28 }
 0x42d   :  { %v2762_v48 = vmul.f32 %v2506_v33, %v11387_v19  ;;  %8830 = vtanh.f32 %v3522_v59  ;;  %v3011_v40 = vmul.f32 0.044715, %v2755_v55  ;;  %v2255_v60 = vadd.f32 %v2254_v49, %v11110_v45 }
 0x42e   :  { %v2343_v63 = vpop.f32.mrf.mxu3  ;;  %v2078_v11 = vpop.f32.mrf.mxu0  ;;  %v4531_v35 = vmul.f32 %v4275_v53, %v11344_v38  ;;  %v4282_v28 = vmul.f32 0.5, %v4026_v20 }
 0x42f   :  { %v3018_v42 = vmul.f32 0.044715, %v2762_v48  ;;  %v2079_v50 = vadd.f32 %v2078_v11, %v11095_v52  ;;  %v3267_v56 = vadd.f32 %v3011_v40, %v11384_v14  ;;  %v11408_v44 = vadd.f32 %v2343_v63, %v2255_v60 }
 0x430   :  { %v2167_v36 = vpop.f32.mrf.mxu1  ;;  %v11413_v59 = vpack.c.bf16 %v4531_v35, %v4523_v61 }
 0x431   :  { %v3274_v57 = vadd.f32 %v3018_v42, %v11387_v19  ;;  %v11411_v47 = vadd.f32 %v2167_v36, %v2079_v50  ;;  %v8829_v33 = vpop.eup %8828  ;;  %v3523_v39 = vmul.f32 0.7978846, %v3267_v56  ;;  %v2507_v55 = vmul.f32 %v11408_v44, %v11408_v44 }
 0x432   :  { %12495 = vst [vmem:[#allocation113_spill] sm:$0xff] %v11413_v59  ;;  %v4027_v1 = vadd.f32 1.0, %v8829_v33  ;;  %v4538_v56 = vmul.f32 %v4282_v28, %v11349_v10 }
 0x433   :  { %v8831_v16 = vpop.eup %8830  ;;  %v3530_v18 = vmul.f32 0.7978846, %v3274_v57  ;;  %v2514_v38 = vmul.f32 %v11411_v47, %v11411_v47  ;;  %v2763_v58 = vmul.f32 %v2507_v55, %v11408_v44  ;;  %8832 = vtanh.f32 %v3523_v39  ;;  %v12496_v39 = vld [vmem:[#allocation15_spill] sm:$0xff] }
 0x434   :  { %v4034_v37 = vadd.f32 1.0, %v8831_v16  ;;  %v2256_v49 = vpop.f32.mrf.mxu2  ;;  %v4283_v10 = vmul.f32 0.5, %v4027_v1 }
 0x435   :  { %v2770_v48 = vmul.f32 %v2514_v38, %v11411_v47  ;;  %8834 = vtanh.f32 %v3530_v18  ;;  %v3019_v53 = vmul.f32 0.044715, %v2763_v58  ;;  %v2257_v40 = vadd.f32 %v2256_v49, %v11110_v45  ;;  %v12497_v38 = vld [vmem:[#allocation16_spill] sm:$0xff]  ;;  %v12498_v58 = vld [vmem:[#allocation49_spill] sm:$0xff] }
 0x436   :  { %v2345_v60 = vpop.f32.mrf.mxu3  ;;  %v2081_v63 = vpop.f32.mrf.mxu0  ;;  %v4290_v11 = vmul.f32 0.5, %v4034_v37 }
 0x437   :  { %v3026_v42 = vmul.f32 0.044715, %v2770_v48  ;;  %v2082_v50 = vadd.f32 %v2081_v63, %v11095_v52  ;;  %v3275_v61 = vadd.f32 %v3019_v53, %v11408_v44  ;;  %v11424_v35 = vadd.f32 %v2345_v60, %v2257_v40  ;;  %v12500_v48 = vld [vmem:[#allocation50_spill] sm:$0xff] }
 0x438   :  { %v2170_v36 = vpop.f32.mrf.mxu1  ;;  %v4546_v20 = vmul.f32 %v4290_v11, %v11371_v15 }
 0x439   :  { %v3282_v57 = vadd.f32 %v3026_v42, %v11411_v47  ;;  %v11429_v33 = vadd.f32 %v2170_v36, %v2082_v50  ;;  %5602 = vmatmul.bf16.vlgmr.msra.gmra.mxu0 %v12496_v39  ;;  %v8833_v55 = vpop.eup %8832  ;;  %v3531_v16 = vmul.f32 0.7978846, %v3275_v61  ;;  %v2515_v18 = vmul.f32 %v11424_v35, %v11424_v35  ;;  %5780 = vmatmul.bf16.vlgmr.msra.gmra.mxu2 %v12498_v58 }
 0x43a   :  { %v11436_v37 = vpack.c.bf16 %v4546_v20, %v4538_v56  ;;  %v4035_v49 = vadd.f32 1.0, %v8833_v55  ;;  %v4539_v61 = vmul.f32 %v4283_v10, %v11368_v34 }
 0x43b   :  { %5691 = vmatmul.bf16.vlgmr.msra.gmra.mxu1 %v12497_v38  ;;  %v3538_v28 = vmul.f32 0.7978846, %v3282_v57  ;;  %v2522_v15 = vmul.f32 %v11429_v33, %v11429_v33  ;;  %5869 = vmatmul.bf16.vlgmr.msra.gmra.mxu3 %v12500_v48  ;;  %v8835_v53 = vpop.eup %8834  ;;  %8836 = vtanh.f32 %v3531_v16  ;;  %v2771_v40 = vmul.f32 %v2515_v18, %v11424_v35  ;;  %v8332_v38 = vld [vmem:[#allocation8 + $0x264] sm:$0xf0] }
 0x43c   :  { %12499 = vst [vmem:[#allocation114_spill] sm:$0xff] %v11436_v37  ;;  %v2259_v63 = vpop.f32.mrf.mxu2  ;;  %v4291_v11 = vmul.f32 0.5, %v4035_v49  ;;  %v4042_v16 = vadd.f32 1.0, %v8835_v53 }
 0x43d   :  { %v2778_v60 = vmul.f32 %v2522_v15, %v11429_v33  ;;  %8838 = vtanh.f32 %v3538_v28  ;;  %v3027_v42 = vmul.f32 0.044715, %v2771_v40  ;;  %v2260_v50 = vadd.f32 %v2259_v63, %v11110_v45 }
 0x43e   :  { %v2348_v1 = vpop.f32.mrf.mxu3  ;;  %v2083_v36 = vpop.f32.mrf.mxu0  ;;  %v4547_v55 = vmul.f32 %v4291_v11, %v11384_v14  ;;  %v4298_v53 = vmul.f32 0.5, %v4042_v16  ;;  %v8113_v16 = vld [vmem:[#allocation8 + $0x3e0] sm:$0xf] }
 0x43f   :  { %v3034_v56 = vmul.f32 0.044715, %v2778_v60  ;;  %v2084_v20 = vadd.f32 %v2083_v36, %v11095_v52  ;;  %v3283_v18 = vadd.f32 %v3027_v42, %v11424_v35  ;;  %v11448_v15 = vadd.f32 %v2348_v1, %v2260_v50 }
 0x440   :  { %v2172_v57 = vpop.f32.mrf.mxu1  ;;  %v11453_v40 = vpack.c.bf16 %v4547_v55, %v4539_v61  ;;  %v8049_v61 = vld [vmem:[#allocation8 + $0x360] sm:$0xf] }
 0x441   :  { %v3290_v28 = vadd.f32 %v3034_v56, %v11429_v33  ;;  %v11451_v49 = vadd.f32 %v2172_v57, %v2084_v20  ;;  %v8837_v63 = vpop.eup %8836  ;;  %v3539_v48 = vmul.f32 0.7978846, %v3283_v18  ;;  %v2523_v34 = vmul.f32 %v11448_v15, %v11448_v15  ;;  %v8364_v56 = vld [vmem:[#allocation8 + $0x364] sm:$0xf0]  ;;  %v7921_v20 = vld [vmem:[#allocation8 + $0x260] sm:$0xf] }
 0x442   :  { %12501 = vst [vmem:[#allocation115_spill] sm:$0xff] %v11453_v40  ;;  %v4043_v50 = vadd.f32 1.0, %v8837_v63  ;;  %v8050_v58 = vor.u32 %v8364_v56, %v8049_v61  ;;  %v7922_v63 = vor.u32 %v8332_v38, %v7921_v20  ;;  %v12502_v61 = vld [vmem:[#allocation17_spill] sm:$0xff]  ;;  %v12503_v20 = vld [vmem:[#allocation18_spill] sm:$0xff] }
 0x443   :  { %v8839_v10 = vpop.eup %8838  ;;  %v3546_v60 = vmul.f32 0.7978846, %v3290_v28  ;;  %v2530_v14 = vmul.f32 %v11451_v49, %v11451_v49  ;;  %v2779_v11 = vmul.f32 %v2523_v34, %v11448_v15  ;;  %8840 = vtanh.f32 %v3539_v48 }
 0x444   :  { %v4050_v42 = vadd.f32 1.0, %v8839_v10  ;;  %v2261_v36 = vpop.f32.mrf.mxu2  ;;  %v8380_v10 = vld [vmem:[#allocation8 + $0x3e4] sm:$0xf0]  ;;  %6129 = vmatpush.bf16.msrb.mxu2 %v8050_v58  ;;  %v4299_v58 = vmul.f32 0.5, %v4043_v50  ;;  %5951 = vmatpush.bf16.msrb.mxu0 %v7922_v63 }
 0x445   :  { %v2786_v1 = vmul.f32 %v2530_v14, %v11451_v49  ;;  %8842 = vtanh.f32 %v3546_v60  ;;  %v3035_v57 = vmul.f32 0.044715, %v2779_v11  ;;  %v2262_v55 = vadd.f32 %v2261_v36, %v11110_v45 }
 0x446   :  { %v2350_v18 = vpop.f32.mrf.mxu3  ;;  %v2086_v28 = vpop.f32.mrf.mxu0  ;;  %v4306_v14 = vmul.f32 0.5, %v4050_v42  ;;  %v8114_v60 = vor.u32 %v8380_v10, %v8113_v16  ;;  %v7985_v16 = vld [vmem:[#allocation8 + $0x2e0] sm:$0xf] }
 0x447   :  { %v3042_v39 = vmul.f32 0.044715, %v2786_v1  ;;  %v2087_v34 = vadd.f32 %v2086_v28, %v11095_v52  ;;  %v3291_v0 = vadd.f32 %v3035_v57, %v11448_v15  ;;  %v11464_v46 = vadd.f32 %v2350_v18, %v2262_v55  ;;  %v12504_v57 = vld [vmem:[#allocation51_spill] sm:$0xff]  ;;  %v12505_v18 = vld [vmem:[#allocation52_spill] sm:$0xff] }
 0x448   :  { %v2175_v48 = vpop.f32.mrf.mxu1  ;;  %v4554_v1 = vmul.f32 %v4298_v53, %v11387_v19  ;;  %v4562_v56 = vmul.f32 %v4306_v14, %v11411_v47  ;;  %6218 = vmatpush.bf16.msrb.mxu3 %v8114_v60  ;;  %v4555_v60 = vmul.f32 %v4299_v58, %v11408_v44 }
 0x449   :  { %v3298_v11 = vadd.f32 %v3042_v39, %v11451_v49  ;;  %v11467_v36 = vadd.f32 %v2175_v48, %v2087_v34  ;;  %5607 = vmatmul.bf16.gmra.mxu0 %v12502_v61  ;;  %v8841_v28 = vpop.eup %8840  ;;  %v3547_v38 = vmul.f32 0.7978846, %v3291_v0  ;;  %v2531_v42 = vmul.f32 %v11464_v46, %v11464_v46  ;;  %5785 = vmatmul.bf16.gmra.mxu2 %v12504_v57  ;;  %v8348_v34 = vld [vmem:[#allocation8 + $0x2e4] sm:$0xf0] }
 0x44a   :  { %v11479_v19 = vpack.c.bf16 %v4562_v56, %v4554_v1  ;;  %v4051_v47 = vadd.f32 1.0, %v8841_v28  ;;  %v7986_v10 = vor.u32 %v8348_v34, %v7985_v16 }
 0x44b   :  { %5696 = vmatmul.bf16.gmra.mxu1 %v12503_v20  ;;  %v3554_v55 = vmul.f32 0.7978846, %v3298_v11  ;;  %v2538_v39 = vmul.f32 %v11467_v36, %v11467_v36  ;;  %5874 = vmatmul.bf16.gmra.mxu3 %v12505_v18  ;;  %v8843_v53 = vpop.eup %8842  ;;  %8844 = vtanh.f32 %v3547_v38  ;;  %v2787_v0 = vmul.f32 %v2531_v42, %v11464_v46 }
 0x44c   :  { %v2264_v50 = vpop.f32.mrf.mxu2  ;;  %v4307_v14 = vmul.f32 0.5, %v4051_v47  ;;  %6040 = vmatpush.bf16.msrb.mxu1 %v7986_v10  ;;  %v4058_v47 = vadd.f32 1.0, %v8843_v53 }
 0x44d   :  { %v2794_v48 = vmul.f32 %v2538_v39, %v11467_v36  ;;  %8846 = vtanh.f32 %v3554_v55  ;;  %v3043_v11 = vmul.f32 0.044715, %v2787_v0  ;;  %v2265_v18 = vadd.f32 %v2264_v50, %v11110_v45 }
 0x44e   :  { %v2353_v63 = vpop.f32.mrf.mxu3  ;;  %v2088_v1 = vpop.f32.mrf.mxu0  ;;  %v4563_v42 = vmul.f32 %v4307_v14, %v11424_v35  ;;  %v4314_v53 = vmul.f32 0.5, %v4058_v47 }
 0x44f   :  { %v3050_v56 = vmul.f32 0.044715, %v2794_v48  ;;  %v2089_v28 = vadd.f32 %v2088_v1, %v11095_v52  ;;  %v3299_v39 = vadd.f32 %v3043_v11, %v11464_v46  ;;  %v11488_v57 = vadd.f32 %v2353_v63, %v2265_v18 }
 0x450   :  { %v2177_v38 = vpop.f32.mrf.mxu1  ;;  %v11493_v16 = vpack.c.bf16 %v4563_v42, %v4555_v60  ;;  %v4570_v47 = vmul.f32 %v4314_v53, %v11429_v33 }
 0x451   :  { %v3306_v55 = vadd.f32 %v3050_v56, %v11467_v36  ;;  %v11491_v0 = vadd.f32 %v2177_v38, %v2089_v28  ;;  %v8845_v34 = vpop.eup %8844  ;;  %v3555_v48 = vmul.f32 0.7978846, %v3299_v39  ;;  %v2539_v50 = vmul.f32 %v11488_v57, %v11488_v57 }
 0x452   :  { %v4059_v63 = vadd.f32 1.0, %v8845_v34 }
 0x453   :  { %v8847_v10 = vpop.eup %8846  ;;  %v3562_v44 = vmul.f32 0.7978846, %v3306_v55  ;;  %v2546_v35 = vmul.f32 %v11491_v0, %v11491_v0  ;;  %v2795_v58 = vmul.f32 %v2539_v50, %v11488_v57  ;;  %8848 = vtanh.f32 %v3555_v48 }
 0x454   :  { %v4066_v18 = vadd.f32 1.0, %v8847_v10  ;;  %v2266_v11 = vpop.f32.mrf.mxu2  ;;  %v4315_v33 = vmul.f32 0.5, %v4059_v63 }
 0x455   :  { %v2802_v14 = vmul.f32 %v2546_v35, %v11491_v0  ;;  %8850 = vtanh.f32 %v3562_v44  ;;  %v3051_v1 = vmul.f32 0.044715, %v2795_v58  ;;  %v2267_v56 = vadd.f32 %v2266_v11, %v11110_v45  ;;  %v12506_v35 = vld [vmem:[#allocation19_spill] sm:$0xff]  ;;  %v12507_v11 = vld [vmem:[#allocation20_spill] sm:$0xff] }
 0x456   :  { %v2355_v28 = vpop.f32.mrf.mxu3  ;;  %v2091_v38 = vpop.f32.mrf.mxu0  ;;  %v4322_v60 = vmul.f32 0.5, %v4066_v18 }
 0x457   :  { %v3058_v42 = vmul.f32 0.044715, %v2802_v14  ;;  %v2092_v39 = vadd.f32 %v2091_v38, %v11095_v52  ;;  %v3307_v50 = vadd.f32 %v3051_v1, %v11488_v57  ;;  %v11504_v10 = vadd.f32 %v2355_v28, %v2267_v56  ;;  %v12508_v1 = vld [vmem:[#allocation53_spill] sm:$0xff]  ;;  %v12510_v28 = vld [vmem:[#allocation54_spill] sm:$0xff] }
 0x458   :  { %v2180_v55 = vpop.f32.mrf.mxu1  ;;  %v4578_v48 = vmul.f32 %v4322_v60, %v11451_v49 }
 0x459   :  { %v3314_v34 = vadd.f32 %v3058_v42, %v11491_v0  ;;  %v11509_v44 = vadd.f32 %v2180_v55, %v2092_v39  ;;  %5612 = vmatmul.bf16.gmra.mxu0 %v12506_v35  ;;  %v8849_v58 = vpop.eup %8848  ;;  %v3563_v18 = vmul.f32 0.7978846, %v3307_v50  ;;  %v2547_v14 = vmul.f32 %v11504_v10, %v11504_v10  ;;  %5790 = vmatmul.bf16.gmra.mxu2 %v12508_v1 }
 0x45a   :  { %v11516_v56 = vpack.c.bf16 %v4578_v48, %v4570_v47  ;;  %v4067_v38 = vadd.f32 1.0, %v8849_v58 }
 0x45b   :  { %5701 = vmatmul.bf16.gmra.mxu1 %v12507_v11  ;;  %v3570_v53 = vmul.f32 0.7978846, %v3314_v34  ;;  %v2554_v49 = vmul.f32 %v11509_v44, %v11509_v44  ;;  %5879 = vmatmul.bf16.gmra.mxu3 %v12510_v28  ;;  %v8851_v60 = vpop.eup %8850  ;;  %8852 = vtanh.f32 %v3563_v18  ;;  %v2803_v42 = vmul.f32 %v2547_v14, %v11504_v10 }
 0x45c   :  { %12509 = vst [vmem:[#allocation116_spill] sm:$0xff] %v11516_v56  ;;  %v2269_v55 = vpop.f32.mrf.mxu2  ;;  %v4323_v50 = vmul.f32 0.5, %v4067_v38  ;;  %v4571_v34 = vmul.f32 %v4315_v33, %v11448_v15  ;;  %v4074_v35 = vadd.f32 1.0, %v8851_v60 }
 0x45d   :  { %v2810_v39 = vmul.f32 %v2554_v49, %v11509_v44  ;;  %8854 = vtanh.f32 %v3570_v53  ;;  %v3059_v1 = vmul.f32 0.044715, %v2803_v42  ;;  %v2270_v47 = vadd.f32 %v2269_v55, %v11110_v45 }
 0x45e   :  { %v2358_v63 = vpop.f32.mrf.mxu3  ;;  %v2093_v48 = vpop.f32.mrf.mxu0  ;;  %v4579_v18 = vmul.f32 %v4323_v50, %v11464_v46  ;;  %v4330_v60 = vmul.f32 0.5, %v4074_v35  ;;  %v8105_v35 = vld [vmem:[#allocation8 + $0x3d0] sm:$0xf] }
 0x45f   :  { %v3066_v11 = vmul.f32 0.044715, %v2810_v39  ;;  %v2094_v28 = vadd.f32 %v2093_v48, %v11095_v52  ;;  %v3315_v14 = vadd.f32 %v3059_v1, %v11504_v10  ;;  %v11528_v49 = vadd.f32 %v2358_v63, %v2270_v47  ;;  %v8041_v63 = vld [vmem:[#allocation8 + $0x350] sm:$0xf]  ;;  %v8362_v48 = vld [vmem:[#allocation8 + $0x354] sm:$0xf0] }
 0x460   :  { %v2182_v58 = vpop.f32.mrf.mxu1  ;;  %v11533_v42 = vpack.c.bf16 %v4579_v18, %v4571_v34  ;;  %v7913_v34 = vld [vmem:[#allocation8 + $0x250] sm:$0xf]  ;;  %v8042_v61 = vor.u32 %v8362_v48, %v8041_v63 }
 0x461   :  { %v3322_v53 = vadd.f32 %v3066_v11, %v11509_v44  ;;  %v11531_v38 = vadd.f32 %v2182_v58, %v2094_v28  ;;  %v8853_v55 = vpop.eup %8852  ;;  %v3571_v20 = vmul.f32 0.7978846, %v3315_v14  ;;  %v2555_v15 = vmul.f32 %v11528_v49, %v11528_v49  ;;  %v12512_v63 = vld [vmem:[#allocation21_spill] sm:$0xff] }
 0x462   :  { %12511 = vst [vmem:[#allocation117_spill] sm:$0xff] %v11533_v42  ;;  %v4075_v11 = vadd.f32 1.0, %v8853_v55  ;;  %v7914_v55 = vor.u32 %v8330_v24, %v7913_v34  ;;  %6130 = vmatpush.bf16.msrb.mxu2 %v8042_v61  ;;  %v12513_v34 = vld [vmem:[#allocation22_spill] sm:$0xff] }
 0x463   :  { %v8855_v33 = vpop.eup %8854  ;;  %v3578_v39 = vmul.f32 0.7978846, %v3322_v53  ;;  %v2562_v46 = vmul.f32 %v11531_v38, %v11531_v38  ;;  %v2811_v1 = vmul.f32 %v2555_v15, %v11528_v49  ;;  %8856 = vtanh.f32 %v3571_v20 }
 0x464   :  { %v4082_v50 = vadd.f32 1.0, %v8855_v33  ;;  %v2271_v47 = vpop.f32.mrf.mxu2  ;;  %v8378_v33 = vld [vmem:[#allocation8 + $0x3d4] sm:$0xf0]  ;;  %v4331_v61 = vmul.f32 0.5, %v4075_v11  ;;  %5952 = vmatpush.bf16.msrb.mxu0 %v7914_v55 }
 0x465   :  { %v2818_v28 = vmul.f32 %v2562_v46, %v11531_v38  ;;  %8858 = vtanh.f32 %v3578_v39  ;;  %v3067_v58 = vmul.f32 0.044715, %v2811_v1  ;;  %v2272_v18 = vadd.f32 %v2271_v47, %v11110_v45 }
 0x466   :  { %v2360_v14 = vpop.f32.mrf.mxu3  ;;  %v2096_v53 = vpop.f32.mrf.mxu0  ;;  %v4338_v46 = vmul.f32 0.5, %v4082_v50  ;;  %v8106_v39 = vor.u32 %v8378_v33, %v8105_v35  ;;  %v7977_v35 = vld [vmem:[#allocation8 + $0x2d0] sm:$0xf] }
 0x467   :  { %v3074_v2 = vmul.f32 0.044715, %v2818_v28  ;;  %v2097_v15 = vadd.f32 %v2096_v53, %v11095_v52  ;;  %v3323_v25 = vadd.f32 %v3067_v58, %v11528_v49  ;;  %v11544_v6 = vadd.f32 %v2360_v14, %v2272_v18  ;;  %v12514_v58 = vld [vmem:[#allocation55_spill] sm:$0xff]  ;;  %v12515_v14 = vld [vmem:[#allocation56_spill] sm:$0xff] }
 0x468   :  { %v2185_v20 = vpop.f32.mrf.mxu1  ;;  %v4586_v28 = vmul.f32 %v4330_v60, %v11467_v36  ;;  %v4594_v48 = vmul.f32 %v4338_v46, %v11491_v0  ;;  %6219 = vmatpush.bf16.msrb.mxu3 %v8106_v39  ;;  %v4587_v39 = vmul.f32 %v4331_v61, %v11488_v57 }
 0x469   :  { %v3330_v1 = vadd.f32 %v3074_v2, %v11531_v38  ;;  %v11547_v47 = vadd.f32 %v2185_v20, %v2097_v15  ;;  %5617 = vmatmul.bf16.gmra.mxu0 %v12512_v63  ;;  %v8857_v53 = vpop.eup %8856  ;;  %v3579_v24 = vmul.f32 0.7978846, %v3323_v25  ;;  %v2563_v50 = vmul.f32 %v11544_v6, %v11544_v6  ;;  %5795 = vmatmul.bf16.gmra.mxu2 %v12514_v58  ;;  %v8346_v15 = vld [vmem:[#allocation8 + $0x2d4] sm:$0xf0] }
 0x46a   :  { %v11559_v36 = vpack.c.bf16 %v4594_v48, %v4586_v28  ;;  %v4083_v0 = vadd.f32 1.0, %v8857_v53  ;;  %v7978_v33 = vor.u32 %v8346_v15, %v7977_v35 }
 0x46b   :  { %5706 = vmatmul.bf16.gmra.mxu1 %v12513_v34  ;;  %v3586_v18 = vmul.f32 0.7978846, %v3330_v1  ;;  %v2570_v2 = vmul.f32 %v11547_v47, %v11547_v47  ;;  %5884 = vmatmul.bf16.gmra.mxu3 %v12515_v14  ;;  %v8859_v60 = vpop.eup %8858  ;;  %8860 = vtanh.f32 %v3579_v24  ;;  %v2819_v25 = vmul.f32 %v2563_v50, %v11544_v6 }
 0x46c   :  { %v2274_v11 = vpop.f32.mrf.mxu2  ;;  %v4339_v46 = vmul.f32 0.5, %v4083_v0  ;;  %6041 = vmatpush.bf16.msrb.mxu1 %v7978_v33  ;;  %v4090_v0 = vadd.f32 1.0, %v8859_v60 }
 0x46d   :  { %v2826_v20 = vmul.f32 %v2570_v2, %v11547_v47  ;;  %8862 = vtanh.f32 %v3586_v18  ;;  %v3075_v1 = vmul.f32 0.044715, %v2819_v25  ;;  %v2275_v14 = vadd.f32 %v2274_v11, %v11110_v45 }
 0x46e   :  { %v2363_v55 = vpop.f32.mrf.mxu3  ;;  %v2098_v28 = vpop.f32.mrf.mxu0  ;;  %v4595_v50 = vmul.f32 %v4339_v46, %v11504_v10  ;;  %v4346_v60 = vmul.f32 0.5, %v4090_v0 }
 0x46f   :  { %v3082_v48 = vmul.f32 0.044715, %v2826_v20  ;;  %v2099_v53 = vadd.f32 %v2098_v28, %v11095_v52  ;;  %v3331_v2 = vadd.f32 %v3075_v1, %v11544_v6  ;;  %v11568_v58 = vadd.f32 %v2363_v55, %v2275_v14 }
 0x470   :  { %v2187_v24 = vpop.f32.mrf.mxu1  ;;  %v11573_v35 = vpack.c.bf16 %v4595_v50, %v4587_v39  ;;  %v4602_v0 = vmul.f32 %v4346_v60, %v11509_v44 }
 0x471   :  { %v3338_v18 = vadd.f32 %v3082_v48, %v11547_v47  ;;  %v11571_v25 = vadd.f32 %v2187_v24, %v2099_v53  ;;  %v8861_v15 = vpop.eup %8860  ;;  %v3587_v20 = vmul.f32 0.7978846, %v3331_v2  ;;  %v2571_v11 = vmul.f32 %v11568_v58, %v11568_v58 }
 0x472   :  { %v4091_v55 = vadd.f32 1.0, %v8861_v15 }
 0x473   :  { %v8863_v33 = vpop.eup %8862  ;;  %v3594_v57 = vmul.f32 0.7978846, %v3338_v18  ;;  %v2578_v10 = vmul.f32 %v11571_v25, %v11571_v25  ;;  %v2827_v61 = vmul.f32 %v2571_v11, %v11568_v58  ;;  %8864 = vtanh.f32 %v3587_v20 }
 0x474   :  { %v4098_v14 = vadd.f32 1.0, %v8863_v33  ;;  %v2276_v1 = vpop.f32.mrf.mxu2  ;;  %v4347_v44 = vmul.f32 0.5, %v4091_v55 }
 0x475   :  { %v2834_v46 = vmul.f32 %v2578_v10, %v11571_v25  ;;  %8866 = vtanh.f32 %v3594_v57  ;;  %v3083_v28 = vmul.f32 0.044715, %v2827_v61  ;;  %v2277_v48 = vadd.f32 %v2276_v1, %v11110_v45  ;;  %v12516_v10 = vld [vmem:[#allocation25_spill] sm:$0xff]  ;;  %v12517_v1 = vld [vmem:[#allocation26_spill] sm:$0xff] }
 0x476   :  { %v2365_v53 = vpop.f32.mrf.mxu3  ;;  %v2101_v24 = vpop.f32.mrf.mxu0  ;;  %v4354_v39 = vmul.f32 0.5, %v4098_v14 }
 0x477   :  { %v3090_v50 = vmul.f32 0.044715, %v2834_v46  ;;  %v2102_v2 = vadd.f32 %v2101_v24, %v11095_v52  ;;  %v3339_v11 = vadd.f32 %v3083_v28, %v11568_v58  ;;  %v11584_v33 = vadd.f32 %v2365_v53, %v2277_v48  ;;  %v12518_v28 = vld [vmem:[#allocation57_spill] sm:$0xff]  ;;  %v12520_v53 = vld [vmem:[#allocation58_spill] sm:$0xff] }
 0x478   :  { %v2190_v18 = vpop.f32.mrf.mxu1  ;;  %v4610_v20 = vmul.f32 %v4354_v39, %v11531_v38 }
 0x479   :  { %v3346_v15 = vadd.f32 %v3090_v50, %v11571_v25  ;;  %v11589_v57 = vadd.f32 %v2190_v18, %v2102_v2  ;;  %5622 = vmatmul.bf16.gmra.mxu0 %v12516_v10  ;;  %v8865_v61 = vpop.eup %8864  ;;  %v3595_v14 = vmul.f32 0.7978846, %v3339_v11  ;;  %v2579_v46 = vmul.f32 %v11584_v33, %v11584_v33  ;;  %5800 = vmatmul.bf16.gmra.mxu2 %v12518_v28 }
 0x47a   :  { %v11596_v48 = vpack.c.bf16 %v4610_v20, %v4602_v0  ;;  %v4099_v24 = vadd.f32 1.0, %v8865_v61 }
 0x47b   :  { %5711 = vmatmul.bf16.gmra.mxu1 %v12517_v1  ;;  %v3602_v60 = vmul.f32 0.7978846, %v3346_v15  ;;  %v2586_v38 = vmul.f32 %v11589_v57, %v11589_v57  ;;  %5889 = vmatmul.bf16.gmra.mxu3 %v12520_v53  ;;  %v8867_v39 = vpop.eup %8866  ;;  %8868 = vtanh.f32 %v3595_v14  ;;  %v2835_v50 = vmul.f32 %v2579_v46, %v11584_v33 }
 0x47c   :  { %12519 = vst [vmem:[#allocation118_spill] sm:$0xff] %v11596_v48  ;;  %v2279_v18 = vpop.f32.mrf.mxu2  ;;  %v4355_v11 = vmul.f32 0.5, %v4099_v24  ;;  %v4603_v15 = vmul.f32 %v4347_v44, %v11528_v49  ;;  %v4106_v10 = vadd.f32 1.0, %v8867_v39 }
 0x47d   :  { %v2842_v2 = vmul.f32 %v2586_v38, %v11589_v57  ;;  %8870 = vtanh.f32 %v3602_v60  ;;  %v3091_v28 = vmul.f32 0.044715, %v2835_v50  ;;  %v2280_v0 = vadd.f32 %v2279_v18, %v11110_v45 }
 0x47e   :  { %v2368_v55 = vpop.f32.mrf.mxu3  ;;  %v2103_v20 = vpop.f32.mrf.mxu0  ;;  %v4611_v14 = vmul.f32 %v4355_v11, %v11544_v6  ;;  %v4362_v39 = vmul.f32 0.5, %v4106_v10  ;;  %v8097_v10 = vld [vmem:[#allocation8 + $0x3c0] sm:$0xf] }
 0x47f   :  { %v3098_v1 = vmul.f32 0.044715, %v2842_v2  ;;  %v2104_v53 = vadd.f32 %v2103_v20, %v11095_v52  ;;  %v3347_v46 = vadd.f32 %v3091_v28, %v11584_v33  ;;  %v11608_v38 = vadd.f32 %v2368_v55, %v2280_v0  ;;  %v8033_v55 = vld [vmem:[#allocation8 + $0x340] sm:$0xf]  ;;  %v8360_v20 = vld [vmem:[#allocation8 + $0x344] sm:$0xf0] }
 0x480   :  { %v2192_v61 = vpop.f32.mrf.mxu1  ;;  %v11613_v50 = vpack.c.bf16 %v4611_v14, %v4603_v15  ;;  %v7905_v15 = vld [vmem:[#allocation8 + $0x240] sm:$0xf]  ;;  %v8034_v63 = vor.u32 %v8360_v20, %v8033_v55 }
 0x481   :  { %v3354_v60 = vadd.f32 %v3098_v1, %v11589_v57  ;;  %v11611_v24 = vadd.f32 %v2192_v61, %v2104_v53  ;;  %v8869_v18 = vpop.eup %8868  ;;  %v3603_v34 = vmul.f32 0.7978846, %v3347_v46  ;;  %v2587_v49 = vmul.f32 %v11608_v38, %v11608_v38  ;;  %v12522_v55 = vld [vmem:[#allocation27_spill] sm:$0xff] }
 0x482   :  { %12521 = vst [vmem:[#allocation119_spill] sm:$0xff] %v11613_v50  ;;  %v4107_v1 = vadd.f32 1.0, %v8869_v18  ;;  %v7906_v18 = vor.u32 %v8328_v27, %v7905_v15  ;;  %6131 = vmatpush.bf16.msrb.mxu2 %v8034_v63  ;;  %v12523_v15 = vld [vmem:[#allocation28_spill] sm:$0xff] }
 0x483   :  { %v8871_v44 = vpop.eup %8870  ;;  %v3610_v2 = vmul.f32 0.7978846, %v3354_v60  ;;  %v2594_v6 = vmul.f32 %v11611_v24, %v11611_v24  ;;  %v2843_v28 = vmul.f32 %v2587_v49, %v11608_v38  ;;  %8872 = vtanh.f32 %v3603_v34 }
 0x484   :  { %v4114_v11 = vadd.f32 1.0, %v8871_v44  ;;  %v2281_v0 = vpop.f32.mrf.mxu2  ;;  %v8376_v44 = vld [vmem:[#allocation8 + $0x3c4] sm:$0xf0]  ;;  %v4363_v63 = vmul.f32 0.5, %v4107_v1  ;;  %5953 = vmatpush.bf16.msrb.mxu0 %v7906_v18 }
 0x485   :  { %v2850_v53 = vmul.f32 %v2594_v6, %v11611_v24  ;;  %8874 = vtanh.f32 %v3610_v2  ;;  %v3099_v61 = vmul.f32 0.044715, %v2843_v28  ;;  %v2282_v14 = vadd.f32 %v2281_v0, %v11110_v45 }
 0x486   :  { %v2370_v46 = vpop.f32.mrf.mxu3  ;;  %v2106_v60 = vpop.f32.mrf.mxu0  ;;  %v4370_v6 = vmul.f32 0.5, %v4114_v11  ;;  %v8098_v2 = vor.u32 %v8376_v44, %v8097_v10  ;;  %v7969_v10 = vld [vmem:[#allocation8 + $0x2c0] sm:$0xf] }
 0x487   :  { %v3106_v29 = vmul.f32 0.044715, %v2850_v53  ;;  %v2107_v49 = vadd.f32 %v2106_v60, %v11095_v52  ;;  %v3355_v50 = vadd.f32 %v3099_v61, %v11608_v38  ;;  %v11624_v48 = vadd.f32 %v2370_v46, %v2282_v14  ;;  %v12524_v61 = vld [vmem:[#allocation59_spill] sm:$0xff]  ;;  %v12525_v46 = vld [vmem:[#allocation60_spill] sm:$0xff] }
 0x488   :  { %v2195_v34 = vpop.f32.mrf.mxu1  ;;  %v4618_v53 = vmul.f32 %v4362_v39, %v11547_v47  ;;  %v4626_v20 = vmul.f32 %v4370_v6, %v11571_v25  ;;  %6220 = vmatpush.bf16.msrb.mxu3 %v8098_v2 }
 0x489   :  { %v3362_v28 = vadd.f32 %v3106_v29, %v11611_v24  ;;  %v11627_v0 = vadd.f32 %v2195_v34, %v2107_v49  ;;  %5627 = vmatmul.bf16.gmra.mxu0 %v12522_v55  ;;  %v8873_v60 = vpop.eup %8872  ;;  %v3611_v27 = vmul.f32 0.7978846, %v3355_v50  ;;  %v2595_v11 = vmul.f32 %v11624_v48, %v11624_v48  ;;  %5805 = vmatmul.bf16.gmra.mxu2 %v12524_v61  ;;  %v8344_v49 = vld [vmem:[#allocation8 + $0x2c4] sm:$0xf0] }
 0x48a   :  { %v11639_v47 = vpack.c.bf16 %v4626_v20, %v4618_v53  ;;  %v4115_v25 = vadd.f32 1.0, %v8873_v60  ;;  %v7970_v1 = vor.u32 %v8344_v49, %v7969_v10  ;;  %v4619_v20 = vmul.f32 %v4363_v63, %v11568_v58 }
 0x48b   :  { %5716 = vmatmul.bf16.gmra.mxu1 %v12523_v15  ;;  %v3618_v14 = vmul.f32 0.7978846, %v3362_v28  ;;  %v2602_v29 = vmul.f32 %v11627_v0, %v11627_v0  ;;  %5894 = vmatmul.bf16.gmra.mxu3 %v12525_v46  ;;  %v8875_v39 = vpop.eup %8874  ;;  %v2851_v50 = vmul.f32 %v2595_v11, %v11624_v48  ;;  %v8025_v15 = vld [vmem:[#allocation8 + $0x330] sm:$0xf] }
 0x48c   :  { %12526 = vst [vmem:[#allocation120_spill] sm:$0xff] %v11639_v47  ;;  %v2284_v44 = vpop.f32.mrf.mxu2  ;;  %v4371_v6 = vmul.f32 0.5, %v4115_v25  ;;  %6042 = vmatpush.bf16.msrb.mxu1 %v7970_v1 }
 0x48d   :  { %v2858_v34 = vmul.f32 %v2602_v29, %v11627_v0  ;;  %8876 = vtanh.f32 %v3618_v14  ;;  %v3107_v28 = vmul.f32 0.044715, %v2851_v50  ;;  %v2285_v46 = vadd.f32 %v2284_v44, %v11110_v45 }
 0x48e   :  { %8878 = vtanh.f32 %v3611_v27  ;;  %v2373_v18 = vpop.f32.mrf.mxu3  ;;  %v2108_v53 = vpop.f32.mrf.mxu0  ;;  %v4627_v61 = vmul.f32 %v4371_v6, %v11584_v33  ;;  %v4122_v29 = vadd.f32 1.0, %v8875_v39 }
 0x48f   :  { %v3114_v60 = vmul.f32 0.044715, %v2858_v34  ;;  %v2109_v11 = vadd.f32 %v2108_v53, %v11095_v52  ;;  %v3363_v10 = vadd.f32 %v3107_v28, %v11624_v48  ;;  %v11648_v25 = vadd.f32 %v2373_v18, %v2285_v46 }
 0x490   :  { %v2197_v2 = vpop.f32.mrf.mxu1  ;;  %v11653_v50 = vpack.c.bf16 %v4627_v61, %v4619_v20  ;;  %v4378_v33 = vmul.f32 0.5, %v4122_v29 }
 0x491   :  { %v3370_v27 = vadd.f32 %v3114_v60, %v11627_v0  ;;  %v11651_v14 = vadd.f32 %v2197_v2, %v2109_v11  ;;  %v3619_v49 = vmul.f32 0.7978846, %v3363_v10  ;;  %v2603_v58 = vmul.f32 %v11648_v25, %v11648_v25 }
 0x492   :  { %12527 = vst [vmem:[#allocation121_spill] sm:$0xff] %v11653_v50  ;;  %v4634_v29 = vmul.f32 %v4378_v33, %v11589_v57  ;;  %v12529_v57 = vld [vmem:[#allocation30_spill] sm:$0xff]  ;;  %v12530_v33 = vld [vmem:[#allocation61_spill] sm:$0xff] }
 0x493   :  { %v8877_v63 = vpop.eup %8876  ;;  %v2610_v34 = vmul.f32 %v11651_v14, %v11651_v14  ;;  %v3626_v44 = vmul.f32 0.7978846, %v3370_v27  ;;  %v2859_v46 = vmul.f32 %v2603_v58, %v11648_v25  ;;  %8880 = vtanh.f32 %v3619_v49 }
 0x494   :  { %v8879_v39 = vpop.eup %8878  ;;  %v4130_v1 = vadd.f32 1.0, %v8877_v63  ;;  %v2286_v28 = vpop.f32.mrf.mxu2 }
 0x495   :  { %v2866_v6 = vmul.f32 %v2610_v34, %v11651_v14  ;;  %v3115_v61 = vmul.f32 0.044715, %v2859_v46  ;;  %v2287_v18 = vadd.f32 %v2286_v28, %v11110_v45  ;;  %v4123_v27 = vadd.f32 1.0, %v8879_v39  ;;  %v12528_v28 = vld [vmem:[#allocation29_spill] sm:$0xff] }
 0x496   :  { %v2375_v53 = vpop.f32.mrf.mxu3  ;;  %v2111_v20 = vpop.f32.mrf.mxu0  ;;  %v4386_v60 = vmul.f32 0.5, %v4130_v1  ;;  %8882 = vtanh.f32 %v3626_v44 }
 0x497   :  { %v3122_v11 = vmul.f32 0.044715, %v2866_v6  ;;  %v2112_v2 = vadd.f32 %v2111_v20, %v11095_v52  ;;  %v3371_v58 = vadd.f32 %v3115_v61, %v11648_v25  ;;  %v11665_v49 = vadd.f32 %v2375_v53, %v2287_v18  ;;  %v12532_v61 = vld [vmem:[#allocation62_spill] sm:$0xff] }
 0x498   :  { %v2200_v10 = vpop.f32.mrf.mxu1  ;;  %v4642_v63 = vmul.f32 %v4386_v60, %v11611_v24  ;;  %v4379_v53 = vmul.f32 0.5, %v4123_v27 }
 0x499   :  { %v3378_v34 = vadd.f32 %v3122_v11, %v11651_v14  ;;  %v11669_v46 = vadd.f32 %v2200_v10, %v2112_v2  ;;  %5632 = vmatmul.bf16.gmra.mxu0 %v12528_v28  ;;  %v8881_v1 = vpop.eup %8880  ;;  %v3627_v6 = vmul.f32 0.7978846, %v3371_v58  ;;  %v2611_v20 = vmul.f32 %v11665_v49, %v11665_v49  ;;  %5810 = vmatmul.bf16.gmra.mxu2 %v12530_v33 }
 0x49a   :  { %v11676_v39 = vpack.c.bf16 %v4642_v63, %v4634_v29  ;;  %v4131_v18 = vadd.f32 1.0, %v8881_v1  ;;  %v4635_v27 = vmul.f32 %v4379_v53, %v11608_v38  ;;  %v8358_v38 = vld [vmem:[#allocation8 + $0x334] sm:$0xf0] }
 0x49b   :  { %5721 = vmatmul.bf16.gmra.mxu1 %v12529_v57  ;;  %v3634_v44 = vmul.f32 0.7978846, %v3378_v34  ;;  %v2618_v24 = vmul.f32 %v11669_v46, %v11669_v46  ;;  %5899 = vmatmul.bf16.gmra.mxu3 %v12532_v61  ;;  %8884 = vtanh.f32 %v3627_v6  ;;  %v2867_v60 = vmul.f32 %v2611_v20, %v11665_v49 }
 0x49c   :  { %12531 = vst [vmem:[#allocation122_spill] sm:$0xff] %v11676_v39  ;;  %v2289_v2 = vpop.f32.mrf.mxu2  ;;  %v4387_v10 = vmul.f32 0.5, %v4131_v18  ;;  %v8883_v58 = vpop.eup %8882 }
 0x49d   :  { %v2874_v11 = vmul.f32 %v2618_v24, %v11669_v46  ;;  %8886 = vtanh.f32 %v3634_v44  ;;  %v3123_v33 = vmul.f32 0.044715, %v2867_v60  ;;  %v2290_v29 = vadd.f32 %v2289_v2, %v11110_v45 }
 0x49e   :  { %v2378_v63 = vpop.f32.mrf.mxu3  ;;  %v2113_v34 = vpop.f32.mrf.mxu0  ;;  %v4643_v1 = vmul.f32 %v4387_v10, %v11624_v48  ;;  %v4138_v60 = vadd.f32 1.0, %v8883_v58  ;;  %v8026_v10 = vor.u32 %v8358_v38, %v8025_v15  ;;  %v8374_v58 = vld [vmem:[#allocation8 + $0x3b4] sm:$0xf0] }
 0x49f   :  { %v3130_v57 = vmul.f32 0.044715, %v2874_v11  ;;  %v2114_v28 = vadd.f32 %v2113_v34, %v11095_v52  ;;  %v3379_v6 = vadd.f32 %v3123_v33, %v11665_v49  ;;  %v11688_v20 = vadd.f32 %v2378_v63, %v2290_v29  ;;  %v7897_v29 = vld [vmem:[#allocation8 + $0x230] sm:$0xf] }
 0x4a0   :  { %v2202_v61 = vpop.f32.mrf.mxu1  ;;  %v11693_v18 = vpack.c.bf16 %v4643_v1, %v4635_v27  ;;  %v8089_v63 = vld [vmem:[#allocation8 + $0x3b0] sm:$0xf]  ;;  %6132 = vmatpush.bf16.msrb.mxu2 %v8026_v10  ;;  %v4394_v39 = vmul.f32 0.5, %v4138_v60 }
 0x4a1   :  { %v3386_v44 = vadd.f32 %v3130_v57, %v11669_v46  ;;  %v11691_v24 = vadd.f32 %v2202_v61, %v2114_v28  ;;  %v8885_v2 = vpop.eup %8884  ;;  %v3635_v11 = vmul.f32 0.7978846, %v3379_v6  ;;  %v2619_v34 = vmul.f32 %v11688_v20, %v11688_v20  ;;  %v8326_v57 = vld [vmem:[#allocation8 + $0x234] sm:$0xf0]  ;;  %v7961_v27 = vld [vmem:[#allocation8 + $0x2b0] sm:$0xf] }
 0x4a2   :  { %12533 = vst [vmem:[#allocation123_spill] sm:$0xff] %v11693_v18  ;;  %v7898_v61 = vor.u32 %v8326_v57, %v7897_v29  ;;  %v8090_v55 = vor.u32 %v8374_v58, %v8089_v63  ;;  %v8342_v18 = vld [vmem:[#allocation8 + $0x2b4] sm:$0xf0]  ;;  %v4139_v29 = vadd.f32 1.0, %v8885_v2 }
 0x4a3   :  { %v8887_v53 = vpop.eup %8886  ;;  %v3642_v48 = vmul.f32 0.7978846, %v3386_v44  ;;  %v2626_v33 = vmul.f32 %v11691_v24, %v11691_v24  ;;  %v2875_v28 = vmul.f32 %v2619_v34, %v11688_v20  ;;  %8888 = vtanh.f32 %v3635_v11 }
 0x4a4   :  { %v2291_v6 = vpop.f32.mrf.mxu2  ;;  %v4146_v44 = vadd.f32 1.0, %v8887_v53  ;;  %5954 = vmatpush.bf16.msrb.mxu0 %v7898_v61  ;;  %v7962_v34 = vor.u32 %v8342_v18, %v7961_v27  ;;  %6221 = vmatpush.bf16.msrb.mxu3 %v8090_v55  ;;  %v4650_v18 = vmul.f32 %v4394_v39, %v11627_v0  ;;  %v4395_v61 = vmul.f32 0.5, %v4139_v29  ;;  %v12537_v27 = vld [vmem:[#allocation64_spill] sm:$0xff] }
 0x4a5   :  { %v2882_v1 = vmul.f32 %v2626_v33, %v11691_v24  ;;  %v3131_v50 = vmul.f32 0.044715, %v2875_v28  ;;  %v2292_v15 = vadd.f32 %v2291_v6, %v11110_v45  ;;  %8890 = vtanh.f32 %v3642_v48  ;;  %v12534_v28 = vld [vmem:[#allocation31_spill] sm:$0xff] }
 0x4a6   :  { %v2380_v38 = vpop.f32.mrf.mxu3  ;;  %v2116_v47 = vpop.f32.mrf.mxu0  ;;  %v4402_v33 = vmul.f32 0.5, %v4146_v44  ;;  %6043 = vmatpush.bf16.msrb.mxu1 %v7962_v34 }
 0x4a7   :  { %v3138_v57 = vmul.f32 0.044715, %v2882_v1  ;;  %v2117_v11 = vadd.f32 %v2116_v47, %v11095_v52  ;;  %v3387_v10 = vadd.f32 %v3131_v50, %v11688_v20  ;;  %v11704_v63 = vadd.f32 %v2380_v38, %v2292_v15  ;;  %v12535_v47 = vld [vmem:[#allocation32_spill] sm:$0xff]  ;;  %v12536_v50 = vld [vmem:[#allocation63_spill] sm:$0xff] }
 0x4a8   :  { %v2205_v12 = vpop.f32.mrf.mxu1  ;;  %v4658_v2 = vmul.f32 %v4402_v33, %v11651_v14 }
 0x4a9   :  { %v3394_v60 = vadd.f32 %v3138_v57, %v11691_v24  ;;  %v11707_v53 = vadd.f32 %v2205_v12, %v2117_v11  ;;  %5637 = vmatmul.bf16.gmra.mxu0 %v12534_v28  ;;  %v8889_v48 = vpop.eup %8888  ;;  %v2627_v55 = vmul.f32 %v11704_v63, %v11704_v63  ;;  %5815 = vmatmul.bf16.gmra.mxu2 %v12536_v50  ;;  %v3643_v39 = vmul.f32 0.7978846, %v3387_v10  ;;  %v8372_v50 = vld [vmem:[#allocation8 + $0x3a4] sm:$0xf0] }
 0x4aa   :  { %v11719_v1 = vpack.c.bf16 %v4658_v2, %v4650_v18  ;;  %v4147_v0 = vadd.f32 1.0, %v8889_v48  ;;  %v4651_v2 = vmul.f32 %v4395_v61, %v11648_v25 }
 0x4ab   :  { %5726 = vmatmul.bf16.gmra.mxu1 %v12535_v47  ;;  %v3650_v58 = vmul.f32 0.7978846, %v3394_v60  ;;  %v2634_v12 = vmul.f32 %v11707_v53, %v11707_v53  ;;  %5904 = vmatmul.bf16.gmra.mxu3 %v12537_v27  ;;  %v2883_v14 = vmul.f32 %v2627_v55, %v11704_v63  ;;  %v8891_v6 = vpop.eup %8890 }
 0x4ac   :  { %v2294_v15 = vpop.f32.mrf.mxu2  ;;  %v4403_v38 = vmul.f32 0.5, %v4147_v0 }
 0x4ad   :  { %v2890_v44 = vmul.f32 %v2634_v12, %v11707_v53  ;;  %8892 = vtanh.f32 %v3650_v58  ;;  %v3139_v34 = vmul.f32 0.044715, %v2883_v14  ;;  %v2295_v29 = vadd.f32 %v2294_v15, %v11110_v45  ;;  %v4948_v58 = vld [vmem:[%s12266_s4] sm:$0x3] }
 0x4ae   :  { %v2383_v57 = vpop.f32.mrf.mxu3  ;;  %v2118_v11 = vpop.f32.mrf.mxu0  ;;  %v4659_v10 = vmul.f32 %v4403_v38, %v11665_v49  ;;  %8894 = vtanh.f32 %v3643_v39  ;;  %v4154_v12 = vadd.f32 1.0, %v8891_v6  ;;  %v11742_v15 = vperm.slane %v4948_v58, 0 }
 0x4af   :  { %v3146_v33 = vmul.f32 0.044715, %v2890_v44  ;;  %v2119_v60 = vadd.f32 %v2118_v11, %v11095_v52  ;;  %v3395_v48 = vadd.f32 %v3139_v34, %v11704_v63  ;;  %v11728_v55 = vadd.f32 %v2383_v57, %v2295_v29 }
 0x4b0   :  { %v2207_v18 = vpop.f32.mrf.mxu1  ;;  %v11736_v52 = vpack.c.bf16 %v4659_v10, %v4651_v2  ;;  %v4410_v34 = vmul.f32 0.5, %v4154_v12 }
 0x4b1   :  { %v3402_v0 = vadd.f32 %v3146_v33, %v11707_v53  ;;  %v11734_v14 = vadd.f32 %v2207_v18, %v2119_v60  ;;  %v3651_v44 = vmul.f32 0.7978846, %v3395_v48  ;;  %v2635_v25 = vmul.f32 %v11728_v55, %v11728_v55 }
 0x4b2   :  { %v4666_v12 = vmul.f32 %v4410_v34, %v11669_v46  ;;  %v12542_v34 = vld [vmem:[#allocation66_spill] sm:$0xff] }
 0x4b3   :  { %v8893_v49 = vpop.eup %8892  ;;  %v3658_v61 = vmul.f32 0.7978846, %v3402_v0  ;;  %v2642_v39 = vmul.f32 %v11734_v14, %v11734_v14  ;;  %v2891_v38 = vmul.f32 %v2635_v25, %v11728_v55  ;;  %8896 = vtanh.f32 %v3651_v44 }
 0x4b4   :  { %v4162_v6 = vadd.f32 1.0, %v8893_v49  ;;  %v2296_v57 = vpop.f32.mrf.mxu2  ;;  %v8895_v11 = vpop.eup %8894 }
 0x4b5   :  { %v2898_v29 = vmul.f32 %v2642_v39, %v11734_v14  ;;  %v3147_v33 = vmul.f32 0.044715, %v2891_v38  ;;  %v2297_v60 = vadd.f32 %v2296_v57, %v11110_v45  ;;  %8898 = vtanh.f32 %v3658_v61  ;;  %v12538_v45 = vld [vmem:[#allocation33_spill] sm:$0xff] }
 0x4b6   :  { %v2385_v18 = vpop.f32.mrf.mxu3  ;;  %v5603_v2 = vpop.f32.mrf.mxu0  ;;  %v4418_v10 = vmul.f32 0.5, %v4162_v6  ;;  %v4155_v57 = vadd.f32 1.0, %v8895_v11  ;;  %v7889_v11 = vld [vmem:[#allocation8 + $0x220] sm:$0xf] }
 0x4b7   :  { %v3154_v48 = vmul.f32 0.044715, %v2898_v29  ;;  %v5604_v58 = vadd.f32 %v5603_v2, %v11742_v15  ;;  %v3403_v25 = vadd.f32 %v3147_v33, %v11728_v55  ;;  %v11749_v49 = vadd.f32 %v2385_v18, %v2297_v60  ;;  %v12539_v2 = vld [vmem:[#allocation34_spill] sm:$0xff]  ;;  %v12540_v33 = vld [vmem:[#allocation65_spill] sm:$0xff]  ;;  %v8356_v18 = vld [vmem:[#allocation8 + $0x324] sm:$0xf0] }
 0x4b8   :  { %v5692_v0 = vpop.f32.mrf.mxu1  ;;  %v4674_v44 = vmul.f32 %v4418_v10, %v11691_v24  ;;  %v8017_v24 = vld [vmem:[#allocation8 + $0x320] sm:$0xf]  ;;  %v4411_v47 = vmul.f32 0.5, %v4155_v57  ;;  %v8340_v57 = vld [vmem:[#allocation8 + $0x2a4] sm:$0xf0] }
 0x4b9   :  { %v3410_v39 = vadd.f32 %v3154_v48, %v11734_v14  ;;  %v5693_v38 = vadd.f32 %v5692_v0, %v5604_v58  ;;  %5642 = vmatmul.bf16.gmra.mxu0 %v12538_v45  ;;  %v8897_v6 = vpop.eup %8896  ;;  %v3659_v61 = vmul.f32 0.7978846, %v3403_v25  ;;  %v2643_v29 = vmul.f32 %v11749_v49, %v11749_v49  ;;  %5820 = vmatmul.bf16.gmra.mxu2 %v12540_v33  ;;  %v8324_v58 = vld [vmem:[#allocation8 + $0x224] sm:$0xf0]  ;;  %v8081_v0 = vld [vmem:[#allocation8 + $0x3a0] sm:$0xf] }
 0x4ba   :  { %v11759_v60 = vpack.c.bf16 %v4674_v44, %v4666_v12  ;;  %v8018_v48 = vor.u32 %v8356_v18, %v8017_v24  ;;  %v7890_v27 = vor.u32 %v8324_v58, %v7889_v11  ;;  %v8082_v33 = vor.u32 %v8372_v50, %v8081_v0 }
 0x4bb   :  { %5731 = vmatmul.bf16.gmra.mxu1 %v12539_v2  ;;  %v3666_v46 = vmul.f32 0.7978846, %v3410_v39  ;;  %5909 = vmatmul.bf16.gmra.mxu3 %v12542_v34  ;;  %v2899_v10 = vmul.f32 %v2643_v29, %v11749_v49  ;;  %v8899_v25 = vpop.eup %8898  ;;  %v4163_v2 = vadd.f32 1.0, %v8897_v6  ;;  %v7953_v6 = vld [vmem:[#allocation8 + $0x2a0] sm:$0xf] }
 0x4bc   :  { %12541 = vst [vmem:[#allocation124_spill] sm:$0xff] %v11759_v60  ;;  %v5781_v45 = vpop.f32.mrf.mxu2  ;;  %6133 = vmatpush.bf16.msrb.mxu2 %v8018_v48  ;;  %5955 = vmatpush.bf16.msrb.mxu0 %v7890_v27 }
 0x4bd   :  { %8900 = vtanh.f32 %v3666_v46  ;;  %v3155_v12 = vmul.f32 0.044715, %v2899_v10  ;;  %v5782_v44 = vadd.f32 %v5781_v45, %v5693_v38  ;;  %v4419_v18 = vmul.f32 0.5, %v4163_v2  ;;  %6222 = vmatpush.bf16.msrb.mxu3 %v8082_v33 }
 0x4be   :  { %8902 = vtanh.f32 %v3659_v61  ;;  %v5870_v39 = vpop.f32.mrf.mxu3  ;;  %v5605_v34 = vpop.f32.mrf.mxu0  ;;  %v4170_v46 = vadd.f32 1.0, %v8899_v25  ;;  %v7954_v10 = vor.u32 %v8340_v57, %v7953_v6  ;;  %v4667_v38 = vmul.f32 %v4411_v47, %v11688_v20  ;;  %v12545_v6 = vld [vmem:[#allocation36_spill] sm:$0xff]  ;;  %v12546_v57 = vld [vmem:[#allocation67_spill] sm:$0xff] }
 0x4bf   :  { %v5606_v29 = vadd.f32 %v5605_v34, %v11742_v15  ;;  %v3411_v28 = vadd.f32 %v3155_v12, %v11749_v49  ;;  %v11765_v60 = vadd.f32 %v5870_v39, %v5782_v44  ;;  %v4675_v45 = vmul.f32 %v4419_v18, %v11704_v63 }
 0x4c0   :  { %v5694_v24 = vpop.f32.mrf.mxu1  ;;  %6044 = vmatpush.bf16.msrb.mxu1 %v7954_v10  ;;  %v4426_v11 = vmul.f32 0.5, %v4170_v46 }
 0x4c1   :  { %v5695_v61 = vadd.f32 %v5694_v24, %v5606_v29  ;;  %v3667_v50 = vmul.f32 0.7978846, %v3411_v28  ;;  %v11769_v34 = vpack.c.bf16 %v4675_v45, %v4667_v38  ;;  %v12544_v24 = vld [vmem:[#allocation35_spill] sm:$0xff] }
 0x4c2   :  { %v4682_v63 = vmul.f32 %v4426_v11, %v11707_v53 }
 0x4c3   :  { %v8901_v48 = vpop.eup %8900  ;;  %12543 = vst [vmem:[#allocation125_spill] sm:$0xff] %v11769_v34  ;;  %8904 = vtanh.f32 %v3667_v50 }
 0x4c4   :  { %v8903_v27 = vpop.eup %8902  ;;  %v4178_v2 = vadd.f32 1.0, %v8901_v48  ;;  %v5783_v58 = vpop.f32.mrf.mxu2 }
 0x4c5   :  { %v5784_v33 = vadd.f32 %v5783_v58, %v5695_v61  ;;  %v4171_v20 = vadd.f32 1.0, %v8903_v27  ;;  %v12548_v61 = vld [vmem:[#allocation68_spill] sm:$0xff] }
 0x4c6   :  { %v5872_v0 = vpop.f32.mrf.mxu3  ;;  %v5608_v12 = vpop.f32.mrf.mxu0  ;;  %v4434_v25 = vmul.f32 0.5, %v4178_v2 }
 0x4c7   :  { %v5609_v44 = vadd.f32 %v5608_v12, %v11742_v15  ;;  %v11772_v47 = vadd.f32 %v5872_v0, %v5784_v33  ;;  %v4427_v38 = vmul.f32 0.5, %v4171_v20 }
 0x4c8   :  { %v5697_v39 = vpop.f32.mrf.mxu1  ;;  %v4690_v28 = vmul.f32 %v4434_v25, %v11734_v14 }
 0x4c9   :  { %v5698_v29 = vadd.f32 %v5697_v39, %v5609_v44  ;;  %5647 = vmatmul.bf16.gmra.mxu0 %v12544_v24  ;;  %v8905_v18 = vpop.eup %8904  ;;  %5825 = vmatmul.bf16.gmra.mxu2 %v12546_v57  ;;  %v4683_v11 = vmul.f32 %v4427_v38, %v11728_v55  ;;  %v12551_v55 = vld [vmem:[#allocation38_spill] sm:$0xff]  ;;  %v8336_v57 = vld [vmem:[#allocation8 + $0x284] sm:$0xf0] }
 0x4ca   :  { %v11779_v46 = vpack.c.bf16 %v4690_v28, %v4682_v63  ;;  %v4179_v10 = vadd.f32 1.0, %v8905_v18  ;;  %v12553_v38 = vld [vmem:[#allocation70_spill] sm:$0xff] }
 0x4cb   :  { %5736 = vmatmul.bf16.gmra.mxu1 %v12545_v6  ;;  %5914 = vmatmul.bf16.gmra.mxu3 %v12548_v61 }
 0x4cc   :  { %12547 = vst [vmem:[#allocation126_spill] sm:$0xff] %v11779_v46  ;;  %v5786_v45 = vpop.f32.mrf.mxu2  ;;  %v4435_v50 = vmul.f32 0.5, %v4179_v10  ;;  %v12550_v10 = vld [vmem:[#allocation37_spill] sm:$0xff]  ;;  %v7739_v46 = vld [vmem:[#allocation8 + $0xf8] sm:$0xf0] }
 0x4cd   :  { %v5787_v48 = vadd.f32 %v5786_v45, %v5698_v29  ;;  %v8009_v45 = vld [vmem:[#allocation8 + $0x310] sm:$0xf] }
 0x4ce   :  { %v5875_v53 = vpop.f32.mrf.mxu3  ;;  %v5610_v27 = vpop.f32.mrf.mxu0  ;;  %v4691_v58 = vmul.f32 %v4435_v50, %v11749_v49  ;;  %v12552_v49 = vld [vmem:[#allocation69_spill] sm:$0xff]  ;;  %v8354_v50 = vld [vmem:[#allocation8 + $0x314] sm:$0xf0] }
 0x4cf   :  { %v5611_v14 = vadd.f32 %v5610_v27, %v11742_v15  ;;  %v11785_v33 = vadd.f32 %v5875_v53, %v5787_v48  ;;  %v7881_v48 = vld [vmem:[#allocation8 + $0x210] sm:$0xf]  ;;  %v8010_v53 = vor.u32 %v8354_v50, %v8009_v45  ;;  %v8322_v27 = vld [vmem:[#allocation8 + $0x214] sm:$0xf0] }
 0x4d0   :  { %v5699_v2 = vpop.f32.mrf.mxu1  ;;  %v11787_v12 = vpack.c.bf16 %v4691_v58, %v4683_v11  ;;  %v7882_v58 = vor.u32 %v8322_v27, %v7881_v48 }
 0x4d1   :  { %v5700_v0 = vadd.f32 %v5699_v2, %v5611_v14  ;;  %v8073_v14 = vld [vmem:[#allocation8 + $0x390] sm:$0xf]  ;;  %v8370_v2 = vld [vmem:[#allocation8 + $0x394] sm:$0xf0]  ;;  %6134 = vmatpush.bf16.msrb.mxu2 %v8010_v53 }
 0x4d2   :  { %12549 = vst [vmem:[#allocation127_spill] sm:$0xff] %v11787_v12  ;;  %5956 = vmatpush.bf16.msrb.mxu0 %v7882_v58  ;;  %v12555_v58 = vld [vmem:[#allocation40_spill] sm:$0xff] }
 0x4d4   :  { %v5788_v25 = vpop.f32.mrf.mxu2 }
 0x4d5   :  { %v5789_v44 = vadd.f32 %v5788_v25, %v5700_v0  ;;  %v8074_v0 = vor.u32 %v8370_v2, %v8073_v14 }
 0x4d6   :  { %v5877_v39 = vpop.f32.mrf.mxu3  ;;  %v5613_v20 = vpop.f32.mrf.mxu0 }
 0x4d7   :  { %v5614_v63 = vadd.f32 %v5613_v20, %v11742_v15  ;;  %v11790_v29 = vadd.f32 %v5877_v39, %v5789_v44  ;;  %6223 = vmatpush.bf16.msrb.mxu3 %v8074_v0  ;;  %v12556_v0 = vld [vmem:[#allocation71_spill] sm:$0xff] }
 0x4d8   :  { %v5702_v28 = vpop.f32.mrf.mxu1 }
 0x4d9   :  { %v5703_v18 = vadd.f32 %v5702_v28, %v5614_v63  ;;  %5652 = vmatmul.bf16.gmra.mxu0 %v12550_v10  ;;  %5830 = vmatmul.bf16.gmra.mxu2 %v12552_v49  ;;  %v8338_v49 = vld [vmem:[#allocation8 + $0x294] sm:$0xf0] }
 0x4db   :  { %5741 = vmatmul.bf16.gmra.mxu1 %v12551_v55  ;;  %5919 = vmatmul.bf16.gmra.mxu3 %v12553_v38  ;;  %v7945_v38 = vld [vmem:[#allocation8 + $0x290] sm:$0xf] }
 0x4dc   :  { %v5791_v11 = vpop.f32.mrf.mxu2  ;;  %v7946_v50 = vor.u32 %v8338_v49, %v7945_v38 }
 0x4dd   :  { %v5792_v25 = vadd.f32 %v5791_v11, %v5703_v18  ;;  %v12554_v11 = vld [vmem:[#allocation39_spill] sm:$0xff] }
 0x4de   :  { %v5880_v44 = vpop.f32.mrf.mxu3  ;;  %v5615_v39 = vpop.f32.mrf.mxu0  ;;  %6045 = vmatpush.bf16.msrb.mxu1 %v7946_v50 }
 0x4df   :  { %v5616_v20 = vadd.f32 %v5615_v39, %v11742_v15  ;;  %v11797_v28 = vadd.f32 %v5880_v44, %v5792_v25  ;;  %v12557_v25 = vld [vmem:[#allocation72_spill] sm:$0xff] }
 0x4e0   :  { %v5704_v63 = vpop.f32.mrf.mxu1 }
 0x4e1   :  { %v5705_v45 = vadd.f32 %v5704_v63, %v5616_v20 }
 0x4e4   :  { %v5793_v55 = vpop.f32.mrf.mxu2 }
 0x4e5   :  { %v5794_v10 = vadd.f32 %v5793_v55, %v5705_v45 }
 0x4e6   :  { %v5882_v48 = vpop.f32.mrf.mxu3  ;;  %v5618_v27 = vpop.f32.mrf.mxu0 }
 0x4e7   :  { %v5619_v18 = vadd.f32 %v5618_v27, %v11742_v15  ;;  %v11800_v53 = vadd.f32 %v5882_v48, %v5794_v10 }
 0x4e8   :  { %v5707_v14 = vpop.f32.mrf.mxu1 }
 0x4e9   :  { %v5708_v2 = vadd.f32 %v5707_v14, %v5619_v18  ;;  %5657 = vmatmul.bf16.gmra.mxu0 %v12554_v11  ;;  %5835 = vmatmul.bf16.gmra.mxu2 %v12556_v0  ;;  %v8368_v11 = vld [vmem:[#allocation8 + $0x384] sm:$0xf0] }
 0x4eb   :  { %5746 = vmatmul.bf16.gmra.mxu1 %v12555_v58  ;;  %5924 = vmatmul.bf16.gmra.mxu3 %v12557_v25  ;;  %v12558_v58 = vld [vmem:[#allocation41_spill] sm:$0xff] }
 0x4ec   :  { %v5796_v49 = vpop.f32.mrf.mxu2 }
 0x4ed   :  { %v5797_v38 = vadd.f32 %v5796_v49, %v5708_v2  ;;  %v12559_v2 = vld [vmem:[#allocation42_spill] sm:$0xff]  ;;  %v12560_v49 = vld [vmem:[#allocation73_spill] sm:$0xff] }
 0x4ee   :  { %v5885_v44 = vpop.f32.mrf.mxu3  ;;  %v5620_v55 = vpop.f32.mrf.mxu0 }
 0x4ef   :  { %v5621_v39 = vadd.f32 %v5620_v55, %v11742_v15  ;;  %v11807_v63 = vadd.f32 %v5885_v44, %v5797_v38  ;;  %v12561_v55 = vld [vmem:[#allocation74_spill] sm:$0xff]  ;;  %v8001_v38 = vld [vmem:[#allocation8 + $0x300] sm:$0xf]  ;;  %v8352_v44 = vld [vmem:[#allocation8 + $0x304] sm:$0xf0] }
 0x4f0   :  { %v5709_v20 = vpop.f32.mrf.mxu1 }
 0x4f1   :  { %v5710_v10 = vadd.f32 %v5709_v20, %v5621_v39  ;;  %v7873_v39 = vld [vmem:[#allocation8 + $0x200] sm:$0xf]  ;;  %v8002_v20 = vor.u32 %v8352_v44, %v8001_v38 }
 0x4f3   :  { %6135 = vmatpush.bf16.msrb.mxu2 %v8002_v20 }
 0x4f4   :  { %v5798_v45 = vpop.f32.mrf.mxu2 }
 0x4f5   :  { %v5799_v50 = vadd.f32 %v5798_v45, %v5710_v10  ;;  %v8320_v10 = vld [vmem:[#allocation8 + $0x204] sm:$0xf0]  ;;  %v8065_v45 = vld [vmem:[#allocation8 + $0x380] sm:$0xf] }
 0x4f6   :  { %v5887_v48 = vpop.f32.mrf.mxu3  ;;  %v5623_v27 = vpop.f32.mrf.mxu0  ;;  %v7874_v61 = vor.u32 %v8320_v10, %v7873_v39 }
 0x4f7   :  { %v5624_v18 = vadd.f32 %v5623_v27, %v11742_v15  ;;  %v11810_v0 = vadd.f32 %v5887_v48, %v5799_v50  ;;  %v8066_v50 = vor.u32 %v8368_v11, %v8065_v45 }
 0x4f8   :  { %v5712_v14 = vpop.f32.mrf.mxu1  ;;  %5957 = vmatpush.bf16.msrb.mxu0 %v7874_v61  ;;  %v12563_v61 = vld [vmem:[#allocation44_spill] sm:$0xff] }
 0x4f9   :  { %v5713_v25 = vadd.f32 %v5712_v14, %v5624_v18  ;;  %5662 = vmatmul.bf16.gmra.mxu0 %v12558_v58  ;;  %5840 = vmatmul.bf16.gmra.mxu2 %v12560_v49  ;;  %v7937_v49 = vld [vmem:[#allocation8 + $0x280] sm:$0xf] }
 0x4fa   :  { %6224 = vmatpush.bf16.msrb.mxu3 %v8066_v50  ;;  %v7938_v44 = vor.u32 %v8336_v57, %v7937_v49  ;;  %v12564_v50 = vld [vmem:[#allocation75_spill] sm:$0xff] }
 0x4fb   :  { %5751 = vmatmul.bf16.gmra.mxu1 %v12559_v2  ;;  %5929 = vmatmul.bf16.gmra.mxu3 %v12561_v55 }
 0x4fc   :  { %v5801_v27 = vpop.f32.mrf.mxu2  ;;  %6046 = vmatpush.bf16.msrb.mxu1 %v7938_v44 }
 0x4fd   :  { %v5802_v48 = vadd.f32 %v5801_v27, %v5713_v25  ;;  %v12562_v27 = vld [vmem:[#allocation43_spill] sm:$0xff] }
 0x4fe   :  { %v5890_v18 = vpop.f32.mrf.mxu3  ;;  %v5625_v14 = vpop.f32.mrf.mxu0 }
 0x4ff   :  { %v5626_v2 = vadd.f32 %v5625_v14, %v11742_v15  ;;  %v11817_v55 = vadd.f32 %v5890_v18, %v5802_v48  ;;  %v12565_v48 = vld [vmem:[#allocation76_spill] sm:$0xff] }
 0x500   :  { %v5714_v58 = vpop.f32.mrf.mxu1 }
 0x501   :  { %v5715_v38 = vadd.f32 %v5714_v58, %v5626_v2 }
 0x504   :  { %v5803_v6 = vpop.f32.mrf.mxu2 }
 0x505   :  { %v5804_v24 = vadd.f32 %v5803_v6, %v5715_v38 }
 0x506   :  { %v5892_v39 = vpop.f32.mrf.mxu3  ;;  %v5628_v11 = vpop.f32.mrf.mxu0 }
 0x507   :  { %v5629_v25 = vadd.f32 %v5628_v11, %v11742_v15  ;;  %v11820_v20 = vadd.f32 %v5892_v39, %v5804_v24 }
 0x508   :  { %v5717_v10 = vpop.f32.mrf.mxu1 }
 0x509   :  { %v5718_v45 = vadd.f32 %v5717_v10, %v5629_v25  ;;  %5667 = vmatmul.bf16.gmra.mxu0 %v12562_v27  ;;  %5845 = vmatmul.bf16.gmra.mxu2 %v12564_v50  ;;  %v7867_v27 = vld [vmem:[#allocation8 + $0x1f8] sm:$0xf0] }
 0x50b   :  { %5756 = vmatmul.bf16.gmra.mxu1 %v12563_v61  ;;  %5934 = vmatmul.bf16.gmra.mxu3 %v12565_v48  ;;  %v12567_v61 = vld [vmem:[#allocation45_spill] sm:$0xff] }
 0x50c   :  { %v5806_v57 = vpop.f32.mrf.mxu2 }
 0x50d   :  { %v5807_v58 = vadd.f32 %v5806_v57, %v5718_v45  ;;  %v12568_v45 = vld [vmem:[#allocation46_spill] sm:$0xff]  ;;  %v12569_v57 = vld [vmem:[#allocation77_spill] sm:$0xff] }
 0x50e   :  { %v5895_v2 = vpop.f32.mrf.mxu3  ;;  %v5630_v6 = vpop.f32.mrf.mxu0 }
 0x50f   :  { %v5631_v49 = vadd.f32 %v5630_v6, %v11742_v15  ;;  %v11827_v14 = vadd.f32 %v5895_v2, %v5807_v58  ;;  %v12570_v6 = vld [vmem:[#allocation78_spill] sm:$0xff]  ;;  %v8301_v58 = vld [vmem:[#allocation8 + $0x174] sm:$0xf] }
 0x510   :  { %v5719_v18 = vpop.f32.mrf.mxu1  ;;  %v7803_v2 = vld [vmem:[#allocation8 + $0x178] sm:$0xf0] }
 0x511   :  { %v5720_v24 = vadd.f32 %v5719_v18, %v5631_v49  ;;  %v8269_v49 = vld [vmem:[#allocation8 + $0x74] sm:$0xf]  ;;  %v7806_v18 = vor.u32 %v8301_v58, %v7803_v2 }
 0x513   :  { %6484 = vmatpush.bf16.msra.mxu2 %v7806_v18 }
 0x514   :  { %v5808_v38 = vpop.f32.mrf.mxu2 }
 0x515   :  { %v5809_v44 = vadd.f32 %v5808_v38, %v5720_v24  ;;  %v7675_v24 = vld [vmem:[#allocation8 + $0x78] sm:$0xf0]  ;;  %v8317_v38 = vld [vmem:[#allocation8 + $0x1f4] sm:$0xf] }
 0x516   :  { %v5897_v39 = vpop.f32.mrf.mxu3  ;;  %v5633_v11 = vpop.f32.mrf.mxu0  ;;  %v7678_v12 = vor.u32 %v8269_v49, %v7675_v24 }
 0x517   :  { %v5634_v25 = vadd.f32 %v5633_v11, %v11742_v15  ;;  %v11830_v50 = vadd.f32 %v5897_v39, %v5809_v44  ;;  %v7870_v44 = vor.u32 %v8317_v38, %v7867_v27 }
 0x518   :  { %v5722_v10 = vpop.f32.mrf.mxu1  ;;  %6306 = vmatpush.bf16.msra.mxu0 %v7678_v12  ;;  %v12572_v12 = vld [vmem:[#allocation48_spill] sm:$0xff] }
 0x519   :  { %12566 = vst [vmem:[#allocation128_spill] sm:$0xff] %v11830_v50  ;;  %v5723_v48 = vadd.f32 %v5722_v10, %v5634_v25  ;;  %5672 = vmatmul.bf16.gmra.mxu0 %v12567_v61  ;;  %5850 = vmatmul.bf16.gmra.mxu2 %v12569_v57  ;;  %v8285_v57 = vld [vmem:[#allocation8 + $0xf4] sm:$0xf] }
 0x51a   :  { %6573 = vmatpush.bf16.msra.mxu3 %v7870_v44  ;;  %v7742_v2 = vor.u32 %v8285_v57, %v7739_v46  ;;  %v12573_v44 = vld [vmem:[#allocation79_spill] sm:$0xff] }
 0x51b   :  { %5761 = vmatmul.bf16.gmra.mxu1 %v12568_v45  ;;  %5939 = vmatmul.bf16.gmra.mxu3 %v12570_v6 }
 0x51c   :  { %v5811_v11 = vpop.f32.mrf.mxu2  ;;  %6395 = vmatpush.bf16.msra.mxu1 %v7742_v2 }
 0x51d   :  { %v5812_v39 = vadd.f32 %v5811_v11, %v5723_v48  ;;  %v12571_v11 = vld [vmem:[#allocation47_spill] sm:$0xff] }
 0x51e   :  { %v5900_v25 = vpop.f32.mrf.mxu3  ;;  %v5635_v10 = vpop.f32.mrf.mxu0 }
 0x51f   :  { %v5636_v45 = vadd.f32 %v5635_v10, %v11742_v15  ;;  %v11837_v6 = vadd.f32 %v5900_v25, %v5812_v39  ;;  %v12574_v39 = vld [vmem:[#allocation80_spill] sm:$0xff] }
 0x520   :  { %v5724_v61 = vpop.f32.mrf.mxu1 }
 0x521   :  { %v5725_v58 = vadd.f32 %v5724_v61, %v5636_v45 }
 0x524   :  { %v5813_v34 = vpop.f32.mrf.mxu2 }
 0x525   :  { %v5814_v50 = vadd.f32 %v5813_v34, %v5725_v58 }
 0x526   :  { %v5902_v49 = vpop.f32.mrf.mxu3  ;;  %v5638_v27 = vpop.f32.mrf.mxu0 }
 0x527   :  { %v5639_v48 = vadd.f32 %v5638_v27, %v11742_v15  ;;  %v11840_v18 = vadd.f32 %v5902_v49, %v5814_v50 }
 0x528   :  { %v5727_v24 = vpop.f32.mrf.mxu1 }
 0x529   :  { %v5728_v38 = vadd.f32 %v5727_v24, %v5639_v48  ;;  %5677 = vmatmul.bf16.gmra.mxu0 %v12571_v11  ;;  %5855 = vmatmul.bf16.gmra.mxu2 %v12573_v44  ;;  %v7731_v11 = vld [vmem:[#allocation8 + $0xe8] sm:$0xf0] }
 0x52b   :  { %5766 = vmatmul.bf16.gmra.mxu1 %v12572_v12  ;;  %5944 = vmatmul.bf16.gmra.mxu3 %v12574_v39  ;;  %v12577_v12 = vld [vmem:[#allocation81_spill] sm:$0xff] }
 0x52c   :  { %v5816_v46 = vpop.f32.mrf.mxu2 }
 0x52d   :  { %v5817_v61 = vadd.f32 %v5816_v46, %v5728_v38  ;;  %v12578_v38 = vld [vmem:[#allocation82_spill] sm:$0xff]  ;;  %v8299_v46 = vld [vmem:[#allocation8 + $0x164] sm:$0xf] }
 0x52e   :  { %v5905_v45 = vpop.f32.mrf.mxu3  ;;  %v5640_v34 = vpop.f32.mrf.mxu0 }
 0x52f   :  { %v5641_v57 = vadd.f32 %v5640_v34, %v11742_v15  ;;  %v11847_v10 = vadd.f32 %v5905_v45, %v5817_v61  ;;  %v7795_v61 = vld [vmem:[#allocation8 + $0x168] sm:$0xf0]  ;;  %v8267_v45 = vld [vmem:[#allocation8 + $0x64] sm:$0xf] }
 0x530   :  { %v5729_v25 = vpop.f32.mrf.mxu1  ;;  %v7798_v34 = vor.u32 %v8299_v46, %v7795_v61 }
 0x531   :  { %12575 = vst [vmem:[#allocation129_spill] sm:$0xff] %v11847_v10  ;;  %v5730_v50 = vadd.f32 %v5729_v25, %v5641_v57  ;;  %v7667_v57 = vld [vmem:[#allocation8 + $0x68] sm:$0xf0]  ;;  %v8315_v25 = vld [vmem:[#allocation8 + $0x1e4] sm:$0xf] }
 0x532   :  { %6485 = vmatpush.bf16.msra.mxu2 %v7798_v34 }
 0x534   :  { %v5818_v58 = vpop.f32.mrf.mxu2 }
 0x535   :  { %v5819_v2 = vadd.f32 %v5818_v58, %v5730_v50  ;;  %v7859_v50 = vld [vmem:[#allocation8 + $0x1e8] sm:$0xf0] }
 0x536   :  { %v5907_v49 = vpop.f32.mrf.mxu3  ;;  %v5643_v27 = vpop.f32.mrf.mxu0 }
 0x537   :  { %v5644_v48 = vadd.f32 %v5643_v27, %v11742_v15  ;;  %v11850_v44 = vadd.f32 %v5907_v49, %v5819_v2  ;;  %v7670_v27 = vor.u32 %v8267_v45, %v7667_v57  ;;  %v7862_v2 = vor.u32 %v8315_v25, %v7859_v50 }
 0x538   :  { %v5732_v24 = vpop.f32.mrf.mxu1 }
 0x539   :  { %12576 = vst [vmem:[#allocation130_spill] sm:$0xff] %v11850_v44  ;;  %v5733_v39 = vadd.f32 %v5732_v24, %v5644_v48  ;;  %5958 = vmatmul.bf16.vlgmr.msrb.gmra.mxu0 %v12577_v12  ;;  %6136 = vmatmul.bf16.vlgmr.msrb.gmra.mxu2 %v11192_v23  ;;  %v8283_v23 = vld [vmem:[#allocation8 + $0xe4] sm:$0xf] }
 0x53a   :  { %6307 = vmatpush.bf16.msra.mxu0 %v7670_v27  ;;  %6574 = vmatpush.bf16.msra.mxu3 %v7862_v2  ;;  %v7734_v61 = vor.u32 %v8283_v23, %v7731_v11  ;;  %v12580_v27 = vld [vmem:[#allocation84_spill] sm:$0xff] }
 0x53b   :  { %6047 = vmatmul.bf16.vlgmr.msrb.gmra.mxu1 %v12578_v38  ;;  %6225 = vmatmul.bf16.vlgmr.msrb.gmra.mxu3 %v11210_v26 }
 0x53c   :  { %v5821_v58 = vpop.f32.mrf.mxu2  ;;  %6396 = vmatpush.bf16.msra.mxu1 %v7734_v61 }
 0x53d   :  { %v5822_v49 = vadd.f32 %v5821_v58, %v5733_v39  ;;  %v12579_v58 = vld [vmem:[#allocation83_spill] sm:$0xff] }
 0x53e   :  { %v5910_v48 = vpop.f32.mrf.mxu3  ;;  %v5645_v24 = vpop.f32.mrf.mxu0 }
 0x53f   :  { %v5646_v38 = vadd.f32 %v5645_v24, %v11742_v15  ;;  %v11857_v26 = vadd.f32 %v5910_v48, %v5822_v49 }
 0x540   :  { %v5734_v12 = vpop.f32.mrf.mxu1 }
 0x541   :  { %v5735_v46 = vadd.f32 %v5734_v12, %v5646_v38 }
 0x544   :  { %v5823_v44 = vpop.f32.mrf.mxu2 }
 0x545   :  { %v5824_v10 = vadd.f32 %v5823_v44, %v5735_v46 }
 0x546   :  { %v5912_v45 = vpop.f32.mrf.mxu3  ;;  %v5648_v57 = vpop.f32.mrf.mxu0 }
 0x547   :  { %v5649_v39 = vadd.f32 %v5648_v57, %v11742_v15  ;;  %v11860_v34 = vadd.f32 %v5912_v45, %v5824_v10 }
 0x548   :  { %v5737_v25 = vpop.f32.mrf.mxu1 }
 0x549   :  { %v5738_v50 = vadd.f32 %v5737_v25, %v5649_v39  ;;  %5963 = vmatmul.bf16.gmra.mxu0 %v12579_v58  ;;  %6141 = vmatmul.bf16.gmra.mxu2 %v11239_v32  ;;  %v7723_v32 = vld [vmem:[#allocation8 + $0xd8] sm:$0xf0] }
 0x54b   :  { %6052 = vmatmul.bf16.gmra.mxu1 %v12580_v27  ;;  %6230 = vmatmul.bf16.gmra.mxu3 %v11253_v13  ;;  %v12581_v13 = vld [vmem:[#allocation85_spill] sm:$0xff] }
 0x54c   :  { %v5826_v23 = vpop.f32.mrf.mxu2 }
 0x54d   :  { %v5827_v11 = vadd.f32 %v5826_v23, %v5738_v50  ;;  %v12582_v50 = vld [vmem:[#allocation86_spill] sm:$0xff]  ;;  %v8297_v23 = vld [vmem:[#allocation8 + $0x154] sm:$0xf] }
 0x54e   :  { %v5915_v12 = vpop.f32.mrf.mxu3  ;;  %v5650_v44 = vpop.f32.mrf.mxu0 }
 0x54f   :  { %v5651_v38 = vadd.f32 %v5650_v44, %v11742_v15  ;;  %v11867_v49 = vadd.f32 %v5915_v12, %v5827_v11  ;;  %v7787_v11 = vld [vmem:[#allocation8 + $0x158] sm:$0xf0]  ;;  %v8265_v12 = vld [vmem:[#allocation8 + $0x54] sm:$0xf] }
 0x550   :  { %v5739_v2 = vpop.f32.mrf.mxu1  ;;  %v7790_v44 = vor.u32 %v8297_v23, %v7787_v11 }
 0x551   :  { %v5740_v10 = vadd.f32 %v5739_v2, %v5651_v38  ;;  %v7659_v38 = vld [vmem:[#allocation8 + $0x58] sm:$0xf0]  ;;  %v8313_v2 = vld [vmem:[#allocation8 + $0x1d4] sm:$0xf] }
 0x552   :  { %6486 = vmatpush.bf16.msra.mxu2 %v7790_v44 }
 0x554   :  { %v5828_v48 = vpop.f32.mrf.mxu2 }
 0x555   :  { %v5829_v24 = vadd.f32 %v5828_v48, %v5740_v10  ;;  %v7851_v10 = vld [vmem:[#allocation8 + $0x1d8] sm:$0xf0] }
 0x556   :  { %v5917_v46 = vpop.f32.mrf.mxu3  ;;  %v5653_v61 = vpop.f32.mrf.mxu0 }
 0x557   :  { %v5654_v45 = vadd.f32 %v5653_v61, %v11742_v15  ;;  %v11870_v39 = vadd.f32 %v5917_v46, %v5829_v24  ;;  %v7662_v61 = vor.u32 %v8265_v12, %v7659_v38  ;;  %v7854_v24 = vor.u32 %v8313_v2, %v7851_v10 }
 0x558   :  { %v5742_v57 = vpop.f32.mrf.mxu1 }
 0x559   :  { %v5743_v25 = vadd.f32 %v5742_v57, %v5654_v45  ;;  %5968 = vmatmul.bf16.gmra.mxu0 %v12581_v13  ;;  %6146 = vmatmul.bf16.gmra.mxu2 %v11276_v21  ;;  %v8281_v21 = vld [vmem:[#allocation8 + $0xd4] sm:$0xf] }
 0x55a   :  { %6308 = vmatpush.bf16.msra.mxu0 %v7662_v61  ;;  %6575 = vmatpush.bf16.msra.mxu3 %v7854_v24  ;;  %v7726_v11 = vor.u32 %v8281_v21, %v7723_v32  ;;  %v12584_v61 = vld [vmem:[#allocation88_spill] sm:$0xff] }
 0x55b   :  { %6057 = vmatmul.bf16.gmra.mxu1 %v12582_v50  ;;  %6235 = vmatmul.bf16.gmra.mxu3 %v11293_v8 }
 0x55c   :  { %v5831_v48 = vpop.f32.mrf.mxu2  ;;  %6397 = vmatpush.bf16.msra.mxu1 %v7726_v11 }
 0x55d   :  { %v5832_v46 = vadd.f32 %v5831_v48, %v5743_v25  ;;  %v12583_v48 = vld [vmem:[#allocation87_spill] sm:$0xff] }
 0x55e   :  { %v5920_v45 = vpop.f32.mrf.mxu3  ;;  %v5655_v57 = vpop.f32.mrf.mxu0 }
 0x55f   :  { %v5656_v50 = vadd.f32 %v5655_v57, %v11742_v15  ;;  %v11877_v8 = vadd.f32 %v5920_v45, %v5832_v46 }
 0x560   :  { %v5744_v13 = vpop.f32.mrf.mxu1 }
 0x561   :  { %v5745_v23 = vadd.f32 %v5744_v13, %v5656_v50 }
 0x564   :  { %v5833_v27 = vpop.f32.mrf.mxu2 }
 0x565   :  { %v5834_v58 = vadd.f32 %v5833_v27, %v5745_v23 }
 0x566   :  { %v5922_v12 = vpop.f32.mrf.mxu3  ;;  %v5658_v38 = vpop.f32.mrf.mxu0 }
 0x567   :  { %v5659_v25 = vadd.f32 %v5658_v38, %v11742_v15  ;;  %v11880_v44 = vadd.f32 %v5922_v12, %v5834_v58 }
 0x568   :  { %v5747_v2 = vpop.f32.mrf.mxu1 }
 0x569   :  { %v5748_v10 = vadd.f32 %v5747_v2, %v5659_v25  ;;  %5973 = vmatmul.bf16.gmra.mxu0 %v12583_v48  ;;  %6151 = vmatmul.bf16.gmra.mxu2 %v11319_v9  ;;  %v7715_v9 = vld [vmem:[#allocation8 + $0xc8] sm:$0xf0] }
 0x56b   :  { %6062 = vmatmul.bf16.gmra.mxu1 %v12584_v61  ;;  %6240 = vmatmul.bf16.gmra.mxu3 %v11333_v17  ;;  %v12585_v17 = vld [vmem:[#allocation89_spill] sm:$0xff] }
 0x56c   :  { %v5836_v32 = vpop.f32.mrf.mxu2 }
 0x56d   :  { %v5837_v13 = vadd.f32 %v5836_v32, %v5748_v10  ;;  %v12586_v10 = vld [vmem:[#allocation90_spill] sm:$0xff]  ;;  %v8295_v32 = vld [vmem:[#allocation8 + $0x144] sm:$0xf] }
 0x56e   :  { %v5925_v21 = vpop.f32.mrf.mxu3  ;;  %v5660_v27 = vpop.f32.mrf.mxu0 }
 0x56f   :  { %v5661_v50 = vadd.f32 %v5660_v27, %v11742_v15  ;;  %v11887_v46 = vadd.f32 %v5925_v21, %v5837_v13  ;;  %v7779_v13 = vld [vmem:[#allocation8 + $0x148] sm:$0xf0]  ;;  %v8263_v21 = vld [vmem:[#allocation8 + $0x44] sm:$0xf] }
 0x570   :  { %v5749_v24 = vpop.f32.mrf.mxu1  ;;  %v7782_v27 = vor.u32 %v8295_v32, %v7779_v13 }
 0x571   :  { %v5750_v58 = vadd.f32 %v5749_v24, %v5661_v50  ;;  %v7651_v50 = vld [vmem:[#allocation8 + $0x48] sm:$0xf0]  ;;  %v8311_v24 = vld [vmem:[#allocation8 + $0x1c4] sm:$0xf] }
 0x572   :  { %6487 = vmatpush.bf16.msra.mxu2 %v7782_v27 }
 0x574   :  { %v5838_v45 = vpop.f32.mrf.mxu2 }
 0x575   :  { %v5839_v57 = vadd.f32 %v5838_v45, %v5750_v58  ;;  %v7843_v58 = vld [vmem:[#allocation8 + $0x1c8] sm:$0xf0] }
 0x576   :  { %v5927_v23 = vpop.f32.mrf.mxu3  ;;  %v5663_v11 = vpop.f32.mrf.mxu0 }
 0x577   :  { %v5664_v12 = vadd.f32 %v5663_v11, %v11742_v15  ;;  %v11890_v25 = vadd.f32 %v5927_v23, %v5839_v57  ;;  %v7654_v11 = vor.u32 %v8263_v21, %v7651_v50  ;;  %v7846_v57 = vor.u32 %v8311_v24, %v7843_v58 }
 0x578   :  { %v5752_v38 = vpop.f32.mrf.mxu1 }
 0x579   :  { %v5753_v2 = vadd.f32 %v5752_v38, %v5664_v12  ;;  %5978 = vmatmul.bf16.gmra.mxu0 %v12585_v17  ;;  %6156 = vmatmul.bf16.gmra.mxu2 %v11356_v31  ;;  %v8279_v31 = vld [vmem:[#allocation8 + $0xc4] sm:$0xf] }
 0x57a   :  { %6309 = vmatpush.bf16.msra.mxu0 %v7654_v11  ;;  %6576 = vmatpush.bf16.msra.mxu3 %v7846_v57  ;;  %v7718_v13 = vor.u32 %v8279_v31, %v7715_v9 }
 0x57b   :  { %6067 = vmatmul.bf16.gmra.mxu1 %v12586_v10  ;;  %6245 = vmatmul.bf16.gmra.mxu3 %v11373_v22 }
 0x57c   :  { %v5841_v45 = vpop.f32.mrf.mxu2  ;;  %6398 = vmatpush.bf16.msra.mxu1 %v7718_v13 }
 0x57d   :  { %v5842_v23 = vadd.f32 %v5841_v45, %v5753_v2 }
 0x57e   :  { %v5930_v12 = vpop.f32.mrf.mxu3  ;;  %v5665_v38 = vpop.f32.mrf.mxu0 }
 0x57f   :  { %v5666_v10 = vadd.f32 %v5665_v38, %v11742_v15  ;;  %v11897_v22 = vadd.f32 %v5930_v12, %v5842_v23 }
 0x580   :  { %v5754_v17 = vpop.f32.mrf.mxu1 }
 0x581   :  { %v5755_v32 = vadd.f32 %v5754_v17, %v5666_v10 }
 0x584   :  { %v5843_v61 = vpop.f32.mrf.mxu2 }
 0x585   :  { %v5844_v48 = vadd.f32 %v5843_v61, %v5755_v32 }
 0x586   :  { %v5932_v21 = vpop.f32.mrf.mxu3  ;;  %v5668_v50 = vpop.f32.mrf.mxu0 }
 0x587   :  { %v5669_v2 = vadd.f32 %v5668_v50, %v11742_v15  ;;  %v11900_v27 = vadd.f32 %v5932_v21, %v5844_v48 }
 0x588   :  { %v5757_v24 = vpop.f32.mrf.mxu1 }
 0x589   :  { %v5758_v58 = vadd.f32 %v5757_v24, %v5669_v2  ;;  %5983 = vmatmul.bf16.gmra.mxu0 %v10755_v7  ;;  %6161 = vmatmul.bf16.gmra.mxu2 %v11399_v5  ;;  %v12587_v2 = vld [vmem:[#allocation91_spill] sm:$0xff]  ;;  %v12588_v24 = vld [vmem:[#allocation92_spill] sm:$0xff] }
 0x58b   :  { %6072 = vmatmul.bf16.gmra.mxu1 %v10769_v51  ;;  %6250 = vmatmul.bf16.gmra.mxu3 %v11413_v59 }
 0x58c   :  { %v5846_v9 = vpop.f32.mrf.mxu2 }
 0x58d   :  { %v5847_v17 = vadd.f32 %v5846_v9, %v5758_v58  ;;  %v8293_v58 = vld [vmem:[#allocation8 + $0x134] sm:$0xf]  ;;  %v7771_v9 = vld [vmem:[#allocation8 + $0x138] sm:$0xf0] }
 0x58e   :  { %v5935_v31 = vpop.f32.mrf.mxu3  ;;  %v5670_v61 = vpop.f32.mrf.mxu0 }
 0x58f   :  { %v5671_v10 = vadd.f32 %v5670_v61, %v11742_v15  ;;  %v11907_v11 = vadd.f32 %v5935_v31, %v5847_v17  ;;  %v8261_v17 = vld [vmem:[#allocation8 + $0x34] sm:$0xf]  ;;  %v7774_v31 = vor.u32 %v8293_v58, %v7771_v9  ;;  %v7643_v61 = vld [vmem:[#allocation8 + $0x38] sm:$0xf0] }
 0x590   :  { %v5759_v45 = vpop.f32.mrf.mxu1  ;;  %v7707_v58 = vld [vmem:[#allocation8 + $0xb8] sm:$0xf0] }
 0x591   :  { %v5760_v48 = vadd.f32 %v5759_v45, %v5671_v10  ;;  %v8309_v10 = vld [vmem:[#allocation8 + $0x1b4] sm:$0xf]  ;;  %v7835_v45 = vld [vmem:[#allocation8 + $0x1b8] sm:$0xf0]  ;;  %6488 = vmatpush.bf16.msra.mxu2 %v7774_v31 }
 0x594   :  { %v5848_v57 = vpop.f32.mrf.mxu2 }
 0x595   :  { %v5849_v23 = vadd.f32 %v5848_v57, %v5760_v48  ;;  %v7646_v57 = vor.u32 %v8261_v17, %v7643_v61 }
 0x596   :  { %v5937_v12 = vpop.f32.mrf.mxu3  ;;  %v5673_v38 = vpop.f32.mrf.mxu0 }
 0x597   :  { %v5674_v32 = vadd.f32 %v5673_v38, %v11742_v15  ;;  %v11910_v21 = vadd.f32 %v5937_v12, %v5849_v23  ;;  %v7838_v23 = vor.u32 %v8309_v10, %v7835_v45  ;;  %6310 = vmatpush.bf16.msra.mxu0 %v7646_v57 }
 0x598   :  { %v5762_v13 = vpop.f32.mrf.mxu1 }
 0x599   :  { %v5763_v50 = vadd.f32 %v5762_v13, %v5674_v32  ;;  %5988 = vmatmul.bf16.gmra.mxu0 %v12587_v2  ;;  %6166 = vmatmul.bf16.gmra.mxu2 %v11436_v37  ;;  %v8277_v2 = vld [vmem:[#allocation8 + $0xb4] sm:$0xf] }
 0x59a   :  { %6577 = vmatpush.bf16.msra.mxu3 %v7838_v23  ;;  %v7710_v9 = vor.u32 %v8277_v2, %v7707_v58 }
 0x59b   :  { %6077 = vmatmul.bf16.gmra.mxu1 %v12588_v24  ;;  %6255 = vmatmul.bf16.gmra.mxu3 %v11453_v40 }
 0x59c   :  { %v5851_v48 = vpop.f32.mrf.mxu2  ;;  %6399 = vmatpush.bf16.msra.mxu1 %v7710_v9 }
 0x59d   :  { %v5852_v12 = vadd.f32 %v5851_v48, %v5763_v50 }
 0x59e   :  { %v5940_v38 = vpop.f32.mrf.mxu3  ;;  %v5675_v32 = vpop.f32.mrf.mxu0 }
 0x59f   :  { %v5676_v13 = vadd.f32 %v5675_v32, %v11742_v15  ;;  %v11917_v40 = vadd.f32 %v5940_v38, %v5852_v12 }
 0x5a0   :  { %v5764_v24 = vpop.f32.mrf.mxu1 }
 0x5a1   :  { %v5765_v37 = vadd.f32 %v5764_v24, %v5676_v13 }
 0x5a4   :  { %v5853_v59 = vpop.f32.mrf.mxu2 }
 0x5a5   :  { %v5854_v5 = vadd.f32 %v5853_v59, %v5765_v37 }
 0x5a6   :  { %v5942_v17 = vpop.f32.mrf.mxu3  ;;  %v5678_v61 = vpop.f32.mrf.mxu0 }
 0x5a7   :  { %v5679_v50 = vadd.f32 %v5678_v61, %v11742_v15  ;;  %v11920_v31 = vadd.f32 %v5942_v17, %v5854_v5  ;;  %v7763_v61 = vld [vmem:[#allocation8 + $0x128] sm:$0xf0] }
 0x5a8   :  { %v5767_v10 = vpop.f32.mrf.mxu1 }
 0x5a9   :  { %v5768_v45 = vadd.f32 %v5767_v10, %v5679_v50  ;;  %5993 = vmatmul.bf16.gmra.mxu0 %v10835_v4  ;;  %6171 = vmatmul.bf16.gmra.mxu2 %v11479_v19  ;;  %v8259_v50 = vld [vmem:[#allocation8 + $0x24] sm:$0xf] }
 0x5ab   :  { %6082 = vmatmul.bf16.gmra.mxu1 %v10849_v41  ;;  %6260 = vmatmul.bf16.gmra.mxu3 %v11493_v16 }
 0x5ac   :  { %v5856_v2 = vpop.f32.mrf.mxu2 }
 0x5ad   :  { %v5857_v24 = vadd.f32 %v5856_v2, %v5768_v45  ;;  %v7635_v2 = vld [vmem:[#allocation8 + $0x28] sm:$0xf0] }
 0x5ae   :  { %v5945_v48 = vpop.f32.mrf.mxu3  ;;  %v5680_v59 = vpop.f32.mrf.mxu0 }
 0x5af   :  { %v5681_v37 = vadd.f32 %v5680_v59, %v11742_v15  ;;  %v11927_v23 = vadd.f32 %v5945_v48, %v5857_v24  ;;  %v8291_v15 = vld [vmem:[#allocation8 + $0x124] sm:$0xf]  ;;  %v7827_v48 = vld [vmem:[#allocation8 + $0x1a8] sm:$0xf0] }
 0x5b0   :  { %v5769_v57 = vpop.f32.mrf.mxu1  ;;  %v7766_v45 = vor.u32 %v8291_v15, %v7763_v61  ;;  %v8307_v24 = vld [vmem:[#allocation8 + $0x1a4] sm:$0xf] }
 0x5b1   :  { %v5770_v5 = vadd.f32 %v5769_v57, %v5681_v37  ;;  %v7638_v37 = vor.u32 %v8259_v50, %v7635_v2  ;;  %v7830_v57 = vor.u32 %v8307_v24, %v7827_v48 }
 0x5b2   :  { %6489 = vmatpush.bf16.msra.mxu2 %v7766_v45 }
 0x5b3   :  { %6311 = vmatpush.bf16.msra.mxu0 %v7638_v37  ;;  %6578 = vmatpush.bf16.msra.mxu3 %v7830_v57 }
 0x5b4   :  { %v5858_v12 = vpop.f32.mrf.mxu2 }
 0x5b5   :  { %v5859_v38 = vadd.f32 %v5858_v12, %v5770_v5 }
 0x5b6   :  { %v5947_v32 = vpop.f32.mrf.mxu3  ;;  %v5959_v13 = vpop.f32.mrf.mxu0 }
 0x5b7   :  { %v11929_v9 = vadd.f32 %v5947_v32, %v5859_v38  ;;  %v5960_v17 = vadd.f32 %v5959_v13, %v11765_v60 }
 0x5b8   :  { %v6048_v58 = vpop.f32.mrf.mxu1 }
 0x5b9   :  { %5998 = vmatmul.bf16.gmra.mxu0 %v10872_v30  ;;  %6176 = vmatmul.bf16.gmra.mxu2 %v11516_v56  ;;  %v6049_v10 = vadd.f32 %v6048_v58, %v5960_v17  ;;  %v7699_v58 = vld [vmem:[#allocation8 + $0xa8] sm:$0xf0] }
 0x5bb   :  { %6087 = vmatmul.bf16.gmra.mxu1 %v10889_v62  ;;  %6265 = vmatmul.bf16.gmra.mxu3 %v11533_v42  ;;  %v8275_v42 = vld [vmem:[#allocation8 + $0xa4] sm:$0xf] }
 0x5bc   :  { %v6137_v59 = vpop.f32.mrf.mxu2  ;;  %v7702_v17 = vor.u32 %v8275_v42, %v7699_v58 }
 0x5bd   :  { %v6138_v60 = vadd.f32 %v6137_v59, %v6049_v10 }
 0x5be   :  { %v6226_v5 = vpop.f32.mrf.mxu3  ;;  %v5961_v12 = vpop.f32.mrf.mxu0  ;;  %6400 = vmatpush.bf16.msra.mxu1 %v7702_v17 }
 0x5bf   :  { %v6227_v32 = vadd.f32 %v6226_v5, %v6138_v60  ;;  %v5962_v13 = vadd.f32 %v5961_v12, %v11772_v47 }
 0x5c0   :  { %v6050_v38 = vpop.f32.mrf.mxu1 }
 0x5c1   :  { %7018 = vst [vmem:[#allocation10] sm:$0xff] %v6227_v32  ;;  %v6051_v15 = vadd.f32 %v6050_v38, %v5962_v13 }
 0x5c4   :  { %v6139_v61 = vpop.f32.mrf.mxu2 }
 0x5c5   :  { %v6140_v56 = vadd.f32 %v6139_v61, %v6051_v15  ;;  %v12589_v15 = vld [vmem:[#allocation93_spill] sm:$0xff]  ;;  %v12590_v61 = vld [vmem:[#allocation118_spill] sm:$0xff] }
 0x5c6   :  { %v6228_v50 = vpop.f32.mrf.mxu3  ;;  %v5964_v2 = vpop.f32.mrf.mxu0 }
 0x5c7   :  { %v6229_v24 = vadd.f32 %v6228_v50, %v6140_v56  ;;  %v5965_v45 = vadd.f32 %v5964_v2, %v11785_v33  ;;  %v12591_v50 = vld [vmem:[#allocation119_spill] sm:$0xff]  ;;  %v7755_v2 = vld [vmem:[#allocation8 + $0x118] sm:$0xf0] }
 0x5c8   :  { %v6053_v10 = vpop.f32.mrf.mxu1 }
 0x5c9   :  { %6003 = vmatmul.bf16.gmra.mxu0 %v10915_v43  ;;  %7020 = vst [vmem:[#allocation10 + $0x10] sm:$0xff] %v6229_v24  ;;  %6181 = vmatmul.bf16.gmra.mxu2 %v11559_v36  ;;  %v6054_v42 = vadd.f32 %v6053_v10, %v5965_v45  ;;  %v8257_v10 = vld [vmem:[#allocation8 + $0x14] sm:$0xf] }
 0x5cb   :  { %6092 = vmatmul.bf16.gmra.mxu1 %v10929_v3  ;;  %6270 = vmatmul.bf16.gmra.mxu3 %v11573_v35 }
 0x5cc   :  { %v6142_v47 = vpop.f32.mrf.mxu2 }
 0x5cd   :  { %v6143_v48 = vadd.f32 %v6142_v47, %v6054_v42  ;;  %v7627_v42 = vld [vmem:[#allocation8 + $0x18] sm:$0xf0]  ;;  %v8305_v47 = vld [vmem:[#allocation8 + $0x194] sm:$0xf] }
 0x5ce   :  { %v6231_v59 = vpop.f32.mrf.mxu3  ;;  %v5966_v37 = vpop.f32.mrf.mxu0 }
 0x5cf   :  { %v6232_v60 = vadd.f32 %v6231_v59, %v6143_v48  ;;  %v5967_v56 = vadd.f32 %v5966_v37, %v11790_v29  ;;  %v8289_v29 = vld [vmem:[#allocation8 + $0x114] sm:$0xf]  ;;  %v7819_v48 = vld [vmem:[#allocation8 + $0x198] sm:$0xf0]  ;;  %v7630_v37 = vor.u32 %v8257_v10, %v7627_v42 }
 0x5d0   :  { %v6055_v57 = vpop.f32.mrf.mxu1  ;;  %v7758_v45 = vor.u32 %v8289_v29, %v7755_v2 }
 0x5d1   :  { %7022 = vst [vmem:[#allocation10 + $0x20] sm:$0xff] %v6232_v60  ;;  %v6056_v33 = vadd.f32 %v6055_v57, %v5967_v56  ;;  %6312 = vmatpush.bf16.msra.mxu0 %v7630_v37 }
 0x5d2   :  { %6490 = vmatpush.bf16.msra.mxu2 %v7758_v45 }
 0x5d4   :  { %v6144_v5 = vpop.f32.mrf.mxu2 }
 0x5d5   :  { %v6145_v12 = vadd.f32 %v6144_v5, %v6056_v33 }
 0x5d6   :  { %v6233_v38 = vpop.f32.mrf.mxu3  ;;  %v5969_v32 = vpop.f32.mrf.mxu0 }
 0x5d7   :  { %v6234_v58 = vadd.f32 %v6233_v38, %v6145_v12  ;;  %v5970_v17 = vadd.f32 %v5969_v32, %v11797_v28  ;;  %v7822_v28 = vor.u32 %v8305_v47, %v7819_v48  ;;  %v8273_v38 = vld [vmem:[#allocation8 + $0x94] sm:$0xf]  ;;  %v7691_v32 = vld [vmem:[#allocation8 + $0x98] sm:$0xf0]  ;;  %v12593_v48 = vld [vmem:[#allocation95_spill] sm:$0xff] }
 0x5d8   :  { %v6058_v13 = vpop.f32.mrf.mxu1  ;;  %v12592_v47 = vld [vmem:[#allocation94_spill] sm:$0xff] }
 0x5d9   :  { %6008 = vmatmul.bf16.gmra.mxu0 %v10952_v54  ;;  %7024 = vst [vmem:[#allocation10 + $0x30] sm:$0xff] %v6234_v58  ;;  %6186 = vmatmul.bf16.gmra.mxu2 %v12590_v61  ;;  %v6059_v24 = vadd.f32 %v6058_v13, %v5970_v17  ;;  %v7694_v13 = vor.u32 %v8273_v38, %v7691_v32 }
 0x5da   :  { %6579 = vmatpush.bf16.msra.mxu3 %v7822_v28 }
 0x5db   :  { %6097 = vmatmul.bf16.gmra.mxu1 %v12589_v15  ;;  %6275 = vmatmul.bf16.gmra.mxu3 %v12591_v50 }
 0x5dc   :  { %v6147_v59 = vpop.f32.mrf.mxu2  ;;  %6401 = vmatpush.bf16.msra.mxu1 %v7694_v13 }
 0x5dd   :  { %v6148_v57 = vadd.f32 %v6147_v59, %v6059_v24  ;;  %v12595_v59 = vld [vmem:[#allocation121_spill] sm:$0xff] }
 0x5de   :  { %v6236_v60 = vpop.f32.mrf.mxu3  ;;  %v5971_v56 = vpop.f32.mrf.mxu0 }
 0x5df   :  { %v6237_v5 = vadd.f32 %v6236_v60, %v6148_v57  ;;  %v5972_v12 = vadd.f32 %v5971_v56, %v11800_v53  ;;  %v12594_v53 = vld [vmem:[#allocation120_spill] sm:$0xff] }
 0x5e0   :  { %v6060_v33 = vpop.f32.mrf.mxu1 }
 0x5e1   :  { %7026 = vst [vmem:[#allocation10 + $0x40] sm:$0xff] %v6237_v5  ;;  %v6061_v58 = vadd.f32 %v6060_v33, %v5972_v12 }
 0x5e4   :  { %v6149_v17 = vpop.f32.mrf.mxu2 }
 0x5e5   :  { %v6150_v29 = vadd.f32 %v6149_v17, %v6061_v58 }
 0x5e6   :  { %v6238_v2 = vpop.f32.mrf.mxu3  ;;  %v5974_v10 = vpop.f32.mrf.mxu0 }
 0x5e7   :  { %v6239_v42 = vadd.f32 %v6238_v2, %v6150_v29  ;;  %v5975_v45 = vadd.f32 %v5974_v10, %v11807_v63  ;;  %v12596_v10 = vld [vmem:[#allocation96_spill] sm:$0xff] }
 0x5e8   :  { %v6063_v24 = vpop.f32.mrf.mxu1 }
 0x5e9   :  { %6013 = vmatmul.bf16.gmra.mxu0 %v12592_v47  ;;  %7028 = vst [vmem:[#allocation10 + $0x50] sm:$0xff] %v6239_v42  ;;  %6191 = vmatmul.bf16.gmra.mxu2 %v12594_v53  ;;  %v6064_v37 = vadd.f32 %v6063_v24, %v5975_v45  ;;  %v12597_v24 = vld [vmem:[#allocation97_spill] sm:$0xff]  ;;  %v12598_v42 = vld [vmem:[#allocation122_spill] sm:$0xff]  ;;  %v12599_v45 = vld [vmem:[#allocation123_spill] sm:$0xff] }
 0x5eb   :  { %6102 = vmatmul.bf16.gmra.mxu1 %v12593_v48  ;;  %6280 = vmatmul.bf16.gmra.mxu3 %v12595_v59 }
 0x5ec   :  { %v6152_v28 = vpop.f32.mrf.mxu2 }
 0x5ed   :  { %v6153_v57 = vadd.f32 %v6152_v28, %v6064_v37  ;;  %v7747_v37 = vld [vmem:[#allocation8 + $0x108] sm:$0xf0]  ;;  %v8255_v28 = vld [vmem:[#allocation8 + $0x4] sm:$0xf] }
 0x5ee   :  { %v6241_v60 = vpop.f32.mrf.mxu3  ;;  %v5976_v56 = vpop.f32.mrf.mxu0 }
 0x5ef   :  { %v6242_v5 = vadd.f32 %v6241_v60, %v6153_v57  ;;  %v5977_v12 = vadd.f32 %v5976_v56, %v11810_v0  ;;  %v8287_v0 = vld [vmem:[#allocation8 + $0x104] sm:$0xf]  ;;  %v7619_v56 = vld [vmem:[#allocation8 + $0x8] sm:$0xf0] }
 0x5f0   :  { %v6065_v33 = vpop.f32.mrf.mxu1  ;;  %v7750_v60 = vor.u32 %v8287_v0, %v7747_v37 }
 0x5f1   :  { %7030 = vst [vmem:[#allocation10 + $0x60] sm:$0xff] %v6242_v5  ;;  %v6066_v63 = vadd.f32 %v6065_v33, %v5977_v12  ;;  %v8303_v33 = vld [vmem:[#allocation8 + $0x184] sm:$0xf]  ;;  %v7811_v5 = vld [vmem:[#allocation8 + $0x188] sm:$0xf0] }
 0x5f2   :  { %6491 = vmatpush.bf16.msra.mxu2 %v7750_v60 }
 0x5f4   :  { %v6154_v38 = vpop.f32.mrf.mxu2 }
 0x5f5   :  { %v6155_v32 = vadd.f32 %v6154_v38, %v6066_v63  ;;  %v7622_v63 = vor.u32 %v8255_v28, %v7619_v56 }
 0x5f6   :  { %v6243_v13 = vpop.f32.mrf.mxu3  ;;  %v5979_v58 = vpop.f32.mrf.mxu0 }
 0x5f7   :  { %v6244_v29 = vadd.f32 %v6243_v13, %v6155_v32  ;;  %v5980_v2 = vadd.f32 %v5979_v58, %v11817_v55  ;;  %v7814_v55 = vor.u32 %v8303_v33, %v7811_v5  ;;  %6313 = vmatpush.bf16.msra.mxu0 %v7622_v63  ;;  %v12600_v5 = vld [vmem:[#allocation98_spill] sm:$0xff] }
 0x5f8   :  { %v6068_v17 = vpop.f32.mrf.mxu1 }
 0x5f9   :  { %6018 = vmatmul.bf16.gmra.mxu0 %v12596_v10  ;;  %7032 = vst [vmem:[#allocation10 + $0x70] sm:$0xff] %v6244_v29  ;;  %6196 = vmatmul.bf16.gmra.mxu2 %v12598_v42  ;;  %v6069_v57 = vadd.f32 %v6068_v17, %v5980_v2  ;;  %v8271_v42 = vld [vmem:[#allocation8 + $0x84] sm:$0xf]  ;;  %v7683_v17 = vld [vmem:[#allocation8 + $0x88] sm:$0xf0] }
 0x5fa   :  { %6580 = vmatpush.bf16.msra.mxu3 %v7814_v55  ;;  %v7686_v2 = vor.u32 %v8271_v42, %v7683_v17 }
 0x5fb   :  { %6107 = vmatmul.bf16.gmra.mxu1 %v12597_v24  ;;  %6285 = vmatmul.bf16.gmra.mxu3 %v12599_v45 }
 0x5fc   :  { %v6157_v12 = vpop.f32.mrf.mxu2  ;;  %6402 = vmatpush.bf16.msra.mxu1 %v7686_v2 }
 0x5fd   :  { %v6158_v38 = vadd.f32 %v6157_v12, %v6069_v57  ;;  %v12601_v12 = vld [vmem:[#allocation99_spill] sm:$0xff] }
 0x5fe   :  { %v6246_v32 = vpop.f32.mrf.mxu3  ;;  %v5981_v13 = vpop.f32.mrf.mxu0 }
 0x5ff   :  { %v6247_v29 = vadd.f32 %v6246_v32, %v6158_v38  ;;  %v5982_v45 = vadd.f32 %v5981_v13, %v11820_v20  ;;  %v12602_v13 = vld [vmem:[#allocation128_spill] sm:$0xff] }
 0x600   :  { %v6070_v58 = vpop.f32.mrf.mxu1 }
 0x601   :  { %7034 = vst [vmem:[#allocation10 + $0x80] sm:$0xff] %v6247_v29  ;;  %v6071_v0 = vadd.f32 %v6070_v58, %v5982_v45 }
 0x604   :  { %v6159_v37 = vpop.f32.mrf.mxu2 }
 0x605   :  { %v6160_v24 = vadd.f32 %v6159_v37, %v6071_v0 }
 0x606   :  { %v6248_v28 = vpop.f32.mrf.mxu3  ;;  %v5984_v56 = vpop.f32.mrf.mxu0 }
 0x607   :  { %v6249_v33 = vadd.f32 %v6248_v28, %v6160_v24  ;;  %v5985_v60 = vadd.f32 %v5984_v56, %v11827_v14  ;;  %v12603_v56 = vld [vmem:[#allocation100_spill] sm:$0xff] }
 0x608   :  { %v6073_v57 = vpop.f32.mrf.mxu1 }
 0x609   :  { %6023 = vmatmul.bf16.gmra.mxu0 %v12600_v5  ;;  %7036 = vst [vmem:[#allocation10 + $0x90] sm:$0xff] %v6249_v33  ;;  %6201 = vmatmul.bf16.gmra.mxu2 %v11719_v1  ;;  %v6074_v20 = vadd.f32 %v6073_v57, %v5985_v60  ;;  %v12604_v57 = vld [vmem:[#allocation101_spill] sm:$0xff]  ;;  %v12605_v33 = vld [vmem:[#allocation124_spill] sm:$0xff] }
 0x60a   :  { %v12606_v60 = vld [vmem:[#allocation125_spill] sm:$0xff] }
 0x60b   :  { %6112 = vmatmul.bf16.gmra.mxu1 %v12601_v12  ;;  %6290 = vmatmul.bf16.gmra.mxu3 %v11736_v52 }
 0x60c   :  { %v6162_v42 = vpop.f32.mrf.mxu2 }
 0x60d   :  { %v6163_v45 = vadd.f32 %v6162_v42, %v6074_v20  ;;  %v8365_v20 = vld [vmem:[#allocation8 + $0x374] sm:$0xf]  ;;  %v8059_v42 = vld [vmem:[#allocation8 + $0x378] sm:$0xf0] }
 0x60e   :  { %v6251_v63 = vpop.f32.mrf.mxu3  ;;  %v5986_v55 = vpop.f32.mrf.mxu0 }
 0x60f   :  { %v6252_v32 = vadd.f32 %v6251_v63, %v6163_v45  ;;  %v5987_v24 = vadd.f32 %v5986_v55, %v12602_v13  ;;  %v8333_v45 = vld [vmem:[#allocation8 + $0x274] sm:$0xf]  ;;  %v8062_v55 = vor.u32 %v8365_v20, %v8059_v42  ;;  %v8123_v13 = vld [vmem:[#allocation8 + $0x3f8] sm:$0xf0] }
 0x610   :  { %v6075_v38 = vpop.f32.mrf.mxu1 }
 0x611   :  { %7038 = vst [vmem:[#allocation10 + $0xa0] sm:$0xff] %v6252_v32  ;;  %v6076_v14 = vadd.f32 %v6075_v38, %v5987_v24  ;;  %v7931_v38 = vld [vmem:[#allocation8 + $0x278] sm:$0xf0]  ;;  %v8381_v32 = vld [vmem:[#allocation8 + $0x3f4] sm:$0xf]  ;;  %6840 = vmatpush.bf16.msrb.mxu2 %v8062_v55 }
 0x614   :  { %v6164_v58 = vpop.f32.mrf.mxu2 }
 0x615   :  { %v6165_v29 = vadd.f32 %v6164_v58, %v6076_v14  ;;  %v7934_v14 = vor.u32 %v8333_v45, %v7931_v38 }
 0x616   :  { %v6253_v17 = vpop.f32.mrf.mxu3  ;;  %v5989_v2 = vpop.f32.mrf.mxu0 }
 0x617   :  { %v6254_v37 = vadd.f32 %v6253_v17, %v6165_v29  ;;  %v5990_v28 = vadd.f32 %v5989_v2, %v11837_v6  ;;  %v8126_v6 = vor.u32 %v8381_v32, %v8123_v13  ;;  %6662 = vmatpush.bf16.msrb.mxu0 %v7934_v14  ;;  %v12607_v13 = vld [vmem:[#allocation129_spill] sm:$0xff]  ;;  %v12609_v14 = vld [vmem:[#allocation103_spill] sm:$0xff] }
 0x618   :  { %v6078_v0 = vpop.f32.mrf.mxu1 }
 0x619   :  { %6028 = vmatmul.bf16.gmra.mxu0 %v12603_v56  ;;  %7040 = vst [vmem:[#allocation10 + $0xb0] sm:$0xff] %v6254_v37  ;;  %6206 = vmatmul.bf16.gmra.mxu2 %v12605_v33  ;;  %v6079_v63 = vadd.f32 %v6078_v0, %v5990_v28  ;;  %v8349_v33 = vld [vmem:[#allocation8 + $0x2f4] sm:$0xf]  ;;  %v7995_v0 = vld [vmem:[#allocation8 + $0x2f8] sm:$0xf0] }
 0x61a   :  { %6929 = vmatpush.bf16.msrb.mxu3 %v8126_v6  ;;  %v7998_v28 = vor.u32 %v8349_v33, %v7995_v0  ;;  %v12611_v6 = vld [vmem:[#allocation127_spill] sm:$0xff]  ;;  %v12612_v0 = vld [vmem:[#allocation130_spill] sm:$0xff] }
 0x61b   :  { %6117 = vmatmul.bf16.gmra.mxu1 %v12604_v57  ;;  %6295 = vmatmul.bf16.gmra.mxu3 %v12606_v60 }
 0x61c   :  { %v6167_v24 = vpop.f32.mrf.mxu2  ;;  %6751 = vmatpush.bf16.msrb.mxu1 %v7998_v28 }
 0x61d   :  { %v6168_v58 = vadd.f32 %v6167_v24, %v6079_v63  ;;  %v12608_v24 = vld [vmem:[#allocation102_spill] sm:$0xff] }
 0x61e   :  { %v6256_v29 = vpop.f32.mrf.mxu3  ;;  %v5991_v17 = vpop.f32.mrf.mxu0 }
 0x61f   :  { %v6257_v37 = vadd.f32 %v6256_v29, %v6168_v58  ;;  %v5992_v60 = vadd.f32 %v5991_v17, %v11840_v18  ;;  %v12610_v18 = vld [vmem:[#allocation126_spill] sm:$0xff] }
 0x620   :  { %v6080_v2 = vpop.f32.mrf.mxu1 }
 0x621   :  { %7042 = vst [vmem:[#allocation10 + $0xc0] sm:$0xff] %v6257_v37  ;;  %v6081_v20 = vadd.f32 %v6080_v2, %v5992_v60 }
 0x624   :  { %v6169_v42 = vpop.f32.mrf.mxu2 }
 0x625   :  { %v6170_v57 = vadd.f32 %v6169_v42, %v6081_v20 }
 0x626   :  { %v6258_v45 = vpop.f32.mrf.mxu3  ;;  %v5994_v38 = vpop.f32.mrf.mxu0 }
 0x627   :  { %v6259_v32 = vadd.f32 %v6258_v45, %v6170_v57  ;;  %v5995_v55 = vadd.f32 %v5994_v38, %v12607_v13 }
 0x628   :  { %v6083_v63 = vpop.f32.mrf.mxu1 }
 0x629   :  { %6033 = vmatmul.bf16.gmra.mxu0 %v12608_v24  ;;  %7044 = vst [vmem:[#allocation10 + $0xd0] sm:$0xff] %v6259_v32  ;;  %6211 = vmatmul.bf16.gmra.mxu2 %v12610_v18  ;;  %v6084_v33 = vadd.f32 %v6083_v63, %v5995_v55  ;;  %v12614_v63 = vld [vmem:[#allocation16_spill] sm:$0xff]  ;;  %v12615_v55 = vld [vmem:[#allocation49_spill] sm:$0xff] }
 0x62b   :  { %6122 = vmatmul.bf16.gmra.mxu1 %v12609_v14  ;;  %6300 = vmatmul.bf16.gmra.mxu3 %v12611_v6  ;;  %v12613_v6 = vld [vmem:[#allocation15_spill] sm:$0xff] }
 0x62c   :  { %v6172_v60 = vpop.f32.mrf.mxu2 }
 0x62d   :  { %v6173_v58 = vadd.f32 %v6172_v60, %v6084_v33  ;;  %v12616_v33 = vld [vmem:[#allocation50_spill] sm:$0xff]  ;;  %v8363_v60 = vld [vmem:[#allocation8 + $0x364] sm:$0xf] }
 0x62e   :  { %v6261_v29 = vpop.f32.mrf.mxu3  ;;  %v5996_v17 = vpop.f32.mrf.mxu0 }
 0x62f   :  { %v6262_v37 = vadd.f32 %v6261_v29, %v6173_v58  ;;  %v5997_v57 = vadd.f32 %v5996_v17, %v12612_v0  ;;  %v8051_v58 = vld [vmem:[#allocation8 + $0x368] sm:$0xf0]  ;;  %v8331_v29 = vld [vmem:[#allocation8 + $0x264] sm:$0xf] }
 0x630   :  { %v6085_v2 = vpop.f32.mrf.mxu1  ;;  %v8379_v0 = vld [vmem:[#allocation8 + $0x3e4] sm:$0xf] }
 0x631   :  { %7046 = vst [vmem:[#allocation10 + $0xe0] sm:$0xff] %v6262_v37  ;;  %v6086_v28 = vadd.f32 %v6085_v2, %v5997_v57  ;;  %v8054_v2 = vor.u32 %v8363_v60, %v8051_v58  ;;  %v7923_v37 = vld [vmem:[#allocation8 + $0x268] sm:$0xf0] }
 0x632   :  { %v8115_v57 = vld [vmem:[#allocation8 + $0x3e8] sm:$0xf0] }
 0x633   :  { %6841 = vmatpush.bf16.msrb.mxu2 %v8054_v2 }
 0x634   :  { %v6174_v20 = vpop.f32.mrf.mxu2 }
 0x635   :  { %v6175_v42 = vadd.f32 %v6174_v20, %v6086_v28  ;;  %v7926_v20 = vor.u32 %v8331_v29, %v7923_v37 }
 0x636   :  { %v6263_v45 = vpop.f32.mrf.mxu3  ;;  %v5999_v38 = vpop.f32.mrf.mxu0 }
 0x637   :  { %v6264_v13 = vadd.f32 %v6263_v45, %v6175_v42  ;;  %v6000_v18 = vadd.f32 %v5999_v38, %v11857_v26  ;;  %v8118_v26 = vor.u32 %v8379_v0, %v8115_v57  ;;  %6663 = vmatpush.bf16.msrb.mxu0 %v7926_v20  ;;  %v12617_v57 = vld [vmem:[#allocation17_spill] sm:$0xff]  ;;  %v12620_v20 = vld [vmem:[#allocation52_spill] sm:$0xff] }
 0x638   :  { %v6088_v32 = vpop.f32.mrf.mxu1 }
 0x639   :  { %6314 = vmatmul.bf16.vlgmr.msra.gmra.mxu0 %v12613_v6  ;;  %7048 = vst [vmem:[#allocation10 + $0xf0] sm:$0xff] %v6264_v13  ;;  %6492 = vmatmul.bf16.vlgmr.msra.gmra.mxu2 %v12615_v55  ;;  %v6089_v17 = vadd.f32 %v6088_v32, %v6000_v18  ;;  %v8347_v55 = vld [vmem:[#allocation8 + $0x2e4] sm:$0xf]  ;;  %v7987_v18 = vld [vmem:[#allocation8 + $0x2e8] sm:$0xf0] }
 0x63a   :  { %6930 = vmatpush.bf16.msrb.mxu3 %v8118_v26  ;;  %v7990_v32 = vor.u32 %v8347_v55, %v7987_v18 }
 0x63b   :  { %6403 = vmatmul.bf16.vlgmr.msra.gmra.mxu1 %v12614_v63  ;;  %6581 = vmatmul.bf16.vlgmr.msra.gmra.mxu3 %v12616_v33 }
 0x63c   :  { %v6177_v28 = vpop.f32.mrf.mxu2  ;;  %6752 = vmatpush.bf16.msrb.mxu1 %v7990_v32 }
 0x63d   :  { %v6178_v42 = vadd.f32 %v6177_v28, %v6089_v17  ;;  %v12618_v28 = vld [vmem:[#allocation18_spill] sm:$0xff] }
 0x63e   :  { %v6266_v6 = vpop.f32.mrf.mxu3  ;;  %v6001_v45 = vpop.f32.mrf.mxu0 }
 0x63f   :  { %v6267_v13 = vadd.f32 %v6266_v6, %v6178_v42  ;;  %v6002_v63 = vadd.f32 %v6001_v45, %v11860_v34  ;;  %v12619_v34 = vld [vmem:[#allocation51_spill] sm:$0xff] }
 0x640   :  { %v6090_v38 = vpop.f32.mrf.mxu1 }
 0x641   :  { %7050 = vst [vmem:[#allocation10 + $0x100] sm:$0xff] %v6267_v13  ;;  %v6091_v33 = vadd.f32 %v6090_v38, %v6002_v63 }
 0x644   :  { %v6179_v60 = vpop.f32.mrf.mxu2 }
 0x645   :  { %v6180_v58 = vadd.f32 %v6179_v60, %v6091_v33 }
 0x646   :  { %v6268_v29 = vpop.f32.mrf.mxu3  ;;  %v6004_v37 = vpop.f32.mrf.mxu0 }
 0x647   :  { %v6269_v0 = vadd.f32 %v6268_v29, %v6180_v58  ;;  %v6005_v2 = vadd.f32 %v6004_v37, %v11867_v49 }
 0x648   :  { %v6093_v17 = vpop.f32.mrf.mxu1 }
 0x649   :  { %6319 = vmatmul.bf16.gmra.mxu0 %v12617_v57  ;;  %7052 = vst [vmem:[#allocation10 + $0x110] sm:$0xff] %v6269_v0  ;;  %6497 = vmatmul.bf16.gmra.mxu2 %v12619_v34  ;;  %v6094_v26 = vadd.f32 %v6093_v17, %v6005_v2  ;;  %v12621_v0 = vld [vmem:[#allocation19_spill] sm:$0xff]  ;;  %v12622_v17 = vld [vmem:[#allocation20_spill] sm:$0xff]  ;;  %v12623_v2 = vld [vmem:[#allocation53_spill] sm:$0xff] }
 0x64a   :  { %v12624_v57 = vld [vmem:[#allocation54_spill] sm:$0xff]  ;;  %v8329_v34 = vld [vmem:[#allocation8 + $0x254] sm:$0xf] }
 0x64b   :  { %6408 = vmatmul.bf16.gmra.mxu1 %v12618_v28  ;;  %6586 = vmatmul.bf16.gmra.mxu3 %v12620_v20  ;;  %v8043_v28 = vld [vmem:[#allocation8 + $0x358] sm:$0xf0] }
 0x64c   :  { %v6182_v42 = vpop.f32.mrf.mxu2 }
 0x64d   :  { %v6183_v6 = vadd.f32 %v6182_v42, %v6094_v26  ;;  %v7915_v42 = vld [vmem:[#allocation8 + $0x258] sm:$0xf0] }
 0x64e   :  { %v6271_v45 = vpop.f32.mrf.mxu3  ;;  %v6006_v38 = vpop.f32.mrf.mxu0 }
 0x64f   :  { %v6272_v63 = vadd.f32 %v6271_v45, %v6183_v6  ;;  %v6007_v55 = vadd.f32 %v6006_v38, %v11870_v39  ;;  %v8361_v39 = vld [vmem:[#allocation8 + $0x354] sm:$0xf]  ;;  %v8107_v45 = vld [vmem:[#allocation8 + $0x3d8] sm:$0xf0] }
 0x650   :  { %v6095_v13 = vpop.f32.mrf.mxu1  ;;  %v8046_v26 = vor.u32 %v8361_v39, %v8043_v28  ;;  %v8377_v6 = vld [vmem:[#allocation8 + $0x3d4] sm:$0xf] }
 0x651   :  { %7054 = vst [vmem:[#allocation10 + $0x120] sm:$0xff] %v6272_v63  ;;  %v6096_v49 = vadd.f32 %v6095_v13, %v6007_v55  ;;  %v7918_v13 = vor.u32 %v8329_v34, %v7915_v42  ;;  %v12628_v42 = vld [vmem:[#allocation56_spill] sm:$0xff] }
 0x652   :  { %6842 = vmatpush.bf16.msrb.mxu2 %v8046_v26  ;;  %v12626_v26 = vld [vmem:[#allocation22_spill] sm:$0xff] }
 0x653   :  { %6664 = vmatpush.bf16.msrb.mxu0 %v7918_v13 }
 0x654   :  { %v6184_v18 = vpop.f32.mrf.mxu2 }
 0x655   :  { %v6185_v32 = vadd.f32 %v6184_v18, %v6096_v49 }
 0x656   :  { %v6273_v33 = vpop.f32.mrf.mxu3  ;;  %v6009_v60 = vpop.f32.mrf.mxu0 }
 0x657   :  { %v6274_v29 = vadd.f32 %v6273_v33, %v6185_v32  ;;  %v6010_v37 = vadd.f32 %v6009_v60, %v11877_v8  ;;  %v8110_v8 = vor.u32 %v8377_v6, %v8107_v45  ;;  %v8345_v60 = vld [vmem:[#allocation8 + $0x2d4] sm:$0xf] }
 0x658   :  { %v6098_v58 = vpop.f32.mrf.mxu1 }
 0x659   :  { %6324 = vmatmul.bf16.gmra.mxu0 %v12621_v0  ;;  %7056 = vst [vmem:[#allocation10 + $0x130] sm:$0xff] %v6274_v29  ;;  %6502 = vmatmul.bf16.gmra.mxu2 %v12623_v2  ;;  %v6099_v20 = vadd.f32 %v6098_v58, %v6010_v37  ;;  %v7979_v58 = vld [vmem:[#allocation8 + $0x2d8] sm:$0xf0] }
 0x65a   :  { %6931 = vmatpush.bf16.msrb.mxu3 %v8110_v8  ;;  %v7982_v29 = vor.u32 %v8345_v60, %v7979_v58 }
 0x65b   :  { %6413 = vmatmul.bf16.gmra.mxu1 %v12622_v17  ;;  %6591 = vmatmul.bf16.gmra.mxu3 %v12624_v57 }
 0x65c   :  { %v6187_v38 = vpop.f32.mrf.mxu2  ;;  %6753 = vmatpush.bf16.msrb.mxu1 %v7982_v29 }
 0x65d   :  { %v6188_v63 = vadd.f32 %v6187_v38, %v6099_v20  ;;  %v12625_v20 = vld [vmem:[#allocation21_spill] sm:$0xff] }
 0x65e   :  { %v6276_v55 = vpop.f32.mrf.mxu3  ;;  %v6011_v49 = vpop.f32.mrf.mxu0 }
 0x65f   :  { %v6277_v32 = vadd.f32 %v6276_v55, %v6188_v63  ;;  %v6012_v33 = vadd.f32 %v6011_v49, %v11880_v44  ;;  %v12627_v44 = vld [vmem:[#allocation55_spill] sm:$0xff] }
 0x660   :  { %v6100_v18 = vpop.f32.mrf.mxu1 }
 0x661   :  { %7058 = vst [vmem:[#allocation10 + $0x140] sm:$0xff] %v6277_v32  ;;  %v6101_v37 = vadd.f32 %v6100_v18, %v6012_v33 }
 0x664   :  { %v6189_v0 = vpop.f32.mrf.mxu2 }
 0x665   :  { %v6190_v17 = vadd.f32 %v6189_v0, %v6101_v37  ;;  %v12629_v0 = vld [vmem:[#allocation25_spill] sm:$0xff] }
 0x666   :  { %v6278_v2 = vpop.f32.mrf.mxu3  ;;  %v6014_v57 = vpop.f32.mrf.mxu0 }
 0x667   :  { %v6279_v28 = vadd.f32 %v6278_v2, %v6190_v17  ;;  %v6015_v34 = vadd.f32 %v6014_v57, %v11887_v46  ;;  %v12630_v17 = vld [vmem:[#allocation26_spill] sm:$0xff]  ;;  %v12631_v2 = vld [vmem:[#allocation57_spill] sm:$0xff] }
 0x668   :  { %v6103_v39 = vpop.f32.mrf.mxu1  ;;  %v12632_v57 = vld [vmem:[#allocation58_spill] sm:$0xff] }
 0x669   :  { %6329 = vmatmul.bf16.gmra.mxu0 %v12625_v20  ;;  %7060 = vst [vmem:[#allocation10 + $0x150] sm:$0xff] %v6279_v28  ;;  %6507 = vmatmul.bf16.gmra.mxu2 %v12627_v44  ;;  %v6104_v6 = vadd.f32 %v6103_v39, %v6015_v34  ;;  %v8035_v39 = vld [vmem:[#allocation8 + $0x348] sm:$0xf0]  ;;  %v8327_v28 = vld [vmem:[#allocation8 + $0x244] sm:$0xf] }
 0x66a   :  { %v8375_v44 = vld [vmem:[#allocation8 + $0x3c4] sm:$0xf] }
 0x66b   :  { %6418 = vmatmul.bf16.gmra.mxu1 %v12626_v26  ;;  %6596 = vmatmul.bf16.gmra.mxu3 %v12628_v42  ;;  %v7907_v26 = vld [vmem:[#allocation8 + $0x248] sm:$0xf0] }
 0x66c   :  { %v6192_v45 = vpop.f32.mrf.mxu2  ;;  %v8099_v42 = vld [vmem:[#allocation8 + $0x3c8] sm:$0xf0] }
 0x66d   :  { %v6193_v38 = vadd.f32 %v6192_v45, %v6104_v6  ;;  %v7910_v45 = vor.u32 %v8327_v28, %v7907_v26 }
 0x66e   :  { %v6281_v13 = vpop.f32.mrf.mxu3  ;;  %v6016_v8 = vpop.f32.mrf.mxu0 }
 0x66f   :  { %v6282_v55 = vadd.f32 %v6281_v13, %v6193_v38  ;;  %v6017_v49 = vadd.f32 %v6016_v8, %v11890_v25  ;;  %v8359_v25 = vld [vmem:[#allocation8 + $0x344] sm:$0xf]  ;;  %6665 = vmatpush.bf16.msrb.mxu0 %v7910_v45 }
 0x670   :  { %v6105_v63 = vpop.f32.mrf.mxu1  ;;  %v8038_v20 = vor.u32 %v8359_v25, %v8035_v39  ;;  %v12634_v25 = vld [vmem:[#allocation28_spill] sm:$0xff] }
 0x671   :  { %7062 = vst [vmem:[#allocation10 + $0x160] sm:$0xff] %v6282_v55  ;;  %v6106_v46 = vadd.f32 %v6105_v63, %v6017_v49  ;;  %v12636_v39 = vld [vmem:[#allocation60_spill] sm:$0xff] }
 0x672   :  { %6843 = vmatpush.bf16.msrb.mxu2 %v8038_v20 }
 0x674   :  { %v6194_v18 = vpop.f32.mrf.mxu2 }
 0x675   :  { %v6195_v32 = vadd.f32 %v6194_v18, %v6106_v46  ;;  %v8343_v46 = vld [vmem:[#allocation8 + $0x2c4] sm:$0xf]  ;;  %v7971_v18 = vld [vmem:[#allocation8 + $0x2c8] sm:$0xf0] }
 0x676   :  { %v6283_v33 = vpop.f32.mrf.mxu3  ;;  %v6019_v60 = vpop.f32.mrf.mxu0 }
 0x677   :  { %v6284_v29 = vadd.f32 %v6283_v33, %v6195_v32  ;;  %v6020_v37 = vadd.f32 %v6019_v60, %v11897_v22  ;;  %v8102_v22 = vor.u32 %v8375_v44, %v8099_v42  ;;  %v7974_v32 = vor.u32 %v8343_v46, %v7971_v18  ;;  %v12637_v46 = vld [vmem:[#allocation29_spill] sm:$0xff]  ;;  %v12638_v18 = vld [vmem:[#allocation30_spill] sm:$0xff] }
 0x678   :  { %v6108_v58 = vpop.f32.mrf.mxu1 }
 0x679   :  { %6334 = vmatmul.bf16.gmra.mxu0 %v12629_v0  ;;  %7064 = vst [vmem:[#allocation10 + $0x170] sm:$0xff] %v6284_v29  ;;  %6512 = vmatmul.bf16.gmra.mxu2 %v12631_v2  ;;  %v6109_v34 = vadd.f32 %v6108_v58, %v6020_v37 }
 0x67a   :  { %6932 = vmatpush.bf16.msrb.mxu3 %v8102_v22  ;;  %6754 = vmatpush.bf16.msrb.mxu1 %v7974_v32  ;;  %v12639_v32 = vld [vmem:[#allocation61_spill] sm:$0xff] }
 0x67b   :  { %6423 = vmatmul.bf16.gmra.mxu1 %v12630_v17  ;;  %6601 = vmatmul.bf16.gmra.mxu3 %v12632_v57  ;;  %v12633_v57 = vld [vmem:[#allocation27_spill] sm:$0xff] }
 0x67c   :  { %v6197_v6 = vpop.f32.mrf.mxu2 }
 0x67d   :  { %v6198_v38 = vadd.f32 %v6197_v6, %v6109_v34 }
 0x67e   :  { %v6286_v13 = vpop.f32.mrf.mxu3  ;;  %v6021_v8 = vpop.f32.mrf.mxu0 }
 0x67f   :  { %v6287_v55 = vadd.f32 %v6286_v13, %v6198_v38  ;;  %v6022_v49 = vadd.f32 %v6021_v8, %v11900_v27  ;;  %v12635_v27 = vld [vmem:[#allocation59_spill] sm:$0xff] }
 0x680   :  { %v6110_v63 = vpop.f32.mrf.mxu1 }
 0x681   :  { %7066 = vst [vmem:[#allocation10 + $0x180] sm:$0xff] %v6287_v55  ;;  %v6111_v33 = vadd.f32 %v6110_v63, %v6022_v49 }
 0x684   :  { %v6199_v60 = vpop.f32.mrf.mxu2 }
 0x685   :  { %v6200_v58 = vadd.f32 %v6199_v60, %v6111_v33  ;;  %v12640_v33 = vld [vmem:[#allocation62_spill] sm:$0xff] }
 0x686   :  { %v6288_v29 = vpop.f32.mrf.mxu3  ;;  %v6024_v37 = vpop.f32.mrf.mxu0  ;;  %v8027_v60 = vld [vmem:[#allocation8 + $0x338] sm:$0xf0] }
 0x687   :  { %v6289_v17 = vadd.f32 %v6288_v29, %v6200_v58  ;;  %v6025_v2 = vadd.f32 %v6024_v37, %v11907_v11  ;;  %v8325_v58 = vld [vmem:[#allocation8 + $0x234] sm:$0xf] }
 0x688   :  { %v6113_v0 = vpop.f32.mrf.mxu1 }
 0x689   :  { %6339 = vmatmul.bf16.gmra.mxu0 %v12633_v57  ;;  %7068 = vst [vmem:[#allocation10 + $0x190] sm:$0xff] %v6289_v17  ;;  %6517 = vmatmul.bf16.gmra.mxu2 %v12635_v27  ;;  %v6114_v28 = vadd.f32 %v6113_v0, %v6025_v2  ;;  %v7899_v0 = vld [vmem:[#allocation8 + $0x238] sm:$0xf0]  ;;  %v8373_v17 = vld [vmem:[#allocation8 + $0x3b4] sm:$0xf] }
 0x68a   :  { %v8091_v2 = vld [vmem:[#allocation8 + $0x3b8] sm:$0xf0] }
 0x68b   :  { %6428 = vmatmul.bf16.gmra.mxu1 %v12634_v25  ;;  %6606 = vmatmul.bf16.gmra.mxu3 %v12636_v39  ;;  %v7902_v25 = vor.u32 %v8325_v58, %v7899_v0 }
 0x68c   :  { %v6202_v34 = vpop.f32.mrf.mxu2 }
 0x68d   :  { %v6203_v20 = vadd.f32 %v6202_v34, %v6114_v28  ;;  %6666 = vmatpush.bf16.msrb.mxu0 %v7902_v25 }
 0x68e   :  { %v6291_v26 = vpop.f32.mrf.mxu3  ;;  %v6026_v44 = vpop.f32.mrf.mxu0 }
 0x68f   :  { %v6292_v6 = vadd.f32 %v6291_v26, %v6203_v20  ;;  %v6027_v45 = vadd.f32 %v6026_v44, %v11910_v21  ;;  %v8357_v21 = vld [vmem:[#allocation8 + $0x334] sm:$0xf] }
 0x690   :  { %v6115_v42 = vpop.f32.mrf.mxu1  ;;  %v8030_v37 = vor.u32 %v8357_v21, %v8027_v60  ;;  %v8341_v44 = vld [vmem:[#allocation8 + $0x2b4] sm:$0xf] }
 0x691   :  { %7070 = vst [vmem:[#allocation10 + $0x1a0] sm:$0xff] %v6292_v6  ;;  %v6116_v11 = vadd.f32 %v6115_v42, %v6027_v45  ;;  %v7963_v42 = vld [vmem:[#allocation8 + $0x2b8] sm:$0xf0] }
 0x692   :  { %6844 = vmatpush.bf16.msrb.mxu2 %v8030_v37  ;;  %v7966_v6 = vor.u32 %v8341_v44, %v7963_v42  ;;  %v12647_v44 = vld [vmem:[#allocation65_spill] sm:$0xff]  ;;  %v12648_v42 = vld [vmem:[#allocation66_spill] sm:$0xff] }
 0x694   :  { %v6204_v22 = vpop.f32.mrf.mxu2  ;;  %6755 = vmatpush.bf16.msrb.mxu1 %v7966_v6  ;;  %v8355_v6 = vld [vmem:[#allocation8 + $0x324] sm:$0xf] }
 0x695   :  { %v6205_v38 = vadd.f32 %v6204_v22, %v6116_v11 }
 0x696   :  { %v6293_v13 = vpop.f32.mrf.mxu3  ;;  %v6029_v8 = vpop.f32.mrf.mxu0 }
 0x697   :  { %v6294_v55 = vadd.f32 %v6293_v13, %v6205_v38  ;;  %v6030_v49 = vadd.f32 %v6029_v8, %v11917_v40  ;;  %v8094_v40 = vor.u32 %v8373_v17, %v8091_v2 }
 0x698   :  { %v6118_v63 = vpop.f32.mrf.mxu1 }
 0x699   :  { %6344 = vmatmul.bf16.gmra.mxu0 %v12637_v46  ;;  %7072 = vst [vmem:[#allocation10 + $0x1b0] sm:$0xff] %v6294_v55  ;;  %6522 = vmatmul.bf16.gmra.mxu2 %v12639_v32  ;;  %v6119_v29 = vadd.f32 %v6118_v63, %v6030_v49  ;;  %v12641_v49 = vld [vmem:[#allocation31_spill] sm:$0xff]  ;;  %v12642_v46 = vld [vmem:[#allocation32_spill] sm:$0xff] }
 0x69a   :  { %6933 = vmatpush.bf16.msrb.mxu3 %v8094_v40 }
 0x69b   :  { %6433 = vmatmul.bf16.gmra.mxu1 %v12638_v18  ;;  %6611 = vmatmul.bf16.gmra.mxu3 %v12640_v33  ;;  %v12644_v18 = vld [vmem:[#allocation64_spill] sm:$0xff] }
 0x69c   :  { %v6207_v57 = vpop.f32.mrf.mxu2 }
 0x69d   :  { %v6208_v27 = vadd.f32 %v6207_v57, %v6119_v29 }
 0x69e   :  { %v6296_v39 = vpop.f32.mrf.mxu3  ;;  %v6031_v28 = vpop.f32.mrf.mxu0 }
 0x69f   :  { %v6297_v20 = vadd.f32 %v6296_v39, %v6208_v27  ;;  %v6032_v26 = vadd.f32 %v6031_v28, %v11920_v31  ;;  %v12643_v31 = vld [vmem:[#allocation63_spill] sm:$0xff] }
 0x6a0   :  { %v6120_v34 = vpop.f32.mrf.mxu1 }
 0x6a1   :  { %7074 = vst [vmem:[#allocation10 + $0x1c0] sm:$0xff] %v6297_v20  ;;  %v6121_v45 = vadd.f32 %v6120_v34, %v6032_v26  ;;  %v12645_v26 = vld [vmem:[#allocation33_spill] sm:$0xff] }
 0x6a4   :  { %v6209_v11 = vpop.f32.mrf.mxu2 }
 0x6a5   :  { %v6210_v22 = vadd.f32 %v6209_v11, %v6121_v45  ;;  %v8019_v45 = vld [vmem:[#allocation8 + $0x328] sm:$0xf0]  ;;  %v8323_v11 = vld [vmem:[#allocation8 + $0x224] sm:$0xf] }
 0x6a6   :  { %v6298_v38 = vpop.f32.mrf.mxu3  ;;  %v6034_v13 = vpop.f32.mrf.mxu0 }
 0x6a7   :  { %v6299_v63 = vadd.f32 %v6298_v38, %v6210_v22  ;;  %v6035_v55 = vadd.f32 %v6034_v13, %v11927_v23  ;;  %v8909_v23 = vld [vmem:[%s12266_s4] sm:$0x3]  ;;  %v8022_v22 = vor.u32 %v8355_v6, %v8019_v45  ;;  %v7891_v38 = vld [vmem:[#allocation8 + $0x228] sm:$0xf0]  ;;  %v8371_v13 = vld [vmem:[#allocation8 + $0x3a4] sm:$0xf] }
 0x6a8   :  { %v6123_v8 = vpop.f32.mrf.mxu1  ;;  %v12030_v17 = vperm.slane %v8909_v23, 1 }
 0x6a9   :  { %6349 = vmatmul.bf16.gmra.mxu0 %v12641_v49  ;;  %7076 = vst [vmem:[#allocation10 + $0x1d0] sm:$0xff] %v6299_v63  ;;  %6527 = vmatmul.bf16.gmra.mxu2 %v12643_v31  ;;  %v6124_v32 = vadd.f32 %v6123_v8, %v6035_v55  ;;  %v8083_v8 = vld [vmem:[#allocation8 + $0x3a8] sm:$0xf0]  ;;  %v7894_v55 = vor.u32 %v8323_v11, %v7891_v38 }
 0x6aa   :  { %v8086_v49 = vor.u32 %v8371_v13, %v8083_v8  ;;  %6845 = vmatpush.bf16.msrb.mxu2 %v8022_v22 }
 0x6ab   :  { %6438 = vmatmul.bf16.gmra.mxu1 %v12642_v46  ;;  %6616 = vmatmul.bf16.gmra.mxu3 %v12644_v18 }
 0x6ac   :  { %v6212_v33 = vpop.f32.mrf.mxu2  ;;  %6667 = vmatpush.bf16.msrb.mxu0 %v7894_v55  ;;  %6934 = vmatpush.bf16.msrb.mxu3 %v8086_v49 }
 0x6ad   :  { %v6213_v21 = vadd.f32 %v6212_v33, %v6124_v32 }
 0x6ae   :  { %v6301_v60 = vpop.f32.mrf.mxu3  ;;  %v6036_v58 = vpop.f32.mrf.mxu0 }
 0x6af   :  { %v6302_v37 = vadd.f32 %v6301_v60, %v6213_v21  ;;  %v6037_v0 = vadd.f32 %v6036_v58, %v11929_v9  ;;  %v12646_v9 = vld [vmem:[#allocation34_spill] sm:$0xff]  ;;  %v8339_v60 = vld [vmem:[#allocation8 + $0x2a4] sm:$0xf]  ;;  %v7955_v58 = vld [vmem:[#allocation8 + $0x2a8] sm:$0xf0] }
 0x6b0   :  { %v6125_v29 = vpop.f32.mrf.mxu1 }
 0x6b1   :  { %7078 = vst [vmem:[#allocation10 + $0x1e0] sm:$0xff] %v6302_v37  ;;  %v6126_v2 = vadd.f32 %v6125_v29, %v6037_v0  ;;  %v7958_v37 = vor.u32 %v8339_v60, %v7955_v58  ;;  %v12655_v60 = vld [vmem:[#allocation69_spill] sm:$0xff]  ;;  %v12656_v58 = vld [vmem:[#allocation70_spill] sm:$0xff] }
 0x6b3   :  { %6756 = vmatpush.bf16.msrb.mxu1 %v7958_v37  ;;  %v8011_v37 = vld [vmem:[#allocation8 + $0x318] sm:$0xf0] }
 0x6b4   :  { %v6214_v57 = vpop.f32.mrf.mxu2 }
 0x6b5   :  { %v6215_v25 = vadd.f32 %v6214_v57, %v6126_v2 }
 0x6b6   :  { %v6303_v40 = vpop.f32.mrf.mxu3  ;;  %v6315_v27 = vpop.f32.mrf.mxu0 }
 0x6b7   :  { %v6316_v39 = vadd.f32 %v6315_v27, %v12030_v17  ;;  %v6304_v34 = vadd.f32 %v6303_v40, %v6215_v25 }
 0x6b8   :  { %v6404_v28 = vpop.f32.mrf.mxu1 }
 0x6b9   :  { %v6405_v20 = vadd.f32 %v6404_v28, %v6316_v39  ;;  %6354 = vmatmul.bf16.gmra.mxu0 %v12645_v26  ;;  %7080 = vst [vmem:[#allocation10 + $0x1f0] sm:$0xff] %v6304_v34  ;;  %6532 = vmatmul.bf16.gmra.mxu2 %v12647_v44  ;;  %v12649_v28 = vld [vmem:[#allocation35_spill] sm:$0xff]  ;;  %v12650_v34 = vld [vmem:[#allocation36_spill] sm:$0xff] }
 0x6ba   :  { %v12652_v26 = vld [vmem:[#allocation68_spill] sm:$0xff] }
 0x6bb   :  { %6443 = vmatmul.bf16.gmra.mxu1 %v12646_v9  ;;  %6621 = vmatmul.bf16.gmra.mxu3 %v12648_v42 }
 0x6bc   :  { %v6493_v63 = vpop.f32.mrf.mxu2 }
 0x6bd   :  { %v6494_v46 = vadd.f32 %v6493_v63, %v6405_v20  ;;  %v12651_v20 = vld [vmem:[#allocation67_spill] sm:$0xff] }
 0x6be   :  { %v6582_v31 = vpop.f32.mrf.mxu3  ;;  %v6317_v18 = vpop.f32.mrf.mxu0 }
 0x6bf   :  { %v6318_v32 = vadd.f32 %v6317_v18, %v12030_v17  ;;  %v12038_v21 = vadd.f32 %v6582_v31, %v6494_v46 }
 0x6c0   :  { %v6406_v33 = vpop.f32.mrf.mxu1 }
 0x6c1   :  { %v6407_v29 = vadd.f32 %v6406_v33, %v6318_v32  ;;  %v12653_v32 = vld [vmem:[#allocation37_spill] sm:$0xff]  ;;  %v12654_v33 = vld [vmem:[#allocation38_spill] sm:$0xff] }
 0x6c4   :  { %v6495_v0 = vpop.f32.mrf.mxu2 }
 0x6c5   :  { %v6496_v23 = vadd.f32 %v6495_v0, %v6407_v29  ;;  %v8353_v29 = vld [vmem:[#allocation8 + $0x314] sm:$0xf] }
 0x6c6   :  { %v6584_v2 = vpop.f32.mrf.mxu3  ;;  %v6320_v57 = vpop.f32.mrf.mxu0  ;;  %v8321_v0 = vld [vmem:[#allocation8 + $0x214] sm:$0xf] }
 0x6c7   :  { %v6321_v25 = vadd.f32 %v6320_v57, %v12030_v17  ;;  %v12041_v27 = vadd.f32 %v6584_v2, %v6496_v23  ;;  %v8014_v23 = vor.u32 %v8353_v29, %v8011_v37  ;;  %v7883_v2 = vld [vmem:[#allocation8 + $0x218] sm:$0xf0]  ;;  %v8369_v57 = vld [vmem:[#allocation8 + $0x394] sm:$0xf]  ;;  %v12660_v29 = vld [vmem:[#allocation72_spill] sm:$0xff] }
 0x6c8   :  { %v6409_v40 = vpop.f32.mrf.mxu1 }
 0x6c9   :  { %v6410_v39 = vadd.f32 %v6409_v40, %v6321_v25  ;;  %6359 = vmatmul.bf16.gmra.mxu0 %v12649_v28  ;;  %6537 = vmatmul.bf16.gmra.mxu2 %v12651_v20  ;;  %v8075_v25 = vld [vmem:[#allocation8 + $0x398] sm:$0xf0] }
 0x6ca   :  { %v8078_v28 = vor.u32 %v8369_v57, %v8075_v25  ;;  %6846 = vmatpush.bf16.msrb.mxu2 %v8014_v23 }
 0x6cb   :  { %6448 = vmatmul.bf16.gmra.mxu1 %v12650_v34  ;;  %6626 = vmatmul.bf16.gmra.mxu3 %v12652_v26 }
 0x6cc   :  { %v6498_v9 = vpop.f32.mrf.mxu2  ;;  %6935 = vmatpush.bf16.msrb.mxu3 %v8078_v28 }
 0x6cd   :  { %v6499_v44 = vadd.f32 %v6498_v9, %v6410_v39  ;;  %v7886_v39 = vor.u32 %v8321_v0, %v7883_v2 }
 0x6ce   :  { %v6587_v42 = vpop.f32.mrf.mxu3  ;;  %v6322_v6 = vpop.f32.mrf.mxu0 }
 0x6cf   :  { %v6323_v45 = vadd.f32 %v6322_v6, %v12030_v17  ;;  %v12048_v22 = vadd.f32 %v6587_v42, %v6499_v44  ;;  %6668 = vmatpush.bf16.msrb.mxu0 %v7886_v39  ;;  %v8337_v6 = vld [vmem:[#allocation8 + $0x294] sm:$0xf] }
 0x6d0   :  { %v6411_v11 = vpop.f32.mrf.mxu1 }
 0x6d1   :  { %v6412_v38 = vadd.f32 %v6411_v11, %v6323_v45  ;;  %v7947_v45 = vld [vmem:[#allocation8 + $0x298] sm:$0xf0] }
 0x6d4   :  { %v6500_v13 = vpop.f32.mrf.mxu2 }
 0x6d5   :  { %v6501_v8 = vadd.f32 %v6500_v13, %v6412_v38  ;;  %v7950_v38 = vor.u32 %v8337_v6, %v7947_v45 }
 0x6d6   :  { %v6589_v63 = vpop.f32.mrf.mxu3  ;;  %v6325_v55 = vpop.f32.mrf.mxu0 }
 0x6d7   :  { %v6326_v49 = vadd.f32 %v6325_v55, %v12030_v17  ;;  %v12051_v31 = vadd.f32 %v6589_v63, %v6501_v8  ;;  %6757 = vmatpush.bf16.msrb.mxu1 %v7950_v38  ;;  %v12662_v38 = vld [vmem:[#allocation42_spill] sm:$0xff] }
 0x6d8   :  { %v6414_v46 = vpop.f32.mrf.mxu1 }
 0x6d9   :  { %v6415_v18 = vadd.f32 %v6414_v46, %v6326_v49  ;;  %6364 = vmatmul.bf16.gmra.mxu0 %v12653_v32  ;;  %6542 = vmatmul.bf16.gmra.mxu2 %v12655_v60  ;;  %v12658_v60 = vld [vmem:[#allocation40_spill] sm:$0xff] }
 0x6db   :  { %6453 = vmatmul.bf16.gmra.mxu1 %v12654_v33  ;;  %6631 = vmatmul.bf16.gmra.mxu3 %v12656_v58  ;;  %v12657_v33 = vld [vmem:[#allocation39_spill] sm:$0xff] }
 0x6dc   :  { %v6503_v40 = vpop.f32.mrf.mxu2  ;;  %v12659_v58 = vld [vmem:[#allocation71_spill] sm:$0xff] }
 0x6dd   :  { %v6504_v34 = vadd.f32 %v6503_v40, %v6415_v18 }
 0x6de   :  { %v6592_v20 = vpop.f32.mrf.mxu3  ;;  %v6327_v26 = vpop.f32.mrf.mxu0 }
 0x6df   :  { %v6328_v9 = vadd.f32 %v6327_v26, %v12030_v17  ;;  %v12058_v42 = vadd.f32 %v6592_v20, %v6504_v34 }
 0x6e0   :  { %v6416_v44 = vpop.f32.mrf.mxu1 }
 0x6e1   :  { %v6417_v11 = vadd.f32 %v6416_v44, %v6328_v9 }
 0x6e4   :  { %v6505_v13 = vpop.f32.mrf.mxu2 }
 0x6e5   :  { %v6506_v8 = vadd.f32 %v6505_v13, %v6417_v11  ;;  %v12661_v11 = vld [vmem:[#allocation41_spill] sm:$0xff] }
 0x6e6   :  { %v6594_v63 = vpop.f32.mrf.mxu3  ;;  %v6330_v55 = vpop.f32.mrf.mxu0  ;;  %v12663_v13 = vld [vmem:[#allocation73_spill] sm:$0xff] }
 0x6e7   :  { %v6331_v49 = vadd.f32 %v6330_v55, %v12030_v17  ;;  %v12061_v18 = vadd.f32 %v6594_v63, %v6506_v8  ;;  %v12664_v8 = vld [vmem:[#allocation74_spill] sm:$0xff]  ;;  %v8351_v63 = vld [vmem:[#allocation8 + $0x304] sm:$0xf]  ;;  %v8003_v55 = vld [vmem:[#allocation8 + $0x308] sm:$0xf0] }
 0x6e8   :  { %v6419_v46 = vpop.f32.mrf.mxu1 }
 0x6e9   :  { %v6420_v32 = vadd.f32 %v6419_v46, %v6331_v49  ;;  %6369 = vmatmul.bf16.gmra.mxu0 %v12657_v33  ;;  %6547 = vmatmul.bf16.gmra.mxu2 %v12659_v58  ;;  %v8319_v49 = vld [vmem:[#allocation8 + $0x204] sm:$0xf]  ;;  %v8006_v46 = vor.u32 %v8351_v63, %v8003_v55 }
 0x6ea   :  { %v8367_v33 = vld [vmem:[#allocation8 + $0x384] sm:$0xf] }
 0x6eb   :  { %6458 = vmatmul.bf16.gmra.mxu1 %v12658_v60  ;;  %6636 = vmatmul.bf16.gmra.mxu3 %v12660_v29  ;;  %v8067_v60 = vld [vmem:[#allocation8 + $0x388] sm:$0xf0]  ;;  %v12665_v55 = vld [vmem:[#allocation43_spill] sm:$0xff] }
 0x6ec   :  { %v6508_v37 = vpop.f32.mrf.mxu2  ;;  %6847 = vmatpush.bf16.msrb.mxu2 %v8006_v46  ;;  %v12667_v46 = vld [vmem:[#allocation75_spill] sm:$0xff] }
 0x6ed   :  { %v6509_v0 = vadd.f32 %v6508_v37, %v6420_v32  ;;  %v7875_v32 = vld [vmem:[#allocation8 + $0x208] sm:$0xf0]  ;;  %v8070_v37 = vor.u32 %v8367_v33, %v8067_v60 }
 0x6ee   :  { %v6597_v23 = vpop.f32.mrf.mxu3  ;;  %v6332_v2 = vpop.f32.mrf.mxu0  ;;  %v7878_v29 = vor.u32 %v8319_v49, %v7875_v32  ;;  %v12666_v49 = vld [vmem:[#allocation44_spill] sm:$0xff] }
 0x6ef   :  { %v6333_v57 = vadd.f32 %v6332_v2, %v12030_v17  ;;  %v12068_v40 = vadd.f32 %v6597_v23, %v6509_v0  ;;  %6936 = vmatpush.bf16.msrb.mxu3 %v8070_v37  ;;  %v12668_v32 = vld [vmem:[#allocation76_spill] sm:$0xff] }
 0x6f0   :  { %v6421_v25 = vpop.f32.mrf.mxu1  ;;  %6669 = vmatpush.bf16.msrb.mxu0 %v7878_v29 }
 0x6f1   :  { %v6422_v39 = vadd.f32 %v6421_v25, %v6333_v57 }
 0x6f4   :  { %v6510_v28 = vpop.f32.mrf.mxu2 }
 0x6f5   :  { %v6511_v34 = vadd.f32 %v6510_v28, %v6422_v39  ;;  %v8335_v28 = vld [vmem:[#allocation8 + $0x284] sm:$0xf] }
 0x6f6   :  { %v6599_v20 = vpop.f32.mrf.mxu3  ;;  %v6335_v26 = vpop.f32.mrf.mxu0 }
 0x6f7   :  { %v6336_v9 = vadd.f32 %v6335_v26, %v12030_v17  ;;  %v12071_v6 = vadd.f32 %v6599_v20, %v6511_v34  ;;  %v7939_v34 = vld [vmem:[#allocation8 + $0x288] sm:$0xf0] }
 0x6f8   :  { %v6424_v44 = vpop.f32.mrf.mxu1  ;;  %v7942_v26 = vor.u32 %v8335_v28, %v7939_v34 }
 0x6f9   :  { %v6425_v45 = vadd.f32 %v6424_v44, %v6336_v9  ;;  %6374 = vmatmul.bf16.gmra.mxu0 %v12661_v11  ;;  %6552 = vmatmul.bf16.gmra.mxu2 %v12663_v13 }
 0x6fa   :  { %6758 = vmatpush.bf16.msrb.mxu1 %v7942_v26 }
 0x6fb   :  { %6463 = vmatmul.bf16.gmra.mxu1 %v12662_v38  ;;  %6641 = vmatmul.bf16.gmra.mxu3 %v12664_v8 }
 0x6fc   :  { %v6513_v58 = vpop.f32.mrf.mxu2 }
 0x6fd   :  { %v6514_v0 = vadd.f32 %v6513_v58, %v6425_v45 }
 0x6fe   :  { %v6602_v23 = vpop.f32.mrf.mxu3  ;;  %v6337_v2 = vpop.f32.mrf.mxu0 }
 0x6ff   :  { %v6338_v57 = vadd.f32 %v6337_v2, %v12030_v17  ;;  %v12078_v39 = vadd.f32 %v6602_v23, %v6514_v0 }
 0x700   :  { %v6426_v25 = vpop.f32.mrf.mxu1 }
 0x701   :  { %v6427_v20 = vadd.f32 %v6426_v25, %v6338_v57 }
 0x704   :  { %v6515_v9 = vpop.f32.mrf.mxu2 }
 0x705   :  { %v6516_v44 = vadd.f32 %v6515_v9, %v6427_v20 }
 0x706   :  { %v6604_v11 = vpop.f32.mrf.mxu3  ;;  %v6340_v38 = vpop.f32.mrf.mxu0 }
 0x707   :  { %v6341_v45 = vadd.f32 %v6340_v38, %v12030_v17  ;;  %v12081_v8 = vadd.f32 %v6604_v11, %v6516_v44  ;;  %v12669_v11 = vld [vmem:[#allocation45_spill] sm:$0xff]  ;;  %v12670_v38 = vld [vmem:[#allocation46_spill] sm:$0xff] }
 0x708   :  { %v6429_v13 = vpop.f32.mrf.mxu1 }
 0x709   :  { %v6430_v63 = vadd.f32 %v6429_v13, %v6341_v45  ;;  %6379 = vmatmul.bf16.gmra.mxu0 %v12665_v55  ;;  %6557 = vmatmul.bf16.gmra.mxu2 %v12667_v46  ;;  %v12671_v45 = vld [vmem:[#allocation77_spill] sm:$0xff]  ;;  %v12672_v13 = vld [vmem:[#allocation78_spill] sm:$0xff] }
 0x70b   :  { %6468 = vmatmul.bf16.gmra.mxu1 %v12666_v49  ;;  %6646 = vmatmul.bf16.gmra.mxu3 %v12668_v32 }
 0x70c   :  { %v6518_v33 = vpop.f32.mrf.mxu2 }
 0x70d   :  { %v6519_v60 = vadd.f32 %v6518_v33, %v6430_v63 }
 0x70e   :  { %v6607_v58 = vpop.f32.mrf.mxu3  ;;  %v6342_v29 = vpop.f32.mrf.mxu0 }
 0x70f   :  { %v6343_v37 = vadd.f32 %v6342_v29, %v12030_v17  ;;  %v12088_v23 = vadd.f32 %v6607_v58, %v6519_v60 }
 0x710   :  { %v6431_v0 = vpop.f32.mrf.mxu1 }
 0x711   :  { %v6432_v2 = vadd.f32 %v6431_v0, %v6343_v37 }
 0x714   :  { %v6520_v57 = vpop.f32.mrf.mxu2 }
 0x715   :  { %v6521_v25 = vadd.f32 %v6520_v57, %v6432_v2 }
 0x716   :  { %v6609_v28 = vpop.f32.mrf.mxu3  ;;  %v6345_v34 = vpop.f32.mrf.mxu0 }
 0x717   :  { %v6346_v20 = vadd.f32 %v6345_v34, %v12030_v17  ;;  %v12091_v9 = vadd.f32 %v6609_v28, %v6521_v25 }
 0x718   :  { %v6434_v26 = vpop.f32.mrf.mxu1 }
 0x719   :  { %v6435_v44 = vadd.f32 %v6434_v26, %v6346_v20  ;;  %6384 = vmatmul.bf16.gmra.mxu0 %v12669_v11  ;;  %6562 = vmatmul.bf16.gmra.mxu2 %v12671_v45  ;;  %v12673_v20 = vld [vmem:[#allocation47_spill] sm:$0xff]  ;;  %v12674_v26 = vld [vmem:[#allocation48_spill] sm:$0xff] }
 0x71a   :  { %v12676_v11 = vld [vmem:[#allocation80_spill] sm:$0xff] }
 0x71b   :  { %6473 = vmatmul.bf16.gmra.mxu1 %v12670_v38  ;;  %6651 = vmatmul.bf16.gmra.mxu3 %v12672_v13 }
 0x71c   :  { %v6523_v63 = vpop.f32.mrf.mxu2 }
 0x71d   :  { %v6524_v55 = vadd.f32 %v6523_v63, %v6435_v44  ;;  %v12675_v44 = vld [vmem:[#allocation79_spill] sm:$0xff] }
 0x71e   :  { %v6612_v49 = vpop.f32.mrf.mxu3  ;;  %v6347_v46 = vpop.f32.mrf.mxu0 }
 0x71f   :  { %v6348_v32 = vadd.f32 %v6347_v46, %v12030_v17  ;;  %v12098_v60 = vadd.f32 %v6612_v49, %v6524_v55 }
 0x720   :  { %v6436_v33 = vpop.f32.mrf.mxu1 }
 0x721   :  { %v6437_v58 = vadd.f32 %v6436_v33, %v6348_v32 }
 0x724   :  { %v6525_v29 = vpop.f32.mrf.mxu2 }
 0x725   :  { %v6526_v37 = vadd.f32 %v6525_v29, %v6437_v58 }
 0x726   :  { %v6614_v0 = vpop.f32.mrf.mxu3  ;;  %v6350_v2 = vpop.f32.mrf.mxu0 }
 0x727   :  { %v6351_v57 = vadd.f32 %v6350_v2, %v12030_v17  ;;  %v12101_v28 = vadd.f32 %v6614_v0, %v6526_v37 }
 0x728   :  { %v6439_v25 = vpop.f32.mrf.mxu1 }
 0x729   :  { %v6440_v34 = vadd.f32 %v6439_v25, %v6351_v57  ;;  %6389 = vmatmul.bf16.gmra.mxu0 %v12673_v20  ;;  %6567 = vmatmul.bf16.gmra.mxu2 %v12675_v44  ;;  %v12677_v20 = vld [vmem:[#allocation81_spill] sm:$0xff] }
 0x72a   :  { %v12680_v44 = vld [vmem:[#allocation105_spill] sm:$0xff] }
 0x72b   :  { %6478 = vmatmul.bf16.gmra.mxu1 %v12674_v26  ;;  %6656 = vmatmul.bf16.gmra.mxu3 %v12676_v11  ;;  %v12679_v26 = vld [vmem:[#allocation104_spill] sm:$0xff] }
 0x72c   :  { %v6528_v38 = vpop.f32.mrf.mxu2 }
 0x72d   :  { %v6529_v45 = vadd.f32 %v6528_v38, %v6440_v34  ;;  %v12678_v34 = vld [vmem:[#allocation82_spill] sm:$0xff] }
 0x72e   :  { %v6617_v13 = vpop.f32.mrf.mxu3  ;;  %v6352_v63 = vpop.f32.mrf.mxu0 }
 0x72f   :  { %v6353_v55 = vadd.f32 %v6352_v63, %v12030_v17  ;;  %v12108_v46 = vadd.f32 %v6617_v13, %v6529_v45 }
 0x730   :  { %v6441_v49 = vpop.f32.mrf.mxu1 }
 0x731   :  { %v6442_v32 = vadd.f32 %v6441_v49, %v6353_v55 }
 0x734   :  { %v6530_v33 = vpop.f32.mrf.mxu2 }
 0x735   :  { %v6531_v58 = vadd.f32 %v6530_v33, %v6442_v32 }
 0x736   :  { %v6619_v29 = vpop.f32.mrf.mxu3  ;;  %v6355_v37 = vpop.f32.mrf.mxu0 }
 0x737   :  { %v6356_v0 = vadd.f32 %v6355_v37, %v12030_v17  ;;  %v12111_v57 = vadd.f32 %v6619_v29, %v6531_v58 }
 0x738   :  { %v6444_v2 = vpop.f32.mrf.mxu1 }
 0x739   :  { %v6445_v25 = vadd.f32 %v6444_v2, %v6356_v0  ;;  %6670 = vmatmul.bf16.vlgmr.msrb.gmra.mxu0 %v12677_v20  ;;  %6848 = vmatmul.bf16.vlgmr.msrb.gmra.mxu2 %v12679_v26  ;;  %v12682_v26 = vld [vmem:[#allocation83_spill] sm:$0xff] }
 0x73b   :  { %6759 = vmatmul.bf16.vlgmr.msrb.gmra.mxu1 %v12678_v34  ;;  %6937 = vmatmul.bf16.vlgmr.msrb.gmra.mxu3 %v12680_v44  ;;  %v12684_v44 = vld [vmem:[#allocation106_spill] sm:$0xff] }
 0x73c   :  { %v6533_v11 = vpop.f32.mrf.mxu2 }
 0x73d   :  { %v6534_v38 = vadd.f32 %v6533_v11, %v6445_v25  ;;  %v12683_v25 = vld [vmem:[#allocation84_spill] sm:$0xff]  ;;  %v12685_v11 = vld [vmem:[#allocation107_spill] sm:$0xff] }
 0x73e   :  { %v6622_v45 = vpop.f32.mrf.mxu3  ;;  %v6357_v13 = vpop.f32.mrf.mxu0 }
 0x73f   :  { %v6358_v63 = vadd.f32 %v6357_v13, %v12030_v17  ;;  %v12118_v49 = vadd.f32 %v6622_v45, %v6534_v38 }
 0x740   :  { %v6446_v55 = vpop.f32.mrf.mxu1 }
 0x741   :  { %v6447_v32 = vadd.f32 %v6446_v55, %v6358_v63 }
 0x744   :  { %v6535_v33 = vpop.f32.mrf.mxu2 }
 0x745   :  { %v6536_v58 = vadd.f32 %v6535_v33, %v6447_v32 }
 0x746   :  { %v6624_v29 = vpop.f32.mrf.mxu3  ;;  %v6360_v37 = vpop.f32.mrf.mxu0 }
 0x747   :  { %v6361_v0 = vadd.f32 %v6360_v37, %v12030_v17  ;;  %v12121_v20 = vadd.f32 %v6624_v29, %v6536_v58 }
 0x748   :  { %v6449_v2 = vpop.f32.mrf.mxu1 }
 0x749   :  { %12681 = vst [vmem:[#allocation93_spill] sm:$0xff] %v12121_v20  ;;  %v6450_v34 = vadd.f32 %v6449_v2, %v6361_v0  ;;  %6675 = vmatmul.bf16.gmra.mxu0 %v12682_v26  ;;  %6853 = vmatmul.bf16.gmra.mxu2 %v12684_v44  ;;  %v12688_v20 = vld [vmem:[#allocation85_spill] sm:$0xff] }
 0x74b   :  { %6764 = vmatmul.bf16.gmra.mxu1 %v12683_v25  ;;  %6942 = vmatmul.bf16.gmra.mxu3 %v12685_v11 }
 0x74c   :  { %v6538_v38 = vpop.f32.mrf.mxu2 }
 0x74d   :  { %v6539_v45 = vadd.f32 %v6538_v38, %v6450_v34  ;;  %v12689_v34 = vld [vmem:[#allocation86_spill] sm:$0xff]  ;;  %v12690_v38 = vld [vmem:[#allocation108_spill] sm:$0xff] }
 0x74e   :  { %v6627_v13 = vpop.f32.mrf.mxu3  ;;  %v6362_v63 = vpop.f32.mrf.mxu0 }
 0x74f   :  { %v6363_v55 = vadd.f32 %v6362_v63, %v12030_v17  ;;  %v12128_v33 = vadd.f32 %v6627_v13, %v6539_v45  ;;  %v12691_v63 = vld [vmem:[#allocation109_spill] sm:$0xff] }
 0x750   :  { %v6451_v32 = vpop.f32.mrf.mxu1 }
 0x751   :  { %12686 = vst [vmem:[#allocation118_spill] sm:$0xff] %v12128_v33  ;;  %v6452_v58 = vadd.f32 %v6451_v32, %v6363_v55  ;;  %v12694_v33 = vld [vmem:[#allocation87_spill] sm:$0xff] }
 0x754   :  { %v6540_v29 = vpop.f32.mrf.mxu2 }
 0x755   :  { %v6541_v37 = vadd.f32 %v6540_v29, %v6452_v58 }
 0x756   :  { %v6629_v0 = vpop.f32.mrf.mxu3  ;;  %v6365_v2 = vpop.f32.mrf.mxu0 }
 0x757   :  { %v6366_v26 = vadd.f32 %v6365_v2, %v12030_v17  ;;  %v12131_v44 = vadd.f32 %v6629_v0, %v6541_v37 }
 0x758   :  { %v6454_v25 = vpop.f32.mrf.mxu1 }
 0x759   :  { %12687 = vst [vmem:[#allocation119_spill] sm:$0xff] %v12131_v44  ;;  %v6455_v11 = vadd.f32 %v6454_v25, %v6366_v26  ;;  %6680 = vmatmul.bf16.gmra.mxu0 %v12688_v20  ;;  %6858 = vmatmul.bf16.gmra.mxu2 %v12690_v38 }
 0x75b   :  { %6769 = vmatmul.bf16.gmra.mxu1 %v12689_v34  ;;  %6947 = vmatmul.bf16.gmra.mxu3 %v12691_v63 }
 0x75c   :  { %v6543_v45 = vpop.f32.mrf.mxu2 }
 0x75d   :  { %v6544_v13 = vadd.f32 %v6543_v45, %v6455_v11  ;;  %v12695_v11 = vld [vmem:[#allocation88_spill] sm:$0xff]  ;;  %v12696_v45 = vld [vmem:[#allocation110_spill] sm:$0xff] }
 0x75e   :  { %v6632_v55 = vpop.f32.mrf.mxu3  ;;  %v6367_v32 = vpop.f32.mrf.mxu0 }
 0x75f   :  { %v6368_v58 = vadd.f32 %v6367_v32, %v12030_v17  ;;  %v12138_v2 = vadd.f32 %v6632_v55, %v6544_v13  ;;  %v12697_v32 = vld [vmem:[#allocation111_spill] sm:$0xff] }
 0x760   :  { %v6456_v29 = vpop.f32.mrf.mxu1 }
 0x761   :  { %12692 = vst [vmem:[#allocation94_spill] sm:$0xff] %v12138_v2  ;;  %v6457_v37 = vadd.f32 %v6456_v29, %v6368_v58  ;;  %v12699_v2 = vld [vmem:[#allocation89_spill] sm:$0xff] }
 0x764   :  { %v6545_v0 = vpop.f32.mrf.mxu2 }
 0x765   :  { %v6546_v26 = vadd.f32 %v6545_v0, %v6457_v37 }
 0x766   :  { %v6634_v25 = vpop.f32.mrf.mxu3  ;;  %v6370_v20 = vpop.f32.mrf.mxu0 }
 0x767   :  { %v6371_v34 = vadd.f32 %v6370_v20, %v12030_v17  ;;  %v12141_v38 = vadd.f32 %v6634_v25, %v6546_v26 }
 0x768   :  { %v6459_v44 = vpop.f32.mrf.mxu1 }
 0x769   :  { %12693 = vst [vmem:[#allocation95_spill] sm:$0xff] %v12141_v38  ;;  %v6460_v63 = vadd.f32 %v6459_v44, %v6371_v34  ;;  %6685 = vmatmul.bf16.gmra.mxu0 %v12694_v33  ;;  %6863 = vmatmul.bf16.gmra.mxu2 %v12696_v45 }
 0x76b   :  { %6774 = vmatmul.bf16.gmra.mxu1 %v12695_v11  ;;  %6952 = vmatmul.bf16.gmra.mxu3 %v12697_v32 }
 0x76c   :  { %v6548_v13 = vpop.f32.mrf.mxu2 }
 0x76d   :  { %v6549_v55 = vadd.f32 %v6548_v13, %v6460_v63  ;;  %v12700_v63 = vld [vmem:[#allocation90_spill] sm:$0xff]  ;;  %v12701_v13 = vld [vmem:[#allocation23_spill] sm:$0xff] }
 0x76e   :  { %v6637_v58 = vpop.f32.mrf.mxu3  ;;  %v6372_v29 = vpop.f32.mrf.mxu0 }
 0x76f   :  { %v6373_v37 = vadd.f32 %v6372_v29, %v12030_v17  ;;  %v12148_v20 = vadd.f32 %v6637_v58, %v6549_v55  ;;  %v12702_v29 = vld [vmem:[#allocation24_spill] sm:$0xff] }
 0x770   :  { %v6461_v0 = vpop.f32.mrf.mxu1 }
 0x771   :  { %v6462_v26 = vadd.f32 %v6461_v0, %v6373_v37 }
 0x774   :  { %v6550_v25 = vpop.f32.mrf.mxu2 }
 0x775   :  { %v6551_v44 = vadd.f32 %v6550_v25, %v6462_v26 }
 0x776   :  { %v6639_v34 = vpop.f32.mrf.mxu3  ;;  %v6375_v33 = vpop.f32.mrf.mxu0 }
 0x777   :  { %v6376_v11 = vadd.f32 %v6375_v33, %v12030_v17  ;;  %v12151_v45 = vadd.f32 %v6639_v34, %v6551_v44 }
 0x778   :  { %v6464_v38 = vpop.f32.mrf.mxu1 }
 0x779   :  { %12698 = vst [vmem:[#allocation120_spill] sm:$0xff] %v12151_v45  ;;  %v6465_v32 = vadd.f32 %v6464_v38, %v6376_v11  ;;  %6690 = vmatmul.bf16.gmra.mxu0 %v12699_v2  ;;  %6868 = vmatmul.bf16.gmra.mxu2 %v12701_v13 }
 0x77b   :  { %6779 = vmatmul.bf16.gmra.mxu1 %v12700_v63  ;;  %6957 = vmatmul.bf16.gmra.mxu3 %v12702_v29 }
 0x77c   :  { %v6553_v55 = vpop.f32.mrf.mxu2 }
 0x77d   :  { %v6554_v58 = vadd.f32 %v6553_v55, %v6465_v32  ;;  %v12704_v32 = vld [vmem:[#allocation112_spill] sm:$0xff]  ;;  %v12705_v55 = vld [vmem:[#allocation113_spill] sm:$0xff] }
 0x77e   :  { %v6642_v37 = vpop.f32.mrf.mxu3  ;;  %v6377_v0 = vpop.f32.mrf.mxu0 }
 0x77f   :  { %v6378_v26 = vadd.f32 %v6377_v0, %v12030_v17  ;;  %v12158_v33 = vadd.f32 %v6642_v37, %v6554_v58 }
 0x780   :  { %v6466_v25 = vpop.f32.mrf.mxu1 }
 0x781   :  { %v6467_v44 = vadd.f32 %v6466_v25, %v6378_v26 }
 0x784   :  { %v6555_v34 = vpop.f32.mrf.mxu2 }
 0x785   :  { %v6556_v38 = vadd.f32 %v6555_v34, %v6467_v44 }
 0x786   :  { %v6644_v11 = vpop.f32.mrf.mxu3  ;;  %v6380_v2 = vpop.f32.mrf.mxu0 }
 0x787   :  { %v6381_v63 = vadd.f32 %v6380_v2, %v12030_v17  ;;  %v12161_v13 = vadd.f32 %v6644_v11, %v6556_v38 }
 0x788   :  { %v6469_v45 = vpop.f32.mrf.mxu1 }
 0x789   :  { %12703 = vst [vmem:[#allocation121_spill] sm:$0xff] %v12161_v13  ;;  %v6470_v29 = vadd.f32 %v6469_v45, %v6381_v63  ;;  %6695 = vmatmul.bf16.gmra.mxu0 %v10755_v7  ;;  %6873 = vmatmul.bf16.gmra.mxu2 %v12704_v32  ;;  %v12707_v13 = vld [vmem:[#allocation91_spill] sm:$0xff] }
 0x78b   :  { %6784 = vmatmul.bf16.gmra.mxu1 %v10769_v51  ;;  %6962 = vmatmul.bf16.gmra.mxu3 %v12705_v55 }
 0x78c   :  { %v6558_v58 = vpop.f32.mrf.mxu2 }
 0x78d   :  { %v6559_v37 = vadd.f32 %v6558_v58, %v6470_v29  ;;  %v12708_v29 = vld [vmem:[#allocation92_spill] sm:$0xff]  ;;  %v12709_v58 = vld [vmem:[#allocation114_spill] sm:$0xff] }
 0x78e   :  { %v6647_v0 = vpop.f32.mrf.mxu3  ;;  %v6382_v26 = vpop.f32.mrf.mxu0 }
 0x78f   :  { %v6383_v25 = vadd.f32 %v6382_v26, %v12030_v17  ;;  %v12168_v34 = vadd.f32 %v6647_v0, %v6559_v37  ;;  %v12710_v26 = vld [vmem:[#allocation115_spill] sm:$0xff] }
 0x790   :  { %v6471_v44 = vpop.f32.mrf.mxu1 }
 0x791   :  { %v6472_v38 = vadd.f32 %v6471_v44, %v6383_v25 }
 0x794   :  { %v6560_v11 = vpop.f32.mrf.mxu2 }
 0x795   :  { %v6561_v45 = vadd.f32 %v6560_v11, %v6472_v38 }
 0x796   :  { %v6649_v2 = vpop.f32.mrf.mxu3  ;;  %v6385_v7 = vpop.f32.mrf.mxu0 }
 0x797   :  { %v6386_v51 = vadd.f32 %v6385_v7, %v12030_v17  ;;  %v12171_v32 = vadd.f32 %v6649_v2, %v6561_v45 }
 0x798   :  { %v6474_v63 = vpop.f32.mrf.mxu1 }
 0x799   :  { %12706 = vst [vmem:[#allocation96_spill] sm:$0xff] %v12171_v32  ;;  %v6475_v55 = vadd.f32 %v6474_v63, %v6386_v51  ;;  %6700 = vmatmul.bf16.gmra.mxu0 %v12707_v13  ;;  %6878 = vmatmul.bf16.gmra.mxu2 %v12709_v58 }
 0x79b   :  { %6789 = vmatmul.bf16.gmra.mxu1 %v12708_v29  ;;  %6967 = vmatmul.bf16.gmra.mxu3 %v12710_v26 }
 0x79c   :  { %v6563_v37 = vpop.f32.mrf.mxu2 }
 0x79d   :  { %v6564_v0 = vadd.f32 %v6563_v37, %v6475_v55 }
 0x79e   :  { %v6652_v25 = vpop.f32.mrf.mxu3  ;;  %v6387_v44 = vpop.f32.mrf.mxu0 }
 0x79f   :  { %v6388_v38 = vadd.f32 %v6387_v44, %v12030_v17  ;;  %v12178_v7 = vadd.f32 %v6652_v25, %v6564_v0 }
 0x7a0   :  { %v6476_v11 = vpop.f32.mrf.mxu1 }
 0x7a1   :  { %v6477_v45 = vadd.f32 %v6476_v11, %v6388_v38 }
 0x7a4   :  { %v6565_v2 = vpop.f32.mrf.mxu2 }
 0x7a5   :  { %v6566_v51 = vadd.f32 %v6565_v2, %v6477_v45 }
 0x7a6   :  { %v6654_v63 = vpop.f32.mrf.mxu3  ;;  %v6390_v13 = vpop.f32.mrf.mxu0 }
 0x7a7   :  { %v6391_v29 = vadd.f32 %v6390_v13, %v12030_v17  ;;  %v12181_v58 = vadd.f32 %v6654_v63, %v6566_v51 }
 0x7a8   :  { %v6479_v32 = vpop.f32.mrf.mxu1 }
 0x7a9   :  { %v6480_v26 = vadd.f32 %v6479_v32, %v6391_v29  ;;  %6705 = vmatmul.bf16.gmra.mxu0 %v10835_v4  ;;  %6883 = vmatmul.bf16.gmra.mxu2 %v11479_v19 }
 0x7ab   :  { %6794 = vmatmul.bf16.gmra.mxu1 %v10849_v41  ;;  %6972 = vmatmul.bf16.gmra.mxu3 %v11493_v16  ;;  %v12711_v16 = vld [vmem:[#allocation116_spill] sm:$0xff] }
 0x7ac   :  { %v6568_v55 = vpop.f32.mrf.mxu2 }
 0x7ad   :  { %v6569_v37 = vadd.f32 %v6568_v55, %v6480_v26 }
 0x7ae   :  { %v6657_v0 = vpop.f32.mrf.mxu3  ;;  %v6392_v25 = vpop.f32.mrf.mxu0 }
 0x7af   :  { %v6393_v44 = vadd.f32 %v6392_v25, %v12030_v17  ;;  %v12188_v11 = vadd.f32 %v6657_v0, %v6569_v37  ;;  %v12712_v17 = vld [vmem:[#allocation117_spill] sm:$0xff] }
 0x7b0   :  { %v6481_v38 = vpop.f32.mrf.mxu1 }
 0x7b1   :  { %v6482_v45 = vadd.f32 %v6481_v38, %v6393_v44 }
 0x7b4   :  { %v6570_v2 = vpop.f32.mrf.mxu2 }
 0x7b5   :  { %v6571_v32 = vadd.f32 %v6570_v2, %v6482_v45 }
 0x7b6   :  { %v6659_v51 = vpop.f32.mrf.mxu3  ;;  %v6671_v4 = vpop.f32.mrf.mxu0 }
 0x7b7   :  { %v12190_v41 = vadd.f32 %v6659_v51, %v6571_v32  ;;  %v6672_v19 = vadd.f32 %v6671_v4, %v12038_v21 }
 0x7b8   :  { %v6760_v63 = vpop.f32.mrf.mxu1 }
 0x7b9   :  { %6710 = vmatmul.bf16.gmra.mxu0 %v10872_v30  ;;  %6888 = vmatmul.bf16.gmra.mxu2 %v12711_v16  ;;  %v6761_v13 = vadd.f32 %v6760_v63, %v6672_v19 }
 0x7bb   :  { %6799 = vmatmul.bf16.gmra.mxu1 %v10889_v62  ;;  %6977 = vmatmul.bf16.gmra.mxu3 %v12712_v17 }
 0x7bc   :  { %v6849_v29 = vpop.f32.mrf.mxu2 }
 0x7bd   :  { %v6850_v26 = vadd.f32 %v6849_v29, %v6761_v13 }
 0x7be   :  { %v6938_v55 = vpop.f32.mrf.mxu3  ;;  %v6673_v37 = vpop.f32.mrf.mxu0 }
 0x7bf   :  { %v6939_v25 = vadd.f32 %v6938_v55, %v6850_v26  ;;  %v6674_v44 = vadd.f32 %v6673_v37, %v12041_v27 }
 0x7c0   :  { %v6762_v0 = vpop.f32.mrf.mxu1 }
 0x7c1   :  { %7019 = vst [vmem:[#allocation10 + $0x8] sm:$0xff] %v6939_v25  ;;  %v6763_v38 = vadd.f32 %v6762_v0, %v6674_v44 }
 0x7c4   :  { %v6851_v21 = vpop.f32.mrf.mxu2 }
 0x7c5   :  { %v6852_v45 = vadd.f32 %v6851_v21, %v6763_v38 }
 0x7c6   :  { %v6940_v30 = vpop.f32.mrf.mxu3  ;;  %v6676_v2 = vpop.f32.mrf.mxu0 }
 0x7c7   :  { %v6941_v32 = vadd.f32 %v6940_v30, %v6852_v45  ;;  %v6677_v51 = vadd.f32 %v6676_v2, %v12048_v22 }
 0x7c8   :  { %v6765_v62 = vpop.f32.mrf.mxu1 }
 0x7c9   :  { %6715 = vmatmul.bf16.gmra.mxu0 %v10915_v43  ;;  %7021 = vst [vmem:[#allocation10 + $0x18] sm:$0xff] %v6941_v32  ;;  %6893 = vmatmul.bf16.gmra.mxu2 %v11559_v36  ;;  %v6766_v27 = vadd.f32 %v6765_v62, %v6677_v51 }
 0x7cb   :  { %6804 = vmatmul.bf16.gmra.mxu1 %v10929_v3  ;;  %6982 = vmatmul.bf16.gmra.mxu3 %v11573_v35 }
 0x7cc   :  { %v6854_v4 = vpop.f32.mrf.mxu2 }
 0x7cd   :  { %v6855_v63 = vadd.f32 %v6854_v4, %v6766_v27 }
 0x7ce   :  { %v6943_v19 = vpop.f32.mrf.mxu3  ;;  %v6678_v16 = vpop.f32.mrf.mxu0 }
 0x7cf   :  { %v6944_v13 = vadd.f32 %v6943_v19, %v6855_v63  ;;  %v6679_v29 = vadd.f32 %v6678_v16, %v12051_v31 }
 0x7d0   :  { %v6767_v17 = vpop.f32.mrf.mxu1 }
 0x7d1   :  { %7023 = vst [vmem:[#allocation10 + $0x28] sm:$0xff] %v6944_v13  ;;  %v6768_v22 = vadd.f32 %v6767_v17, %v6679_v29 }
 0x7d4   :  { %v6856_v26 = vpop.f32.mrf.mxu2 }
 0x7d5   :  { %v6857_v43 = vadd.f32 %v6856_v26, %v6768_v22 }
 0x7d6   :  { %v6945_v55 = vpop.f32.mrf.mxu3  ;;  %v6681_v37 = vpop.f32.mrf.mxu0 }
 0x7d7   :  { %v6946_v0 = vadd.f32 %v6945_v55, %v6857_v43  ;;  %v6682_v36 = vadd.f32 %v6681_v37, %v12058_v42  ;;  %v12714_v43 = vld [vmem:[#allocation122_spill] sm:$0xff]  ;;  %v12715_v55 = vld [vmem:[#allocation123_spill] sm:$0xff] }
 0x7d8   :  { %v6770_v3 = vpop.f32.mrf.mxu1 }
 0x7d9   :  { %6720 = vmatmul.bf16.gmra.mxu0 %v10952_v54  ;;  %7025 = vst [vmem:[#allocation10 + $0x38] sm:$0xff] %v6946_v0  ;;  %6898 = vmatmul.bf16.gmra.mxu2 %v12590_v61  ;;  %v6771_v35 = vadd.f32 %v6770_v3, %v6682_v36 }
 0x7db   :  { %6809 = vmatmul.bf16.gmra.mxu1 %v12589_v15  ;;  %6987 = vmatmul.bf16.gmra.mxu3 %v12591_v50 }
 0x7dc   :  { %v6859_v31 = vpop.f32.mrf.mxu2 }
 0x7dd   :  { %v6860_v25 = vadd.f32 %v6859_v31, %v6771_v35 }
 0x7de   :  { %v6948_v44 = vpop.f32.mrf.mxu3  ;;  %v6683_v38 = vpop.f32.mrf.mxu0 }
 0x7df   :  { %v6949_v45 = vadd.f32 %v6948_v44, %v6860_v25  ;;  %v6684_v30 = vadd.f32 %v6683_v38, %v12061_v18 }
 0x7e0   :  { %v6772_v21 = vpop.f32.mrf.mxu1 }
 0x7e1   :  { %7027 = vst [vmem:[#allocation10 + $0x48] sm:$0xff] %v6949_v45  ;;  %v6773_v42 = vadd.f32 %v6772_v21, %v6684_v30 }
 0x7e4   :  { %v6861_v2 = vpop.f32.mrf.mxu2 }
 0x7e5   :  { %v6862_v54 = vadd.f32 %v6861_v2, %v6773_v42 }
 0x7e6   :  { %v6950_v62 = vpop.f32.mrf.mxu3  ;;  %v6686_v32 = vpop.f32.mrf.mxu0 }
 0x7e7   :  { %v6951_v51 = vadd.f32 %v6950_v62, %v6862_v54  ;;  %v6687_v61 = vadd.f32 %v6686_v32, %v12068_v40 }
 0x7e8   :  { %v6775_v15 = vpop.f32.mrf.mxu1 }
 0x7e9   :  { %6725 = vmatmul.bf16.gmra.mxu0 %v12592_v47  ;;  %7029 = vst [vmem:[#allocation10 + $0x58] sm:$0xff] %v6951_v51  ;;  %6903 = vmatmul.bf16.gmra.mxu2 %v12594_v53  ;;  %v6776_v50 = vadd.f32 %v6775_v15, %v6687_v61 }
 0x7eb   :  { %6814 = vmatmul.bf16.gmra.mxu1 %v12593_v48  ;;  %6992 = vmatmul.bf16.gmra.mxu3 %v12595_v59  ;;  %v12713_v59 = vld [vmem:[#allocation97_spill] sm:$0xff] }
 0x7ec   :  { %v6864_v18 = vpop.f32.mrf.mxu2 }
 0x7ed   :  { %v6865_v27 = vadd.f32 %v6864_v18, %v6776_v50 }
 0x7ee   :  { %v6953_v4 = vpop.f32.mrf.mxu3  ;;  %v6688_v63 = vpop.f32.mrf.mxu0 }
 0x7ef   :  { %v6954_v16 = vadd.f32 %v6953_v4, %v6865_v27  ;;  %v6689_v17 = vadd.f32 %v6688_v63, %v12071_v6  ;;  %v12717_v63 = vld [vmem:[#allocation124_spill] sm:$0xff] }
 0x7f0   :  { %v6777_v19 = vpop.f32.mrf.mxu1 }
 0x7f1   :  { %7031 = vst [vmem:[#allocation10 + $0x68] sm:$0xff] %v6954_v16  ;;  %v6778_v40 = vadd.f32 %v6777_v19, %v6689_v17  ;;  %v12718_v19 = vld [vmem:[#allocation125_spill] sm:$0xff] }
 0x7f4   :  { %v6866_v13 = vpop.f32.mrf.mxu2 }
 0x7f5   :  { %v6867_v47 = vadd.f32 %v6866_v13, %v6778_v40 }
 0x7f6   :  { %v6955_v29 = vpop.f32.mrf.mxu3  ;;  %v6691_v22 = vpop.f32.mrf.mxu0 }
 0x7f7   :  { %v6956_v26 = vadd.f32 %v6955_v29, %v6867_v47  ;;  %v6692_v53 = vadd.f32 %v6691_v22, %v12078_v39 }
 0x7f8   :  { %v6780_v48 = vpop.f32.mrf.mxu1 }
 0x7f9   :  { %6730 = vmatmul.bf16.gmra.mxu0 %v12596_v10  ;;  %7033 = vst [vmem:[#allocation10 + $0x78] sm:$0xff] %v6956_v26  ;;  %6908 = vmatmul.bf16.gmra.mxu2 %v12714_v43  ;;  %v6781_v6 = vadd.f32 %v6780_v48, %v6692_v53 }
 0x7fb   :  { %6819 = vmatmul.bf16.gmra.mxu1 %v12713_v59  ;;  %6997 = vmatmul.bf16.gmra.mxu3 %v12715_v55 }
 0x7fc   :  { %v6869_v37 = vpop.f32.mrf.mxu2 }
 0x7fd   :  { %v6870_v3 = vadd.f32 %v6869_v37, %v6781_v6  ;;  %v12719_v6 = vld [vmem:[#allocation126_spill] sm:$0xff]  ;;  %v12720_v37 = vld [vmem:[#allocation127_spill] sm:$0xff] }
 0x7fe   :  { %v6958_v0 = vpop.f32.mrf.mxu3  ;;  %v6693_v36 = vpop.f32.mrf.mxu0 }
 0x7ff   :  { %v6959_v31 = vadd.f32 %v6958_v0, %v6870_v3  ;;  %v6694_v25 = vadd.f32 %v6693_v36, %v12081_v8 }
 0x800   :  { %v6782_v35 = vpop.f32.mrf.mxu1 }
 0x801   :  { %7035 = vst [vmem:[#allocation10 + $0x88] sm:$0xff] %v6959_v31  ;;  %v6783_v39 = vadd.f32 %v6782_v35, %v6694_v25 }
 0x804   :  { %v6871_v44 = vpop.f32.mrf.mxu2 }
 0x805   :  { %v6872_v10 = vadd.f32 %v6871_v44, %v6783_v39 }
 0x806   :  { %v6960_v38 = vpop.f32.mrf.mxu3  ;;  %v6696_v21 = vpop.f32.mrf.mxu0 }
 0x807   :  { %v6961_v30 = vadd.f32 %v6960_v38, %v6872_v10  ;;  %v6697_v42 = vadd.f32 %v6696_v21, %v12088_v23 }
 0x808   :  { %v6785_v45 = vpop.f32.mrf.mxu1 }
 0x809   :  { %6735 = vmatmul.bf16.gmra.mxu0 %v12600_v5  ;;  %7037 = vst [vmem:[#allocation10 + $0x98] sm:$0xff] %v6961_v30  ;;  %6913 = vmatmul.bf16.gmra.mxu2 %v11719_v1  ;;  %v6786_v8 = vadd.f32 %v6785_v45, %v6697_v42 }
 0x80b   :  { %6824 = vmatmul.bf16.gmra.mxu1 %v12601_v12  ;;  %7002 = vmatmul.bf16.gmra.mxu3 %v11736_v52  ;;  %v12716_v52 = vld [vmem:[#allocation101_spill] sm:$0xff] }
 0x80c   :  { %v6874_v2 = vpop.f32.mrf.mxu2 }
 0x80d   :  { %v6875_v54 = vadd.f32 %v6874_v2, %v6786_v8 }
 0x80e   :  { %v6963_v62 = vpop.f32.mrf.mxu3  ;;  %v6698_v32 = vpop.f32.mrf.mxu0 }
 0x80f   :  { %v6964_v51 = vadd.f32 %v6963_v62, %v6875_v54  ;;  %v6699_v61 = vadd.f32 %v6698_v32, %v12091_v9 }
 0x810   :  { %v6787_v15 = vpop.f32.mrf.mxu1 }
 0x811   :  { %7039 = vst [vmem:[#allocation10 + $0xa8] sm:$0xff] %v6964_v51  ;;  %v6788_v23 = vadd.f32 %v6787_v15, %v6699_v61  ;;  %v12721_v15 = vld [vmem:[#allocation93_spill] sm:$0xff] }
 0x814   :  { %v6876_v50 = vpop.f32.mrf.mxu2 }
 0x815   :  { %v6877_v5 = vadd.f32 %v6876_v50, %v6788_v23 }
 0x816   :  { %v6965_v18 = vpop.f32.mrf.mxu3  ;;  %v6701_v27 = vpop.f32.mrf.mxu0 }
 0x817   :  { %v6966_v4 = vadd.f32 %v6965_v18, %v6877_v5  ;;  %v6702_v1 = vadd.f32 %v6701_v27, %v12098_v60 }
 0x818   :  { %v6790_v12 = vpop.f32.mrf.mxu1 }
 0x819   :  { %6740 = vmatmul.bf16.gmra.mxu0 %v12603_v56  ;;  %7041 = vst [vmem:[#allocation10 + $0xb8] sm:$0xff] %v6966_v4  ;;  %6918 = vmatmul.bf16.gmra.mxu2 %v12717_v63  ;;  %v6791_v9 = vadd.f32 %v6790_v12, %v6702_v1  ;;  %v12722_v12 = vld [vmem:[#allocation118_spill] sm:$0xff] }
 0x81b   :  { %6829 = vmatmul.bf16.gmra.mxu1 %v12716_v52  ;;  %7007 = vmatmul.bf16.gmra.mxu3 %v12718_v19 }
 0x81c   :  { %v6879_v16 = vpop.f32.mrf.mxu2 }
 0x81d   :  { %v6880_v17 = vadd.f32 %v6879_v16, %v6791_v9 }
 0x81e   :  { %v6968_v40 = vpop.f32.mrf.mxu3  ;;  %v6703_v13 = vpop.f32.mrf.mxu0 }
 0x81f   :  { %v6969_v29 = vadd.f32 %v6968_v40, %v6880_v17  ;;  %v6704_v22 = vadd.f32 %v6703_v13, %v12101_v28  ;;  %v12723_v17 = vld [vmem:[#allocation119_spill] sm:$0xff] }
 0x820   :  { %v6792_v47 = vpop.f32.mrf.mxu1 }
 0x821   :  { %7043 = vst [vmem:[#allocation10 + $0xc8] sm:$0xff] %v6969_v29  ;;  %v6793_v60 = vadd.f32 %v6792_v47, %v6704_v22 }
 0x824   :  { %v6881_v48 = vpop.f32.mrf.mxu2 }
 0x825   :  { %v6882_v56 = vadd.f32 %v6881_v48, %v6793_v60 }
 0x826   :  { %v6970_v26 = vpop.f32.mrf.mxu3  ;;  %v6706_v53 = vpop.f32.mrf.mxu0 }
 0x827   :  { %v6971_v43 = vadd.f32 %v6970_v26, %v6882_v56  ;;  %v6707_v55 = vadd.f32 %v6706_v53, %v12108_v46  ;;  %v12724_v26 = vld [vmem:[#allocation94_spill] sm:$0xff] }
 0x828   :  { %v6795_v59 = vpop.f32.mrf.mxu1 }
 0x829   :  { %6745 = vmatmul.bf16.gmra.mxu0 %v12608_v24  ;;  %7045 = vst [vmem:[#allocation10 + $0xd8] sm:$0xff] %v6971_v43  ;;  %6923 = vmatmul.bf16.gmra.mxu2 %v12719_v6  ;;  %v6796_v28 = vadd.f32 %v6795_v59, %v6707_v55 }
 0x82b   :  { %6834 = vmatmul.bf16.gmra.mxu1 %v12609_v14  ;;  %7012 = vmatmul.bf16.gmra.mxu3 %v12720_v37 }
 0x82c   :  { %v6884_v3 = vpop.f32.mrf.mxu2 }
 0x82d   :  { %v6885_v0 = vadd.f32 %v6884_v3, %v6796_v28 }
 0x82e   :  { %v6973_v36 = vpop.f32.mrf.mxu3  ;;  %v6708_v35 = vpop.f32.mrf.mxu0 }
 0x82f   :  { %v6974_v25 = vadd.f32 %v6973_v36, %v6885_v0  ;;  %v6709_v39 = vadd.f32 %v6708_v35, %v12111_v57  ;;  %v12725_v0 = vld [vmem:[#allocation95_spill] sm:$0xff] }
 0x830   :  { %v6797_v31 = vpop.f32.mrf.mxu1 }
 0x831   :  { %7047 = vst [vmem:[#allocation10 + $0xe8] sm:$0xff] %v6974_v25  ;;  %v6798_v46 = vadd.f32 %v6797_v31, %v6709_v39 }
 0x834   :  { %v6886_v44 = vpop.f32.mrf.mxu2 }
 0x835   :  { %v6887_v24 = vadd.f32 %v6886_v44, %v6798_v46 }
 0x836   :  { %v6975_v10 = vpop.f32.mrf.mxu3  ;;  %v6711_v38 = vpop.f32.mrf.mxu0 }
 0x837   :  { %v6976_v21 = vadd.f32 %v6975_v10, %v6887_v24  ;;  %v6712_v45 = vadd.f32 %v6711_v38, %v12118_v49 }
 0x838   :  { %v6800_v14 = vpop.f32.mrf.mxu1 }
 0x839   :  { %7049 = vst [vmem:[#allocation10 + $0xf8] sm:$0xff] %v6976_v21  ;;  %v6801_v30 = vadd.f32 %v6800_v14, %v6712_v45 }
 0x83c   :  { %v6889_v42 = vpop.f32.mrf.mxu2 }
 0x83d   :  { %v6890_v8 = vadd.f32 %v6889_v42, %v6801_v30 }
 0x83e   :  { %v6978_v2 = vpop.f32.mrf.mxu3  ;;  %v6713_v54 = vpop.f32.mrf.mxu0 }
 0x83f   :  { %v6979_v32 = vadd.f32 %v6978_v2, %v6890_v8  ;;  %v6714_v57 = vadd.f32 %v6713_v54, %v12721_v15  ;;  %v12726_v2 = vld [vmem:[#allocation120_spill] sm:$0xff] }
 0x840   :  { %v6802_v62 = vpop.f32.mrf.mxu1 }
 0x841   :  { %7051 = vst [vmem:[#allocation10 + $0x108] sm:$0xff] %v6979_v32  ;;  %v6803_v51 = vadd.f32 %v6802_v62, %v6714_v57 }
 0x844   :  { %v6891_v61 = vpop.f32.mrf.mxu2 }
 0x845   :  { %v6892_v23 = vadd.f32 %v6891_v61, %v6803_v51 }
 0x846   :  { %v6980_v50 = vpop.f32.mrf.mxu3  ;;  %v6716_v5 = vpop.f32.mrf.mxu0 }
 0x847   :  { %v6981_v27 = vadd.f32 %v6980_v50, %v6892_v23  ;;  %v6717_v49 = vadd.f32 %v6716_v5, %v12722_v12 }
 0x848   :  { %v6805_v18 = vpop.f32.mrf.mxu1 }
 0x849   :  { %7053 = vst [vmem:[#allocation10 + $0x118] sm:$0xff] %v6981_v27  ;;  %v6806_v4 = vadd.f32 %v6805_v18, %v6717_v49 }
 0x84c   :  { %v6894_v1 = vpop.f32.mrf.mxu2 }
 0x84d   :  { %v6895_v52 = vadd.f32 %v6894_v1, %v6806_v4  ;;  %v12727_v1 = vld [vmem:[#allocation121_spill] sm:$0xff] }
 0x84e   :  { %v6983_v63 = vpop.f32.mrf.mxu3  ;;  %v6718_v19 = vpop.f32.mrf.mxu0 }
 0x84f   :  { %v6984_v16 = vadd.f32 %v6983_v63, %v6895_v52  ;;  %v6719_v40 = vadd.f32 %v6718_v19, %v12723_v17 }
 0x850   :  { %v6807_v9 = vpop.f32.mrf.mxu1 }
 0x851   :  { %7055 = vst [vmem:[#allocation10 + $0x128] sm:$0xff] %v6984_v16  ;;  %v6808_v13 = vadd.f32 %v6807_v9, %v6719_v40 }
 0x854   :  { %v6896_v47 = vpop.f32.mrf.mxu2 }
 0x855   :  { %v6897_v29 = vadd.f32 %v6896_v47, %v6808_v13 }
 0x856   :  { %v6985_v22 = vpop.f32.mrf.mxu3  ;;  %v6721_v60 = vpop.f32.mrf.mxu0 }
 0x857   :  { %v6986_v56 = vadd.f32 %v6985_v22, %v6897_v29  ;;  %v6722_v53 = vadd.f32 %v6721_v60, %v12724_v26 }
 0x858   :  { %v6810_v48 = vpop.f32.mrf.mxu1 }
 0x859   :  { %7057 = vst [vmem:[#allocation10 + $0x138] sm:$0xff] %v6986_v56  ;;  %v6811_v59 = vadd.f32 %v6810_v48, %v6722_v53  ;;  %v12728_v53 = vld [vmem:[#allocation96_spill] sm:$0xff] }
 0x85c   :  { %v6899_v43 = vpop.f32.mrf.mxu2 }
 0x85d   :  { %v6900_v55 = vadd.f32 %v6899_v43, %v6811_v59 }
 0x85e   :  { %v6988_v6 = vpop.f32.mrf.mxu3  ;;  %v6723_v37 = vpop.f32.mrf.mxu0 }
 0x85f   :  { %v6989_v3 = vadd.f32 %v6988_v6, %v6900_v55  ;;  %v6724_v36 = vadd.f32 %v6723_v37, %v12725_v0 }
 0x860   :  { %v6812_v28 = vpop.f32.mrf.mxu1 }
 0x861   :  { %7059 = vst [vmem:[#allocation10 + $0x148] sm:$0xff] %v6989_v3  ;;  %v6813_v35 = vadd.f32 %v6812_v28, %v6724_v36 }
 0x864   :  { %v6901_v31 = vpop.f32.mrf.mxu2 }
 0x865   :  { %v6902_v25 = vadd.f32 %v6901_v31, %v6813_v35 }
 0x866   :  { %v6990_v39 = vpop.f32.mrf.mxu3  ;;  %v6726_v46 = vpop.f32.mrf.mxu0 }
 0x867   :  { %v6991_v24 = vadd.f32 %v6990_v39, %v6902_v25  ;;  %v6727_v10 = vadd.f32 %v6726_v46, %v12148_v20 }
 0x868   :  { %v6815_v44 = vpop.f32.mrf.mxu1 }
 0x869   :  { %7061 = vst [vmem:[#allocation10 + $0x158] sm:$0xff] %v6991_v24  ;;  %v6816_v38 = vadd.f32 %v6815_v44, %v6727_v10 }
 0x86c   :  { %v6904_v14 = vpop.f32.mrf.mxu2 }
 0x86d   :  { %v6905_v21 = vadd.f32 %v6904_v14, %v6816_v38 }
 0x86e   :  { %v6993_v45 = vpop.f32.mrf.mxu3  ;;  %v6728_v30 = vpop.f32.mrf.mxu0 }
 0x86f   :  { %v6994_v8 = vadd.f32 %v6993_v45, %v6905_v21  ;;  %v6729_v54 = vadd.f32 %v6728_v30, %v12726_v2 }
 0x870   :  { %v6817_v42 = vpop.f32.mrf.mxu1 }
 0x871   :  { %7063 = vst [vmem:[#allocation10 + $0x168] sm:$0xff] %v6994_v8  ;;  %v6818_v62 = vadd.f32 %v6817_v42, %v6729_v54 }
 0x874   :  { %v6906_v32 = vpop.f32.mrf.mxu2 }
 0x875   :  { %v6907_v15 = vadd.f32 %v6906_v32, %v6818_v62 }
 0x876   :  { %v6995_v57 = vpop.f32.mrf.mxu3  ;;  %v6731_v51 = vpop.f32.mrf.mxu0 }
 0x877   :  { %v6996_v23 = vadd.f32 %v6995_v57, %v6907_v15  ;;  %v6732_v20 = vadd.f32 %v6731_v51, %v12158_v33 }
 0x878   :  { %v6820_v61 = vpop.f32.mrf.mxu1 }
 0x879   :  { %7065 = vst [vmem:[#allocation10 + $0x178] sm:$0xff] %v6996_v23  ;;  %v6821_v50 = vadd.f32 %v6820_v61, %v6732_v20 }
 0x87c   :  { %v6909_v5 = vpop.f32.mrf.mxu2 }
 0x87d   :  { %v6910_v18 = vadd.f32 %v6909_v5, %v6821_v50 }
 0x87e   :  { %v6998_v27 = vpop.f32.mrf.mxu3  ;;  %v6733_v12 = vpop.f32.mrf.mxu0 }
 0x87f   :  { %v6999_v4 = vadd.f32 %v6998_v27, %v6910_v18  ;;  %v6734_v52 = vadd.f32 %v6733_v12, %v12727_v1 }
 0x880   :  { %v6822_v49 = vpop.f32.mrf.mxu1 }
 0x881   :  { %7067 = vst [vmem:[#allocation10 + $0x188] sm:$0xff] %v6999_v4  ;;  %v6823_v63 = vadd.f32 %v6822_v49, %v6734_v52 }
 0x884   :  { %v6911_v19 = vpop.f32.mrf.mxu2 }
 0x885   :  { %v6912_v9 = vadd.f32 %v6911_v19, %v6823_v63 }
 0x886   :  { %v7000_v16 = vpop.f32.mrf.mxu3  ;;  %v6736_v17 = vpop.f32.mrf.mxu0 }
 0x887   :  { %v7001_v13 = vadd.f32 %v7000_v16, %v6912_v9  ;;  %v6737_v33 = vadd.f32 %v6736_v17, %v12168_v34 }
 0x888   :  { %v6825_v40 = vpop.f32.mrf.mxu1 }
 0x889   :  { %7069 = vst [vmem:[#allocation10 + $0x198] sm:$0xff] %v7001_v13  ;;  %v6826_v47 = vadd.f32 %v6825_v40, %v6737_v33 }
 0x88c   :  { %v6914_v29 = vpop.f32.mrf.mxu2 }
 0x88d   :  { %v6915_v22 = vadd.f32 %v6914_v29, %v6826_v47 }
 0x88e   :  { %v7003_v60 = vpop.f32.mrf.mxu3  ;;  %v6738_v48 = vpop.f32.mrf.mxu0 }
 0x88f   :  { %v7004_v26 = vadd.f32 %v7003_v60, %v6915_v22  ;;  %v6739_v59 = vadd.f32 %v6738_v48, %v12728_v53 }
 0x890   :  { %v6827_v56 = vpop.f32.mrf.mxu1 }
 0x891   :  { %7071 = vst [vmem:[#allocation10 + $0x1a8] sm:$0xff] %v7004_v26  ;;  %v6828_v43 = vadd.f32 %v6827_v56, %v6739_v59 }
 0x894   :  { %v6916_v55 = vpop.f32.mrf.mxu2 }
 0x895   :  { %v6917_v6 = vadd.f32 %v6916_v55, %v6828_v43 }
 0x896   :  { %v7005_v37 = vpop.f32.mrf.mxu3  ;;  %v6741_v28 = vpop.f32.mrf.mxu0 }
 0x897   :  { %v7006_v0 = vadd.f32 %v7005_v37, %v6917_v6  ;;  %v6742_v34 = vadd.f32 %v6741_v28, %v12178_v7 }
 0x898   :  { %v6830_v3 = vpop.f32.mrf.mxu1 }
 0x899   :  { %7073 = vst [vmem:[#allocation10 + $0x1b8] sm:$0xff] %v7006_v0  ;;  %v6831_v36 = vadd.f32 %v6830_v3, %v6742_v34 }
 0x89c   :  { %v6919_v35 = vpop.f32.mrf.mxu2 }
 0x89d   :  { %v6920_v31 = vadd.f32 %v6919_v35, %v6831_v36 }
 0x89e   :  { %v7008_v25 = vpop.f32.mrf.mxu3  ;;  %v6743_v39 = vpop.f32.mrf.mxu0 }
 0x89f   :  { %v7009_v44 = vadd.f32 %v7008_v25, %v6920_v31  ;;  %v6744_v24 = vadd.f32 %v6743_v39, %v12181_v58 }
 0x8a0   :  { %v6832_v46 = vpop.f32.mrf.mxu1 }
 0x8a1   :  { %7075 = vst [vmem:[#allocation10 + $0x1c8] sm:$0xff] %v7009_v44  ;;  %v6833_v10 = vadd.f32 %v6832_v46, %v6744_v24 }
 0x8a4   :  { %v6921_v38 = vpop.f32.mrf.mxu2 }
 0x8a5   :  { %v6922_v14 = vadd.f32 %v6921_v38, %v6833_v10 }
 0x8a6   :  { %v7010_v21 = vpop.f32.mrf.mxu3  ;;  %v6746_v45 = vpop.f32.mrf.mxu0 }
 0x8a7   :  { %v7011_v30 = vadd.f32 %v7010_v21, %v6922_v14  ;;  %v6747_v42 = vadd.f32 %v6746_v45, %v12188_v11 }
 0x8a8   :  { %v6835_v7 = vpop.f32.mrf.mxu1 }
 0x8a9   :  { %7077 = vst [vmem:[#allocation10 + $0x1d8] sm:$0xff] %v7011_v30  ;;  %v6836_v8 = vadd.f32 %v6835_v7, %v6747_v42 }
 0x8ac   :  { %v6924_v2 = vpop.f32.mrf.mxu2 }
 0x8ad   :  { %v6925_v54 = vadd.f32 %v6924_v2, %v6836_v8 }
 0x8ae   :  { %v7013_v62 = vpop.f32.mrf.mxu3  ;;  %v6748_v32 = vpop.f32.mrf.mxu0 }
 0x8af   :  { %v7014_v15 = vadd.f32 %v7013_v62, %v6925_v54  ;;  %v6749_v57 = vadd.f32 %v6748_v32, %v12190_v41 }
 0x8b0   :  { %v6837_v58 = vpop.f32.mrf.mxu1 }
 0x8b1   :  { %7079 = vst [vmem:[#allocation10 + $0x1e8] sm:$0xff] %v7014_v15  ;;  %v6838_v51 = vadd.f32 %v6837_v58, %v6749_v57 }
 0x8b4   :  { %v6926_v61 = vpop.f32.mrf.mxu2 }
 0x8b5   :  { %v6927_v23 = vadd.f32 %v6926_v61, %v6838_v51 }
 0x8b6   :  { %v7015_v20 = vpop.f32.mrf.mxu3 }
 0x8b7   :  { %v7016_v50 = vadd.f32 %v7015_v20, %v6927_v23 }
 0x8b9   :  { %7081 = vst [vmem:[#allocation10 + $0x1f8] sm:$0xff] %v7016_v50 }
 0x8ba   :  { %7085 = vsyncadd [#allocation4], 7680  ;;  %s7088_s20 = sshll.u32 %s12267_s5, 4  ;;  %s9048_s21 = smov [#allocation10]   ;;  %s7089_s20 = int_to_ptr.hbm [resolvable:$true] %s7088_s20 }
 0x8bb   :  { %s7086_s22 = sshll.u32 %s9048_s21, 4  ;;  %s7087_s22 = int_to_ptr.vmem [resolvable:$true] %s7086_s22 }
 0x8bc   :  { %7094 = dma.vmem_to_hbm [thread:$0]  %s7087_s22, 512, %s7089_s20, [#allocation4], %s9042_s30, %s9042_s30, %s9043_s6  }
 0x8bd   :  { %9036 = dma.done.wait [#allocation4], 8192  }
 0x8be   :  { %9037 = vsyncadd [#allocation4], 4294959104 }
 0x8bf   :  { %7099 = vsyncpa [#allocation3], 1 }
 0x8c0   :  { %7100 = vsyncpa [#allocation6], 1 }
 0x8c1   :  { %7101 = vsyncpa [#allocation9], 1 }
 0x8c2   :  { %7102 = vsyncpa [#allocation4], 1 }

</bundles_post_ra>
